<compile_context>
chip_gen: v7x
topology: tpu7x:2x2x1
jax: 0.10.0
libtpu: 0.0.40
codegen_flags: <defaults>
</compile_context>

<pallas_src>
import functools

import numpy as np
import jax
import jax.numpy as jnp
from jax.experimental import pallas as pl
from jax.experimental.pallas import tpu as pltpu

_WPAD = 16  # padded half-width (output-column pairs) held per feature-map row


# ----------------------------------------------------------------------------
# Parameter prep: BN folding + kernel-friendly weight layouts (host side, once)
# ----------------------------------------------------------------------------

def _fold_bn(gamma, beta, mean, var, eps=1e-5):
    scale = gamma / np.sqrt(var + eps)
    shift = beta - mean * scale
    return scale, shift


def prep_conv(w_oihw, bias, bn, cout_pad, eps=1e-5):
    """Fold BN into a conv weight, pad Cout, and build the parity-packed
    (K*NS, 2*Cin, 2*Cout_pad) weight used by the fused conv+pool kernel.

    Column parity j of the conv output lives in lane half j of the matmul output;
    lane phase p of the merged input picks the even/odd source column."""
    w = np.asarray(w_oihw, np.float32)                      # (O, Cin, K, K)
    b = np.asarray(bias, np.float32)
    gamma, beta, mean, var = (np.asarray(t, np.float32) for t in bn)
    scale, shift = _fold_bn(gamma, beta, mean, var, eps)

    O, Cin, K, _ = w.shape
    wf = np.transpose(w * scale[:, None, None, None], (2, 3, 1, 0))  # (K, K, Cin, O)
    bf = b * scale + shift
    if cout_pad > O:                                        # pad output channels (zeros)
        wf = np.pad(wf, ((0, 0), (0, 0), (0, 0), (0, cout_pad - O)))
        bf = np.pad(bf, (0, cout_pad - O))

    NS = K // 2 + 1                                         # width shifts s in [0, NS)
    packed = np.zeros((K, NS, 2 * Cin, 2 * cout_pad), np.float32)
    for dh in range(K):
        for s in range(NS):
            for j in range(2):                              # output-column parity
                for p in range(2):                          # input lane phase
                    dw = 2 * s + p - j
                    if 0 <= dw < K:
                        packed[dh, s, p * Cin:(p + 1) * Cin,
                               j * cout_pad:(j + 1) * cout_pad] = wf[dh, dw]
    packed = packed.reshape(K * NS, 2 * Cin, 2 * cout_pad)
    return (jnp.asarray(packed, jnp.bfloat16),
            jnp.asarray(bf.reshape(1, cout_pad), jnp.float32))


def prep_head(params, eps=1e-5):
    """Fold BN, remap the fc rows to the NHWC (padded-C) flatten order, pack the
    two 512->100 matmuls into one lane-dense 512->256 matmul and pad the final
    10-/2-way heads to 128 lanes (pad logits forced to -1e30)."""
    code = params["fc_w"].shape[1]
    n_class = params["cls2_w"].shape[1]

    s_fc, t_fc = _fold_bn(*(np.asarray(t, np.float32) for t in params["bn_fc"]), eps=eps)
    fc_w = np.asarray(params["fc_w"], np.float32)           # rows in PyTorch (c, h, w) order
    fc_b = np.asarray(params["fc_b"], np.float32)
    w = fc_w.reshape(50, 4, 4, code).transpose(1, 2, 0, 3)  # -> (h, w, c, code)
    w = np.pad(w, ((0, 0), (0, 0), (0, 64 - 50), (0, 0)))   # pad channel dim to 64
    wfc = w.reshape(4 * 4 * 64, code) * s_fc[None, :]
    bfc = fc_b * s_fc + t_fc

    s_c, t_c = _fold_bn(*(np.asarray(t, np.float32) for t in params["bn_cls"]), eps=eps)
    s_d, t_d = _fold_bn(*(np.asarray(t, np.float32) for t in params["bn_dom"]), eps=eps)
    wh = np.zeros((code, 256), np.float32)                  # [cls 100 | pad | dom 100 | pad]
    bh = np.zeros((256,), np.float32)
    wh[:, 0:100] = np.asarray(params["cls1_w"], np.float32) * s_c[None, :]
    bh[0:100] = np.asarray(params["cls1_b"], np.float32) * s_c + t_c
    wh[:, 128:228] = np.asarray(params["dom1_w"], np.float32) * s_d[None, :]
    bh[128:228] = np.asarray(params["dom1_b"], np.float32) * s_d + t_d

    NEG = -1e30
    wc = np.zeros((128, 128), np.float32)
    bc = np.full((128,), NEG, np.float32)
    wc[:100, :n_class] = np.asarray(params["cls2_w"], np.float32)
    bc[:n_class] = np.asarray(params["cls2_b"], np.float32)
    wd = np.zeros((128, 128), np.float32)
    bd = np.full((128,), NEG, np.float32)
    wd[:100, :2] = np.asarray(params["dom2_w"], np.float32)
    bd[:2] = np.asarray(params["dom2_b"], np.float32)

    bf16 = lambda a: jnp.asarray(a, jnp.bfloat16)
    row = lambda a: jnp.asarray(a.reshape(1, -1), jnp.float32)
    return (bf16(wfc), row(bfc), bf16(wh), row(bh),
            bf16(wc), row(bc), bf16(wd), row(bd))


def prepare_params(params):
    w1, b1 = prep_conv(params["conv1_w"], params["conv1_b"], params["bn1"], cout_pad=64)
    w2, b2 = prep_conv(params["conv2_w"], params["conv2_b"], params["bn2"], cout_pad=64)
    return {"conv1": (w1, b1), "conv2": (w2, b2), "head": prep_head(params)}


# ----------------------------------------------------------------------------
# Pallas kernels
# ----------------------------------------------------------------------------

def conv_pool_relu_kernel(x_ref, w_ref, b_ref, o_ref, acc_ref, *, K, Ho, Wp, Cout):
    """Fused Conv(KxK, valid) + folded BN/bias + MaxPool2d(2) + ReLU, per image.

    x_ref : (ROWS, 2*Cin) bf16 -- rows are (h * _WPAD + pw); lane phase p selects
                                  even/odd source column 2*pw + p.
    w_ref : (K*NS, 2*Cin, 2*Cout) bf16 -- parity-packed, BN-folded weights.
    b_ref : (1, Cout) f32
    o_ref : (Hp, Wp, Cout) bf16 -- pooled + ReLU'd output.
    acc_ref: (Ho*_WPAD, 2*Cout) f32 scratch accumulator.
    """
    NS = K // 2 + 1
    M = Ho * _WPAD
    first = True
    for dh in range(K):
        for s in range(NS):
            start = dh * _WPAD + s
            slab = x_ref[start:start + M, :]                      # (M, 2*Cin) bf16
            contrib = jnp.dot(slab, w_ref[dh * NS + s],
                              preferred_element_type=jnp.float32)  # (M, 2*Cout) f32
            if first:
                acc_ref[...] = contrib
                first = False
            else:
                acc_ref[...] += contrib

    b = b_ref[...]                                                # (1, Cout)
    for r in range(Ho // 2):
        base = 2 * r * _WPAD
        pair = jnp.maximum(acc_ref[base:base + _WPAD, :],
                           acc_ref[base + _WPAD:base + 2 * _WPAD, :])   # pool over H
        pooled = jnp.maximum(pair[:, :Cout], pair[:, Cout:])            # pool over W (parity)
        pooled = jnp.maximum(pooled[:Wp, :] + b, 0.0)                   # bias + ReLU
        o_ref[r] = pooled.astype(o_ref.dtype)


def head_kernel(x_ref, wfc_ref, bfc_ref, wh_ref, bh_ref,
                wc_ref, bc_ref, wd_ref, bd_ref, cls_ref, dom_ref):
    """Whole FC head: fc(1024->512)+ReLU, packed hidden (512->256)+ReLU,
    class/domain logits (128->128 padded) + log-softmax."""
    x = x_ref[...]                                                        # (TM, 1024) bf16
    f = jnp.dot(x, wfc_ref[...], preferred_element_type=jnp.float32) + bfc_ref[...]
    f = jnp.maximum(f, 0.0).astype(jnp.bfloat16)                          # feature
    h = jnp.dot(f, wh_ref[...], preferred_element_type=jnp.float32) + bh_ref[...]
    h = jnp.maximum(h, 0.0).astype(jnp.bfloat16)                          # [cls|pad|dom|pad]
    zc = jnp.dot(h[:, :128], wc_ref[...], preferred_element_type=jnp.float32) + bc_ref[...]
    zd = jnp.dot(h[:, 128:], wd_ref[...], preferred_element_type=jnp.float32) + bd_ref[...]

    def logsoftmax(z):
        m = jnp.max(z, axis=1, keepdims=True)
        lse = jnp.log(jnp.sum(jnp.exp(z - m), axis=1, keepdims=True)) + m
        return z - lse

    cls_ref[...] = logsoftmax(zc)
    dom_ref[...] = logsoftmax(zd)


# ----------------------------------------------------------------------------
# Pallas wrappers
# ----------------------------------------------------------------------------

def conv_pool_relu(x_nhwc, w_packed, bias, K=5):
    B, H, W, Cin = x_nhwc.shape
    Ho, Wo = H - K + 1, W - K + 1
    Hp, Wp = Ho // 2, Wo // 2
    NS = K // 2 + 1
    Cout = w_packed.shape[-1] // 2
    Wh = W // 2
    assert W % 2 == 0 and Ho % 2 == 0 and Wo % 2 == 0
    assert Wh <= _WPAD and Wp + NS - 1 <= Wh
    assert w_packed.shape[1] == 2 * Cin

    # merge W-pairs into lanes (free reshape), pad half-width to _WPAD, flatten
    # (H, _WPAD) into rows and pad a few extra rows so shifted slabs stay in bounds
    xw = x_nhwc.astype(jnp.bfloat16).reshape(B, H, Wh, 2 * Cin)
    xw = jnp.pad(xw, ((0, 0), (0, 0), (0, _WPAD - Wh), (0, 0)))
    flat = xw.reshape(B, H * _WPAD, 2 * Cin)
    rows_needed = (K - 1) * _WPAD + (NS - 1) + Ho * _WPAD
    rows_pad = pl.cdiv(rows_needed, 16) * 16
    flat = jnp.pad(flat, ((0, 0), (0, rows_pad - H * _WPAD), (0, 0)))

    kern = functools.partial(conv_pool_relu_kernel, K=K, Ho=Ho, Wp=Wp, Cout=Cout)
    return pl.pallas_call(
        kern,
        out_shape=jax.ShapeDtypeStruct((B, Hp, Wp, Cout), jnp.bfloat16),
        grid=(B,),
        in_specs=[
            pl.BlockSpec((None, rows_pad, 2 * Cin), lambda b: (b, 0, 0)),
            pl.BlockSpec(w_packed.shape, lambda b: (0, 0, 0)),
            pl.BlockSpec((1, Cout), lambda b: (0, 0)),
        ],
        out_specs=pl.BlockSpec((None, Hp, Wp, Cout), lambda b: (b, 0, 0, 0)),
        scratch_shapes=[pltpu.VMEM((Ho * _WPAD, 2 * Cout), jnp.float32)],
        compiler_params=pltpu.CompilerParams(dimension_semantics=("parallel",)),
    )(flat, w_packed, bias)


def head_forward(feat, head_params):
    wfc, bfc, wh, bh, wc, bc, wd, bd = head_params
    B, Kin = feat.shape
    if B <= 128:
        TM, Bp = B, B
    else:
        TM = 128
        Bp = pl.cdiv(B, TM) * TM
    if Bp != B:
        feat = jnp.pad(feat, ((0, Bp - B), (0, 0)))

    full = lambda a: pl.BlockSpec(a.shape, lambda i: (0,) * a.ndim)
    cls_full, dom_full = pl.pallas_call(
        head_kernel,
        out_shape=(jax.ShapeDtypeStruct((Bp, 128), jnp.float32),
                   jax.ShapeDtypeStruct((Bp, 128), jnp.float32)),
        grid=(Bp // TM,),
        in_specs=[pl.BlockSpec((TM, Kin), lambda i: (i, 0)),
                  full(wfc), full(bfc), full(wh), full(bh),
                  full(wc), full(bc), full(wd), full(bd)],
        out_specs=[pl.BlockSpec((TM, 128), lambda i: (i, 0)),
                   pl.BlockSpec((TM, 128), lambda i: (i, 0))],
        compiler_params=pltpu.CompilerParams(dimension_semantics=("parallel",)),
    )(feat.astype(jnp.bfloat16), wfc, bfc, wh, bh, wc, bc, wd, bd)
    return cls_full[:B], dom_full[:B]


# ----------------------------------------------------------------------------
# DANN forward
# ----------------------------------------------------------------------------

def dann_forward(prepped, x_nchw, alpha=1.0, n_class=10):
    del alpha  # ReverseLayerF is identity in the forward pass
    B = x_nchw.shape[0]
    x = jnp.transpose(x_nchw, (0, 2, 3, 1))                 # NCHW -> NHWC
    w1, b1 = prepped["conv1"]
    y1 = conv_pool_relu(x, w1, b1)                          # (B, 12, 12, 64)
    w2, b2 = prepped["conv2"]
    y2 = conv_pool_relu(y1, w2, b2)                         # (B, 4, 4, 64) (chans 50..63 = 0)
    feat = y2.reshape(B, -1)                                # NHWC flatten; fc rows pre-permuted
    cls_full, dom_full = head_forward(feat, prepped["head"])
    return cls_full[:, :n_class], dom_full[:, :2]


# ----------------------------------------------------------------------------
# Parameter init + pure-JAX reference (for the self-check)
# ----------------------------------------------------------------------------

def init_params(key, code_size=512, n_class=10):
    ks = jax.random.split(key, 14)
    r = lambda k, shape, s=0.05: jax.random.normal(k, shape, jnp.float32) * s
    bn = lambda n: (jnp.ones((n,), jnp.float32), jnp.zeros((n,), jnp.float32),
                    jnp.zeros((n,), jnp.float32), jnp.ones((n,), jnp.float32))
    return {
        "conv1_w": r(ks[0], (64, 3, 5, 5)),   "conv1_b": r(ks[1], (64,)),
        "conv2_w": r(ks[2], (50, 64, 5, 5)),  "conv2_b": r(ks[3], (50,)),
        "fc_w":    r(ks[4], (50 * 4 * 4, code_size)), "fc_b": r(ks[5], (code_size,)),
        "cls1_w":  r(ks[6], (code_size, 100)), "cls1_b": r(ks[7], (100,)),
        "cls2_w":  r(ks[8], (100, n_class)),   "cls2_b": r(ks[9], (n_class,)),
        "dom1_w":  r(ks[10], (code_size, 100)), "dom1_b": r(ks[11], (100,)),
        "dom2_w":  r(ks[12], (100, 2)),         "dom2_b": r(ks[13], (2,)),
        "bn1": bn(64), "bn2": bn(50), "bn_fc": bn(code_size),
        "bn_cls": bn(100), "bn_dom": bn(100),
    }


def dann_reference(params, x_nchw, eps=1e-5):
    def bn(y, bnp):
        gamma, beta, mean, var = bnp
        scale = gamma / jnp.sqrt(var + eps)
        shift = beta - mean * scale
        if y.ndim == 4:
            return y * scale[None, :, None, None] + shift[None, :, None, None]
        return y * scale[None, :] + shift[None, :]

    def conv(y, w, b):
        y = jax.lax.conv_general_dilated(y, w, (1, 1), "VALID",
                                         dimension_numbers=("NCHW", "OIHW", "NCHW"))
        return y + b[None, :, None, None]

    pool = lambda y: jax.lax.reduce_window(y, -jnp.inf, jax.lax.max,
                                           (1, 1, 2, 2), (1, 1, 2, 2), "VALID")
    y = jnp.maximum(pool(bn(conv(x_nchw, params["conv1_w"], params["conv1_b"]),
                            params["bn1"])), 0.0)
    y = jnp.maximum(pool(bn(conv(y, params["conv2_w"], params["conv2_b"]),
                            params["bn2"])), 0.0)
    feat = y.reshape(y.shape[0], -1)
    f = jnp.maximum(bn(feat @ params["fc_w"] + params["fc_b"], params["bn_fc"]), 0.0)
    hc = jnp.maximum(bn(f @ params["cls1_w"] + params["cls1_b"], params["bn_cls"]), 0.0)
    hd = jnp.maximum(bn(f @ params["dom1_w"] + params["dom1_b"], params["bn_dom"]), 0.0)
    zc = hc @ params["cls2_w"] + params["cls2_b"]
    zd = hd @ params["dom2_w"] + params["dom2_b"]
    return jax.nn.log_softmax(zc, axis=1), jax.nn.log_softmax(zd, axis=1)


# ----------------------------------------------------------------------------

if __name__ == "__main__":
    key = jax.random.PRNGKey(0)
    k_param, k_x = jax.random.split(key)

    params = init_params(k_param, code_size=512, n_class=10)
    prepped = prepare_params(params)

    # Architecture requires 28x28 input (28 -5+1=24 ->12 -5+1=8 ->4 => 50*4*4).
    x = jax.random.normal(k_x, (2, 3, 28, 28), jnp.float32)

    fwd = jax.jit(dann_forward, static_argnames=("n_class",))
    class_out, domain_out = fwd(prepped, x, 1.0, n_class=10)
    jax.block_until_ready((class_out, domain_out))

    assert class_out.shape == (2, 10) and domain_out.shape == (2, 2)
    # log-softmax rows must sum to ~1 in probability space
    assert jnp.allclose(jnp.sum(jnp.exp(class_out), axis=1), 1.0, atol=1e-3)
    assert jnp.allclose(jnp.sum(jnp.exp(domain_out), axis=1), 1.0, atol=1e-3)

    # compare against a pure-JAX f32 reference (kernels use bf16 -> loose tol)
    ref_c, ref_d = jax.jit(dann_reference)(params, x)
    jax.block_until_ready((ref_c, ref_d))
    assert float(jnp.max(jnp.abs(class_out - ref_c))) < 0.1
    assert float(jnp.max(jnp.abs(domain_out - ref_d))) < 0.1

    print("KERNEL_OK")
</pallas_src>

<mosaic_0001>
module attributes {stable_mosaic.version = 11 : i64} {
  func.func @conv_pool_relu_kernel(%arg0: i32, %arg1: memref<1x464x6xbf16, #tpu.memory_space<vmem>>, %arg2: memref<15x6x128xbf16, #tpu.memory_space<vmem>>, %arg3: memref<1x64xf32, #tpu.memory_space<vmem>>, %arg4: memref<1x12x12x64xbf16, #tpu.memory_space<vmem>>, %arg5: memref<384x128xf32, #tpu.memory_space<vmem>>) attributes {dimension_semantics = [#tpu.dimension_semantics<parallel>], iteration_bounds = array<i64: 2>, scalar_prefetch = 0 : i64, scratch_operands = 1 : i64, tpu.core_type = #tpu.core_type<tc>, window_params = [{transform_indices = @transform_0, window_bounds = array<i64: 1, 464, 6>}, {pipeline_mode = #tpu.pipeline_mode<synchronous>, transform_indices = @transform_1, window_bounds = array<i64: 15, 6, 128>}, {pipeline_mode = #tpu.pipeline_mode<synchronous>, transform_indices = @transform_2, window_bounds = array<i64: 1, 64>}, {transform_indices = @transform_3, window_bounds = array<i64: 1, 12, 12, 64>}]} {
    %c0 = arith.constant 0 : index
    %c0_0 = arith.constant 0 : index
    %c0_1 = arith.constant 0 : index
    %0 = vector.load %arg1[%c0, %c0_0, %c0_1] : memref<1x464x6xbf16, #tpu.memory_space<vmem>>, vector<1x384x6xbf16>
    %1 = vector.shape_cast %0 : vector<1x384x6xbf16> to vector<384x6xbf16>
    %c0_2 = arith.constant 0 : index
    %c0_3 = arith.constant 0 : index
    %c0_4 = arith.constant 0 : index
    %2 = vector.load %arg2[%c0_2, %c0_3, %c0_4] : memref<15x6x128xbf16, #tpu.memory_space<vmem>>, vector<1x6x128xbf16>
    %3 = vector.shape_cast %2 : vector<1x6x128xbf16> to vector<6x128xbf16>
    %cst = arith.constant dense<0.000000e+00> : vector<384x128xf32>
    %4 = tpu.matmul %1, %3, %cst {dimension_numbers = #tpu.dot_dimension_numbers<[1], [0], [0], [1], [0, 0, 1, 1], [], []>} : vector<384x6xbf16>, vector<6x128xbf16>, vector<384x128xf32> -> vector<384x128xf32>
    %c0_5 = arith.constant 0 : index
    %c0_6 = arith.constant 0 : index
    %5 = vector.load %arg5[%c0_5, %c0_6] : memref<384x128xf32, #tpu.memory_space<vmem>>, vector<384x128xf32>
    tpu.vector_store %arg5[%c0_5, %c0_6], %4 {strides = array<i32>} : memref<384x128xf32, #tpu.memory_space<vmem>>, vector<384x128xf32>,
    %c0_7 = arith.constant 0 : index
    %c1 = arith.constant 1 : index
    %c0_8 = arith.constant 0 : index
    %6 = vector.load %arg1[%c0_7, %c1, %c0_8] : memref<1x464x6xbf16, #tpu.memory_space<vmem>>, vector<1x384x6xbf16>
    %7 = vector.shape_cast %6 : vector<1x384x6xbf16> to vector<384x6xbf16>
    %c1_9 = arith.constant 1 : index
    %c0_10 = arith.constant 0 : index
    %c0_11 = arith.constant 0 : index
    %8 = vector.load %arg2[%c1_9, %c0_10, %c0_11] : memref<15x6x128xbf16, #tpu.memory_space<vmem>>, vector<1x6x128xbf16>
    %9 = vector.shape_cast %8 : vector<1x6x128xbf16> to vector<6x128xbf16>
    %cst_12 = arith.constant dense<0.000000e+00> : vector<384x128xf32>
    %10 = tpu.matmul %7, %9, %cst_12 {dimension_numbers = #tpu.dot_dimension_numbers<[1], [0], [0], [1], [0, 0, 1, 1], [], []>} : vector<384x6xbf16>, vector<6x128xbf16>, vector<384x128xf32> -> vector<384x128xf32>
    %c0_13 = arith.constant 0 : index
    %c0_14 = arith.constant 0 : index
    %11 = vector.load %arg5[%c0_13, %c0_14] : memref<384x128xf32, #tpu.memory_space<vmem>>, vector<384x128xf32>
    %12 = arith.addf %11, %10 : vector<384x128xf32>
    %c0_15 = arith.constant 0 : index
    %c0_16 = arith.constant 0 : index
    %13 = vector.load %arg5[%c0_15, %c0_16] : memref<384x128xf32, #tpu.memory_space<vmem>>, vector<384x128xf32>
    tpu.vector_store %arg5[%c0_15, %c0_16], %12 {strides = array<i32>} : memref<384x128xf32, #tpu.memory_space<vmem>>, vector<384x128xf32>,
    %c0_17 = arith.constant 0 : index
    %c2 = arith.constant 2 : index
    %c0_18 = arith.constant 0 : index
    %14 = vector.load %arg1[%c0_17, %c2, %c0_18] : memref<1x464x6xbf16, #tpu.memory_space<vmem>>, vector<1x384x6xbf16>
    %15 = vector.shape_cast %14 : vector<1x384x6xbf16> to vector<384x6xbf16>
    %c2_19 = arith.constant 2 : index
    %c0_20 = arith.constant 0 : index
    %c0_21 = arith.constant 0 : index
    %16 = vector.load %arg2[%c2_19, %c0_20, %c0_21] : memref<15x6x128xbf16, #tpu.memory_space<vmem>>, vector<1x6x128xbf16>
    %17 = vector.shape_cast %16 : vector<1x6x128xbf16> to vector<6x128xbf16>
    %cst_22 = arith.constant dense<0.000000e+00> : vector<384x128xf32>
    %18 = tpu.matmul %15, %17, %cst_22 {dimension_numbers = #tpu.dot_dimension_numbers<[1], [0], [0], [1], [0, 0, 1, 1], [], []>} : vector<384x6xbf16>, vector<6x128xbf16>, vector<384x128xf32> -> vector<384x128xf32>
    %c0_23 = arith.constant 0 : index
    %c0_24 = arith.constant 0 : index
    %19 = vector.load %arg5[%c0_23, %c0_24] : memref<384x128xf32, #tpu.memory_space<vmem>>, vector<384x128xf32>
    %20 = arith.addf %19, %18 : vector<384x128xf32>
    %c0_25 = arith.constant 0 : index
    %c0_26 = arith.constant 0 : index
    %21 = vector.load %arg5[%c0_25, %c0_26] : memref<384x128xf32, #tpu.memory_space<vmem>>, vector<384x128xf32>
    tpu.vector_store %arg5[%c0_25, %c0_26], %20 {strides = array<i32>} : memref<384x128xf32, #tpu.memory_space<vmem>>, vector<384x128xf32>,
    %c0_27 = arith.constant 0 : index
    %c16 = arith.constant 16 : index
    %c0_28 = arith.constant 0 : index
    %22 = vector.load %arg1[%c0_27, %c16, %c0_28] : memref<1x464x6xbf16, #tpu.memory_space<vmem>>, vector<1x384x6xbf16>
    %23 = vector.shape_cast %22 : vector<1x384x6xbf16> to vector<384x6xbf16>
    %c3 = arith.constant 3 : index
    %c0_29 = arith.constant 0 : index
    %c0_30 = arith.constant 0 : index
    %24 = vector.load %arg2[%c3, %c0_29, %c0_30] : memref<15x6x128xbf16, #tpu.memory_space<vmem>>, vector<1x6x128xbf16>
    %25 = vector.shape_cast %24 : vector<1x6x128xbf16> to vector<6x128xbf16>
    %cst_31 = arith.constant dense<0.000000e+00> : vector<384x128xf32>
    %26 = tpu.matmul %23, %25, %cst_31 {dimension_numbers = #tpu.dot_dimension_numbers<[1], [0], [0], [1], [0, 0, 1, 1], [], []>} : vector<384x6xbf16>, vector<6x128xbf16>, vector<384x128xf32> -> vector<384x128xf32>
    %c0_32 = arith.constant 0 : index
    %c0_33 = arith.constant 0 : index
    %27 = vector.load %arg5[%c0_32, %c0_33] : memref<384x128xf32, #tpu.memory_space<vmem>>, vector<384x128xf32>
    %28 = arith.addf %27, %26 : vector<384x128xf32>
    %c0_34 = arith.constant 0 : index
    %c0_35 = arith.constant 0 : index
    %29 = vector.load %arg5[%c0_34, %c0_35] : memref<384x128xf32, #tpu.memory_space<vmem>>, vector<384x128xf32>
    tpu.vector_store %arg5[%c0_34, %c0_35], %28 {strides = array<i32>} : memref<384x128xf32, #tpu.memory_space<vmem>>, vector<384x128xf32>,
    %c0_36 = arith.constant 0 : index
    %c17 = arith.constant 17 : index
    %c0_37 = arith.constant 0 : index
    %30 = vector.load %arg1[%c0_36, %c17, %c0_37] : memref<1x464x6xbf16, #tpu.memory_space<vmem>>, vector<1x384x6xbf16>
    %31 = vector.shape_cast %30 : vector<1x384x6xbf16> to vector<384x6xbf16>
    %c4 = arith.constant 4 : index
    %c0_38 = arith.constant 0 : index
    %c0_39 = arith.constant 0 : index
    %32 = vector.load %arg2[%c4, %c0_38, %c0_39] : memref<15x6x128xbf16, #tpu.memory_space<vmem>>, vector<1x6x128xbf16>
    %33 = vector.shape_cast %32 : vector<1x6x128xbf16> to vector<6x128xbf16>
    %cst_40 = arith.constant dense<0.000000e+00> : vector<384x128xf32>
    %34 = tpu.matmul %31, %33, %cst_40 {dimension_numbers = #tpu.dot_dimension_numbers<[1], [0], [0], [1], [0, 0, 1, 1], [], []>} : vector<384x6xbf16>, vector<6x128xbf16>, vector<384x128xf32> -> vector<384x128xf32>
    %c0_41 = arith.constant 0 : index
    %c0_42 = arith.constant 0 : index
    %35 = vector.load %arg5[%c0_41, %c0_42] : memref<384x128xf32, #tpu.memory_space<vmem>>, vector<384x128xf32>
    %36 = arith.addf %35, %34 : vector<384x128xf32>
    %c0_43 = arith.constant 0 : index
    %c0_44 = arith.constant 0 : index
    %37 = vector.load %arg5[%c0_43, %c0_44] : memref<384x128xf32, #tpu.memory_space<vmem>>, vector<384x128xf32>
    tpu.vector_store %arg5[%c0_43, %c0_44], %36 {strides = array<i32>} : memref<384x128xf32, #tpu.memory_space<vmem>>, vector<384x128xf32>,
    %c0_45 = arith.constant 0 : index
    %c18 = arith.constant 18 : index
    %c0_46 = arith.constant 0 : index
    %38 = vector.load %arg1[%c0_45, %c18, %c0_46] : memref<1x464x6xbf16, #tpu.memory_space<vmem>>, vector<1x384x6xbf16>
    %39 = vector.shape_cast %38 : vector<1x384x6xbf16> to vector<384x6xbf16>
    %c5 = arith.constant 5 : index
    %c0_47 = arith.constant 0 : index
    %c0_48 = arith.constant 0 : index
    %40 = vector.load %arg2[%c5, %c0_47, %c0_48] : memref<15x6x128xbf16, #tpu.memory_space<vmem>>, vector<1x6x128xbf16>
    %41 = vector.shape_cast %40 : vector<1x6x128xbf16> to vector<6x128xbf16>
    %cst_49 = arith.constant dense<0.000000e+00> : vector<384x128xf32>
    %42 = tpu.matmul %39, %41, %cst_49 {dimension_numbers = #tpu.dot_dimension_numbers<[1], [0], [0], [1], [0, 0, 1, 1], [], []>} : vector<384x6xbf16>, vector<6x128xbf16>, vector<384x128xf32> -> vector<384x128xf32>
    %c0_50 = arith.constant 0 : index
    %c0_51 = arith.constant 0 : index
    %43 = vector.load %arg5[%c0_50, %c0_51] : memref<384x128xf32, #tpu.memory_space<vmem>>, vector<384x128xf32>
    %44 = arith.addf %43, %42 : vector<384x128xf32>
    %c0_52 = arith.constant 0 : index
    %c0_53 = arith.constant 0 : index
    %45 = vector.load %arg5[%c0_52, %c0_53] : memref<384x128xf32, #tpu.memory_space<vmem>>, vector<384x128xf32>
    tpu.vector_store %arg5[%c0_52, %c0_53], %44 {strides = array<i32>} : memref<384x128xf32, #tpu.memory_space<vmem>>, vector<384x128xf32>,
    %c0_54 = arith.constant 0 : index
    %c32 = arith.constant 32 : index
    %c0_55 = arith.constant 0 : index
    %46 = vector.load %arg1[%c0_54, %c32, %c0_55] : memref<1x464x6xbf16, #tpu.memory_space<vmem>>, vector<1x384x6xbf16>
    %47 = vector.shape_cast %46 : vector<1x384x6xbf16> to vector<384x6xbf16>
    %c6 = arith.constant 6 : index
    %c0_56 = arith.constant 0 : index
    %c0_57 = arith.constant 0 : index
    %48 = vector.load %arg2[%c6, %c0_56, %c0_57] : memref<15x6x128xbf16, #tpu.memory_space<vmem>>, vector<1x6x128xbf16>
    %49 = vector.shape_cast %48 : vector<1x6x128xbf16> to vector<6x128xbf16>
    %cst_58 = arith.constant dense<0.000000e+00> : vector<384x128xf32>
    %50 = tpu.matmul %47, %49, %cst_58 {dimension_numbers = #tpu.dot_dimension_numbers<[1], [0], [0], [1], [0, 0, 1, 1], [], []>} : vector<384x6xbf16>, vector<6x128xbf16>, vector<384x128xf32> -> vector<384x128xf32>
    %c0_59 = arith.constant 0 : index
    %c0_60 = arith.constant 0 : index
    %51 = vector.load %arg5[%c0_59, %c0_60] : memref<384x128xf32, #tpu.memory_space<vmem>>, vector<384x128xf32>
    %52 = arith.addf %51, %50 : vector<384x128xf32>
    %c0_61 = arith.constant 0 : index
    %c0_62 = arith.constant 0 : index
    %53 = vector.load %arg5[%c0_61, %c0_62] : memref<384x128xf32, #tpu.memory_space<vmem>>, vector<384x128xf32>
    tpu.vector_store %arg5[%c0_61, %c0_62], %52 {strides = array<i32>} : memref<384x128xf32, #tpu.memory_space<vmem>>, vector<384x128xf32>,
    %c0_63 = arith.constant 0 : index
    %c33 = arith.constant 33 : index
    %c0_64 = arith.constant 0 : index
    %54 = vector.load %arg1[%c0_63, %c33, %c0_64] : memref<1x464x6xbf16, #tpu.memory_space<vmem>>, vector<1x384x6xbf16>
    %55 = vector.shape_cast %54 : vector<1x384x6xbf16> to vector<384x6xbf16>
    %c7 = arith.constant 7 : index
    %c0_65 = arith.constant 0 : index
    %c0_66 = arith.constant 0 : index
    %56 = vector.load %arg2[%c7, %c0_65, %c0_66] : memref<15x6x128xbf16, #tpu.memory_space<vmem>>, vector<1x6x128xbf16>
    %57 = vector.shape_cast %56 : vector<1x6x128xbf16> to vector<6x128xbf16>
    %cst_67 = arith.constant dense<0.000000e+00> : vector<384x128xf32>
    %58 = tpu.matmul %55, %57, %cst_67 {dimension_numbers = #tpu.dot_dimension_numbers<[1], [0], [0], [1], [0, 0, 1, 1], [], []>} : vector<384x6xbf16>, vector<6x128xbf16>, vector<384x128xf32> -> vector<384x128xf32>
    %c0_68 = arith.constant 0 : index
    %c0_69 = arith.constant 0 : index
    %59 = vector.load %arg5[%c0_68, %c0_69] : memref<384x128xf32, #tpu.memory_space<vmem>>, vector<384x128xf32>
    %60 = arith.addf %59, %58 : vector<384x128xf32>
    %c0_70 = arith.constant 0 : index
    %c0_71 = arith.constant 0 : index
    %61 = vector.load %arg5[%c0_70, %c0_71] : memref<384x128xf32, #tpu.memory_space<vmem>>, vector<384x128xf32>
    tpu.vector_store %arg5[%c0_70, %c0_71], %60 {strides = array<i32>} : memref<384x128xf32, #tpu.memory_space<vmem>>, vector<384x128xf32>,
    %c0_72 = arith.constant 0 : index
    %c34 = arith.constant 34 : index
    %c0_73 = arith.constant 0 : index
    %62 = vector.load %arg1[%c0_72, %c34, %c0_73] : memref<1x464x6xbf16, #tpu.memory_space<vmem>>, vector<1x384x6xbf16>
    %63 = vector.shape_cast %62 : vector<1x384x6xbf16> to vector<384x6xbf16>
    %c8 = arith.constant 8 : index
    %c0_74 = arith.constant 0 : index
    %c0_75 = arith.constant 0 : index
    %64 = vector.load %arg2[%c8, %c0_74, %c0_75] : memref<15x6x128xbf16, #tpu.memory_space<vmem>>, vector<1x6x128xbf16>
    %65 = vector.shape_cast %64 : vector<1x6x128xbf16> to vector<6x128xbf16>
    %cst_76 = arith.constant dense<0.000000e+00> : vector<384x128xf32>
    %66 = tpu.matmul %63, %65, %cst_76 {dimension_numbers = #tpu.dot_dimension_numbers<[1], [0], [0], [1], [0, 0, 1, 1], [], []>} : vector<384x6xbf16>, vector<6x128xbf16>, vector<384x128xf32> -> vector<384x128xf32>
    %c0_77 = arith.constant 0 : index
    %c0_78 = arith.constant 0 : index
    %67 = vector.load %arg5[%c0_77, %c0_78] : memref<384x128xf32, #tpu.memory_space<vmem>>, vector<384x128xf32>
    %68 = arith.addf %67, %66 : vector<384x128xf32>
    %c0_79 = arith.constant 0 : index
    %c0_80 = arith.constant 0 : index
    %69 = vector.load %arg5[%c0_79, %c0_80] : memref<384x128xf32, #tpu.memory_space<vmem>>, vector<384x128xf32>
    tpu.vector_store %arg5[%c0_79, %c0_80], %68 {strides = array<i32>} : memref<384x128xf32, #tpu.memory_space<vmem>>, vector<384x128xf32>,
    %c0_81 = arith.constant 0 : index
    %c48 = arith.constant 48 : index
    %c0_82 = arith.constant 0 : index
    %70 = vector.load %arg1[%c0_81, %c48, %c0_82] : memref<1x464x6xbf16, #tpu.memory_space<vmem>>, vector<1x384x6xbf16>
    %71 = vector.shape_cast %70 : vector<1x384x6xbf16> to vector<384x6xbf16>
    %c9 = arith.constant 9 : index
    %c0_83 = arith.constant 0 : index
    %c0_84 = arith.constant 0 : index
    %72 = vector.load %arg2[%c9, %c0_83, %c0_84] : memref<15x6x128xbf16, #tpu.memory_space<vmem>>, vector<1x6x128xbf16>
    %73 = vector.shape_cast %72 : vector<1x6x128xbf16> to vector<6x128xbf16>
    %cst_85 = arith.constant dense<0.000000e+00> : vector<384x128xf32>
    %74 = tpu.matmul %71, %73, %cst_85 {dimension_numbers = #tpu.dot_dimension_numbers<[1], [0], [0], [1], [0, 0, 1, 1], [], []>} : vector<384x6xbf16>, vector<6x128xbf16>, vector<384x128xf32> -> vector<384x128xf32>
    %c0_86 = arith.constant 0 : index
    %c0_87 = arith.constant 0 : index
    %75 = vector.load %arg5[%c0_86, %c0_87] : memref<384x128xf32, #tpu.memory_space<vmem>>, vector<384x128xf32>
    %76 = arith.addf %75, %74 : vector<384x128xf32>
    %c0_88 = arith.constant 0 : index
    %c0_89 = arith.constant 0 : index
    %77 = vector.load %arg5[%c0_88, %c0_89] : memref<384x128xf32, #tpu.memory_space<vmem>>, vector<384x128xf32>
    tpu.vector_store %arg5[%c0_88, %c0_89], %76 {strides = array<i32>} : memref<384x128xf32, #tpu.memory_space<vmem>>, vector<384x128xf32>,
    %c0_90 = arith.constant 0 : index
    %c49 = arith.constant 49 : index
    %c0_91 = arith.constant 0 : index
    %78 = vector.load %arg1[%c0_90, %c49, %c0_91] : memref<1x464x6xbf16, #tpu.memory_space<vmem>>, vector<1x384x6xbf16>
    %79 = vector.shape_cast %78 : vector<1x384x6xbf16> to vector<384x6xbf16>
    %c10 = arith.constant 10 : index
    %c0_92 = arith.constant 0 : index
    %c0_93 = arith.constant 0 : index
    %80 = vector.load %arg2[%c10, %c0_92, %c0_93] : memref<15x6x128xbf16, #tpu.memory_space<vmem>>, vector<1x6x128xbf16>
    %81 = vector.shape_cast %80 : vector<1x6x128xbf16> to vector<6x128xbf16>
    %cst_94 = arith.constant dense<0.000000e+00> : vector<384x128xf32>
    %82 = tpu.matmul %79, %81, %cst_94 {dimension_numbers = #tpu.dot_dimension_numbers<[1], [0], [0], [1], [0, 0, 1, 1], [], []>} : vector<384x6xbf16>, vector<6x128xbf16>, vector<384x128xf32> -> vector<384x128xf32>
    %c0_95 = arith.constant 0 : index
    %c0_96 = arith.constant 0 : index
    %83 = vector.load %arg5[%c0_95, %c0_96] : memref<384x128xf32, #tpu.memory_space<vmem>>, vector<384x128xf32>
    %84 = arith.addf %83, %82 : vector<384x128xf32>
    %c0_97 = arith.constant 0 : index
    %c0_98 = arith.constant 0 : index
    %85 = vector.load %arg5[%c0_97, %c0_98] : memref<384x128xf32, #tpu.memory_space<vmem>>, vector<384x128xf32>
    tpu.vector_store %arg5[%c0_97, %c0_98], %84 {strides = array<i32>} : memref<384x128xf32, #tpu.memory_space<vmem>>, vector<384x128xf32>,
    %c0_99 = arith.constant 0 : index
    %c50 = arith.constant 50 : index
    %c0_100 = arith.constant 0 : index
    %86 = vector.load %arg1[%c0_99, %c50, %c0_100] : memref<1x464x6xbf16, #tpu.memory_space<vmem>>, vector<1x384x6xbf16>
    %87 = vector.shape_cast %86 : vector<1x384x6xbf16> to vector<384x6xbf16>
    %c11 = arith.constant 11 : index
    %c0_101 = arith.constant 0 : index
    %c0_102 = arith.constant 0 : index
    %88 = vector.load %arg2[%c11, %c0_101, %c0_102] : memref<15x6x128xbf16, #tpu.memory_space<vmem>>, vector<1x6x128xbf16>
    %89 = vector.shape_cast %88 : vector<1x6x128xbf16> to vector<6x128xbf16>
    %cst_103 = arith.constant dense<0.000000e+00> : vector<384x128xf32>
    %90 = tpu.matmul %87, %89, %cst_103 {dimension_numbers = #tpu.dot_dimension_numbers<[1], [0], [0], [1], [0, 0, 1, 1], [], []>} : vector<384x6xbf16>, vector<6x128xbf16>, vector<384x128xf32> -> vector<384x128xf32>
    %c0_104 = arith.constant 0 : index
    %c0_105 = arith.constant 0 : index
    %91 = vector.load %arg5[%c0_104, %c0_105] : memref<384x128xf32, #tpu.memory_space<vmem>>, vector<384x128xf32>
    %92 = arith.addf %91, %90 : vector<384x128xf32>
    %c0_106 = arith.constant 0 : index
    %c0_107 = arith.constant 0 : index
    %93 = vector.load %arg5[%c0_106, %c0_107] : memref<384x128xf32, #tpu.memory_space<vmem>>, vector<384x128xf32>
    tpu.vector_store %arg5[%c0_106, %c0_107], %92 {strides = array<i32>} : memref<384x128xf32, #tpu.memory_space<vmem>>, vector<384x128xf32>,
    %c0_108 = arith.constant 0 : index
    %c64 = arith.constant 64 : index
    %c0_109 = arith.constant 0 : index
    %94 = vector.load %arg1[%c0_108, %c64, %c0_109] : memref<1x464x6xbf16, #tpu.memory_space<vmem>>, vector<1x384x6xbf16>
    %95 = vector.shape_cast %94 : vector<1x384x6xbf16> to vector<384x6xbf16>
    %c12 = arith.constant 12 : index
    %c0_110 = arith.constant 0 : index
    %c0_111 = arith.constant 0 : index
    %96 = vector.load %arg2[%c12, %c0_110, %c0_111] : memref<15x6x128xbf16, #tpu.memory_space<vmem>>, vector<1x6x128xbf16>
    %97 = vector.shape_cast %96 : vector<1x6x128xbf16> to vector<6x128xbf16>
    %cst_112 = arith.constant dense<0.000000e+00> : vector<384x128xf32>
    %98 = tpu.matmul %95, %97, %cst_112 {dimension_numbers = #tpu.dot_dimension_numbers<[1], [0], [0], [1], [0, 0, 1, 1], [], []>} : vector<384x6xbf16>, vector<6x128xbf16>, vector<384x128xf32> -> vector<384x128xf32>
    %c0_113 = arith.constant 0 : index
    %c0_114 = arith.constant 0 : index
    %99 = vector.load %arg5[%c0_113, %c0_114] : memref<384x128xf32, #tpu.memory_space<vmem>>, vector<384x128xf32>
    %100 = arith.addf %99, %98 : vector<384x128xf32>
    %c0_115 = arith.constant 0 : index
    %c0_116 = arith.constant 0 : index
    %101 = vector.load %arg5[%c0_115, %c0_116] : memref<384x128xf32, #tpu.memory_space<vmem>>, vector<384x128xf32>
    tpu.vector_store %arg5[%c0_115, %c0_116], %100 {strides = array<i32>} : memref<384x128xf32, #tpu.memory_space<vmem>>, vector<384x128xf32>,
    %c0_117 = arith.constant 0 : index
    %c65 = arith.constant 65 : index
    %c0_118 = arith.constant 0 : index
    %102 = vector.load %arg1[%c0_117, %c65, %c0_118] : memref<1x464x6xbf16, #tpu.memory_space<vmem>>, vector<1x384x6xbf16>
    %103 = vector.shape_cast %102 : vector<1x384x6xbf16> to vector<384x6xbf16>
    %c13 = arith.constant 13 : index
    %c0_119 = arith.constant 0 : index
    %c0_120 = arith.constant 0 : index
    %104 = vector.load %arg2[%c13, %c0_119, %c0_120] : memref<15x6x128xbf16, #tpu.memory_space<vmem>>, vector<1x6x128xbf16>
    %105 = vector.shape_cast %104 : vector<1x6x128xbf16> to vector<6x128xbf16>
    %cst_121 = arith.constant dense<0.000000e+00> : vector<384x128xf32>
    %106 = tpu.matmul %103, %105, %cst_121 {dimension_numbers = #tpu.dot_dimension_numbers<[1], [0], [0], [1], [0, 0, 1, 1], [], []>} : vector<384x6xbf16>, vector<6x128xbf16>, vector<384x128xf32> -> vector<384x128xf32>
    %c0_122 = arith.constant 0 : index
    %c0_123 = arith.constant 0 : index
    %107 = vector.load %arg5[%c0_122, %c0_123] : memref<384x128xf32, #tpu.memory_space<vmem>>, vector<384x128xf32>
    %108 = arith.addf %107, %106 : vector<384x128xf32>
    %c0_124 = arith.constant 0 : index
    %c0_125 = arith.constant 0 : index
    %109 = vector.load %arg5[%c0_124, %c0_125] : memref<384x128xf32, #tpu.memory_space<vmem>>, vector<384x128xf32>
    tpu.vector_store %arg5[%c0_124, %c0_125], %108 {strides = array<i32>} : memref<384x128xf32, #tpu.memory_space<vmem>>, vector<384x128xf32>,
    %c0_126 = arith.constant 0 : index
    %c66 = arith.constant 66 : index
    %c0_127 = arith.constant 0 : index
    %110 = vector.load %arg1[%c0_126, %c66, %c0_127] : memref<1x464x6xbf16, #tpu.memory_space<vmem>>, vector<1x384x6xbf16>
    %111 = vector.shape_cast %110 : vector<1x384x6xbf16> to vector<384x6xbf16>
    %c14 = arith.constant 14 : index
    %c0_128 = arith.constant 0 : index
    %c0_129 = arith.constant 0 : index
    %112 = vector.load %arg2[%c14, %c0_128, %c0_129] : memref<15x6x128xbf16, #tpu.memory_space<vmem>>, vector<1x6x128xbf16>
    %113 = vector.shape_cast %112 : vector<1x6x128xbf16> to vector<6x128xbf16>
    %cst_130 = arith.constant dense<0.000000e+00> : vector<384x128xf32>
    %114 = tpu.matmul %111, %113, %cst_130 {dimension_numbers = #tpu.dot_dimension_numbers<[1], [0], [0], [1], [0, 0, 1, 1], [], []>} : vector<384x6xbf16>, vector<6x128xbf16>, vector<384x128xf32> -> vector<384x128xf32>
    %c0_131 = arith.constant 0 : index
    %c0_132 = arith.constant 0 : index
    %115 = vector.load %arg5[%c0_131, %c0_132] : memref<384x128xf32, #tpu.memory_space<vmem>>, vector<384x128xf32>
    %116 = arith.addf %115, %114 : vector<384x128xf32>
    %c0_133 = arith.constant 0 : index
    %c0_134 = arith.constant 0 : index
    %117 = vector.load %arg5[%c0_133, %c0_134] : memref<384x128xf32, #tpu.memory_space<vmem>>, vector<384x128xf32>
    tpu.vector_store %arg5[%c0_133, %c0_134], %116 {strides = array<i32>} : memref<384x128xf32, #tpu.memory_space<vmem>>, vector<384x128xf32>,
    %c0_135 = arith.constant 0 : index
    %c0_136 = arith.constant 0 : index
    %118 = vector.load %arg3[%c0_135, %c0_136] : memref<1x64xf32, #tpu.memory_space<vmem>>, vector<1x64xf32>
    %c0_137 = arith.constant 0 : index
    %c0_138 = arith.constant 0 : index
    %119 = vector.load %arg5[%c0_137, %c0_138] : memref<384x128xf32, #tpu.memory_space<vmem>>, vector<16x128xf32>
    %c16_139 = arith.constant 16 : index
    %c0_140 = arith.constant 0 : index
    %120 = vector.load %arg5[%c16_139, %c0_140] : memref<384x128xf32, #tpu.memory_space<vmem>>, vector<16x128xf32>
    %121 = arith.maximumf %119, %120 : vector<16x128xf32>
    %122 = vector.extract_strided_slice %121 {offsets = [0, 0], sizes = [16, 64], strides = [1, 1]} : vector<16x128xf32> to vector<16x64xf32>
    %123 = vector.extract_strided_slice %121 {offsets = [0, 64], sizes = [16, 64], strides = [1, 1]} : vector<16x128xf32> to vector<16x64xf32>
    %124 = arith.maximumf %122, %123 : vector<16x64xf32>
    %125 = vector.extract_strided_slice %124 {offsets = [0, 0], sizes = [12, 64], strides = [1, 1]} : vector<16x64xf32> to vector<12x64xf32>
    %126 = vector.broadcast %118 : vector<1x64xf32> to vector<12x64xf32>
    %127 = arith.addf %125, %126 : vector<12x64xf32>
    %cst_141 = arith.constant 0.000000e+00 : f32
    %128 = vector.broadcast %cst_141 : f32 to vector<12x64xf32>
    %129 = arith.maximumf %127, %128 : vector<12x64xf32>
    %130 = arith.truncf %129 : vector<12x64xf32> to vector<12x64xbf16>
    %c0_142 = arith.constant 0 : index
    %c0_143 = arith.constant 0 : index
    %c0_144 = arith.constant 0 : index
    %c0_145 = arith.constant 0 : index
    %131 = vector.load %arg4[%c0_142, %c0_143, %c0_144, %c0_145] : memref<1x12x12x64xbf16, #tpu.memory_space<vmem>>, vector<1x1x12x64xbf16>
    %132 = vector.shape_cast %131 : vector<1x1x12x64xbf16> to vector<12x64xbf16>
    %133 = vector.shape_cast %130 : vector<12x64xbf16> to vector<1x1x12x64xbf16>
    tpu.vector_store %arg4[%c0_142, %c0_143, %c0_144, %c0_145], %133 {strides = array<i32>} : memref<1x12x12x64xbf16, #tpu.memory_space<vmem>>, vector<1x1x12x64xbf16>,
    %c32_146 = arith.constant 32 : index
    %c0_147 = arith.constant 0 : index
    %134 = vector.load %arg5[%c32_146, %c0_147] : memref<384x128xf32, #tpu.memory_space<vmem>>, vector<16x128xf32>
    %c48_148 = arith.constant 48 : index
    %c0_149 = arith.constant 0 : index
    %135 = vector.load %arg5[%c48_148, %c0_149] : memref<384x128xf32, #tpu.memory_space<vmem>>, vector<16x128xf32>
    %136 = arith.maximumf %134, %135 : vector<16x128xf32>
    %137 = vector.extract_strided_slice %136 {offsets = [0, 0], sizes = [16, 64], strides = [1, 1]} : vector<16x128xf32> to vector<16x64xf32>
    %138 = vector.extract_strided_slice %136 {offsets = [0, 64], sizes = [16, 64], strides = [1, 1]} : vector<16x128xf32> to vector<16x64xf32>
    %139 = arith.maximumf %137, %138 : vector<16x64xf32>
    %140 = vector.extract_strided_slice %139 {offsets = [0, 0], sizes = [12, 64], strides = [1, 1]} : vector<16x64xf32> to vector<12x64xf32>
    %141 = vector.broadcast %118 : vector<1x64xf32> to vector<12x64xf32>
    %142 = arith.addf %140, %141 : vector<12x64xf32>
    %cst_150 = arith.constant 0.000000e+00 : f32
    %143 = vector.broadcast %cst_150 : f32 to vector<12x64xf32>
    %144 = arith.maximumf %142, %143 : vector<12x64xf32>
    %145 = arith.truncf %144 : vector<12x64xf32> to vector<12x64xbf16>
    %c0_151 = arith.constant 0 : index
    %c1_152 = arith.constant 1 : index
    %c0_153 = arith.constant 0 : index
    %c0_154 = arith.constant 0 : index
    %146 = vector.load %arg4[%c0_151, %c1_152, %c0_153, %c0_154] : memref<1x12x12x64xbf16, #tpu.memory_space<vmem>>, vector<1x1x12x64xbf16>
    %147 = vector.shape_cast %146 : vector<1x1x12x64xbf16> to vector<12x64xbf16>
    %148 = vector.shape_cast %145 : vector<12x64xbf16> to vector<1x1x12x64xbf16>
    tpu.vector_store %arg4[%c0_151, %c1_152, %c0_153, %c0_154], %148 {strides = array<i32>} : memref<1x12x12x64xbf16, #tpu.memory_space<vmem>>, vector<1x1x12x64xbf16>,
    %c64_155 = arith.constant 64 : index
    %c0_156 = arith.constant 0 : index
    %149 = vector.load %arg5[%c64_155, %c0_156] : memref<384x128xf32, #tpu.memory_space<vmem>>, vector<16x128xf32>
    %c80 = arith.constant 80 : index
    %c0_157 = arith.constant 0 : index
    %150 = vector.load %arg5[%c80, %c0_157] : memref<384x128xf32, #tpu.memory_space<vmem>>, vector<16x128xf32>
    %151 = arith.maximumf %149, %150 : vector<16x128xf32>
    %152 = vector.extract_strided_slice %151 {offsets = [0, 0], sizes = [16, 64], strides = [1, 1]} : vector<16x128xf32> to vector<16x64xf32>
    %153 = vector.extract_strided_slice %151 {offsets = [0, 64], sizes = [16, 64], strides = [1, 1]} : vector<16x128xf32> to vector<16x64xf32>
    %154 = arith.maximumf %152, %153 : vector<16x64xf32>
    %155 = vector.extract_strided_slice %154 {offsets = [0, 0], sizes = [12, 64], strides = [1, 1]} : vector<16x64xf32> to vector<12x64xf32>
    %156 = vector.broadcast %118 : vector<1x64xf32> to vector<12x64xf32>
    %157 = arith.addf %155, %156 : vector<12x64xf32>
    %cst_158 = arith.constant 0.000000e+00 : f32
    %158 = vector.broadcast %cst_158 : f32 to vector<12x64xf32>
    %159 = arith.maximumf %157, %158 : vector<12x64xf32>
    %160 = arith.truncf %159 : vector<12x64xf32> to vector<12x64xbf16>
    %c0_159 = arith.constant 0 : index
    %c2_160 = arith.constant 2 : index
    %c0_161 = arith.constant 0 : index
    %c0_162 = arith.constant 0 : index
    %161 = vector.load %arg4[%c0_159, %c2_160, %c0_161, %c0_162] : memref<1x12x12x64xbf16, #tpu.memory_space<vmem>>, vector<1x1x12x64xbf16>
    %162 = vector.shape_cast %161 : vector<1x1x12x64xbf16> to vector<12x64xbf16>
    %163 = vector.shape_cast %160 : vector<12x64xbf16> to vector<1x1x12x64xbf16>
    tpu.vector_store %arg4[%c0_159, %c2_160, %c0_161, %c0_162], %163 {strides = array<i32>} : memref<1x12x12x64xbf16, #tpu.memory_space<vmem>>, vector<1x1x12x64xbf16>,
    %c96 = arith.constant 96 : index
    %c0_163 = arith.constant 0 : index
    %164 = vector.load %arg5[%c96, %c0_163] : memref<384x128xf32, #tpu.memory_space<vmem>>, vector<16x128xf32>
    %c112 = arith.constant 112 : index
    %c0_164 = arith.constant 0 : index
    %165 = vector.load %arg5[%c112, %c0_164] : memref<384x128xf32, #tpu.memory_space<vmem>>, vector<16x128xf32>
    %166 = arith.maximumf %164, %165 : vector<16x128xf32>
    %167 = vector.extract_strided_slice %166 {offsets = [0, 0], sizes = [16, 64], strides = [1, 1]} : vector<16x128xf32> to vector<16x64xf32>
    %168 = vector.extract_strided_slice %166 {offsets = [0, 64], sizes = [16, 64], strides = [1, 1]} : vector<16x128xf32> to vector<16x64xf32>
    %169 = arith.maximumf %167, %168 : vector<16x64xf32>
    %170 = vector.extract_strided_slice %169 {offsets = [0, 0], sizes = [12, 64], strides = [1, 1]} : vector<16x64xf32> to vector<12x64xf32>
    %171 = vector.broadcast %118 : vector<1x64xf32> to vector<12x64xf32>
    %172 = arith.addf %170, %171 : vector<12x64xf32>
    %cst_165 = arith.constant 0.000000e+00 : f32
    %173 = vector.broadcast %cst_165 : f32 to vector<12x64xf32>
    %174 = arith.maximumf %172, %173 : vector<12x64xf32>
    %175 = arith.truncf %174 : vector<12x64xf32> to vector<12x64xbf16>
    %c0_166 = arith.constant 0 : index
    %c3_167 = arith.constant 3 : index
    %c0_168 = arith.constant 0 : index
    %c0_169 = arith.constant 0 : index
    %176 = vector.load %arg4[%c0_166, %c3_167, %c0_168, %c0_169] : memref<1x12x12x64xbf16, #tpu.memory_space<vmem>>, vector<1x1x12x64xbf16>
    %177 = vector.shape_cast %176 : vector<1x1x12x64xbf16> to vector<12x64xbf16>
    %178 = vector.shape_cast %175 : vector<12x64xbf16> to vector<1x1x12x64xbf16>
    tpu.vector_store %arg4[%c0_166, %c3_167, %c0_168, %c0_169], %178 {strides = array<i32>} : memref<1x12x12x64xbf16, #tpu.memory_space<vmem>>, vector<1x1x12x64xbf16>,
    %c128 = arith.constant 128 : index
    %c0_170 = arith.constant 0 : index
    %179 = vector.load %arg5[%c128, %c0_170] : memref<384x128xf32, #tpu.memory_space<vmem>>, vector<16x128xf32>
    %c144 = arith.constant 144 : index
    %c0_171 = arith.constant 0 : index
    %180 = vector.load %arg5[%c144, %c0_171] : memref<384x128xf32, #tpu.memory_space<vmem>>, vector<16x128xf32>
    %181 = arith.maximumf %179, %180 : vector<16x128xf32>
    %182 = vector.extract_strided_slice %181 {offsets = [0, 0], sizes = [16, 64], strides = [1, 1]} : vector<16x128xf32> to vector<16x64xf32>
    %183 = vector.extract_strided_slice %181 {offsets = [0, 64], sizes = [16, 64], strides = [1, 1]} : vector<16x128xf32> to vector<16x64xf32>
    %184 = arith.maximumf %182, %183 : vector<16x64xf32>
    %185 = vector.extract_strided_slice %184 {offsets = [0, 0], sizes = [12, 64], strides = [1, 1]} : vector<16x64xf32> to vector<12x64xf32>
    %186 = vector.broadcast %118 : vector<1x64xf32> to vector<12x64xf32>
    %187 = arith.addf %185, %186 : vector<12x64xf32>
    %cst_172 = arith.constant 0.000000e+00 : f32
    %188 = vector.broadcast %cst_172 : f32 to vector<12x64xf32>
    %189 = arith.maximumf %187, %188 : vector<12x64xf32>
    %190 = arith.truncf %189 : vector<12x64xf32> to vector<12x64xbf16>
    %c0_173 = arith.constant 0 : index
    %c4_174 = arith.constant 4 : index
    %c0_175 = arith.constant 0 : index
    %c0_176 = arith.constant 0 : index
    %191 = vector.load %arg4[%c0_173, %c4_174, %c0_175, %c0_176] : memref<1x12x12x64xbf16, #tpu.memory_space<vmem>>, vector<1x1x12x64xbf16>
    %192 = vector.shape_cast %191 : vector<1x1x12x64xbf16> to vector<12x64xbf16>
    %193 = vector.shape_cast %190 : vector<12x64xbf16> to vector<1x1x12x64xbf16>
    tpu.vector_store %arg4[%c0_173, %c4_174, %c0_175, %c0_176], %193 {strides = array<i32>} : memref<1x12x12x64xbf16, #tpu.memory_space<vmem>>, vector<1x1x12x64xbf16>,
    %c160 = arith.constant 160 : index
    %c0_177 = arith.constant 0 : index
    %194 = vector.load %arg5[%c160, %c0_177] : memref<384x128xf32, #tpu.memory_space<vmem>>, vector<16x128xf32>
    %c176 = arith.constant 176 : index
    %c0_178 = arith.constant 0 : index
    %195 = vector.load %arg5[%c176, %c0_178] : memref<384x128xf32, #tpu.memory_space<vmem>>, vector<16x128xf32>
    %196 = arith.maximumf %194, %195 : vector<16x128xf32>
    %197 = vector.extract_strided_slice %196 {offsets = [0, 0], sizes = [16, 64], strides = [1, 1]} : vector<16x128xf32> to vector<16x64xf32>
    %198 = vector.extract_strided_slice %196 {offsets = [0, 64], sizes = [16, 64], strides = [1, 1]} : vector<16x128xf32> to vector<16x64xf32>
    %199 = arith.maximumf %197, %198 : vector<16x64xf32>
    %200 = vector.extract_strided_slice %199 {offsets = [0, 0], sizes = [12, 64], strides = [1, 1]} : vector<16x64xf32> to vector<12x64xf32>
    %201 = vector.broadcast %118 : vector<1x64xf32> to vector<12x64xf32>
    %202 = arith.addf %200, %201 : vector<12x64xf32>
    %cst_179 = arith.constant 0.000000e+00 : f32
    %203 = vector.broadcast %cst_179 : f32 to vector<12x64xf32>
    %204 = arith.maximumf %202, %203 : vector<12x64xf32>
    %205 = arith.truncf %204 : vector<12x64xf32> to vector<12x64xbf16>
    %c0_180 = arith.constant 0 : index
    %c5_181 = arith.constant 5 : index
    %c0_182 = arith.constant 0 : index
    %c0_183 = arith.constant 0 : index
    %206 = vector.load %arg4[%c0_180, %c5_181, %c0_182, %c0_183] : memref<1x12x12x64xbf16, #tpu.memory_space<vmem>>, vector<1x1x12x64xbf16>
    %207 = vector.shape_cast %206 : vector<1x1x12x64xbf16> to vector<12x64xbf16>
    %208 = vector.shape_cast %205 : vector<12x64xbf16> to vector<1x1x12x64xbf16>
    tpu.vector_store %arg4[%c0_180, %c5_181, %c0_182, %c0_183], %208 {strides = array<i32>} : memref<1x12x12x64xbf16, #tpu.memory_space<vmem>>, vector<1x1x12x64xbf16>,
    %c192 = arith.constant 192 : index
    %c0_184 = arith.constant 0 : index
    %209 = vector.load %arg5[%c192, %c0_184] : memref<384x128xf32, #tpu.memory_space<vmem>>, vector<16x128xf32>
    %c208 = arith.constant 208 : index
    %c0_185 = arith.constant 0 : index
    %210 = vector.load %arg5[%c208, %c0_185] : memref<384x128xf32, #tpu.memory_space<vmem>>, vector<16x128xf32>
    %211 = arith.maximumf %209, %210 : vector<16x128xf32>
    %212 = vector.extract_strided_slice %211 {offsets = [0, 0], sizes = [16, 64], strides = [1, 1]} : vector<16x128xf32> to vector<16x64xf32>
    %213 = vector.extract_strided_slice %211 {offsets = [0, 64], sizes = [16, 64], strides = [1, 1]} : vector<16x128xf32> to vector<16x64xf32>
    %214 = arith.maximumf %212, %213 : vector<16x64xf32>
    %215 = vector.extract_strided_slice %214 {offsets = [0, 0], sizes = [12, 64], strides = [1, 1]} : vector<16x64xf32> to vector<12x64xf32>
    %216 = vector.broadcast %118 : vector<1x64xf32> to vector<12x64xf32>
    %217 = arith.addf %215, %216 : vector<12x64xf32>
    %cst_186 = arith.constant 0.000000e+00 : f32
    %218 = vector.broadcast %cst_186 : f32 to vector<12x64xf32>
    %219 = arith.maximumf %217, %218 : vector<12x64xf32>
    %220 = arith.truncf %219 : vector<12x64xf32> to vector<12x64xbf16>
    %c0_187 = arith.constant 0 : index
    %c6_188 = arith.constant 6 : index
    %c0_189 = arith.constant 0 : index
    %c0_190 = arith.constant 0 : index
    %221 = vector.load %arg4[%c0_187, %c6_188, %c0_189, %c0_190] : memref<1x12x12x64xbf16, #tpu.memory_space<vmem>>, vector<1x1x12x64xbf16>
    %222 = vector.shape_cast %221 : vector<1x1x12x64xbf16> to vector<12x64xbf16>
    %223 = vector.shape_cast %220 : vector<12x64xbf16> to vector<1x1x12x64xbf16>
    tpu.vector_store %arg4[%c0_187, %c6_188, %c0_189, %c0_190], %223 {strides = array<i32>} : memref<1x12x12x64xbf16, #tpu.memory_space<vmem>>, vector<1x1x12x64xbf16>,
    %c224 = arith.constant 224 : index
    %c0_191 = arith.constant 0 : index
    %224 = vector.load %arg5[%c224, %c0_191] : memref<384x128xf32, #tpu.memory_space<vmem>>, vector<16x128xf32>
    %c240 = arith.constant 240 : index
    %c0_192 = arith.constant 0 : index
    %225 = vector.load %arg5[%c240, %c0_192] : memref<384x128xf32, #tpu.memory_space<vmem>>, vector<16x128xf32>
    %226 = arith.maximumf %224, %225 : vector<16x128xf32>
    %227 = vector.extract_strided_slice %226 {offsets = [0, 0], sizes = [16, 64], strides = [1, 1]} : vector<16x128xf32> to vector<16x64xf32>
    %228 = vector.extract_strided_slice %226 {offsets = [0, 64], sizes = [16, 64], strides = [1, 1]} : vector<16x128xf32> to vector<16x64xf32>
    %229 = arith.maximumf %227, %228 : vector<16x64xf32>
    %230 = vector.extract_strided_slice %229 {offsets = [0, 0], sizes = [12, 64], strides = [1, 1]} : vector<16x64xf32> to vector<12x64xf32>
    %231 = vector.broadcast %118 : vector<1x64xf32> to vector<12x64xf32>
    %232 = arith.addf %230, %231 : vector<12x64xf32>
    %cst_193 = arith.constant 0.000000e+00 : f32
    %233 = vector.broadcast %cst_193 : f32 to vector<12x64xf32>
    %234 = arith.maximumf %232, %233 : vector<12x64xf32>
    %235 = arith.truncf %234 : vector<12x64xf32> to vector<12x64xbf16>
    %c0_194 = arith.constant 0 : index
    %c7_195 = arith.constant 7 : index
    %c0_196 = arith.constant 0 : index
    %c0_197 = arith.constant 0 : index
    %236 = vector.load %arg4[%c0_194, %c7_195, %c0_196, %c0_197] : memref<1x12x12x64xbf16, #tpu.memory_space<vmem>>, vector<1x1x12x64xbf16>
    %237 = vector.shape_cast %236 : vector<1x1x12x64xbf16> to vector<12x64xbf16>
    %238 = vector.shape_cast %235 : vector<12x64xbf16> to vector<1x1x12x64xbf16>
    tpu.vector_store %arg4[%c0_194, %c7_195, %c0_196, %c0_197], %238 {strides = array<i32>} : memref<1x12x12x64xbf16, #tpu.memory_space<vmem>>, vector<1x1x12x64xbf16>,
    %c256 = arith.constant 256 : index
    %c0_198 = arith.constant 0 : index
    %239 = vector.load %arg5[%c256, %c0_198] : memref<384x128xf32, #tpu.memory_space<vmem>>, vector<16x128xf32>
    %c272 = arith.constant 272 : index
    %c0_199 = arith.constant 0 : index
    %240 = vector.load %arg5[%c272, %c0_199] : memref<384x128xf32, #tpu.memory_space<vmem>>, vector<16x128xf32>
    %241 = arith.maximumf %239, %240 : vector<16x128xf32>
    %242 = vector.extract_strided_slice %241 {offsets = [0, 0], sizes = [16, 64], strides = [1, 1]} : vector<16x128xf32> to vector<16x64xf32>
    %243 = vector.extract_strided_slice %241 {offsets = [0, 64], sizes = [16, 64], strides = [1, 1]} : vector<16x128xf32> to vector<16x64xf32>
    %244 = arith.maximumf %242, %243 : vector<16x64xf32>
    %245 = vector.extract_strided_slice %244 {offsets = [0, 0], sizes = [12, 64], strides = [1, 1]} : vector<16x64xf32> to vector<12x64xf32>
    %246 = vector.broadcast %118 : vector<1x64xf32> to vector<12x64xf32>
    %247 = arith.addf %245, %246 : vector<12x64xf32>
    %cst_200 = arith.constant 0.000000e+00 : f32
    %248 = vector.broadcast %cst_200 : f32 to vector<12x64xf32>
    %249 = arith.maximumf %247, %248 : vector<12x64xf32>
    %250 = arith.truncf %249 : vector<12x64xf32> to vector<12x64xbf16>
    %c0_201 = arith.constant 0 : index
    %c8_202 = arith.constant 8 : index
    %c0_203 = arith.constant 0 : index
    %c0_204 = arith.constant 0 : index
    %251 = vector.load %arg4[%c0_201, %c8_202, %c0_203, %c0_204] : memref<1x12x12x64xbf16, #tpu.memory_space<vmem>>, vector<1x1x12x64xbf16>
    %252 = vector.shape_cast %251 : vector<1x1x12x64xbf16> to vector<12x64xbf16>
    %253 = vector.shape_cast %250 : vector<12x64xbf16> to vector<1x1x12x64xbf16>
    tpu.vector_store %arg4[%c0_201, %c8_202, %c0_203, %c0_204], %253 {strides = array<i32>} : memref<1x12x12x64xbf16, #tpu.memory_space<vmem>>, vector<1x1x12x64xbf16>,
    %c288 = arith.constant 288 : index
    %c0_205 = arith.constant 0 : index
    %254 = vector.load %arg5[%c288, %c0_205] : memref<384x128xf32, #tpu.memory_space<vmem>>, vector<16x128xf32>
    %c304 = arith.constant 304 : index
    %c0_206 = arith.constant 0 : index
    %255 = vector.load %arg5[%c304, %c0_206] : memref<384x128xf32, #tpu.memory_space<vmem>>, vector<16x128xf32>
    %256 = arith.maximumf %254, %255 : vector<16x128xf32>
    %257 = vector.extract_strided_slice %256 {offsets = [0, 0], sizes = [16, 64], strides = [1, 1]} : vector<16x128xf32> to vector<16x64xf32>
    %258 = vector.extract_strided_slice %256 {offsets = [0, 64], sizes = [16, 64], strides = [1, 1]} : vector<16x128xf32> to vector<16x64xf32>
    %259 = arith.maximumf %257, %258 : vector<16x64xf32>
    %260 = vector.extract_strided_slice %259 {offsets = [0, 0], sizes = [12, 64], strides = [1, 1]} : vector<16x64xf32> to vector<12x64xf32>
    %261 = vector.broadcast %118 : vector<1x64xf32> to vector<12x64xf32>
    %262 = arith.addf %260, %261 : vector<12x64xf32>
    %cst_207 = arith.constant 0.000000e+00 : f32
    %263 = vector.broadcast %cst_207 : f32 to vector<12x64xf32>
    %264 = arith.maximumf %262, %263 : vector<12x64xf32>
    %265 = arith.truncf %264 : vector<12x64xf32> to vector<12x64xbf16>
    %c0_208 = arith.constant 0 : index
    %c9_209 = arith.constant 9 : index
    %c0_210 = arith.constant 0 : index
    %c0_211 = arith.constant 0 : index
    %266 = vector.load %arg4[%c0_208, %c9_209, %c0_210, %c0_211] : memref<1x12x12x64xbf16, #tpu.memory_space<vmem>>, vector<1x1x12x64xbf16>
    %267 = vector.shape_cast %266 : vector<1x1x12x64xbf16> to vector<12x64xbf16>
    %268 = vector.shape_cast %265 : vector<12x64xbf16> to vector<1x1x12x64xbf16>
    tpu.vector_store %arg4[%c0_208, %c9_209, %c0_210, %c0_211], %268 {strides = array<i32>} : memref<1x12x12x64xbf16, #tpu.memory_space<vmem>>, vector<1x1x12x64xbf16>,
    %c320 = arith.constant 320 : index
    %c0_212 = arith.constant 0 : index
    %269 = vector.load %arg5[%c320, %c0_212] : memref<384x128xf32, #tpu.memory_space<vmem>>, vector<16x128xf32>
    %c336 = arith.constant 336 : index
    %c0_213 = arith.constant 0 : index
    %270 = vector.load %arg5[%c336, %c0_213] : memref<384x128xf32, #tpu.memory_space<vmem>>, vector<16x128xf32>
    %271 = arith.maximumf %269, %270 : vector<16x128xf32>
    %272 = vector.extract_strided_slice %271 {offsets = [0, 0], sizes = [16, 64], strides = [1, 1]} : vector<16x128xf32> to vector<16x64xf32>
    %273 = vector.extract_strided_slice %271 {offsets = [0, 64], sizes = [16, 64], strides = [1, 1]} : vector<16x128xf32> to vector<16x64xf32>
    %274 = arith.maximumf %272, %273 : vector<16x64xf32>
    %275 = vector.extract_strided_slice %274 {offsets = [0, 0], sizes = [12, 64], strides = [1, 1]} : vector<16x64xf32> to vector<12x64xf32>
    %276 = vector.broadcast %118 : vector<1x64xf32> to vector<12x64xf32>
    %277 = arith.addf %275, %276 : vector<12x64xf32>
    %cst_214 = arith.constant 0.000000e+00 : f32
    %278 = vector.broadcast %cst_214 : f32 to vector<12x64xf32>
    %279 = arith.maximumf %277, %278 : vector<12x64xf32>
    %280 = arith.truncf %279 : vector<12x64xf32> to vector<12x64xbf16>
    %c0_215 = arith.constant 0 : index
    %c10_216 = arith.constant 10 : index
    %c0_217 = arith.constant 0 : index
    %c0_218 = arith.constant 0 : index
    %281 = vector.load %arg4[%c0_215, %c10_216, %c0_217, %c0_218] : memref<1x12x12x64xbf16, #tpu.memory_space<vmem>>, vector<1x1x12x64xbf16>
    %282 = vector.shape_cast %281 : vector<1x1x12x64xbf16> to vector<12x64xbf16>
    %283 = vector.shape_cast %280 : vector<12x64xbf16> to vector<1x1x12x64xbf16>
    tpu.vector_store %arg4[%c0_215, %c10_216, %c0_217, %c0_218], %283 {strides = array<i32>} : memref<1x12x12x64xbf16, #tpu.memory_space<vmem>>, vector<1x1x12x64xbf16>,
    %c352 = arith.constant 352 : index
    %c0_219 = arith.constant 0 : index
    %284 = vector.load %arg5[%c352, %c0_219] : memref<384x128xf32, #tpu.memory_space<vmem>>, vector<16x128xf32>
    %c368 = arith.constant 368 : index
    %c0_220 = arith.constant 0 : index
    %285 = vector.load %arg5[%c368, %c0_220] : memref<384x128xf32, #tpu.memory_space<vmem>>, vector<16x128xf32>
    %286 = arith.maximumf %284, %285 : vector<16x128xf32>
    %287 = vector.extract_strided_slice %286 {offsets = [0, 0], sizes = [16, 64], strides = [1, 1]} : vector<16x128xf32> to vector<16x64xf32>
    %288 = vector.extract_strided_slice %286 {offsets = [0, 64], sizes = [16, 64], strides = [1, 1]} : vector<16x128xf32> to vector<16x64xf32>
    %289 = arith.maximumf %287, %288 : vector<16x64xf32>
    %290 = vector.extract_strided_slice %289 {offsets = [0, 0], sizes = [12, 64], strides = [1, 1]} : vector<16x64xf32> to vector<12x64xf32>
    %291 = vector.broadcast %118 : vector<1x64xf32> to vector<12x64xf32>
    %292 = arith.addf %290, %291 : vector<12x64xf32>
    %cst_221 = arith.constant 0.000000e+00 : f32
    %293 = vector.broadcast %cst_221 : f32 to vector<12x64xf32>
    %294 = arith.maximumf %292, %293 : vector<12x64xf32>
    %295 = arith.truncf %294 : vector<12x64xf32> to vector<12x64xbf16>
    %c0_222 = arith.constant 0 : index
    %c11_223 = arith.constant 11 : index
    %c0_224 = arith.constant 0 : index
    %c0_225 = arith.constant 0 : index
    %296 = vector.load %arg4[%c0_222, %c11_223, %c0_224, %c0_225] : memref<1x12x12x64xbf16, #tpu.memory_space<vmem>>, vector<1x1x12x64xbf16>
    %297 = vector.shape_cast %296 : vector<1x1x12x64xbf16> to vector<12x64xbf16>
    %298 = vector.shape_cast %295 : vector<12x64xbf16> to vector<1x1x12x64xbf16>
    tpu.vector_store %arg4[%c0_222, %c11_223, %c0_224, %c0_225], %298 {strides = array<i32>} : memref<1x12x12x64xbf16, #tpu.memory_space<vmem>>, vector<1x1x12x64xbf16>,
    return
  }
  func.func @transform_0(%arg0: i32) -> (i32, i32, i32) {
    %c0_i32 = arith.constant 0 : i32
    %c0_i32_0 = arith.constant 0 : i32
    %c0_i32_1 = arith.constant 0 : i32
    return %arg0, %c0_i32, %c0_i32_0 : i32, i32, i32
  }
  func.func @transform_1(%arg0: i32) -> (i32, i32, i32) {
    %c0_i32 = arith.constant 0 : i32
    %c0_i32_0 = arith.constant 0 : i32
    %c0_i32_1 = arith.constant 0 : i32
    %c0_i32_2 = arith.constant 0 : i32
    return %c0_i32, %c0_i32_0, %c0_i32_1 : i32, i32, i32
  }
  func.func @transform_2(%arg0: i32) -> (i32, i32) {
    %c0_i32 = arith.constant 0 : i32
    %c0_i32_0 = arith.constant 0 : i32
    %c0_i32_1 = arith.constant 0 : i32
    return %c0_i32, %c0_i32_0 : i32, i32
  }
  func.func @transform_3(%arg0: i32) -> (i32, i32, i32, i32) {
    %c0_i32 = arith.constant 0 : i32
    %c0_i32_0 = arith.constant 0 : i32
    %c0_i32_1 = arith.constant 0 : i32
    %c0_i32_2 = arith.constant 0 : i32
    return %arg0, %c0_i32, %c0_i32_0, %c0_i32_1 : i32, i32, i32, i32
  }
}

module attributes {stable_mosaic.version = 11 : i64} {
  func.func @head_kernel(%arg0: i32, %arg1: memref<2x1024xbf16, #tpu.memory_space<vmem>>, %arg2: memref<1024x512xbf16, #tpu.memory_space<vmem>>, %arg3: memref<1x512xf32, #tpu.memory_space<vmem>>, %arg4: memref<512x256xbf16, #tpu.memory_space<vmem>>, %arg5: memref<1x256xf32, #tpu.memory_space<vmem>>, %arg6: memref<128x128xbf16, #tpu.memory_space<vmem>>, %arg7: memref<1x128xf32, #tpu.memory_space<vmem>>, %arg8: memref<128x128xbf16, #tpu.memory_space<vmem>>, %arg9: memref<1x128xf32, #tpu.memory_space<vmem>>, %arg10: memref<2x128xf32, #tpu.memory_space<vmem>>, %arg11: memref<2x128xf32, #tpu.memory_space<vmem>>) attributes {dimension_semantics = [#tpu.dimension_semantics<parallel>], iteration_bounds = array<i64: 1>, scalar_prefetch = 0 : i64, scratch_operands = 0 : i64, tpu.core_type = #tpu.core_type<tc>, window_params = [{transform_indices = @transform_0, window_bounds = array<i64: 2, 1024>}, {pipeline_mode = #tpu.pipeline_mode<synchronous>, transform_indices = @transform_1, window_bounds = array<i64: 1024, 512>}, {pipeline_mode = #tpu.pipeline_mode<synchronous>, transform_indices = @transform_2, window_bounds = array<i64: 1, 512>}, {pipeline_mode = #tpu.pipeline_mode<synchronous>, transform_indices = @transform_3, window_bounds = array<i64: 512, 256>}, {pipeline_mode = #tpu.pipeline_mode<synchronous>, transform_indices = @transform_4, window_bounds = array<i64: 1, 256>}, {pipeline_mode = #tpu.pipeline_mode<synchronous>, transform_indices = @transform_5, window_bounds = array<i64: 128, 128>}, {pipeline_mode = #tpu.pipeline_mode<synchronous>, transform_indices = @transform_6, window_bounds = array<i64: 1, 128>}, {pipeline_mode = #tpu.pipeline_mode<synchronous>, transform_indices = @transform_7, window_bounds = array<i64: 128, 128>}, {pipeline_mode = #tpu.pipeline_mode<synchronous>, transform_indices = @transform_8, window_bounds = array<i64: 1, 128>}, {transform_indices = @transform_9, window_bounds = array<i64: 2, 128>}, {transform_indices = @transform_10, window_bounds = array<i64: 2, 128>}]} {
    %c0 = arith.constant 0 : index
    %c0_0 = arith.constant 0 : index
    %0 = vector.load %arg1[%c0, %c0_0] : memref<2x1024xbf16, #tpu.memory_space<vmem>>, vector<2x1024xbf16>
    %c0_1 = arith.constant 0 : index
    %c0_2 = arith.constant 0 : index
    %1 = vector.load %arg2[%c0_1, %c0_2] : memref<1024x512xbf16, #tpu.memory_space<vmem>>, vector<1024x512xbf16>
    %cst = arith.constant dense<0.000000e+00> : vector<2x512xf32>
    %2 = tpu.matmul %0, %1, %cst {dimension_numbers = #tpu.dot_dimension_numbers<[1], [0], [0], [1], [0, 0, 1, 1], [], []>} : vector<2x1024xbf16>, vector<1024x512xbf16>, vector<2x512xf32> -> vector<2x512xf32>
    %c0_3 = arith.constant 0 : index
    %c0_4 = arith.constant 0 : index
    %3 = vector.load %arg3[%c0_3, %c0_4] : memref<1x512xf32, #tpu.memory_space<vmem>>, vector<1x512xf32>
    %4 = vector.broadcast %3 : vector<1x512xf32> to vector<2x512xf32>
    %5 = arith.addf %2, %4 : vector<2x512xf32>
    %cst_5 = arith.constant 0.000000e+00 : f32
    %6 = vector.broadcast %cst_5 : f32 to vector<2x512xf32>
    %7 = arith.maximumf %5, %6 : vector<2x512xf32>
    %8 = arith.truncf %7 : vector<2x512xf32> to vector<2x512xbf16>
    %c0_6 = arith.constant 0 : index
    %c0_7 = arith.constant 0 : index
    %9 = vector.load %arg4[%c0_6, %c0_7] : memref<512x256xbf16, #tpu.memory_space<vmem>>, vector<512x256xbf16>
    %cst_8 = arith.constant dense<0.000000e+00> : vector<2x256xf32>
    %10 = tpu.matmul %8, %9, %cst_8 {dimension_numbers = #tpu.dot_dimension_numbers<[1], [0], [0], [1], [0, 0, 1, 1], [], []>} : vector<2x512xbf16>, vector<512x256xbf16>, vector<2x256xf32> -> vector<2x256xf32>
    %c0_9 = arith.constant 0 : index
    %c0_10 = arith.constant 0 : index
    %11 = vector.load %arg5[%c0_9, %c0_10] : memref<1x256xf32, #tpu.memory_space<vmem>>, vector<1x256xf32>
    %12 = vector.broadcast %11 : vector<1x256xf32> to vector<2x256xf32>
    %13 = arith.addf %10, %12 : vector<2x256xf32>
    %cst_11 = arith.constant 0.000000e+00 : f32
    %14 = vector.broadcast %cst_11 : f32 to vector<2x256xf32>
    %15 = arith.maximumf %13, %14 : vector<2x256xf32>
    %16 = arith.truncf %15 : vector<2x256xf32> to vector<2x256xbf16>
    %17 = vector.extract_strided_slice %16 {offsets = [0, 0], sizes = [2, 128], strides = [1, 1]} : vector<2x256xbf16> to vector<2x128xbf16>
    %c0_12 = arith.constant 0 : index
    %c0_13 = arith.constant 0 : index
    %18 = vector.load %arg6[%c0_12, %c0_13] : memref<128x128xbf16, #tpu.memory_space<vmem>>, vector<128x128xbf16>
    %cst_14 = arith.constant dense<0.000000e+00> : vector<2x128xf32>
    %19 = tpu.matmul %17, %18, %cst_14 {dimension_numbers = #tpu.dot_dimension_numbers<[1], [0], [0], [1], [0, 0, 1, 1], [], []>} : vector<2x128xbf16>, vector<128x128xbf16>, vector<2x128xf32> -> vector<2x128xf32>
    %c0_15 = arith.constant 0 : index
    %c0_16 = arith.constant 0 : index
    %20 = vector.load %arg7[%c0_15, %c0_16] : memref<1x128xf32, #tpu.memory_space<vmem>>, vector<1x128xf32>
    %21 = vector.broadcast %20 : vector<1x128xf32> to vector<2x128xf32>
    %22 = arith.addf %19, %21 : vector<2x128xf32>
    %23 = vector.extract_strided_slice %16 {offsets = [0, 128], sizes = [2, 128], strides = [1, 1]} : vector<2x256xbf16> to vector<2x128xbf16>
    %c0_17 = arith.constant 0 : index
    %c0_18 = arith.constant 0 : index
    %24 = vector.load %arg8[%c0_17, %c0_18] : memref<128x128xbf16, #tpu.memory_space<vmem>>, vector<128x128xbf16>
    %cst_19 = arith.constant dense<0.000000e+00> : vector<2x128xf32>
    %25 = tpu.matmul %23, %24, %cst_19 {dimension_numbers = #tpu.dot_dimension_numbers<[1], [0], [0], [1], [0, 0, 1, 1], [], []>} : vector<2x128xbf16>, vector<128x128xbf16>, vector<2x128xf32> -> vector<2x128xf32>
    %c0_20 = arith.constant 0 : index
    %c0_21 = arith.constant 0 : index
    %26 = vector.load %arg9[%c0_20, %c0_21] : memref<1x128xf32, #tpu.memory_space<vmem>>, vector<1x128xf32>
    %27 = vector.broadcast %26 : vector<1x128xf32> to vector<2x128xf32>
    %28 = arith.addf %25, %27 : vector<2x128xf32>
    %cst_22 = arith.constant dense<0xFF800000> : vector<2xf32>
    %29 = vector.multi_reduction <maximumf>, %22, %cst_22 [1] : vector<2x128xf32> to vector<2xf32>
    %30 = vector.shape_cast %29 : vector<2xf32> to vector<2x1xf32>
    %31 = vector.broadcast %30 : vector<2x1xf32> to vector<2x128xf32>
    %32 = arith.subf %22, %31 : vector<2x128xf32>
    %33 = math.exp %32 : vector<2x128xf32>
    %cst_23 = arith.constant dense<0.000000e+00> : vector<2xf32>
    %34 = vector.multi_reduction <add>, %33, %cst_23 [1] : vector<2x128xf32> to vector<2xf32>
    %35 = vector.shape_cast %34 : vector<2xf32> to vector<2x1xf32>
    %36 = math.log %35 : vector<2x1xf32>
    %37 = arith.addf %36, %30 : vector<2x1xf32>
    %38 = vector.broadcast %37 : vector<2x1xf32> to vector<2x128xf32>
    %39 = arith.subf %22, %38 : vector<2x128xf32>
    %c0_24 = arith.constant 0 : index
    %c0_25 = arith.constant 0 : index
    %40 = vector.load %arg10[%c0_24, %c0_25] : memref<2x128xf32, #tpu.memory_space<vmem>>, vector<2x128xf32>
    tpu.vector_store %arg10[%c0_24, %c0_25], %39 {strides = array<i32>} : memref<2x128xf32, #tpu.memory_space<vmem>>, vector<2x128xf32>,
    %cst_26 = arith.constant dense<0xFF800000> : vector<2xf32>
    %41 = vector.multi_reduction <maximumf>, %28, %cst_26 [1] : vector<2x128xf32> to vector<2xf32>
    %42 = vector.shape_cast %41 : vector<2xf32> to vector<2x1xf32>
    %43 = vector.broadcast %42 : vector<2x1xf32> to vector<2x128xf32>
    %44 = arith.subf %28, %43 : vector<2x128xf32>
    %45 = math.exp %44 : vector<2x128xf32>
    %cst_27 = arith.constant dense<0.000000e+00> : vector<2xf32>
    %46 = vector.multi_reduction <add>, %45, %cst_27 [1] : vector<2x128xf32> to vector<2xf32>
    %47 = vector.shape_cast %46 : vector<2xf32> to vector<2x1xf32>
    %48 = math.log %47 : vector<2x1xf32>
    %49 = arith.addf %48, %42 : vector<2x1xf32>
    %50 = vector.broadcast %49 : vector<2x1xf32> to vector<2x128xf32>
    %51 = arith.subf %28, %50 : vector<2x128xf32>
    %c0_28 = arith.constant 0 : index
    %c0_29 = arith.constant 0 : index
    %52 = vector.load %arg11[%c0_28, %c0_29] : memref<2x128xf32, #tpu.memory_space<vmem>>, vector<2x128xf32>
    tpu.vector_store %arg11[%c0_28, %c0_29], %51 {strides = array<i32>} : memref<2x128xf32, #tpu.memory_space<vmem>>, vector<2x128xf32>,
    return
  }
  func.func @transform_0(%arg0: i32) -> (i32, i32) {
    %c0_i32 = arith.constant 0 : i32
    %c0_i32_0 = arith.constant 0 : i32
    return %arg0, %c0_i32 : i32, i32
  }
  func.func @transform_1(%arg0: i32) -> (i32, i32) {
    %c0_i32 = arith.constant 0 : i32
    %c0_i32_0 = arith.constant 0 : i32
    %c0_i32_1 = arith.constant 0 : i32
    return %c0_i32, %c0_i32_0 : i32, i32
  }
  func.func @transform_2(%arg0: i32) -> (i32, i32) {
    %c0_i32 = arith.constant 0 : i32
    %c0_i32_0 = arith.constant 0 : i32
    %c0_i32_1 = arith.constant 0 : i32
    return %c0_i32, %c0_i32_0 : i32, i32
  }
  func.func @transform_3(%arg0: i32) -> (i32, i32) {
    %c0_i32 = arith.constant 0 : i32
    %c0_i32_0 = arith.constant 0 : i32
    %c0_i32_1 = arith.constant 0 : i32
    return %c0_i32, %c0_i32_0 : i32, i32
  }
  func.func @transform_4(%arg0: i32) -> (i32, i32) {
    %c0_i32 = arith.constant 0 : i32
    %c0_i32_0 = arith.constant 0 : i32
    %c0_i32_1 = arith.constant 0 : i32
    return %c0_i32, %c0_i32_0 : i32, i32
  }
  func.func @transform_5(%arg0: i32) -> (i32, i32) {
    %c0_i32 = arith.constant 0 : i32
    %c0_i32_0 = arith.constant 0 : i32
    %c0_i32_1 = arith.constant 0 : i32
    return %c0_i32, %c0_i32_0 : i32, i32
  }
  func.func @transform_6(%arg0: i32) -> (i32, i32) {
    %c0_i32 = arith.constant 0 : i32
    %c0_i32_0 = arith.constant 0 : i32
    %c0_i32_1 = arith.constant 0 : i32
    return %c0_i32, %c0_i32_0 : i32, i32
  }
  func.func @transform_7(%arg0: i32) -> (i32, i32) {
    %c0_i32 = arith.constant 0 : i32
    %c0_i32_0 = arith.constant 0 : i32
    %c0_i32_1 = arith.constant 0 : i32
    return %c0_i32, %c0_i32_0 : i32, i32
  }
  func.func @transform_8(%arg0: i32) -> (i32, i32) {
    %c0_i32 = arith.constant 0 : i32
    %c0_i32_0 = arith.constant 0 : i32
    %c0_i32_1 = arith.constant 0 : i32
    return %c0_i32, %c0_i32_0 : i32, i32
  }
  func.func @transform_9(%arg0: i32) -> (i32, i32) {
    %c0_i32 = arith.constant 0 : i32
    %c0_i32_0 = arith.constant 0 : i32
    return %arg0, %c0_i32 : i32, i32
  }
  func.func @transform_10(%arg0: i32) -> (i32, i32) {
    %c0_i32 = arith.constant 0 : i32
    %c0_i32_0 = arith.constant 0 : i32
    return %arg0, %c0_i32 : i32, i32
  }
}

module attributes {stable_mosaic.version = 11 : i64} {
  func.func @conv_pool_relu_kernel(%arg0: i32, %arg1: memref<1x208x128xbf16, #tpu.memory_space<vmem>>, %arg2: memref<15x128x128xbf16, #tpu.memory_space<vmem>>, %arg3: memref<1x64xf32, #tpu.memory_space<vmem>>, %arg4: memref<1x4x4x64xbf16, #tpu.memory_space<vmem>>, %arg5: memref<128x128xf32, #tpu.memory_space<vmem>>) attributes {dimension_semantics = [#tpu.dimension_semantics<parallel>], iteration_bounds = array<i64: 2>, scalar_prefetch = 0 : i64, scratch_operands = 1 : i64, tpu.core_type = #tpu.core_type<tc>, window_params = [{transform_indices = @transform_0, window_bounds = array<i64: 1, 208, 128>}, {pipeline_mode = #tpu.pipeline_mode<synchronous>, transform_indices = @transform_1, window_bounds = array<i64: 15, 128, 128>}, {pipeline_mode = #tpu.pipeline_mode<synchronous>, transform_indices = @transform_2, window_bounds = array<i64: 1, 64>}, {transform_indices = @transform_3, window_bounds = array<i64: 1, 4, 4, 64>}]} {
    %c0 = arith.constant 0 : index
    %c0_0 = arith.constant 0 : index
    %c0_1 = arith.constant 0 : index
    %0 = vector.load %arg1[%c0, %c0_0, %c0_1] : memref<1x208x128xbf16, #tpu.memory_space<vmem>>, vector<1x128x128xbf16>
    %1 = vector.shape_cast %0 : vector<1x128x128xbf16> to vector<128x128xbf16>
    %c0_2 = arith.constant 0 : index
    %c0_3 = arith.constant 0 : index
    %c0_4 = arith.constant 0 : index
    %2 = vector.load %arg2[%c0_2, %c0_3, %c0_4] : memref<15x128x128xbf16, #tpu.memory_space<vmem>>, vector<1x128x128xbf16>
    %3 = vector.shape_cast %2 : vector<1x128x128xbf16> to vector<128x128xbf16>
    %cst = arith.constant dense<0.000000e+00> : vector<128x128xf32>
    %4 = tpu.matmul %1, %3, %cst {dimension_numbers = #tpu.dot_dimension_numbers<[1], [0], [0], [1], [0, 0, 1, 1], [], []>} : vector<128x128xbf16>, vector<128x128xbf16>, vector<128x128xf32> -> vector<128x128xf32>
    %c0_5 = arith.constant 0 : index
    %c0_6 = arith.constant 0 : index
    %5 = vector.load %arg5[%c0_5, %c0_6] : memref<128x128xf32, #tpu.memory_space<vmem>>, vector<128x128xf32>
    tpu.vector_store %arg5[%c0_5, %c0_6], %4 {strides = array<i32>} : memref<128x128xf32, #tpu.memory_space<vmem>>, vector<128x128xf32>,
    %c0_7 = arith.constant 0 : index
    %c1 = arith.constant 1 : index
    %c0_8 = arith.constant 0 : index
    %6 = vector.load %arg1[%c0_7, %c1, %c0_8] : memref<1x208x128xbf16, #tpu.memory_space<vmem>>, vector<1x128x128xbf16>
    %7 = vector.shape_cast %6 : vector<1x128x128xbf16> to vector<128x128xbf16>
    %c1_9 = arith.constant 1 : index
    %c0_10 = arith.constant 0 : index
    %c0_11 = arith.constant 0 : index
    %8 = vector.load %arg2[%c1_9, %c0_10, %c0_11] : memref<15x128x128xbf16, #tpu.memory_space<vmem>>, vector<1x128x128xbf16>
    %9 = vector.shape_cast %8 : vector<1x128x128xbf16> to vector<128x128xbf16>
    %cst_12 = arith.constant dense<0.000000e+00> : vector<128x128xf32>
    %10 = tpu.matmul %7, %9, %cst_12 {dimension_numbers = #tpu.dot_dimension_numbers<[1], [0], [0], [1], [0, 0, 1, 1], [], []>} : vector<128x128xbf16>, vector<128x128xbf16>, vector<128x128xf32> -> vector<128x128xf32>
    %c0_13 = arith.constant 0 : index
    %c0_14 = arith.constant 0 : index
    %11 = vector.load %arg5[%c0_13, %c0_14] : memref<128x128xf32, #tpu.memory_space<vmem>>, vector<128x128xf32>
    %12 = arith.addf %11, %10 : vector<128x128xf32>
    %c0_15 = arith.constant 0 : index
    %c0_16 = arith.constant 0 : index
    %13 = vector.load %arg5[%c0_15, %c0_16] : memref<128x128xf32, #tpu.memory_space<vmem>>, vector<128x128xf32>
    tpu.vector_store %arg5[%c0_15, %c0_16], %12 {strides = array<i32>} : memref<128x128xf32, #tpu.memory_space<vmem>>, vector<128x128xf32>,
    %c0_17 = arith.constant 0 : index
    %c2 = arith.constant 2 : index
    %c0_18 = arith.constant 0 : index
    %14 = vector.load %arg1[%c0_17, %c2, %c0_18] : memref<1x208x128xbf16, #tpu.memory_space<vmem>>, vector<1x128x128xbf16>
    %15 = vector.shape_cast %14 : vector<1x128x128xbf16> to vector<128x128xbf16>
    %c2_19 = arith.constant 2 : index
    %c0_20 = arith.constant 0 : index
    %c0_21 = arith.constant 0 : index
    %16 = vector.load %arg2[%c2_19, %c0_20, %c0_21] : memref<15x128x128xbf16, #tpu.memory_space<vmem>>, vector<1x128x128xbf16>
    %17 = vector.shape_cast %16 : vector<1x128x128xbf16> to vector<128x128xbf16>
    %cst_22 = arith.constant dense<0.000000e+00> : vector<128x128xf32>
    %18 = tpu.matmul %15, %17, %cst_22 {dimension_numbers = #tpu.dot_dimension_numbers<[1], [0], [0], [1], [0, 0, 1, 1], [], []>} : vector<128x128xbf16>, vector<128x128xbf16>, vector<128x128xf32> -> vector<128x128xf32>
    %c0_23 = arith.constant 0 : index
    %c0_24 = arith.constant 0 : index
    %19 = vector.load %arg5[%c0_23, %c0_24] : memref<128x128xf32, #tpu.memory_space<vmem>>, vector<128x128xf32>
    %20 = arith.addf %19, %18 : vector<128x128xf32>
    %c0_25 = arith.constant 0 : index
    %c0_26 = arith.constant 0 : index
    %21 = vector.load %arg5[%c0_25, %c0_26] : memref<128x128xf32, #tpu.memory_space<vmem>>, vector<128x128xf32>
    tpu.vector_store %arg5[%c0_25, %c0_26], %20 {strides = array<i32>} : memref<128x128xf32, #tpu.memory_space<vmem>>, vector<128x128xf32>,
    %c0_27 = arith.constant 0 : index
    %c16 = arith.constant 16 : index
    %c0_28 = arith.constant 0 : index
    %22 = vector.load %arg1[%c0_27, %c16, %c0_28] : memref<1x208x128xbf16, #tpu.memory_space<vmem>>, vector<1x128x128xbf16>
    %23 = vector.shape_cast %22 : vector<1x128x128xbf16> to vector<128x128xbf16>
    %c3 = arith.constant 3 : index
    %c0_29 = arith.constant 0 : index
    %c0_30 = arith.constant 0 : index
    %24 = vector.load %arg2[%c3, %c0_29, %c0_30] : memref<15x128x128xbf16, #tpu.memory_space<vmem>>, vector<1x128x128xbf16>
    %25 = vector.shape_cast %24 : vector<1x128x128xbf16> to vector<128x128xbf16>
    %cst_31 = arith.constant dense<0.000000e+00> : vector<128x128xf32>
    %26 = tpu.matmul %23, %25, %cst_31 {dimension_numbers = #tpu.dot_dimension_numbers<[1], [0], [0], [1], [0, 0, 1, 1], [], []>} : vector<128x128xbf16>, vector<128x128xbf16>, vector<128x128xf32> -> vector<128x128xf32>
    %c0_32 = arith.constant 0 : index
    %c0_33 = arith.constant 0 : index
    %27 = vector.load %arg5[%c0_32, %c0_33] : memref<128x128xf32, #tpu.memory_space<vmem>>, vector<128x128xf32>
    %28 = arith.addf %27, %26 : vector<128x128xf32>
    %c0_34 = arith.constant 0 : index
    %c0_35 = arith.constant 0 : index
    %29 = vector.load %arg5[%c0_34, %c0_35] : memref<128x128xf32, #tpu.memory_space<vmem>>, vector<128x128xf32>
    tpu.vector_store %arg5[%c0_34, %c0_35], %28 {strides = array<i32>} : memref<128x128xf32, #tpu.memory_space<vmem>>, vector<128x128xf32>,
    %c0_36 = arith.constant 0 : index
    %c17 = arith.constant 17 : index
    %c0_37 = arith.constant 0 : index
    %30 = vector.load %arg1[%c0_36, %c17, %c0_37] : memref<1x208x128xbf16, #tpu.memory_space<vmem>>, vector<1x128x128xbf16>
    %31 = vector.shape_cast %30 : vector<1x128x128xbf16> to vector<128x128xbf16>
    %c4 = arith.constant 4 : index
    %c0_38 = arith.constant 0 : index
    %c0_39 = arith.constant 0 : index
    %32 = vector.load %arg2[%c4, %c0_38, %c0_39] : memref<15x128x128xbf16, #tpu.memory_space<vmem>>, vector<1x128x128xbf16>
    %33 = vector.shape_cast %32 : vector<1x128x128xbf16> to vector<128x128xbf16>
    %cst_40 = arith.constant dense<0.000000e+00> : vector<128x128xf32>
    %34 = tpu.matmul %31, %33, %cst_40 {dimension_numbers = #tpu.dot_dimension_numbers<[1], [0], [0], [1], [0, 0, 1, 1], [], []>} : vector<128x128xbf16>, vector<128x128xbf16>, vector<128x128xf32> -> vector<128x128xf32>
    %c0_41 = arith.constant 0 : index
    %c0_42 = arith.constant 0 : index
    %35 = vector.load %arg5[%c0_41, %c0_42] : memref<128x128xf32, #tpu.memory_space<vmem>>, vector<128x128xf32>
    %36 = arith.addf %35, %34 : vector<128x128xf32>
    %c0_43 = arith.constant 0 : index
    %c0_44 = arith.constant 0 : index
    %37 = vector.load %arg5[%c0_43, %c0_44] : memref<128x128xf32, #tpu.memory_space<vmem>>, vector<128x128xf32>
    tpu.vector_store %arg5[%c0_43, %c0_44], %36 {strides = array<i32>} : memref<128x128xf32, #tpu.memory_space<vmem>>, vector<128x128xf32>,
    %c0_45 = arith.constant 0 : index
    %c18 = arith.constant 18 : index
    %c0_46 = arith.constant 0 : index
    %38 = vector.load %arg1[%c0_45, %c18, %c0_46] : memref<1x208x128xbf16, #tpu.memory_space<vmem>>, vector<1x128x128xbf16>
    %39 = vector.shape_cast %38 : vector<1x128x128xbf16> to vector<128x128xbf16>
    %c5 = arith.constant 5 : index
    %c0_47 = arith.constant 0 : index
    %c0_48 = arith.constant 0 : index
    %40 = vector.load %arg2[%c5, %c0_47, %c0_48] : memref<15x128x128xbf16, #tpu.memory_space<vmem>>, vector<1x128x128xbf16>
    %41 = vector.shape_cast %40 : vector<1x128x128xbf16> to vector<128x128xbf16>
    %cst_49 = arith.constant dense<0.000000e+00> : vector<128x128xf32>
    %42 = tpu.matmul %39, %41, %cst_49 {dimension_numbers = #tpu.dot_dimension_numbers<[1], [0], [0], [1], [0, 0, 1, 1], [], []>} : vector<128x128xbf16>, vector<128x128xbf16>, vector<128x128xf32> -> vector<128x128xf32>
    %c0_50 = arith.constant 0 : index
    %c0_51 = arith.constant 0 : index
    %43 = vector.load %arg5[%c0_50, %c0_51] : memref<128x128xf32, #tpu.memory_space<vmem>>, vector<128x128xf32>
    %44 = arith.addf %43, %42 : vector<128x128xf32>
    %c0_52 = arith.constant 0 : index
    %c0_53 = arith.constant 0 : index
    %45 = vector.load %arg5[%c0_52, %c0_53] : memref<128x128xf32, #tpu.memory_space<vmem>>, vector<128x128xf32>
    tpu.vector_store %arg5[%c0_52, %c0_53], %44 {strides = array<i32>} : memref<128x128xf32, #tpu.memory_space<vmem>>, vector<128x128xf32>,
    %c0_54 = arith.constant 0 : index
    %c32 = arith.constant 32 : index
    %c0_55 = arith.constant 0 : index
    %46 = vector.load %arg1[%c0_54, %c32, %c0_55] : memref<1x208x128xbf16, #tpu.memory_space<vmem>>, vector<1x128x128xbf16>
    %47 = vector.shape_cast %46 : vector<1x128x128xbf16> to vector<128x128xbf16>
    %c6 = arith.constant 6 : index
    %c0_56 = arith.constant 0 : index
    %c0_57 = arith.constant 0 : index
    %48 = vector.load %arg2[%c6, %c0_56, %c0_57] : memref<15x128x128xbf16, #tpu.memory_space<vmem>>, vector<1x128x128xbf16>
    %49 = vector.shape_cast %48 : vector<1x128x128xbf16> to vector<128x128xbf16>
    %cst_58 = arith.constant dense<0.000000e+00> : vector<128x128xf32>
    %50 = tpu.matmul %47, %49, %cst_58 {dimension_numbers = #tpu.dot_dimension_numbers<[1], [0], [0], [1], [0, 0, 1, 1], [], []>} : vector<128x128xbf16>, vector<128x128xbf16>, vector<128x128xf32> -> vector<128x128xf32>
    %c0_59 = arith.constant 0 : index
    %c0_60 = arith.constant 0 : index
    %51 = vector.load %arg5[%c0_59, %c0_60] : memref<128x128xf32, #tpu.memory_space<vmem>>, vector<128x128xf32>
    %52 = arith.addf %51, %50 : vector<128x128xf32>
    %c0_61 = arith.constant 0 : index
    %c0_62 = arith.constant 0 : index
    %53 = vector.load %arg5[%c0_61, %c0_62] : memref<128x128xf32, #tpu.memory_space<vmem>>, vector<128x128xf32>
    tpu.vector_store %arg5[%c0_61, %c0_62], %52 {strides = array<i32>} : memref<128x128xf32, #tpu.memory_space<vmem>>, vector<128x128xf32>,
    %c0_63 = arith.constant 0 : index
    %c33 = arith.constant 33 : index
    %c0_64 = arith.constant 0 : index
    %54 = vector.load %arg1[%c0_63, %c33, %c0_64] : memref<1x208x128xbf16, #tpu.memory_space<vmem>>, vector<1x128x128xbf16>
    %55 = vector.shape_cast %54 : vector<1x128x128xbf16> to vector<128x128xbf16>
    %c7 = arith.constant 7 : index
    %c0_65 = arith.constant 0 : index
    %c0_66 = arith.constant 0 : index
    %56 = vector.load %arg2[%c7, %c0_65, %c0_66] : memref<15x128x128xbf16, #tpu.memory_space<vmem>>, vector<1x128x128xbf16>
    %57 = vector.shape_cast %56 : vector<1x128x128xbf16> to vector<128x128xbf16>
    %cst_67 = arith.constant dense<0.000000e+00> : vector<128x128xf32>
    %58 = tpu.matmul %55, %57, %cst_67 {dimension_numbers = #tpu.dot_dimension_numbers<[1], [0], [0], [1], [0, 0, 1, 1], [], []>} : vector<128x128xbf16>, vector<128x128xbf16>, vector<128x128xf32> -> vector<128x128xf32>
    %c0_68 = arith.constant 0 : index
    %c0_69 = arith.constant 0 : index
    %59 = vector.load %arg5[%c0_68, %c0_69] : memref<128x128xf32, #tpu.memory_space<vmem>>, vector<128x128xf32>
    %60 = arith.addf %59, %58 : vector<128x128xf32>
    %c0_70 = arith.constant 0 : index
    %c0_71 = arith.constant 0 : index
    %61 = vector.load %arg5[%c0_70, %c0_71] : memref<128x128xf32, #tpu.memory_space<vmem>>, vector<128x128xf32>
    tpu.vector_store %arg5[%c0_70, %c0_71], %60 {strides = array<i32>} : memref<128x128xf32, #tpu.memory_space<vmem>>, vector<128x128xf32>,
    %c0_72 = arith.constant 0 : index
    %c34 = arith.constant 34 : index
    %c0_73 = arith.constant 0 : index
    %62 = vector.load %arg1[%c0_72, %c34, %c0_73] : memref<1x208x128xbf16, #tpu.memory_space<vmem>>, vector<1x128x128xbf16>
    %63 = vector.shape_cast %62 : vector<1x128x128xbf16> to vector<128x128xbf16>
    %c8 = arith.constant 8 : index
    %c0_74 = arith.constant 0 : index
    %c0_75 = arith.constant 0 : index
    %64 = vector.load %arg2[%c8, %c0_74, %c0_75] : memref<15x128x128xbf16, #tpu.memory_space<vmem>>, vector<1x128x128xbf16>
    %65 = vector.shape_cast %64 : vector<1x128x128xbf16> to vector<128x128xbf16>
    %cst_76 = arith.constant dense<0.000000e+00> : vector<128x128xf32>
    %66 = tpu.matmul %63, %65, %cst_76 {dimension_numbers = #tpu.dot_dimension_numbers<[1], [0], [0], [1], [0, 0, 1, 1], [], []>} : vector<128x128xbf16>, vector<128x128xbf16>, vector<128x128xf32> -> vector<128x128xf32>
    %c0_77 = arith.constant 0 : index
    %c0_78 = arith.constant 0 : index
    %67 = vector.load %arg5[%c0_77, %c0_78] : memref<128x128xf32, #tpu.memory_space<vmem>>, vector<128x128xf32>
    %68 = arith.addf %67, %66 : vector<128x128xf32>
    %c0_79 = arith.constant 0 : index
    %c0_80 = arith.constant 0 : index
    %69 = vector.load %arg5[%c0_79, %c0_80] : memref<128x128xf32, #tpu.memory_space<vmem>>, vector<128x128xf32>
    tpu.vector_store %arg5[%c0_79, %c0_80], %68 {strides = array<i32>} : memref<128x128xf32, #tpu.memory_space<vmem>>, vector<128x128xf32>,
    %c0_81 = arith.constant 0 : index
    %c48 = arith.constant 48 : index
    %c0_82 = arith.constant 0 : index
    %70 = vector.load %arg1[%c0_81, %c48, %c0_82] : memref<1x208x128xbf16, #tpu.memory_space<vmem>>, vector<1x128x128xbf16>
    %71 = vector.shape_cast %70 : vector<1x128x128xbf16> to vector<128x128xbf16>
    %c9 = arith.constant 9 : index
    %c0_83 = arith.constant 0 : index
    %c0_84 = arith.constant 0 : index
    %72 = vector.load %arg2[%c9, %c0_83, %c0_84] : memref<15x128x128xbf16, #tpu.memory_space<vmem>>, vector<1x128x128xbf16>
    %73 = vector.shape_cast %72 : vector<1x128x128xbf16> to vector<128x128xbf16>
    %cst_85 = arith.constant dense<0.000000e+00> : vector<128x128xf32>
    %74 = tpu.matmul %71, %73, %cst_85 {dimension_numbers = #tpu.dot_dimension_numbers<[1], [0], [0], [1], [0, 0, 1, 1], [], []>} : vector<128x128xbf16>, vector<128x128xbf16>, vector<128x128xf32> -> vector<128x128xf32>
    %c0_86 = arith.constant 0 : index
    %c0_87 = arith.constant 0 : index
    %75 = vector.load %arg5[%c0_86, %c0_87] : memref<128x128xf32, #tpu.memory_space<vmem>>, vector<128x128xf32>
    %76 = arith.addf %75, %74 : vector<128x128xf32>
    %c0_88 = arith.constant 0 : index
    %c0_89 = arith.constant 0 : index
    %77 = vector.load %arg5[%c0_88, %c0_89] : memref<128x128xf32, #tpu.memory_space<vmem>>, vector<128x128xf32>
    tpu.vector_store %arg5[%c0_88, %c0_89], %76 {strides = array<i32>} : memref<128x128xf32, #tpu.memory_space<vmem>>, vector<128x128xf32>,
    %c0_90 = arith.constant 0 : index
    %c49 = arith.constant 49 : index
    %c0_91 = arith.constant 0 : index
    %78 = vector.load %arg1[%c0_90, %c49, %c0_91] : memref<1x208x128xbf16, #tpu.memory_space<vmem>>, vector<1x128x128xbf16>
    %79 = vector.shape_cast %78 : vector<1x128x128xbf16> to vector<128x128xbf16>
    %c10 = arith.constant 10 : index
    %c0_92 = arith.constant 0 : index
    %c0_93 = arith.constant 0 : index
    %80 = vector.load %arg2[%c10, %c0_92, %c0_93] : memref<15x128x128xbf16, #tpu.memory_space<vmem>>, vector<1x128x128xbf16>
    %81 = vector.shape_cast %80 : vector<1x128x128xbf16> to vector<128x128xbf16>
    %cst_94 = arith.constant dense<0.000000e+00> : vector<128x128xf32>
    %82 = tpu.matmul %79, %81, %cst_94 {dimension_numbers = #tpu.dot_dimension_numbers<[1], [0], [0], [1], [0, 0, 1, 1], [], []>} : vector<128x128xbf16>, vector<128x128xbf16>, vector<128x128xf32> -> vector<128x128xf32>
    %c0_95 = arith.constant 0 : index
    %c0_96 = arith.constant 0 : index
    %83 = vector.load %arg5[%c0_95, %c0_96] : memref<128x128xf32, #tpu.memory_space<vmem>>, vector<128x128xf32>
    %84 = arith.addf %83, %82 : vector<128x128xf32>
    %c0_97 = arith.constant 0 : index
    %c0_98 = arith.constant 0 : index
    %85 = vector.load %arg5[%c0_97, %c0_98] : memref<128x128xf32, #tpu.memory_space<vmem>>, vector<128x128xf32>
    tpu.vector_store %arg5[%c0_97, %c0_98], %84 {strides = array<i32>} : memref<128x128xf32, #tpu.memory_space<vmem>>, vector<128x128xf32>,
    %c0_99 = arith.constant 0 : index
    %c50 = arith.constant 50 : index
    %c0_100 = arith.constant 0 : index
    %86 = vector.load %arg1[%c0_99, %c50, %c0_100] : memref<1x208x128xbf16, #tpu.memory_space<vmem>>, vector<1x128x128xbf16>
    %87 = vector.shape_cast %86 : vector<1x128x128xbf16> to vector<128x128xbf16>
    %c11 = arith.constant 11 : index
    %c0_101 = arith.constant 0 : index
    %c0_102 = arith.constant 0 : index
    %88 = vector.load %arg2[%c11, %c0_101, %c0_102] : memref<15x128x128xbf16, #tpu.memory_space<vmem>>, vector<1x128x128xbf16>
    %89 = vector.shape_cast %88 : vector<1x128x128xbf16> to vector<128x128xbf16>
    %cst_103 = arith.constant dense<0.000000e+00> : vector<128x128xf32>
    %90 = tpu.matmul %87, %89, %cst_103 {dimension_numbers = #tpu.dot_dimension_numbers<[1], [0], [0], [1], [0, 0, 1, 1], [], []>} : vector<128x128xbf16>, vector<128x128xbf16>, vector<128x128xf32> -> vector<128x128xf32>
    %c0_104 = arith.constant 0 : index
    %c0_105 = arith.constant 0 : index
    %91 = vector.load %arg5[%c0_104, %c0_105] : memref<128x128xf32, #tpu.memory_space<vmem>>, vector<128x128xf32>
    %92 = arith.addf %91, %90 : vector<128x128xf32>
    %c0_106 = arith.constant 0 : index
    %c0_107 = arith.constant 0 : index
    %93 = vector.load %arg5[%c0_106, %c0_107] : memref<128x128xf32, #tpu.memory_space<vmem>>, vector<128x128xf32>
    tpu.vector_store %arg5[%c0_106, %c0_107], %92 {strides = array<i32>} : memref<128x128xf32, #tpu.memory_space<vmem>>, vector<128x128xf32>,
    %c0_108 = arith.constant 0 : index
    %c64 = arith.constant 64 : index
    %c0_109 = arith.constant 0 : index
    %94 = vector.load %arg1[%c0_108, %c64, %c0_109] : memref<1x208x128xbf16, #tpu.memory_space<vmem>>, vector<1x128x128xbf16>
    %95 = vector.shape_cast %94 : vector<1x128x128xbf16> to vector<128x128xbf16>
    %c12 = arith.constant 12 : index
    %c0_110 = arith.constant 0 : index
    %c0_111 = arith.constant 0 : index
    %96 = vector.load %arg2[%c12, %c0_110, %c0_111] : memref<15x128x128xbf16, #tpu.memory_space<vmem>>, vector<1x128x128xbf16>
    %97 = vector.shape_cast %96 : vector<1x128x128xbf16> to vector<128x128xbf16>
    %cst_112 = arith.constant dense<0.000000e+00> : vector<128x128xf32>
    %98 = tpu.matmul %95, %97, %cst_112 {dimension_numbers = #tpu.dot_dimension_numbers<[1], [0], [0], [1], [0, 0, 1, 1], [], []>} : vector<128x128xbf16>, vector<128x128xbf16>, vector<128x128xf32> -> vector<128x128xf32>
    %c0_113 = arith.constant 0 : index
    %c0_114 = arith.constant 0 : index
    %99 = vector.load %arg5[%c0_113, %c0_114] : memref<128x128xf32, #tpu.memory_space<vmem>>, vector<128x128xf32>
    %100 = arith.addf %99, %98 : vector<128x128xf32>
    %c0_115 = arith.constant 0 : index
    %c0_116 = arith.constant 0 : index
    %101 = vector.load %arg5[%c0_115, %c0_116] : memref<128x128xf32, #tpu.memory_space<vmem>>, vector<128x128xf32>
    tpu.vector_store %arg5[%c0_115, %c0_116], %100 {strides = array<i32>} : memref<128x128xf32, #tpu.memory_space<vmem>>, vector<128x128xf32>,
    %c0_117 = arith.constant 0 : index
    %c65 = arith.constant 65 : index
    %c0_118 = arith.constant 0 : index
    %102 = vector.load %arg1[%c0_117, %c65, %c0_118] : memref<1x208x128xbf16, #tpu.memory_space<vmem>>, vector<1x128x128xbf16>
    %103 = vector.shape_cast %102 : vector<1x128x128xbf16> to vector<128x128xbf16>
    %c13 = arith.constant 13 : index
    %c0_119 = arith.constant 0 : index
    %c0_120 = arith.constant 0 : index
    %104 = vector.load %arg2[%c13, %c0_119, %c0_120] : memref<15x128x128xbf16, #tpu.memory_space<vmem>>, vector<1x128x128xbf16>
    %105 = vector.shape_cast %104 : vector<1x128x128xbf16> to vector<128x128xbf16>
    %cst_121 = arith.constant dense<0.000000e+00> : vector<128x128xf32>
    %106 = tpu.matmul %103, %105, %cst_121 {dimension_numbers = #tpu.dot_dimension_numbers<[1], [0], [0], [1], [0, 0, 1, 1], [], []>} : vector<128x128xbf16>, vector<128x128xbf16>, vector<128x128xf32> -> vector<128x128xf32>
    %c0_122 = arith.constant 0 : index
    %c0_123 = arith.constant 0 : index
    %107 = vector.load %arg5[%c0_122, %c0_123] : memref<128x128xf32, #tpu.memory_space<vmem>>, vector<128x128xf32>
    %108 = arith.addf %107, %106 : vector<128x128xf32>
    %c0_124 = arith.constant 0 : index
    %c0_125 = arith.constant 0 : index
    %109 = vector.load %arg5[%c0_124, %c0_125] : memref<128x128xf32, #tpu.memory_space<vmem>>, vector<128x128xf32>
    tpu.vector_store %arg5[%c0_124, %c0_125], %108 {strides = array<i32>} : memref<128x128xf32, #tpu.memory_space<vmem>>, vector<128x128xf32>,
    %c0_126 = arith.constant 0 : index
    %c66 = arith.constant 66 : index
    %c0_127 = arith.constant 0 : index
    %110 = vector.load %arg1[%c0_126, %c66, %c0_127] : memref<1x208x128xbf16, #tpu.memory_space<vmem>>, vector<1x128x128xbf16>
    %111 = vector.shape_cast %110 : vector<1x128x128xbf16> to vector<128x128xbf16>
    %c14 = arith.constant 14 : index
    %c0_128 = arith.constant 0 : index
    %c0_129 = arith.constant 0 : index
    %112 = vector.load %arg2[%c14, %c0_128, %c0_129] : memref<15x128x128xbf16, #tpu.memory_space<vmem>>, vector<1x128x128xbf16>
    %113 = vector.shape_cast %112 : vector<1x128x128xbf16> to vector<128x128xbf16>
    %cst_130 = arith.constant dense<0.000000e+00> : vector<128x128xf32>
    %114 = tpu.matmul %111, %113, %cst_130 {dimension_numbers = #tpu.dot_dimension_numbers<[1], [0], [0], [1], [0, 0, 1, 1], [], []>} : vector<128x128xbf16>, vector<128x128xbf16>, vector<128x128xf32> -> vector<128x128xf32>
    %c0_131 = arith.constant 0 : index
    %c0_132 = arith.constant 0 : index
    %115 = vector.load %arg5[%c0_131, %c0_132] : memref<128x128xf32, #tpu.memory_space<vmem>>, vector<128x128xf32>
    %116 = arith.addf %115, %114 : vector<128x128xf32>
    %c0_133 = arith.constant 0 : index
    %c0_134 = arith.constant 0 : index
    %117 = vector.load %arg5[%c0_133, %c0_134] : memref<128x128xf32, #tpu.memory_space<vmem>>, vector<128x128xf32>
    tpu.vector_store %arg5[%c0_133, %c0_134], %116 {strides = array<i32>} : memref<128x128xf32, #tpu.memory_space<vmem>>, vector<128x128xf32>,
    %c0_135 = arith.constant 0 : index
    %c0_136 = arith.constant 0 : index
    %118 = vector.load %arg3[%c0_135, %c0_136] : memref<1x64xf32, #tpu.memory_space<vmem>>, vector<1x64xf32>
    %c0_137 = arith.constant 0 : index
    %c0_138 = arith.constant 0 : index
    %119 = vector.load %arg5[%c0_137, %c0_138] : memref<128x128xf32, #tpu.memory_space<vmem>>, vector<16x128xf32>
    %c16_139 = arith.constant 16 : index
    %c0_140 = arith.constant 0 : index
    %120 = vector.load %arg5[%c16_139, %c0_140] : memref<128x128xf32, #tpu.memory_space<vmem>>, vector<16x128xf32>
    %121 = arith.maximumf %119, %120 : vector<16x128xf32>
    %122 = vector.extract_strided_slice %121 {offsets = [0, 0], sizes = [16, 64], strides = [1, 1]} : vector<16x128xf32> to vector<16x64xf32>
    %123 = vector.extract_strided_slice %121 {offsets = [0, 64], sizes = [16, 64], strides = [1, 1]} : vector<16x128xf32> to vector<16x64xf32>
    %124 = arith.maximumf %122, %123 : vector<16x64xf32>
    %125 = vector.extract_strided_slice %124 {offsets = [0, 0], sizes = [4, 64], strides = [1, 1]} : vector<16x64xf32> to vector<4x64xf32>
    %126 = vector.broadcast %118 : vector<1x64xf32> to vector<4x64xf32>
    %127 = arith.addf %125, %126 : vector<4x64xf32>
    %cst_141 = arith.constant 0.000000e+00 : f32
    %128 = vector.broadcast %cst_141 : f32 to vector<4x64xf32>
    %129 = arith.maximumf %127, %128 : vector<4x64xf32>
    %130 = arith.truncf %129 : vector<4x64xf32> to vector<4x64xbf16>
    %c0_142 = arith.constant 0 : index
    %c0_143 = arith.constant 0 : index
    %c0_144 = arith.constant 0 : index
    %c0_145 = arith.constant 0 : index
    %131 = vector.load %arg4[%c0_142, %c0_143, %c0_144, %c0_145] : memref<1x4x4x64xbf16, #tpu.memory_space<vmem>>, vector<1x1x4x64xbf16>
    %132 = vector.shape_cast %131 : vector<1x1x4x64xbf16> to vector<4x64xbf16>
    %133 = vector.shape_cast %130 : vector<4x64xbf16> to vector<1x1x4x64xbf16>
    tpu.vector_store %arg4[%c0_142, %c0_143, %c0_144, %c0_145], %133 {strides = array<i32>} : memref<1x4x4x64xbf16, #tpu.memory_space<vmem>>, vector<1x1x4x64xbf16>,
    %c32_146 = arith.constant 32 : index
    %c0_147 = arith.constant 0 : index
    %134 = vector.load %arg5[%c32_146, %c0_147] : memref<128x128xf32, #tpu.memory_space<vmem>>, vector<16x128xf32>
    %c48_148 = arith.constant 48 : index
    %c0_149 = arith.constant 0 : index
    %135 = vector.load %arg5[%c48_148, %c0_149] : memref<128x128xf32, #tpu.memory_space<vmem>>, vector<16x128xf32>
    %136 = arith.maximumf %134, %135 : vector<16x128xf32>
    %137 = vector.extract_strided_slice %136 {offsets = [0, 0], sizes = [16, 64], strides = [1, 1]} : vector<16x128xf32> to vector<16x64xf32>
    %138 = vector.extract_strided_slice %136 {offsets = [0, 64], sizes = [16, 64], strides = [1, 1]} : vector<16x128xf32> to vector<16x64xf32>
    %139 = arith.maximumf %137, %138 : vector<16x64xf32>
    %140 = vector.extract_strided_slice %139 {offsets = [0, 0], sizes = [4, 64], strides = [1, 1]} : vector<16x64xf32> to vector<4x64xf32>
    %141 = vector.broadcast %118 : vector<1x64xf32> to vector<4x64xf32>
    %142 = arith.addf %140, %141 : vector<4x64xf32>
    %cst_150 = arith.constant 0.000000e+00 : f32
    %143 = vector.broadcast %cst_150 : f32 to vector<4x64xf32>
    %144 = arith.maximumf %142, %143 : vector<4x64xf32>
    %145 = arith.truncf %144 : vector<4x64xf32> to vector<4x64xbf16>
    %c0_151 = arith.constant 0 : index
    %c1_152 = arith.constant 1 : index
    %c0_153 = arith.constant 0 : index
    %c0_154 = arith.constant 0 : index
    %146 = vector.load %arg4[%c0_151, %c1_152, %c0_153, %c0_154] : memref<1x4x4x64xbf16, #tpu.memory_space<vmem>>, vector<1x1x4x64xbf16>
    %147 = vector.shape_cast %146 : vector<1x1x4x64xbf16> to vector<4x64xbf16>
    %148 = vector.shape_cast %145 : vector<4x64xbf16> to vector<1x1x4x64xbf16>
    tpu.vector_store %arg4[%c0_151, %c1_152, %c0_153, %c0_154], %148 {strides = array<i32>} : memref<1x4x4x64xbf16, #tpu.memory_space<vmem>>, vector<1x1x4x64xbf16>,
    %c64_155 = arith.constant 64 : index
    %c0_156 = arith.constant 0 : index
    %149 = vector.load %arg5[%c64_155, %c0_156] : memref<128x128xf32, #tpu.memory_space<vmem>>, vector<16x128xf32>
    %c80 = arith.constant 80 : index
    %c0_157 = arith.constant 0 : index
    %150 = vector.load %arg5[%c80, %c0_157] : memref<128x128xf32, #tpu.memory_space<vmem>>, vector<16x128xf32>
    %151 = arith.maximumf %149, %150 : vector<16x128xf32>
    %152 = vector.extract_strided_slice %151 {offsets = [0, 0], sizes = [16, 64], strides = [1, 1]} : vector<16x128xf32> to vector<16x64xf32>
    %153 = vector.extract_strided_slice %151 {offsets = [0, 64], sizes = [16, 64], strides = [1, 1]} : vector<16x128xf32> to vector<16x64xf32>
    %154 = arith.maximumf %152, %153 : vector<16x64xf32>
    %155 = vector.extract_strided_slice %154 {offsets = [0, 0], sizes = [4, 64], strides = [1, 1]} : vector<16x64xf32> to vector<4x64xf32>
    %156 = vector.broadcast %118 : vector<1x64xf32> to vector<4x64xf32>
    %157 = arith.addf %155, %156 : vector<4x64xf32>
    %cst_158 = arith.constant 0.000000e+00 : f32
    %158 = vector.broadcast %cst_158 : f32 to vector<4x64xf32>
    %159 = arith.maximumf %157, %158 : vector<4x64xf32>
    %160 = arith.truncf %159 : vector<4x64xf32> to vector<4x64xbf16>
    %c0_159 = arith.constant 0 : index
    %c2_160 = arith.constant 2 : index
    %c0_161 = arith.constant 0 : index
    %c0_162 = arith.constant 0 : index
    %161 = vector.load %arg4[%c0_159, %c2_160, %c0_161, %c0_162] : memref<1x4x4x64xbf16, #tpu.memory_space<vmem>>, vector<1x1x4x64xbf16>
    %162 = vector.shape_cast %161 : vector<1x1x4x64xbf16> to vector<4x64xbf16>
    %163 = vector.shape_cast %160 : vector<4x64xbf16> to vector<1x1x4x64xbf16>
    tpu.vector_store %arg4[%c0_159, %c2_160, %c0_161, %c0_162], %163 {strides = array<i32>} : memref<1x4x4x64xbf16, #tpu.memory_space<vmem>>, vector<1x1x4x64xbf16>,
    %c96 = arith.constant 96 : index
    %c0_163 = arith.constant 0 : index
    %164 = vector.load %arg5[%c96, %c0_163] : memref<128x128xf32, #tpu.memory_space<vmem>>, vector<16x128xf32>
    %c112 = arith.constant 112 : index
    %c0_164 = arith.constant 0 : index
    %165 = vector.load %arg5[%c112, %c0_164] : memref<128x128xf32, #tpu.memory_space<vmem>>, vector<16x128xf32>
    %166 = arith.maximumf %164, %165 : vector<16x128xf32>
    %167 = vector.extract_strided_slice %166 {offsets = [0, 0], sizes = [16, 64], strides = [1, 1]} : vector<16x128xf32> to vector<16x64xf32>
    %168 = vector.extract_strided_slice %166 {offsets = [0, 64], sizes = [16, 64], strides = [1, 1]} : vector<16x128xf32> to vector<16x64xf32>
    %169 = arith.maximumf %167, %168 : vector<16x64xf32>
    %170 = vector.extract_strided_slice %169 {offsets = [0, 0], sizes = [4, 64], strides = [1, 1]} : vector<16x64xf32> to vector<4x64xf32>
    %171 = vector.broadcast %118 : vector<1x64xf32> to vector<4x64xf32>
    %172 = arith.addf %170, %171 : vector<4x64xf32>
    %cst_165 = arith.constant 0.000000e+00 : f32
    %173 = vector.broadcast %cst_165 : f32 to vector<4x64xf32>
    %174 = arith.maximumf %172, %173 : vector<4x64xf32>
    %175 = arith.truncf %174 : vector<4x64xf32> to vector<4x64xbf16>
    %c0_166 = arith.constant 0 : index
    %c3_167 = arith.constant 3 : index
    %c0_168 = arith.constant 0 : index
    %c0_169 = arith.constant 0 : index
    %176 = vector.load %arg4[%c0_166, %c3_167, %c0_168, %c0_169] : memref<1x4x4x64xbf16, #tpu.memory_space<vmem>>, vector<1x1x4x64xbf16>
    %177 = vector.shape_cast %176 : vector<1x1x4x64xbf16> to vector<4x64xbf16>
    %178 = vector.shape_cast %175 : vector<4x64xbf16> to vector<1x1x4x64xbf16>
    tpu.vector_store %arg4[%c0_166, %c3_167, %c0_168, %c0_169], %178 {strides = array<i32>} : memref<1x4x4x64xbf16, #tpu.memory_space<vmem>>, vector<1x1x4x64xbf16>,
    return
  }
  func.func @transform_0(%arg0: i32) -> (i32, i32, i32) {
    %c0_i32 = arith.constant 0 : i32
    %c0_i32_0 = arith.constant 0 : i32
    %c0_i32_1 = arith.constant 0 : i32
    return %arg0, %c0_i32, %c0_i32_0 : i32, i32, i32
  }
  func.func @transform_1(%arg0: i32) -> (i32, i32, i32) {
    %c0_i32 = arith.constant 0 : i32
    %c0_i32_0 = arith.constant 0 : i32
    %c0_i32_1 = arith.constant 0 : i32
    %c0_i32_2 = arith.constant 0 : i32
    return %c0_i32, %c0_i32_0, %c0_i32_1 : i32, i32, i32
  }
  func.func @transform_2(%arg0: i32) -> (i32, i32) {
    %c0_i32 = arith.constant 0 : i32
    %c0_i32_0 = arith.constant 0 : i32
    %c0_i32_1 = arith.constant 0 : i32
    return %c0_i32, %c0_i32_0 : i32, i32
  }
  func.func @transform_3(%arg0: i32) -> (i32, i32, i32, i32) {
    %c0_i32 = arith.constant 0 : i32
    %c0_i32_0 = arith.constant 0 : i32
    %c0_i32_1 = arith.constant 0 : i32
    %c0_i32_2 = arith.constant 0 : i32
    return %arg0, %c0_i32, %c0_i32_0, %c0_i32_1 : i32, i32, i32, i32
  }
}

</mosaic_0001>

<bundles_post_ra>
// kernel: dann_forward.5
= control target key start
LH: loop header
LB: loop body
LE: loop exit
PB: predicated region body
PF: predicated region fallthrough
CT: control target
= control target key end

     0   :  { %16 = vsyncpa [#allocation3], 0  ;;  %v296_v36 = vlaneseq  ;;  %v3739_v37 = vmov 1966171168   ;;  %s4918_s0 = inlined_call_operand.vmem [shape: bf16[2,1024], index: 0, kind: input, shape index: {}]   ;;  %s4919_s1 = inlined_call_operand.vmem [shape: bf16[1024,512], index: 1, kind: input, shape index: {}]   ;;  %s4920_s2 = inlined_call_operand.vmem [shape: f32[1,512], index: 2, kind: input, shape index: {}]   ;;  %s4921_s3 = inlined_call_operand.vmem [shape: bf16[512,256], index: 3, kind: input, shape index: {}]   ;;  %s4922_s4 = inlined_call_operand.vmem [shape: f32[1,256], index: 4, kind: input, shape index: {}]   ;;  %s4923_s5 = inlined_call_operand.vmem [shape: bf16[128,128], index: 5, kind: input, shape index: {}]   ;;  %s4924_s6 = inlined_call_operand.vmem [shape: f32[1,128], index: 6, kind: input, shape index: {}]   ;;  %s4925_s7 = inlined_call_operand.vmem [shape: bf16[128,128], index: 7, kind: input, shape index: {}]   ;;  %s4926_s8 = inlined_call_operand.vmem [shape: f32[1,128], index: 8, kind: input, shape index: {}]   ;;  %s4927_s9 = inlined_call_operand.hbm [shape: f32[2,128], index: 9, kind: output, shape index: {0}]   ;;  %s4928_s10 = inlined_call_operand.hbm [shape: f32[2,128], index: 10, kind: output, shape index: {1}]  }
   0x1   :  { %v3186_v0 = vld [vmem:[%s4919_s1 + $0x4] ss:$16 sps:$4 sm:$0xff]   ;;  %v3188_v1 = vld [vmem:[%s4919_s1 + $0xc] ss:$16 sps:$4 sm:$0xff]   ;;  %v3190_v2 = vld [vmem:[%s4919_s1] ss:$16 sps:$4 sm:$0xff]   ;;  %v319_v38 = vunpack.c.l.s4 %v3739_v37 }
   0x2   :  { %1654 = vmatprep.subr.bf16.mxu0 %v3186_v0  ;;  %v3191_v3 = vld [vmem:[%s4919_s1 + $0x8] ss:$16 sps:$4 sm:$0xff]   ;;  %1818 = vmatprep.subr.bf16.mxu1 %v3188_v1  ;;  %v3192_v4 = vld [vmem:[%s4919_s1 + $0x24] ss:$16 sps:$4 sm:$0xff]   ;;  %v3194_v5 = vld [vmem:[%s4919_s1 + $0x2c] ss:$16 sps:$4 sm:$0xff]  }
   0x3   :  { %1655 = vmatpush1.bf16.msra.mxu0 %v3190_v2  ;;  %1819 = vmatpush1.bf16.msra.mxu1 %v3191_v3  ;;  %v3196_v6 = vld [vmem:[%s4919_s1 + $0x20] ss:$16 sps:$4 sm:$0xff]   ;;  %v3197_v7 = vld [vmem:[%s4919_s1 + $0x28] ss:$16 sps:$4 sm:$0xff]   ;;  %v3198_v8 = vld [vmem:[%s4919_s1 + $0x44] ss:$16 sps:$4 sm:$0xff]   ;;  %v320_v43 = vunpack.c.0.s8 %v319_v38 }
   0x4   :  { %1656 = vmatprep.subr.bf16.mxu0 %v3192_v4  ;;  %1820 = vmatprep.subr.bf16.mxu1 %v3194_v5  ;;  %v3200_v9 = vld [vmem:[%s4919_s1 + $0x4c] ss:$16 sps:$4 sm:$0xff]   ;;  %v3202_v10 = vld [vmem:[%s4919_s1 + $0x40] ss:$16 sps:$4 sm:$0xff]   ;;  %v3203_v11 = vld [vmem:[%s4919_s1 + $0x48] ss:$16 sps:$4 sm:$0xff]  }
   0x5   :  { %v3204_v12 = vld [vmem:[%s4919_s1 + $0x64] ss:$16 sps:$4 sm:$0xff]   ;;  %v3206_v13 = vld [vmem:[%s4919_s1 + $0x6c] ss:$16 sps:$4 sm:$0xff]   ;;  %v3208_v14 = vld [vmem:[%s4919_s1 + $0x60] ss:$16 sps:$4 sm:$0xff]  }
   0x6   :  { %v3209_v15 = vld [vmem:[%s4919_s1 + $0x68] ss:$16 sps:$4 sm:$0xff]   ;;  %v3210_v16 = vld [vmem:[%s4919_s1 + $0x84] ss:$16 sps:$4 sm:$0xff]   ;;  %v3212_v17 = vld [vmem:[%s4919_s1 + $0x8c] ss:$16 sps:$4 sm:$0xff]  }
   0x7   :  { %1657 = vmatpush1.bf16.msra.mxu0 %v3196_v6  ;;  %1821 = vmatpush1.bf16.msra.mxu1 %v3197_v7  ;;  %v3214_v18 = vld [vmem:[%s4919_s1 + $0x80] ss:$16 sps:$4 sm:$0xff]   ;;  %v3215_v19 = vld [vmem:[%s4919_s1 + $0x88] ss:$16 sps:$4 sm:$0xff]   ;;  %v3216_v20 = vld [vmem:[%s4919_s1 + $0xa4] ss:$16 sps:$4 sm:$0xff]  }
   0x8   :  { %1658 = vmatprep.subr.bf16.mxu0 %v3198_v8  ;;  %1822 = vmatprep.subr.bf16.mxu1 %v3200_v9  ;;  %v3218_v21 = vld [vmem:[%s4919_s1 + $0xac] ss:$16 sps:$4 sm:$0xff]   ;;  %v3220_v22 = vld [vmem:[%s4919_s1 + $0xa0] ss:$16 sps:$4 sm:$0xff]   ;;  %v3221_v23 = vld [vmem:[%s4919_s1 + $0xa8] ss:$16 sps:$4 sm:$0xff]  }
   0x9   :  { %v3222_v24 = vld [vmem:[%s4919_s1 + $0xc4] ss:$16 sps:$4 sm:$0xff]   ;;  %v3224_v25 = vld [vmem:[%s4919_s1 + $0xcc] ss:$16 sps:$4 sm:$0xff]   ;;  %v3226_v26 = vld [vmem:[%s4919_s1 + $0xc0] ss:$16 sps:$4 sm:$0xff]  }
   0xa   :  { %v3227_v27 = vld [vmem:[%s4919_s1 + $0xc8] ss:$16 sps:$4 sm:$0xff]   ;;  %v3228_v28 = vld [vmem:[%s4919_s1 + $0xe4] ss:$16 sps:$4 sm:$0xff]   ;;  %v3230_v29 = vld [vmem:[%s4919_s1 + $0xec] ss:$16 sps:$4 sm:$0xff]  }
   0xb   :  { %1659 = vmatpush1.bf16.msra.mxu0 %v3202_v10  ;;  %1823 = vmatpush1.bf16.msra.mxu1 %v3203_v11  ;;  %v3232_v30 = vld [vmem:[%s4919_s1 + $0xe0] ss:$16 sps:$4 sm:$0xff]   ;;  %v3233_v31 = vld [vmem:[%s4919_s1 + $0xe8] ss:$16 sps:$4 sm:$0xff]   ;;  %v3234_v32 = vld [vmem:[%s4919_s1 + $0x104] ss:$16 sps:$4 sm:$0xff]  }
   0xc   :  { %1660 = vmatprep.subr.bf16.mxu0 %v3204_v12  ;;  %1824 = vmatprep.subr.bf16.mxu1 %v3206_v13  ;;  %v3236_v33 = vld [vmem:[%s4919_s1 + $0x10c] ss:$16 sps:$4 sm:$0xff]   ;;  %v3238_v34 = vld [vmem:[%s4919_s1 + $0x100] ss:$16 sps:$4 sm:$0xff]   ;;  %v3239_v35 = vld [vmem:[%s4919_s1 + $0x108] ss:$16 sps:$4 sm:$0xff]  }
   0xd   :  { %v3240_v39 = vld [vmem:[%s4919_s1 + $0x124] ss:$16 sps:$4 sm:$0xff]   ;;  %v3242_v40 = vld [vmem:[%s4919_s1 + $0x12c] ss:$16 sps:$4 sm:$0xff]   ;;  %v3244_v41 = vld [vmem:[%s4919_s1 + $0x120] ss:$16 sps:$4 sm:$0xff]  }
   0xe   :  { %v3916_v42 = vshrl.u32 %v296_v36, 7  ;;  %v3245_v44 = vld [vmem:[%s4919_s1 + $0x128] ss:$16 sps:$4 sm:$0xff]   ;;  %v3246_v45 = vld [vmem:[%s4919_s1 + $0x144] ss:$16 sps:$4 sm:$0xff]  }
   0xf   :  { %1661 = vmatpush1.bf16.msra.mxu0 %v3208_v14  ;;  %1825 = vmatpush1.bf16.msra.mxu1 %v3209_v15  ;;  %v3248_v46 = vld [vmem:[%s4919_s1 + $0x14c] ss:$16 sps:$4 sm:$0xff]   ;;  %v3250_v47 = vld [vmem:[%s4919_s1 + $0x140] ss:$16 sps:$4 sm:$0xff]   ;;  %v3251_v48 = vld [vmem:[%s4919_s1 + $0x148] ss:$16 sps:$4 sm:$0xff]  }
  0x10   :  { %1662 = vmatprep.subr.bf16.mxu0 %v3210_v16  ;;  %1826 = vmatprep.subr.bf16.mxu1 %v3212_v17  ;;  %v3934_v49 = vsub.s32 %v320_v43, %v3916_v42  ;;  %v3252_v50 = vld [vmem:[%s4919_s1 + $0x164] ss:$16 sps:$4 sm:$0xff]   ;;  %v3254_v51 = vld [vmem:[%s4919_s1 + $0x16c] ss:$16 sps:$4 sm:$0xff]   ;;  %v3256_v53 = vld [vmem:[%s4919_s1 + $0x160] ss:$16 sps:$4 sm:$0xff]  }
  0x11   :  { %v37_v52 = vld [vmem:[%s4918_s0] sm:$0xff]  ;;  %v3257_v55 = vld [vmem:[%s4919_s1 + $0x168] ss:$16 sps:$4 sm:$0xff]   ;;  %v3260_v57 = vld [vmem:[%s4919_s1 + $0x18c] ss:$16 sps:$4 sm:$0xff]  }
  0x12   :  { %v324_v54 = vrot.slane %v37_v52, %v3934_v49  ;;  %v3258_v56 = vld [vmem:[%s4919_s1 + $0x184] ss:$16 sps:$4 sm:$0xff]   ;;  %v3262_v59 = vld [vmem:[%s4919_s1 + $0x180] ss:$16 sps:$4 sm:$0xff]   ;;  %v3263_v61 = vld [vmem:[%s4919_s1 + $0x188] ss:$16 sps:$4 sm:$0xff]   ;;  %v317_v9 = vcombine.high %v37_v52, %v37_v52 }
  0x13   :  { %1663 = vmatpush1.bf16.msra.mxu0 %v3214_v18  ;;  %1827 = vmatpush1.bf16.msra.mxu1 %v3215_v19  ;;  %v3264_v62 = vld [vmem:[%s4919_s1 + $0x1a4] ss:$16 sps:$4 sm:$0xff]   ;;  %v3266_v63 = vld [vmem:[%s4919_s1 + $0x1ac] ss:$16 sps:$4 sm:$0xff]   ;;  %v3268_v0 = vld [vmem:[%s4919_s1 + $0x1a0] ss:$16 sps:$4 sm:$0xff]  }
  0x14   :  { %1664 = vmatprep.subr.bf16.mxu0 %v3216_v20  ;;  %1828 = vmatprep.subr.bf16.mxu1 %v3218_v21  ;;  %v332_v58 = vcombine.high %v324_v54, %v324_v54  ;;  %v3269_v1 = vld [vmem:[%s4919_s1 + $0x1a8] ss:$16 sps:$4 sm:$0xff]   ;;  %v3270_v2 = vld [vmem:[%s4919_s1 + $0x1c4] ss:$16 sps:$4 sm:$0xff]   ;;  %v3272_v3 = vld [vmem:[%s4919_s1 + $0x1cc] ss:$16 sps:$4 sm:$0xff]   ;;  %v331_v13 = vrot.slane %v317_v9, %v3934_v49  ;;  %v4012_v15 = vrot.slane %v324_v54, %v3934_v49 }
  0x15   :  { %v3274_v4 = vld [vmem:[%s4919_s1 + $0x1c0] ss:$16 sps:$4 sm:$0xff]   ;;  %v3275_v5 = vld [vmem:[%s4919_s1 + $0x1c8] ss:$16 sps:$4 sm:$0xff]   ;;  %v3276_v6 = vld [vmem:[%s4919_s1 + $0x1e4] ss:$16 sps:$4 sm:$0xff]  }
  0x16   :  { %v354_v60 = vrot.slane %v332_v58, %v3934_v49  ;;  %v3278_v7 = vld [vmem:[%s4919_s1 + $0x1ec] ss:$16 sps:$4 sm:$0xff]   ;;  %v3280_v8 = vld [vmem:[%s4919_s1 + $0x1e0] ss:$16 sps:$4 sm:$0xff]   ;;  %v3281_v10 = vld [vmem:[%s4919_s1 + $0x1e8] ss:$16 sps:$4 sm:$0xff]   ;;  %v333_v16 = vcombine.high %v331_v13, %v331_v13  ;;  %v4027_v21 = vrot.slane %v331_v13, %v3934_v49 }
  0x17   :  { %1665 = vmatpush1.bf16.msra.mxu0 %v3220_v22  ;;  %1829 = vmatpush1.bf16.msra.mxu1 %v3221_v23  ;;  %v3284_v11 = vld [vmem:[%s4919_s1 + $0x204] ss:$16 sps:$4 sm:$0xff]   ;;  %v3287_v12 = vld [vmem:[%s4919_s1 + $0x20c] ss:$16 sps:$4 sm:$0xff]   ;;  %v3282_v14 = vld [vmem:[%s4919_s1 + $0x200] ss:$16 sps:$4 sm:$0xff]  }
  0x18   :  { %1666 = vmatprep.subr.bf16.mxu0 %v3222_v24  ;;  %1830 = vmatprep.subr.bf16.mxu1 %v3224_v25  ;;  %v3285_v17 = vld [vmem:[%s4919_s1 + $0x208] ss:$16 sps:$4 sm:$0xff]   ;;  %v3290_v18 = vld [vmem:[%s4919_s1 + $0x224] ss:$16 sps:$4 sm:$0xff]   ;;  %v3293_v19 = vld [vmem:[%s4919_s1 + $0x22c] ss:$16 sps:$4 sm:$0xff]   ;;  %v4024_v20 = vrot.slane %v333_v16, %v3934_v49  ;;  %v364_v22 = vcombine.high %v354_v60, %v354_v60 }
  0x19   :  { %1686 = vmatprep.mubr.bf16.mxu0 %v354_v60  ;;  %1850 = vmatprep.mubr.bf16.mxu1 %v354_v60  ;;  %v3288_v23 = vld [vmem:[%s4919_s1 + $0x220] ss:$16 sps:$4 sm:$0xff]   ;;  %v3291_v24 = vld [vmem:[%s4919_s1 + $0x228] ss:$16 sps:$4 sm:$0xff]   ;;  %v3296_v25 = vld [vmem:[%s4919_s1 + $0x244] ss:$16 sps:$4 sm:$0xff]  }
  0x1a   :  { %v3309_v36 = vld [vmem:[%s4919_s1 + $0x288] ss:$16 sps:$4 sm:$0xff]   ;;  %v3314_v37 = vld [vmem:[%s4919_s1 + $0x2a4] ss:$16 sps:$4 sm:$0xff]   ;;  %v3317_v38 = vld [vmem:[%s4919_s1 + $0x2ac] ss:$16 sps:$4 sm:$0xff]  }
  0x1b   :  { %1667 = vmatpush1.bf16.msra.mxu0 %v3226_v26  ;;  %1831 = vmatpush1.bf16.msra.mxu1 %v3227_v27  ;;  %v3299_v26 = vld [vmem:[%s4919_s1 + $0x24c] ss:$16 sps:$4 sm:$0xff]   ;;  %v3294_v27 = vld [vmem:[%s4919_s1 + $0x240] ss:$16 sps:$4 sm:$0xff]   ;;  %v3327_v49 = vld [vmem:[%s4919_s1 + $0x2e8] ss:$16 sps:$4 sm:$0xff]  }
  0x1c   :  { %1668 = vmatprep.subr.bf16.mxu0 %v3228_v28  ;;  %1832 = vmatprep.subr.bf16.mxu1 %v3230_v29  ;;  %v3297_v28 = vld [vmem:[%s4919_s1 + $0x248] ss:$16 sps:$4 sm:$0xff]   ;;  %v3302_v29 = vld [vmem:[%s4919_s1 + $0x264] ss:$16 sps:$4 sm:$0xff]   ;;  %v3323_v43 = vld [vmem:[%s4919_s1 + $0x2cc] ss:$16 sps:$4 sm:$0xff]  }
  0x1d   :  { %v3330_v52 = vld [vmem:[%s4919_s1 + $0x300] ss:$16 sps:$4 sm:$0xff]   ;;  %v3338_v54 = vld [vmem:[%s4919_s1 + $0x324] ss:$16 sps:$4 sm:$0xff]   ;;  %v3363_v9 = vld [vmem:[%s4919_s1 + $0x3a8] ss:$16 sps:$4 sm:$0xff]  }
  0x1e   :  { %v3344_v58 = vld [vmem:[%s4919_s1 + $0x344] ss:$16 sps:$4 sm:$0xff]   ;;  %v3342_v60 = vld [vmem:[%s4919_s1 + $0x340] ss:$16 sps:$4 sm:$0xff]   ;;  %v3369_v13 = vld [vmem:[%s4919_s1 + $0x3c8] ss:$16 sps:$4 sm:$0xff]  }
  0x1f   :  { %1669 = vmatpush1.bf16.msra.mxu0 %v3232_v30  ;;  %1833 = vmatpush1.bf16.msra.mxu1 %v3233_v31  ;;  %v3305_v30 = vld [vmem:[%s4919_s1 + $0x26c] ss:$16 sps:$4 sm:$0xff]   ;;  %v3300_v31 = vld [vmem:[%s4919_s1 + $0x260] ss:$16 sps:$4 sm:$0xff]  }
  0x20   :  { %1670 = vmatprep.subr.bf16.mxu0 %v3234_v32  ;;  %1834 = vmatprep.subr.bf16.mxu1 %v3236_v33  ;;  %v3303_v32 = vld [vmem:[%s4919_s1 + $0x268] ss:$16 sps:$4 sm:$0xff]   ;;  %v3308_v33 = vld [vmem:[%s4919_s1 + $0x284] ss:$16 sps:$4 sm:$0xff]   ;;  %v3377_v16 = vld [vmem:[%s4919_s1 + $0x3ec] ss:$16 sps:$4 sm:$0xff]  }
  0x23   :  { %1671 = vmatpush1.bf16.msra.mxu0 %v3238_v34  ;;  %1835 = vmatpush1.bf16.msra.mxu1 %v3239_v35  ;;  %v3311_v34 = vld [vmem:[%s4919_s1 + $0x28c] ss:$16 sps:$4 sm:$0xff]   ;;  %v3306_v35 = vld [vmem:[%s4919_s1 + $0x280] ss:$16 sps:$4 sm:$0xff]  }
  0x24   :  { %1672 = vmatprep.subr.bf16.mxu0 %v3240_v39  ;;  %1836 = vmatprep.subr.bf16.mxu1 %v3242_v40  ;;  %v3312_v39 = vld [vmem:[%s4919_s1 + $0x2a0] ss:$16 sps:$4 sm:$0xff]   ;;  %v3315_v40 = vld [vmem:[%s4919_s1 + $0x2a8] ss:$16 sps:$4 sm:$0xff]  }
  0x27   :  { %1673 = vmatpush1.bf16.msra.mxu0 %v3244_v41  ;;  %1837 = vmatpush1.bf16.msra.mxu1 %v3245_v44  ;;  %v3320_v41 = vld [vmem:[%s4919_s1 + $0x2c4] ss:$16 sps:$4 sm:$0xff]   ;;  %v3318_v44 = vld [vmem:[%s4919_s1 + $0x2c0] ss:$16 sps:$4 sm:$0xff]  }
  0x28   :  { %1674 = vmatprep.subr.bf16.mxu0 %v3246_v45  ;;  %1838 = vmatprep.subr.bf16.mxu1 %v3248_v46  ;;  %v3321_v45 = vld [vmem:[%s4919_s1 + $0x2c8] ss:$16 sps:$4 sm:$0xff]   ;;  %v3326_v46 = vld [vmem:[%s4919_s1 + $0x2e4] ss:$16 sps:$4 sm:$0xff]  }
  0x2b   :  { %1675 = vmatpush1.bf16.msra.mxu0 %v3250_v47  ;;  %1839 = vmatpush1.bf16.msra.mxu1 %v3251_v48  ;;  %v3329_v47 = vld [vmem:[%s4919_s1 + $0x2ec] ss:$16 sps:$4 sm:$0xff]   ;;  %v3324_v48 = vld [vmem:[%s4919_s1 + $0x2e0] ss:$16 sps:$4 sm:$0xff]  }
  0x2c   :  { %1676 = vmatprep.subr.bf16.mxu0 %v3252_v50  ;;  %1840 = vmatprep.subr.bf16.mxu1 %v3254_v51  ;;  %v3332_v50 = vld [vmem:[%s4919_s1 + $0x304] ss:$16 sps:$4 sm:$0xff]   ;;  %v3335_v51 = vld [vmem:[%s4919_s1 + $0x30c] ss:$16 sps:$4 sm:$0xff]  }
  0x2f   :  { %1677 = vmatpush1.bf16.msra.mxu0 %v3256_v53  ;;  %1841 = vmatpush1.bf16.msra.mxu1 %v3257_v55  ;;  %v3333_v53 = vld [vmem:[%s4919_s1 + $0x308] ss:$16 sps:$4 sm:$0xff]   ;;  %v3341_v55 = vld [vmem:[%s4919_s1 + $0x32c] ss:$16 sps:$4 sm:$0xff]  }
  0x30   :  { %1678 = vmatprep.subr.bf16.mxu0 %v3258_v56  ;;  %1842 = vmatprep.subr.bf16.mxu1 %v3260_v57  ;;  %v3336_v56 = vld [vmem:[%s4919_s1 + $0x320] ss:$16 sps:$4 sm:$0xff]   ;;  %v3339_v57 = vld [vmem:[%s4919_s1 + $0x328] ss:$16 sps:$4 sm:$0xff]  }
  0x33   :  { %1679 = vmatpush1.bf16.msra.mxu0 %v3262_v59  ;;  %1843 = vmatpush1.bf16.msra.mxu1 %v3263_v61  ;;  %v3347_v59 = vld [vmem:[%s4919_s1 + $0x34c] ss:$16 sps:$4 sm:$0xff]   ;;  %v3345_v61 = vld [vmem:[%s4919_s1 + $0x348] ss:$16 sps:$4 sm:$0xff]  }
  0x34   :  { %1680 = vmatprep.subr.bf16.mxu0 %v3264_v62  ;;  %1844 = vmatprep.subr.bf16.mxu1 %v3266_v63  ;;  %v3350_v62 = vld [vmem:[%s4919_s1 + $0x364] ss:$16 sps:$4 sm:$0xff]   ;;  %v3353_v63 = vld [vmem:[%s4919_s1 + $0x36c] ss:$16 sps:$4 sm:$0xff]  }
  0x37   :  { %1681 = vmatpush1.bf16.msra.mxu0 %v3268_v0  ;;  %1845 = vmatpush1.bf16.msra.mxu1 %v3269_v1  ;;  %v3348_v0 = vld [vmem:[%s4919_s1 + $0x360] ss:$16 sps:$4 sm:$0xff]   ;;  %v3351_v1 = vld [vmem:[%s4919_s1 + $0x368] ss:$16 sps:$4 sm:$0xff]  }
  0x38   :  { %1682 = vmatprep.subr.bf16.mxu0 %v3270_v2  ;;  %1846 = vmatprep.subr.bf16.mxu1 %v3272_v3  ;;  %v3356_v2 = vld [vmem:[%s4919_s1 + $0x384] ss:$16 sps:$4 sm:$0xff]   ;;  %v3359_v3 = vld [vmem:[%s4919_s1 + $0x38c] ss:$16 sps:$4 sm:$0xff]  }
  0x3b   :  { %1683 = vmatpush1.bf16.msra.mxu0 %v3274_v4  ;;  %1847 = vmatpush1.bf16.msra.mxu1 %v3275_v5  ;;  %v3354_v4 = vld [vmem:[%s4919_s1 + $0x380] ss:$16 sps:$4 sm:$0xff]   ;;  %v3357_v5 = vld [vmem:[%s4919_s1 + $0x388] ss:$16 sps:$4 sm:$0xff]  }
  0x3c   :  { %1684 = vmatprep.subr.bf16.mxu0 %v3276_v6  ;;  %1848 = vmatprep.subr.bf16.mxu1 %v3278_v7  ;;  %v3362_v6 = vld [vmem:[%s4919_s1 + $0x3a4] ss:$16 sps:$4 sm:$0xff]   ;;  %v3365_v7 = vld [vmem:[%s4919_s1 + $0x3ac] ss:$16 sps:$4 sm:$0xff]  }
  0x3f   :  { %1685 = vmatpush1.bf16.msra.mxu0 %v3280_v8  ;;  %1849 = vmatpush1.bf16.msra.mxu1 %v3281_v10  ;;  %v3360_v8 = vld [vmem:[%s4919_s1 + $0x3a0] ss:$16 sps:$4 sm:$0xff]   ;;  %v3368_v10 = vld [vmem:[%s4919_s1 + $0x3c4] ss:$16 sps:$4 sm:$0xff]  }
  0x40   :  { %1695 = vmatprep.subr.bf16.mxu0 %v3284_v11  ;;  %1859 = vmatprep.subr.bf16.mxu1 %v3287_v12  ;;  %v3371_v11 = vld [vmem:[%s4919_s1 + $0x3cc] ss:$16 sps:$4 sm:$0xff]   ;;  %v3366_v12 = vld [vmem:[%s4919_s1 + $0x3c0] ss:$16 sps:$4 sm:$0xff]  }
  0x42   :  { %1687 = vmatmul.mubr.bf16.vlgmr.msra.gmra.mrb[0].mxu0 %v4012_v15  ;;  %1851 = vmatmul.mubr.bf16.vlgmr.msra.gmra.mrb[0].mxu1 %v4012_v15 }
  0x43   :  { %1696 = vmatpush1.bf16.msra.mxu0 %v3282_v14  ;;  %1860 = vmatpush1.bf16.msra.mxu1 %v3285_v17  ;;  %v3374_v14 = vld [vmem:[%s4919_s1 + $0x3e4] ss:$16 sps:$4 sm:$0xff]   ;;  %v3372_v17 = vld [vmem:[%s4919_s1 + $0x3e0] ss:$16 sps:$4 sm:$0xff]  }
  0x44   :  { %1697 = vmatprep.subr.bf16.mxu0 %v3290_v18  ;;  %1861 = vmatprep.subr.bf16.mxu1 %v3293_v19  ;;  %v3375_v18 = vld [vmem:[%s4919_s1 + $0x3e8] ss:$16 sps:$4 sm:$0xff]   ;;  %v3380_v19 = vld [vmem:[%s4919_s1 + $0x404] ss:$16 sps:$4 sm:$0xff]  }
  0x45   :  { %1727 = vmatprep.mubr.bf16.mxu0 %v364_v22  ;;  %1891 = vmatprep.mubr.bf16.mxu1 %v364_v22  ;;  %v3383_v22 = vld [vmem:[%s4919_s1 + $0x40c] ss:$16 sps:$4 sm:$0xff]  }
  0x47   :  { %1698 = vmatpush1.bf16.msra.mxu0 %v3288_v23  ;;  %1862 = vmatpush1.bf16.msra.mxu1 %v3291_v24  ;;  %v3378_v23 = vld [vmem:[%s4919_s1 + $0x400] ss:$16 sps:$4 sm:$0xff]   ;;  %v362_v24 = vcombine.high %v4012_v15, %v4012_v15 }
  0x48   :  { %1699 = vmatprep.subr.bf16.mxu0 %v3296_v25  ;;  %1863 = vmatprep.subr.bf16.mxu1 %v3299_v26  ;;  %v3381_v25 = vld [vmem:[%s4919_s1 + $0x408] ss:$16 sps:$4 sm:$0xff]   ;;  %v3386_v26 = vld [vmem:[%s4919_s1 + $0x424] ss:$16 sps:$4 sm:$0xff]   ;;  %v3384_v15 = vld [vmem:[%s4919_s1 + $0x420] ss:$16 sps:$4 sm:$0xff]  }
  0x4b   :  { %1700 = vmatpush1.bf16.msra.mxu0 %v3294_v27  ;;  %1864 = vmatpush1.bf16.msra.mxu1 %v3297_v28  ;;  %v3389_v27 = vld [vmem:[%s4919_s1 + $0x42c] ss:$16 sps:$4 sm:$0xff]   ;;  %v3387_v28 = vld [vmem:[%s4919_s1 + $0x428] ss:$16 sps:$4 sm:$0xff]  }
  0x4c   :  { %1701 = vmatprep.subr.bf16.mxu0 %v3302_v29  ;;  %1865 = vmatprep.subr.bf16.mxu1 %v3305_v30  ;;  %v3392_v29 = vld [vmem:[%s4919_s1 + $0x444] ss:$16 sps:$4 sm:$0xff]   ;;  %v3395_v30 = vld [vmem:[%s4919_s1 + $0x44c] ss:$16 sps:$4 sm:$0xff]  }
  0x4f   :  { %1702 = vmatpush1.bf16.msra.mxu0 %v3300_v31  ;;  %1866 = vmatpush1.bf16.msra.mxu1 %v3303_v32  ;;  %v3390_v31 = vld [vmem:[%s4919_s1 + $0x440] ss:$16 sps:$4 sm:$0xff]   ;;  %v3393_v32 = vld [vmem:[%s4919_s1 + $0x448] ss:$16 sps:$4 sm:$0xff]  }
  0x50   :  { %1703 = vmatprep.subr.bf16.mxu0 %v3308_v33  ;;  %1867 = vmatprep.subr.bf16.mxu1 %v3311_v34  ;;  %v3398_v33 = vld [vmem:[%s4919_s1 + $0x464] ss:$16 sps:$4 sm:$0xff]   ;;  %v3401_v34 = vld [vmem:[%s4919_s1 + $0x46c] ss:$16 sps:$4 sm:$0xff]  }
  0x53   :  { %1704 = vmatpush1.bf16.msra.mxu0 %v3306_v35  ;;  %1868 = vmatpush1.bf16.msra.mxu1 %v3309_v36  ;;  %v3396_v35 = vld [vmem:[%s4919_s1 + $0x460] ss:$16 sps:$4 sm:$0xff]   ;;  %v3399_v36 = vld [vmem:[%s4919_s1 + $0x468] ss:$16 sps:$4 sm:$0xff]  }
  0x54   :  { %1705 = vmatprep.subr.bf16.mxu0 %v3314_v37  ;;  %1869 = vmatprep.subr.bf16.mxu1 %v3317_v38  ;;  %v3404_v37 = vld [vmem:[%s4919_s1 + $0x484] ss:$16 sps:$4 sm:$0xff]   ;;  %v3407_v38 = vld [vmem:[%s4919_s1 + $0x48c] ss:$16 sps:$4 sm:$0xff]  }
  0x57   :  { %1706 = vmatpush1.bf16.msra.mxu0 %v3312_v39  ;;  %1870 = vmatpush1.bf16.msra.mxu1 %v3315_v40  ;;  %v3402_v39 = vld [vmem:[%s4919_s1 + $0x480] ss:$16 sps:$4 sm:$0xff]   ;;  %v3405_v40 = vld [vmem:[%s4919_s1 + $0x488] ss:$16 sps:$4 sm:$0xff]  }
  0x58   :  { %1707 = vmatprep.subr.bf16.mxu0 %v3320_v41  ;;  %1871 = vmatprep.subr.bf16.mxu1 %v3323_v43  ;;  %v3410_v41 = vld [vmem:[%s4919_s1 + $0x4a4] ss:$16 sps:$4 sm:$0xff]   ;;  %v3413_v43 = vld [vmem:[%s4919_s1 + $0x4ac] ss:$16 sps:$4 sm:$0xff]  }
  0x5b   :  { %1708 = vmatpush1.bf16.msra.mxu0 %v3318_v44  ;;  %1872 = vmatpush1.bf16.msra.mxu1 %v3321_v45  ;;  %v3408_v44 = vld [vmem:[%s4919_s1 + $0x4a0] ss:$16 sps:$4 sm:$0xff]   ;;  %v3411_v45 = vld [vmem:[%s4919_s1 + $0x4a8] ss:$16 sps:$4 sm:$0xff]  }
  0x5c   :  { %1709 = vmatprep.subr.bf16.mxu0 %v3326_v46  ;;  %1873 = vmatprep.subr.bf16.mxu1 %v3329_v47  ;;  %v3416_v46 = vld [vmem:[%s4919_s1 + $0x4c4] ss:$16 sps:$4 sm:$0xff]   ;;  %v3419_v47 = vld [vmem:[%s4919_s1 + $0x4cc] ss:$16 sps:$4 sm:$0xff]  }
  0x5f   :  { %1710 = vmatpush1.bf16.msra.mxu0 %v3324_v48  ;;  %1874 = vmatpush1.bf16.msra.mxu1 %v3327_v49  ;;  %v3414_v48 = vld [vmem:[%s4919_s1 + $0x4c0] ss:$16 sps:$4 sm:$0xff]   ;;  %v3417_v49 = vld [vmem:[%s4919_s1 + $0x4c8] ss:$16 sps:$4 sm:$0xff]  }
  0x60   :  { %1711 = vmatprep.subr.bf16.mxu0 %v3332_v50  ;;  %1875 = vmatprep.subr.bf16.mxu1 %v3335_v51  ;;  %v3422_v50 = vld [vmem:[%s4919_s1 + $0x4e4] ss:$16 sps:$4 sm:$0xff]   ;;  %v3425_v51 = vld [vmem:[%s4919_s1 + $0x4ec] ss:$16 sps:$4 sm:$0xff]  }
  0x63   :  { %1712 = vmatpush1.bf16.msra.mxu0 %v3330_v52  ;;  %1876 = vmatpush1.bf16.msra.mxu1 %v3333_v53  ;;  %v3420_v52 = vld [vmem:[%s4919_s1 + $0x4e0] ss:$16 sps:$4 sm:$0xff]   ;;  %v3423_v53 = vld [vmem:[%s4919_s1 + $0x4e8] ss:$16 sps:$4 sm:$0xff]  }
  0x64   :  { %1713 = vmatprep.subr.bf16.mxu0 %v3338_v54  ;;  %1877 = vmatprep.subr.bf16.mxu1 %v3341_v55  ;;  %v3428_v54 = vld [vmem:[%s4919_s1 + $0x504] ss:$16 sps:$4 sm:$0xff]   ;;  %v3431_v55 = vld [vmem:[%s4919_s1 + $0x50c] ss:$16 sps:$4 sm:$0xff]  }
  0x67   :  { %1714 = vmatpush1.bf16.msra.mxu0 %v3336_v56  ;;  %1878 = vmatpush1.bf16.msra.mxu1 %v3339_v57  ;;  %v3426_v56 = vld [vmem:[%s4919_s1 + $0x500] ss:$16 sps:$4 sm:$0xff]   ;;  %v3429_v57 = vld [vmem:[%s4919_s1 + $0x508] ss:$16 sps:$4 sm:$0xff]  }
  0x68   :  { %1715 = vmatprep.subr.bf16.mxu0 %v3344_v58  ;;  %1879 = vmatprep.subr.bf16.mxu1 %v3347_v59  ;;  %v3434_v58 = vld [vmem:[%s4919_s1 + $0x524] ss:$16 sps:$4 sm:$0xff]   ;;  %v3437_v59 = vld [vmem:[%s4919_s1 + $0x52c] ss:$16 sps:$4 sm:$0xff]  }
  0x6b   :  { %1716 = vmatpush1.bf16.msra.mxu0 %v3342_v60  ;;  %1880 = vmatpush1.bf16.msra.mxu1 %v3345_v61  ;;  %v3432_v60 = vld [vmem:[%s4919_s1 + $0x520] ss:$16 sps:$4 sm:$0xff]   ;;  %v3435_v61 = vld [vmem:[%s4919_s1 + $0x528] ss:$16 sps:$4 sm:$0xff]  }
  0x6c   :  { %1717 = vmatprep.subr.bf16.mxu0 %v3350_v62  ;;  %1881 = vmatprep.subr.bf16.mxu1 %v3353_v63  ;;  %v3440_v62 = vld [vmem:[%s4919_s1 + $0x544] ss:$16 sps:$4 sm:$0xff]   ;;  %v3443_v63 = vld [vmem:[%s4919_s1 + $0x54c] ss:$16 sps:$4 sm:$0xff]  }
  0x6f   :  { %1718 = vmatpush1.bf16.msra.mxu0 %v3348_v0  ;;  %1882 = vmatpush1.bf16.msra.mxu1 %v3351_v1  ;;  %v3438_v0 = vld [vmem:[%s4919_s1 + $0x540] ss:$16 sps:$4 sm:$0xff]   ;;  %v3441_v1 = vld [vmem:[%s4919_s1 + $0x548] ss:$16 sps:$4 sm:$0xff]  }
  0x70   :  { %1719 = vmatprep.subr.bf16.mxu0 %v3356_v2  ;;  %1883 = vmatprep.subr.bf16.mxu1 %v3359_v3  ;;  %v3446_v2 = vld [vmem:[%s4919_s1 + $0x564] ss:$16 sps:$4 sm:$0xff]   ;;  %v3449_v3 = vld [vmem:[%s4919_s1 + $0x56c] ss:$16 sps:$4 sm:$0xff]  }
  0x73   :  { %1720 = vmatpush1.bf16.msra.mxu0 %v3354_v4  ;;  %1884 = vmatpush1.bf16.msra.mxu1 %v3357_v5  ;;  %v3444_v4 = vld [vmem:[%s4919_s1 + $0x560] ss:$16 sps:$4 sm:$0xff]   ;;  %v3447_v5 = vld [vmem:[%s4919_s1 + $0x568] ss:$16 sps:$4 sm:$0xff]  }
  0x74   :  { %1721 = vmatprep.subr.bf16.mxu0 %v3362_v6  ;;  %1885 = vmatprep.subr.bf16.mxu1 %v3365_v7  ;;  %v3452_v6 = vld [vmem:[%s4919_s1 + $0x584] ss:$16 sps:$4 sm:$0xff]   ;;  %v3455_v7 = vld [vmem:[%s4919_s1 + $0x58c] ss:$16 sps:$4 sm:$0xff]  }
  0x77   :  { %1722 = vmatpush1.bf16.msra.mxu0 %v3360_v8  ;;  %1886 = vmatpush1.bf16.msra.mxu1 %v3363_v9  ;;  %v3450_v8 = vld [vmem:[%s4919_s1 + $0x580] ss:$16 sps:$4 sm:$0xff]   ;;  %v3453_v9 = vld [vmem:[%s4919_s1 + $0x588] ss:$16 sps:$4 sm:$0xff]  }
  0x78   :  { %1723 = vmatprep.subr.bf16.mxu0 %v3368_v10  ;;  %1887 = vmatprep.subr.bf16.mxu1 %v3371_v11  ;;  %v3458_v10 = vld [vmem:[%s4919_s1 + $0x5a4] ss:$16 sps:$4 sm:$0xff]   ;;  %v3461_v11 = vld [vmem:[%s4919_s1 + $0x5ac] ss:$16 sps:$4 sm:$0xff]  }
  0x7b   :  { %1724 = vmatpush1.bf16.msra.mxu0 %v3366_v12  ;;  %1888 = vmatpush1.bf16.msra.mxu1 %v3369_v13  ;;  %v3456_v12 = vld [vmem:[%s4919_s1 + $0x5a0] ss:$16 sps:$4 sm:$0xff]   ;;  %v3459_v13 = vld [vmem:[%s4919_s1 + $0x5a8] ss:$16 sps:$4 sm:$0xff]  }
  0x7c   :  { %1725 = vmatprep.subr.bf16.mxu0 %v3374_v14  ;;  %1889 = vmatprep.subr.bf16.mxu1 %v3377_v16  ;;  %v3464_v14 = vld [vmem:[%s4919_s1 + $0x5c4] ss:$16 sps:$4 sm:$0xff]   ;;  %v3467_v16 = vld [vmem:[%s4919_s1 + $0x5cc] ss:$16 sps:$4 sm:$0xff]  }
  0x7f   :  { %1726 = vmatpush1.bf16.msra.mxu0 %v3372_v17  ;;  %1890 = vmatpush1.bf16.msra.mxu1 %v3375_v18  ;;  %v3462_v17 = vld [vmem:[%s4919_s1 + $0x5c0] ss:$16 sps:$4 sm:$0xff]   ;;  %v3465_v18 = vld [vmem:[%s4919_s1 + $0x5c8] ss:$16 sps:$4 sm:$0xff]  }
  0x80   :  { %1736 = vmatprep.subr.bf16.mxu0 %v3380_v19  ;;  %1900 = vmatprep.subr.bf16.mxu1 %v3383_v22  ;;  %v3470_v19 = vld [vmem:[%s4919_s1 + $0x5e4] ss:$16 sps:$4 sm:$0xff]   ;;  %v3473_v22 = vld [vmem:[%s4919_s1 + $0x5ec] ss:$16 sps:$4 sm:$0xff]  }
  0x82   :  { %1728 = vmatmul.mubr.bf16.vlgmr.msra.gmra.mrb[0].mxu0 %v362_v24  ;;  %1892 = vmatmul.mubr.bf16.vlgmr.msra.gmra.mrb[0].mxu1 %v362_v24  ;;  %v3471_v24 = vld [vmem:[%s4919_s1 + $0x5e8] ss:$16 sps:$4 sm:$0xff]  }
  0x83   :  { %1737 = vmatpush1.bf16.msra.mxu0 %v3378_v23  ;;  %1901 = vmatpush1.bf16.msra.mxu1 %v3381_v25  ;;  %v3468_v23 = vld [vmem:[%s4919_s1 + $0x5e0] ss:$16 sps:$4 sm:$0xff]   ;;  %v3477_v25 = vld [vmem:[%s4919_s1 + $0x604] ss:$16 sps:$4 sm:$0xff]  }
  0x84   :  { %1738 = vmatprep.subr.bf16.mxu0 %v3386_v26  ;;  %1902 = vmatprep.subr.bf16.mxu1 %v3389_v27  ;;  %v3480_v26 = vld [vmem:[%s4919_s1 + $0x60c] ss:$16 sps:$4 sm:$0xff]   ;;  %v3475_v27 = vld [vmem:[%s4919_s1 + $0x600] ss:$16 sps:$4 sm:$0xff]  }
  0x85   :  { %1768 = vmatprep.mubr.bf16.mxu0 %v4024_v20  ;;  %1932 = vmatprep.mubr.bf16.mxu1 %v4024_v20 }
  0x87   :  { %1739 = vmatpush1.bf16.msra.mxu0 %v3384_v15  ;;  %1903 = vmatpush1.bf16.msra.mxu1 %v3387_v28  ;;  %v3478_v15 = vld [vmem:[%s4919_s1 + $0x608] ss:$16 sps:$4 sm:$0xff]   ;;  %v3483_v28 = vld [vmem:[%s4919_s1 + $0x624] ss:$16 sps:$4 sm:$0xff]  }
  0x88   :  { %1740 = vmatprep.subr.bf16.mxu0 %v3392_v29  ;;  %1904 = vmatprep.subr.bf16.mxu1 %v3395_v30  ;;  %v3486_v29 = vld [vmem:[%s4919_s1 + $0x62c] ss:$16 sps:$4 sm:$0xff]   ;;  %v3481_v30 = vld [vmem:[%s4919_s1 + $0x620] ss:$16 sps:$4 sm:$0xff]  }
  0x8b   :  { %1741 = vmatpush1.bf16.msra.mxu0 %v3390_v31  ;;  %1905 = vmatpush1.bf16.msra.mxu1 %v3393_v32  ;;  %v3484_v31 = vld [vmem:[%s4919_s1 + $0x628] ss:$16 sps:$4 sm:$0xff]   ;;  %v365_v32 = vcombine.high %v4024_v20, %v4024_v20  ;;  %v3487_v20 = vld [vmem:[%s4919_s1 + $0x640] ss:$16 sps:$4 sm:$0xff]  }
  0x8c   :  { %1742 = vmatprep.subr.bf16.mxu0 %v3398_v33  ;;  %1906 = vmatprep.subr.bf16.mxu1 %v3401_v34  ;;  %v3489_v33 = vld [vmem:[%s4919_s1 + $0x644] ss:$16 sps:$4 sm:$0xff]   ;;  %v3492_v34 = vld [vmem:[%s4919_s1 + $0x64c] ss:$16 sps:$4 sm:$0xff]  }
  0x8f   :  { %1743 = vmatpush1.bf16.msra.mxu0 %v3396_v35  ;;  %1907 = vmatpush1.bf16.msra.mxu1 %v3399_v36  ;;  %v3490_v35 = vld [vmem:[%s4919_s1 + $0x648] ss:$16 sps:$4 sm:$0xff]   ;;  %v3495_v36 = vld [vmem:[%s4919_s1 + $0x664] ss:$16 sps:$4 sm:$0xff]  }
  0x90   :  { %1744 = vmatprep.subr.bf16.mxu0 %v3404_v37  ;;  %1908 = vmatprep.subr.bf16.mxu1 %v3407_v38  ;;  %v3498_v37 = vld [vmem:[%s4919_s1 + $0x66c] ss:$16 sps:$4 sm:$0xff]   ;;  %v3493_v38 = vld [vmem:[%s4919_s1 + $0x660] ss:$16 sps:$4 sm:$0xff]  }
  0x93   :  { %1745 = vmatpush1.bf16.msra.mxu0 %v3402_v39  ;;  %1909 = vmatpush1.bf16.msra.mxu1 %v3405_v40  ;;  %v3496_v39 = vld [vmem:[%s4919_s1 + $0x668] ss:$16 sps:$4 sm:$0xff]   ;;  %v3501_v40 = vld [vmem:[%s4919_s1 + $0x684] ss:$16 sps:$4 sm:$0xff]  }
  0x94   :  { %1746 = vmatprep.subr.bf16.mxu0 %v3410_v41  ;;  %1910 = vmatprep.subr.bf16.mxu1 %v3413_v43  ;;  %v3504_v41 = vld [vmem:[%s4919_s1 + $0x68c] ss:$16 sps:$4 sm:$0xff]   ;;  %v3499_v43 = vld [vmem:[%s4919_s1 + $0x680] ss:$16 sps:$4 sm:$0xff]  }
  0x97   :  { %1747 = vmatpush1.bf16.msra.mxu0 %v3408_v44  ;;  %1911 = vmatpush1.bf16.msra.mxu1 %v3411_v45  ;;  %v3502_v44 = vld [vmem:[%s4919_s1 + $0x688] ss:$16 sps:$4 sm:$0xff]   ;;  %v3507_v45 = vld [vmem:[%s4919_s1 + $0x6a4] ss:$16 sps:$4 sm:$0xff]  }
  0x98   :  { %1748 = vmatprep.subr.bf16.mxu0 %v3416_v46  ;;  %1912 = vmatprep.subr.bf16.mxu1 %v3419_v47  ;;  %v3510_v46 = vld [vmem:[%s4919_s1 + $0x6ac] ss:$16 sps:$4 sm:$0xff]   ;;  %v3505_v47 = vld [vmem:[%s4919_s1 + $0x6a0] ss:$16 sps:$4 sm:$0xff]  }
  0x9b   :  { %1749 = vmatpush1.bf16.msra.mxu0 %v3414_v48  ;;  %1913 = vmatpush1.bf16.msra.mxu1 %v3417_v49  ;;  %v3508_v48 = vld [vmem:[%s4919_s1 + $0x6a8] ss:$16 sps:$4 sm:$0xff]  }
  0x9c   :  { %1750 = vmatprep.subr.bf16.mxu0 %v3422_v50  ;;  %1914 = vmatprep.subr.bf16.mxu1 %v3425_v51 }
  0x9f   :  { %1751 = vmatpush1.bf16.msra.mxu0 %v3420_v52  ;;  %1915 = vmatpush1.bf16.msra.mxu1 %v3423_v53 }
  0xa0   :  { %1752 = vmatprep.subr.bf16.mxu0 %v3428_v54  ;;  %1916 = vmatprep.subr.bf16.mxu1 %v3431_v55 }
  0xa3   :  { %1753 = vmatpush1.bf16.msra.mxu0 %v3426_v56  ;;  %1917 = vmatpush1.bf16.msra.mxu1 %v3429_v57 }
  0xa4   :  { %1754 = vmatprep.subr.bf16.mxu0 %v3434_v58  ;;  %1918 = vmatprep.subr.bf16.mxu1 %v3437_v59 }
  0xa7   :  { %1755 = vmatpush1.bf16.msra.mxu0 %v3432_v60  ;;  %1919 = vmatpush1.bf16.msra.mxu1 %v3435_v61 }
  0xa8   :  { %1756 = vmatprep.subr.bf16.mxu0 %v3440_v62  ;;  %1920 = vmatprep.subr.bf16.mxu1 %v3443_v63 }
  0xab   :  { %1757 = vmatpush1.bf16.msra.mxu0 %v3438_v0  ;;  %1921 = vmatpush1.bf16.msra.mxu1 %v3441_v1 }
  0xac   :  { %1758 = vmatprep.subr.bf16.mxu0 %v3446_v2  ;;  %1922 = vmatprep.subr.bf16.mxu1 %v3449_v3 }
  0xaf   :  { %1759 = vmatpush1.bf16.msra.mxu0 %v3444_v4  ;;  %1923 = vmatpush1.bf16.msra.mxu1 %v3447_v5 }
  0xb0   :  { %1760 = vmatprep.subr.bf16.mxu0 %v3452_v6  ;;  %1924 = vmatprep.subr.bf16.mxu1 %v3455_v7 }
  0xb3   :  { %1761 = vmatpush1.bf16.msra.mxu0 %v3450_v8  ;;  %1925 = vmatpush1.bf16.msra.mxu1 %v3453_v9 }
  0xb4   :  { %1762 = vmatprep.subr.bf16.mxu0 %v3458_v10  ;;  %1926 = vmatprep.subr.bf16.mxu1 %v3461_v11 }
  0xb7   :  { %1763 = vmatpush1.bf16.msra.mxu0 %v3456_v12  ;;  %1927 = vmatpush1.bf16.msra.mxu1 %v3459_v13 }
  0xb8   :  { %1764 = vmatprep.subr.bf16.mxu0 %v3464_v14  ;;  %1928 = vmatprep.subr.bf16.mxu1 %v3467_v16 }
  0xbb   :  { %1765 = vmatpush1.bf16.msra.mxu0 %v3462_v17  ;;  %1929 = vmatpush1.bf16.msra.mxu1 %v3465_v18 }
  0xbc   :  { %1766 = vmatprep.subr.bf16.mxu0 %v3470_v19  ;;  %1930 = vmatprep.subr.bf16.mxu1 %v3473_v22 }
  0xbf   :  { %1767 = vmatpush1.bf16.msra.mxu0 %v3468_v23  ;;  %1931 = vmatpush1.bf16.msra.mxu1 %v3471_v24 }
  0xc0   :  { %1777 = vmatprep.subr.bf16.mxu0 %v3477_v25  ;;  %1941 = vmatprep.subr.bf16.mxu1 %v3480_v26 }
  0xc2   :  { %1769 = vmatmul.mubr.bf16.vlgmr.msra.gmra.mrb[0].mxu0 %v4027_v21  ;;  %1933 = vmatmul.mubr.bf16.vlgmr.msra.gmra.mrb[0].mxu1 %v4027_v21 }
  0xc3   :  { %1778 = vmatpush1.bf16.msra.mxu0 %v3475_v27  ;;  %1942 = vmatpush1.bf16.msra.mxu1 %v3478_v15 }
  0xc4   :  { %1779 = vmatprep.subr.bf16.mxu0 %v3483_v28  ;;  %1943 = vmatprep.subr.bf16.mxu1 %v3486_v29 }
  0xc5   :  { %1809 = vmatprep.mubr.bf16.mxu0 %v365_v32  ;;  %1973 = vmatprep.mubr.bf16.mxu1 %v365_v32 }
  0xc7   :  { %1780 = vmatpush1.bf16.msra.mxu0 %v3481_v30  ;;  %1944 = vmatpush1.bf16.msra.mxu1 %v3484_v31 }
  0xc8   :  { %1781 = vmatprep.subr.bf16.mxu0 %v3489_v33  ;;  %1945 = vmatprep.subr.bf16.mxu1 %v3492_v34 }
  0xcb   :  { %1782 = vmatpush1.bf16.msra.mxu0 %v3487_v20  ;;  %1946 = vmatpush1.bf16.msra.mxu1 %v3490_v35 }
  0xcc   :  { %1783 = vmatprep.subr.bf16.mxu0 %v3495_v36  ;;  %1947 = vmatprep.subr.bf16.mxu1 %v3498_v37 }
  0xcf   :  { %1784 = vmatpush1.bf16.msra.mxu0 %v3493_v38  ;;  %1948 = vmatpush1.bf16.msra.mxu1 %v3496_v39 }
  0xd0   :  { %1785 = vmatprep.subr.bf16.mxu0 %v3501_v40  ;;  %1949 = vmatprep.subr.bf16.mxu1 %v3504_v41 }
  0xd3   :  { %1786 = vmatpush1.bf16.msra.mxu0 %v3499_v43  ;;  %1950 = vmatpush1.bf16.msra.mxu1 %v3502_v44 }
  0xd4   :  { %17 = vsyncpa [#allocation5], 0  ;;  %1787 = vmatprep.subr.bf16.mxu0 %v3507_v45  ;;  %1951 = vmatprep.subr.bf16.mxu1 %v3510_v46  ;;  %v3513_v49 = vld [vmem:[%s4919_s1 + $0x6c4] ss:$16 sps:$4 sm:$0xff]   ;;  %v3516_v50 = vld [vmem:[%s4919_s1 + $0x6cc] ss:$16 sps:$4 sm:$0xff]   ;;  %v363_v28 = vcombine.high %v4027_v21, %v4027_v21 }
  0xd5   :  { %v3511_v51 = vld [vmem:[%s4919_s1 + $0x6c0] ss:$16 sps:$4 sm:$0xff]   ;;  %v3514_v52 = vld [vmem:[%s4919_s1 + $0x6c8] ss:$16 sps:$4 sm:$0xff]   ;;  %v3519_v53 = vld [vmem:[%s4919_s1 + $0x6e4] ss:$16 sps:$4 sm:$0xff]  }
  0xd6   :  { %v3522_v54 = vld [vmem:[%s4919_s1 + $0x6ec] ss:$16 sps:$4 sm:$0xff]   ;;  %v3517_v55 = vld [vmem:[%s4919_s1 + $0x6e0] ss:$16 sps:$4 sm:$0xff]   ;;  %v3520_v56 = vld [vmem:[%s4919_s1 + $0x6e8] ss:$16 sps:$4 sm:$0xff]  }
  0xd7   :  { %1788 = vmatpush1.bf16.msra.mxu0 %v3505_v47  ;;  %1952 = vmatpush1.bf16.msra.mxu1 %v3508_v48  ;;  %v3525_v57 = vld [vmem:[%s4919_s1 + $0x704] ss:$16 sps:$4 sm:$0xff]   ;;  %v3528_v58 = vld [vmem:[%s4919_s1 + $0x70c] ss:$16 sps:$4 sm:$0xff]   ;;  %v3523_v59 = vld [vmem:[%s4919_s1 + $0x700] ss:$16 sps:$4 sm:$0xff]  }
  0xd8   :  { %1789 = vmatprep.subr.bf16.mxu0 %v3513_v49  ;;  %1953 = vmatprep.subr.bf16.mxu1 %v3516_v50  ;;  %v3526_v60 = vld [vmem:[%s4919_s1 + $0x708] ss:$16 sps:$4 sm:$0xff]   ;;  %v3531_v61 = vld [vmem:[%s4919_s1 + $0x724] ss:$16 sps:$4 sm:$0xff]   ;;  %v3534_v62 = vld [vmem:[%s4919_s1 + $0x72c] ss:$16 sps:$4 sm:$0xff]  }
  0xd9   :  { %v3529_v63 = vld [vmem:[%s4919_s1 + $0x720] ss:$16 sps:$4 sm:$0xff]   ;;  %v3532_v0 = vld [vmem:[%s4919_s1 + $0x728] ss:$16 sps:$4 sm:$0xff]   ;;  %v3537_v1 = vld [vmem:[%s4919_s1 + $0x744] ss:$16 sps:$4 sm:$0xff]  }
  0xda   :  { %v3540_v2 = vld [vmem:[%s4919_s1 + $0x74c] ss:$16 sps:$4 sm:$0xff]   ;;  %v3535_v3 = vld [vmem:[%s4919_s1 + $0x740] ss:$16 sps:$4 sm:$0xff]   ;;  %v3538_v4 = vld [vmem:[%s4919_s1 + $0x748] ss:$16 sps:$4 sm:$0xff]  }
  0xdb   :  { %1790 = vmatpush1.bf16.msra.mxu0 %v3511_v51  ;;  %1954 = vmatpush1.bf16.msra.mxu1 %v3514_v52  ;;  %v3543_v5 = vld [vmem:[%s4919_s1 + $0x764] ss:$16 sps:$4 sm:$0xff]   ;;  %v3546_v6 = vld [vmem:[%s4919_s1 + $0x76c] ss:$16 sps:$4 sm:$0xff]   ;;  %v3541_v7 = vld [vmem:[%s4919_s1 + $0x760] ss:$16 sps:$4 sm:$0xff]  }
  0xdc   :  { %1791 = vmatprep.subr.bf16.mxu0 %v3519_v53  ;;  %1955 = vmatprep.subr.bf16.mxu1 %v3522_v54  ;;  %v3544_v8 = vld [vmem:[%s4919_s1 + $0x768] ss:$16 sps:$4 sm:$0xff]   ;;  %v3549_v9 = vld [vmem:[%s4919_s1 + $0x784] ss:$16 sps:$4 sm:$0xff]   ;;  %v3552_v10 = vld [vmem:[%s4919_s1 + $0x78c] ss:$16 sps:$4 sm:$0xff]  }
  0xdd   :  { %v3547_v11 = vld [vmem:[%s4919_s1 + $0x780] ss:$16 sps:$4 sm:$0xff]   ;;  %v3550_v12 = vld [vmem:[%s4919_s1 + $0x788] ss:$16 sps:$4 sm:$0xff]   ;;  %v3555_v13 = vld [vmem:[%s4919_s1 + $0x7a4] ss:$16 sps:$4 sm:$0xff]  }
  0xde   :  { %v3558_v14 = vld [vmem:[%s4919_s1 + $0x7ac] ss:$16 sps:$4 sm:$0xff]   ;;  %v3553_v16 = vld [vmem:[%s4919_s1 + $0x7a0] ss:$16 sps:$4 sm:$0xff]   ;;  %v3556_v17 = vld [vmem:[%s4919_s1 + $0x7a8] ss:$16 sps:$4 sm:$0xff]  }
  0xdf   :  { %1792 = vmatpush1.bf16.msra.mxu0 %v3517_v55  ;;  %1956 = vmatpush1.bf16.msra.mxu1 %v3520_v56  ;;  %v3561_v18 = vld [vmem:[%s4919_s1 + $0x7c4] ss:$16 sps:$4 sm:$0xff]   ;;  %v3564_v19 = vld [vmem:[%s4919_s1 + $0x7cc] ss:$16 sps:$4 sm:$0xff]   ;;  %v3559_v22 = vld [vmem:[%s4919_s1 + $0x7c0] ss:$16 sps:$4 sm:$0xff]  }
  0xe0   :  { %1793 = vmatprep.subr.bf16.mxu0 %v3525_v57  ;;  %1957 = vmatprep.subr.bf16.mxu1 %v3528_v58  ;;  %v3562_v23 = vld [vmem:[%s4919_s1 + $0x7c8] ss:$16 sps:$4 sm:$0xff]   ;;  %v3567_v24 = vld [vmem:[%s4919_s1 + $0x7e4] ss:$16 sps:$4 sm:$0xff]   ;;  %v3570_v25 = vld [vmem:[%s4919_s1 + $0x7ec] ss:$16 sps:$4 sm:$0xff]  }
  0xe1   :  { %v3565_v26 = vld [vmem:[%s4919_s1 + $0x7e0] ss:$16 sps:$4 sm:$0xff]   ;;  %v3568_v27 = vld [vmem:[%s4919_s1 + $0x7e8] ss:$16 sps:$4 sm:$0xff]   ;;  %v3573_v15 = vld [vmem:[%s4921_s3 + $0x4] ss:$8 sps:$4 sm:$0xff]  }
  0xe2   :  { %v3571_v29 = vld [vmem:[%s4921_s3] ss:$8 sps:$4 sm:$0xff]   ;;  %v3576_v30 = vld [vmem:[%s4921_s3 + $0x14] ss:$8 sps:$4 sm:$0xff]   ;;  %v3574_v31 = vld [vmem:[%s4921_s3 + $0x10] ss:$8 sps:$4 sm:$0xff]  }
  0xe3   :  { %1794 = vmatpush1.bf16.msra.mxu0 %v3523_v59  ;;  %1958 = vmatpush1.bf16.msra.mxu1 %v3526_v60  ;;  %v3579_v21 = vld [vmem:[%s4921_s3 + $0x24] ss:$8 sps:$4 sm:$0xff]   ;;  %v3577_v32 = vld [vmem:[%s4921_s3 + $0x20] ss:$8 sps:$4 sm:$0xff]   ;;  %v3582_v33 = vld [vmem:[%s4921_s3 + $0x34] ss:$8 sps:$4 sm:$0xff]  }
  0xe4   :  { %1795 = vmatprep.subr.bf16.mxu0 %v3531_v61  ;;  %1959 = vmatprep.subr.bf16.mxu1 %v3534_v62  ;;  %v3580_v34 = vld [vmem:[%s4921_s3 + $0x30] ss:$8 sps:$4 sm:$0xff]   ;;  %v3585_v20 = vld [vmem:[%s4921_s3 + $0x44] ss:$8 sps:$4 sm:$0xff]   ;;  %v3583_v35 = vld [vmem:[%s4921_s3 + $0x40] ss:$8 sps:$4 sm:$0xff]  }
  0xe5   :  { %v3588_v36 = vld [vmem:[%s4921_s3 + $0x54] ss:$8 sps:$4 sm:$0xff]   ;;  %v3586_v37 = vld [vmem:[%s4921_s3 + $0x50] ss:$8 sps:$4 sm:$0xff]   ;;  %v3591_v38 = vld [vmem:[%s4921_s3 + $0x64] ss:$8 sps:$4 sm:$0xff]  }
  0xe6   :  { %v3589_v39 = vld [vmem:[%s4921_s3 + $0x60] ss:$8 sps:$4 sm:$0xff]   ;;  %v3594_v40 = vld [vmem:[%s4921_s3 + $0x74] ss:$8 sps:$4 sm:$0xff]   ;;  %v3592_v41 = vld [vmem:[%s4921_s3 + $0x70] ss:$8 sps:$4 sm:$0xff]  }
  0xe7   :  { %1796 = vmatpush1.bf16.msra.mxu0 %v3529_v63  ;;  %1960 = vmatpush1.bf16.msra.mxu1 %v3532_v0  ;;  %v3597_v43 = vld [vmem:[%s4921_s3 + $0x84] ss:$8 sps:$4 sm:$0xff]   ;;  %v3595_v44 = vld [vmem:[%s4921_s3 + $0x80] ss:$8 sps:$4 sm:$0xff]   ;;  %v3600_v45 = vld [vmem:[%s4921_s3 + $0x94] ss:$8 sps:$4 sm:$0xff]  }
  0xe8   :  { %1797 = vmatprep.subr.bf16.mxu0 %v3537_v1  ;;  %1961 = vmatprep.subr.bf16.mxu1 %v3540_v2  ;;  %v3598_v46 = vld [vmem:[%s4921_s3 + $0x90] ss:$8 sps:$4 sm:$0xff]   ;;  %v3603_v47 = vld [vmem:[%s4921_s3 + $0xa4] ss:$8 sps:$4 sm:$0xff]   ;;  %v3601_v48 = vld [vmem:[%s4921_s3 + $0xa0] ss:$8 sps:$4 sm:$0xff]  }
  0xe9   :  { %v3606_v49 = vld [vmem:[%s4921_s3 + $0xb4] ss:$8 sps:$4 sm:$0xff]   ;;  %v3604_v50 = vld [vmem:[%s4921_s3 + $0xb0] ss:$8 sps:$4 sm:$0xff]   ;;  %v3609_v51 = vld [vmem:[%s4921_s3 + $0xc4] ss:$8 sps:$4 sm:$0xff]  }
  0xea   :  { %v3607_v52 = vld [vmem:[%s4921_s3 + $0xc0] ss:$8 sps:$4 sm:$0xff]   ;;  %v3612_v53 = vld [vmem:[%s4921_s3 + $0xd4] ss:$8 sps:$4 sm:$0xff]   ;;  %v3610_v54 = vld [vmem:[%s4921_s3 + $0xd0] ss:$8 sps:$4 sm:$0xff]  }
  0xeb   :  { %1798 = vmatpush1.bf16.msra.mxu0 %v3535_v3  ;;  %1962 = vmatpush1.bf16.msra.mxu1 %v3538_v4  ;;  %v3615_v55 = vld [vmem:[%s4921_s3 + $0xe4] ss:$8 sps:$4 sm:$0xff]   ;;  %v3613_v56 = vld [vmem:[%s4921_s3 + $0xe0] ss:$8 sps:$4 sm:$0xff]   ;;  %v3618_v57 = vld [vmem:[%s4921_s3 + $0xf4] ss:$8 sps:$4 sm:$0xff]  }
  0xec   :  { %1799 = vmatprep.subr.bf16.mxu0 %v3543_v5  ;;  %1963 = vmatprep.subr.bf16.mxu1 %v3546_v6  ;;  %v3616_v58 = vld [vmem:[%s4921_s3 + $0xf0] ss:$8 sps:$4 sm:$0xff]   ;;  %v3621_v59 = vld [vmem:[%s4921_s3 + $0x104] ss:$8 sps:$4 sm:$0xff]   ;;  %v3740_v61 = vmov 0.0   ;;  %v298_v4 = vsub.s32 0, %v3916_v42 }
  0xed   :  { %v3667_v60 = vld [vmem:[%s4923_s5] sm:$0xff]   ;;  %v3668_v62 = vld [vmem:[%s4923_s5 + $0x8] sm:$0xff]   ;;  %v3669_v63 = vld [vmem:[%s4923_s5 + $0x10] sm:$0xff]   ;;  %v302_v6 = vsub.s32 1, %v3916_v42  ;;  %vm3741_vm0 = vmmov 0   ;;  %vm2694_vm1 = vcmask 1041408  }
  0xee   :  { %v3670_v0 = vld [vmem:[%s4923_s5 + $0x18] sm:$0xff]   ;;  %v3671_v1 = vld [vmem:[%s4923_s5 + $0x20] sm:$0xff]   ;;  %v3672_v2 = vld [vmem:[%s4923_s5 + $0x28] sm:$0xff]  }
  0xef   :  { %1800 = vmatpush1.bf16.msra.mxu0 %v3541_v7  ;;  %1964 = vmatpush1.bf16.msra.mxu1 %v3544_v8  ;;  %v3673_v3 = vld [vmem:[%s4923_s5 + $0x30] sm:$0xff]   ;;  %v4731_v5 = vld [vmem:[%s4920_s2] sm:$0xf]  ;;  %v310_v7 = vsub.s32 3, %v3916_v42 }
  0xf0   :  { %1801 = vmatprep.subr.bf16.mxu0 %v3549_v9  ;;  %1965 = vmatprep.subr.bf16.mxu1 %v3552_v10  ;;  %v299_v8 = vrot.slane %v4731_v5, %v298_v4  ;;  %v303_v9 = vrot.slane %v4731_v5, %v302_v6 }
  0xf1   :  { %v311_v10 = vrot.slane %v4731_v5, %v310_v7 }
  0xf3   :  { %1802 = vmatpush1.bf16.msra.mxu0 %v3547_v11  ;;  %1966 = vmatpush1.bf16.msra.mxu1 %v3550_v12 }
  0xf4   :  { %1803 = vmatprep.subr.bf16.mxu0 %v3555_v13  ;;  %1967 = vmatprep.subr.bf16.mxu1 %v3558_v14 }
  0xf7   :  { %1804 = vmatpush1.bf16.msra.mxu0 %v3553_v16  ;;  %1968 = vmatpush1.bf16.msra.mxu1 %v3556_v17 }
  0xf8   :  { %1805 = vmatprep.subr.bf16.mxu0 %v3561_v18  ;;  %1969 = vmatprep.subr.bf16.mxu1 %v3564_v19 }
  0xfb   :  { %1806 = vmatpush1.bf16.msra.mxu0 %v3559_v22  ;;  %1970 = vmatpush1.bf16.msra.mxu1 %v3562_v23 }
  0xfc   :  { %1807 = vmatprep.subr.bf16.mxu0 %v3567_v24  ;;  %1971 = vmatprep.subr.bf16.mxu1 %v3570_v25 }
  0xff   :  { %1808 = vmatpush1.bf16.msra.mxu0 %v3565_v26  ;;  %1972 = vmatpush1.bf16.msra.mxu1 %v3568_v27 }
 0x100   :  { %2386 = vmatprep.subr.bf16.mxu0 %v3573_v15  ;;  %3107 = vmatprep.subr.bf16.mxu1 %v3740_v61 }
 0x102   :  { %1810 = vmatmul.mubr.bf16.vlgmr.msra.gmra.mrb[0].mxu0 %v363_v28  ;;  %1974 = vmatmul.mubr.bf16.vlgmr.msra.gmra.mrb[0].mxu1 %v363_v28  ;;  %v3619_v28 = vld [vmem:[%s4921_s3 + $0x100] ss:$8 sps:$4 sm:$0xff]  }
 0x103   :  { %2387 = vmatpush1.bf16.msra.mxu0 %v3571_v29  ;;  %3108 = vmatpush3.bf16.msra.mxu1 %v3667_v60 }
 0x104   :  { %2388 = vmatprep.subr.bf16.mxu0 %v3576_v30  ;;  %3109 = vmatprep.subr.bf16.mxu1 %v3740_v61  ;;  %v3624_v30 = vld [vmem:[%s4921_s3 + $0x114] ss:$8 sps:$4 sm:$0xff]  }
 0x105   :  { %3123 = vmatprep.mubr.msk.bf16.mxu1 %vm3741_vm0, %v3740_v61 }
 0x107   :  { %2389 = vmatpush1.bf16.msra.mxu0 %v3574_v31  ;;  %3110 = vmatpush3.bf16.msra.mxu1 %v3668_v62  ;;  %v3666_v62 = vld [vmem:[%s4921_s3 + $0x1f4] ss:$8 sps:$4 sm:$0xff]  }
 0x108   :  { %2390 = vmatprep.subr.bf16.mxu0 %v3579_v21  ;;  %3111 = vmatprep.subr.bf16.mxu1 %v3740_v61  ;;  %v3622_v21 = vld [vmem:[%s4921_s3 + $0x110] ss:$8 sps:$4 sm:$0xff]  }
 0x10b   :  { %2391 = vmatpush1.bf16.msra.mxu0 %v3577_v32  ;;  %3112 = vmatpush3.bf16.msra.mxu1 %v3669_v63  ;;  %v3627_v32 = vld [vmem:[%s4921_s3 + $0x124] ss:$8 sps:$4 sm:$0xff]   ;;  %v3664_v63 = vld [vmem:[%s4921_s3 + $0x1f0] ss:$8 sps:$4 sm:$0xff]  }
 0x10c   :  { %2392 = vmatprep.subr.bf16.mxu0 %v3582_v33  ;;  %3113 = vmatprep.subr.bf16.mxu1 %v3740_v61  ;;  %v3625_v33 = vld [vmem:[%s4921_s3 + $0x120] ss:$8 sps:$4 sm:$0xff]  }
 0x10f   :  { %2393 = vmatpush1.bf16.msra.mxu0 %v3580_v34  ;;  %3114 = vmatpush3.bf16.msra.mxu1 %v3670_v0  ;;  %v3630_v34 = vld [vmem:[%s4921_s3 + $0x134] ss:$8 sps:$4 sm:$0xff]  }
 0x110   :  { %2394 = vmatprep.subr.bf16.mxu0 %v3585_v20  ;;  %3115 = vmatprep.subr.bf16.mxu1 %v3740_v61  ;;  %v3628_v20 = vld [vmem:[%s4921_s3 + $0x130] ss:$8 sps:$4 sm:$0xff]  }
 0x113   :  { %2395 = vmatpush1.bf16.msra.mxu0 %v3583_v35  ;;  %3116 = vmatpush3.bf16.msra.mxu1 %v3671_v1  ;;  %v3633_v35 = vld [vmem:[%s4921_s3 + $0x144] ss:$8 sps:$4 sm:$0xff]  }
 0x114   :  { %2396 = vmatprep.subr.bf16.mxu0 %v3588_v36  ;;  %3117 = vmatprep.subr.bf16.mxu1 %v3740_v61  ;;  %v3631_v36 = vld [vmem:[%s4921_s3 + $0x140] ss:$8 sps:$4 sm:$0xff]  }
 0x117   :  { %2397 = vmatpush1.bf16.msra.mxu0 %v3586_v37  ;;  %3118 = vmatpush3.bf16.msra.mxu1 %v3672_v2  ;;  %v3636_v37 = vld [vmem:[%s4921_s3 + $0x154] ss:$8 sps:$4 sm:$0xff]  }
 0x118   :  { %2398 = vmatprep.subr.bf16.mxu0 %v3591_v38  ;;  %3119 = vmatprep.subr.bf16.mxu1 %v3740_v61  ;;  %v3634_v38 = vld [vmem:[%s4921_s3 + $0x150] ss:$8 sps:$4 sm:$0xff]  }
 0x119   :  { %v3674_v2 = vld [vmem:[%s4923_s5 + $0x38] sm:$0xff]  }
 0x11b   :  { %2399 = vmatpush1.bf16.msra.mxu0 %v3589_v39  ;;  %3120 = vmatpush3.bf16.msra.mxu1 %v3673_v3  ;;  %v3639_v39 = vld [vmem:[%s4921_s3 + $0x164] ss:$8 sps:$4 sm:$0xff]   ;;  %v2054_v3 = vld [vmem:[%s4922_s4] sm:$0x3] }
 0x11c   :  { %2400 = vmatprep.subr.bf16.mxu0 %v3594_v40  ;;  %3121 = vmatprep.subr.bf16.mxu1 %v3740_v61  ;;  %v3637_v40 = vld [vmem:[%s4921_s3 + $0x160] ss:$8 sps:$4 sm:$0xff]  }
 0x11f   :  { %2401 = vmatpush1.bf16.msra.mxu0 %v3592_v41  ;;  %v3642_v41 = vld [vmem:[%s4921_s3 + $0x174] ss:$8 sps:$4 sm:$0xff]   ;;  %3122 = vmatpush3.bf16.msra.mxu1 %v3674_v2 }
 0x120   :  { %2402 = vmatprep.subr.bf16.mxu0 %v3597_v43  ;;  %v3640_v43 = vld [vmem:[%s4921_s3 + $0x170] ss:$8 sps:$4 sm:$0xff]   ;;  %3127 = vmatprep.subr.bf16.mxu1 %v3740_v61 }
 0x123   :  { %2403 = vmatpush1.bf16.msra.mxu0 %v3595_v44  ;;  %v3645_v44 = vld [vmem:[%s4921_s3 + $0x184] ss:$8 sps:$4 sm:$0xff]  }
 0x124   :  { %2404 = vmatprep.subr.bf16.mxu0 %v3600_v45  ;;  %v3643_v45 = vld [vmem:[%s4921_s3 + $0x180] ss:$8 sps:$4 sm:$0xff]  }
 0x127   :  { %2405 = vmatpush1.bf16.msra.mxu0 %v3598_v46  ;;  %v3648_v46 = vld [vmem:[%s4921_s3 + $0x194] ss:$8 sps:$4 sm:$0xff]  }
 0x128   :  { %2406 = vmatprep.subr.bf16.mxu0 %v3603_v47  ;;  %v3646_v47 = vld [vmem:[%s4921_s3 + $0x190] ss:$8 sps:$4 sm:$0xff]  }
 0x12b   :  { %2407 = vmatpush1.bf16.msra.mxu0 %v3601_v48  ;;  %v3651_v48 = vld [vmem:[%s4921_s3 + $0x1a4] ss:$8 sps:$4 sm:$0xff]  }
 0x12c   :  { %2408 = vmatprep.subr.bf16.mxu0 %v3606_v49  ;;  %v3649_v49 = vld [vmem:[%s4921_s3 + $0x1a0] ss:$8 sps:$4 sm:$0xff]  }
 0x12f   :  { %2409 = vmatpush1.bf16.msra.mxu0 %v3604_v50  ;;  %v3654_v50 = vld [vmem:[%s4921_s3 + $0x1b4] ss:$8 sps:$4 sm:$0xff]  }
 0x130   :  { %2410 = vmatprep.subr.bf16.mxu0 %v3609_v51  ;;  %v3652_v51 = vld [vmem:[%s4921_s3 + $0x1b0] ss:$8 sps:$4 sm:$0xff]  }
 0x133   :  { %2411 = vmatpush1.bf16.msra.mxu0 %v3607_v52  ;;  %v3657_v52 = vld [vmem:[%s4921_s3 + $0x1c4] ss:$8 sps:$4 sm:$0xff]  }
 0x134   :  { %2412 = vmatprep.subr.bf16.mxu0 %v3612_v53  ;;  %v3655_v53 = vld [vmem:[%s4921_s3 + $0x1c0] ss:$8 sps:$4 sm:$0xff]  }
 0x137   :  { %2413 = vmatpush1.bf16.msra.mxu0 %v3610_v54  ;;  %v306_v54 = vsub.s32 2, %v3916_v42 }
 0x138   :  { %2414 = vmatprep.subr.bf16.mxu0 %v3615_v55  ;;  %v3660_v55 = vld [vmem:[%s4921_s3 + $0x1d4] ss:$8 sps:$4 sm:$0xff]  }
 0x13b   :  { %2415 = vmatpush1.bf16.msra.mxu0 %v3613_v56  ;;  %v3658_v56 = vld [vmem:[%s4921_s3 + $0x1d0] ss:$8 sps:$4 sm:$0xff]  }
 0x13c   :  { %2416 = vmatprep.subr.bf16.mxu0 %v3618_v57  ;;  %v307_v57 = vrot.slane %v4731_v5, %v306_v54  ;;  %v2059_v5 = vrot.slane %v2054_v3, %v298_v4  ;;  %v3677_v4 = vld [vmem:[%s4925_s7 + $0x10] sm:$0xff]  }
 0x13f   :  { %2417 = vmatpush1.bf16.msra.mxu0 %v3616_v58  ;;  %v3663_v58 = vld [vmem:[%s4921_s3 + $0x1e4] ss:$8 sps:$4 sm:$0xff]  }
 0x140   :  { %2427 = vmatprep.subr.bf16.mxu0 %v3621_v59  ;;  %v3661_v59 = vld [vmem:[%s4921_s3 + $0x1e0] ss:$8 sps:$4 sm:$0xff]  }
 0x1d5   :  { %v1811_v11 = vpop.f32.mrb[0].mxu0  ;;  %v4742_v12 = vpop.f32.mrb[0].mxu1 }
 0x1d6   :  { %v3147_v13 = vadd.f32 %v1811_v11, %v299_v8  ;;  %v1813_v14 = vpop.f32.mrb[1].mxu0  ;;  %v1977_v16 = vpop.f32.mrb[1].mxu1  ;;  %v3149_v60 = vadd.f32 %v4742_v12, %v307_v57 }
 0x1d7   :  { %v3148_v17 = vadd.f32 %v1813_v14, %v303_v9  ;;  %v3150_v18 = vadd.f32 %v1977_v16, %v311_v10  ;;  %v1815_v19 = vpop.f32.mrb[2].mxu0  ;;  %v1979_v22 = vpop.f32.mrb[2].mxu1  ;;  %v3676_v16 = vld [vmem:[%s4925_s7 + $0x8] sm:$0xff]  }
 0x1d8   :  { %v1982_v23 = vmax.f32 %v3147_v13, 0.0  ;;  %v1816_v24 = vpop.f32.mrb[3].mxu0  ;;  %v1980_v25 = vpop.f32.mrb[3].mxu1  ;;  %v1984_v0 = vmax.f32 %v3149_v60, 0.0  ;;  %v3675_v13 = vld [vmem:[%s4925_s7] sm:$0xff]   ;;  %v3680_v19 = vld [vmem:[%s4925_s7 + $0x28] sm:$0xff]   ;;  %v2063_v22 = vrot.slane %v2054_v3, %v302_v6 }
 0x1d9   :  { %v1983_v26 = vmax.f32 %v3148_v17, 0.0  ;;  %v1985_v27 = vmax.f32 %v3150_v18, 0.0  ;;  %v3678_v17 = vld [vmem:[%s4925_s7 + $0x18] sm:$0xff]   ;;  %v3679_v18 = vld [vmem:[%s4925_s7 + $0x20] sm:$0xff]  }
 0x1da   :  { %v1986_v29 = vpack.c.bf16 %v1982_v23, %v1982_v23  ;;  %v1988_v1 = vpack.c.bf16 %v1984_v0, %v1984_v0  ;;  %v3681_v23 = vld [vmem:[%s4925_s7 + $0x30] sm:$0xff]   ;;  %v3682_v25 = vld [vmem:[%s4925_s7 + $0x38] sm:$0xff]   ;;  %v3071_v6 = vld [vmem:[%s4924_s6] ss:$0 sm:$0xff]  ;;  %s3742_s6 = smov [#allocation2]  }
 0x1db   :  { %v1987_v15 = vpack.c.bf16 %v1983_v26, %v1983_v26  ;;  %v1989_v31 = vpack.c.bf16 %v1985_v27, %v1985_v27 }
 0x1dd   :  { %2418 = vmatprep.mubr.bf16.mxu0 %v1987_v15 }
 0x1de   :  { %2419 = vmatmul.mubr.bf16.vlgmr.msra.gmra.mrb[4].mxu0 %v1986_v29 }
 0x1df   :  { %2428 = vmatpush1.bf16.msra.mxu0 %v3619_v28  ;;  %2459 = vmatprep.mubr.bf16.mxu0 %v1989_v31 }
 0x1e0   :  { %2429 = vmatprep.subr.bf16.mxu0 %v3624_v30 }
 0x1e3   :  { %2430 = vmatpush1.bf16.msra.mxu0 %v3622_v21 }
 0x1e4   :  { %2431 = vmatprep.subr.bf16.mxu0 %v3627_v32 }
 0x1e7   :  { %2432 = vmatpush1.bf16.msra.mxu0 %v3625_v33 }
 0x1e8   :  { %2433 = vmatprep.subr.bf16.mxu0 %v3630_v34 }
 0x1eb   :  { %2434 = vmatpush1.bf16.msra.mxu0 %v3628_v20 }
 0x1ec   :  { %2435 = vmatprep.subr.bf16.mxu0 %v3633_v35 }
 0x1ef   :  { %2436 = vmatpush1.bf16.msra.mxu0 %v3631_v36 }
 0x1f0   :  { %2437 = vmatprep.subr.bf16.mxu0 %v3636_v37 }
 0x1f3   :  { %2438 = vmatpush1.bf16.msra.mxu0 %v3634_v38 }
 0x1f4   :  { %2439 = vmatprep.subr.bf16.mxu0 %v3639_v39 }
 0x1f7   :  { %2440 = vmatpush1.bf16.msra.mxu0 %v3637_v40 }
 0x1f8   :  { %2441 = vmatprep.subr.bf16.mxu0 %v3642_v41 }
 0x1fb   :  { %2442 = vmatpush1.bf16.msra.mxu0 %v3640_v43 }
 0x1fc   :  { %2443 = vmatprep.subr.bf16.mxu0 %v3645_v44 }
 0x1ff   :  { %2444 = vmatpush1.bf16.msra.mxu0 %v3643_v45 }
 0x200   :  { %2445 = vmatprep.subr.bf16.mxu0 %v3648_v46 }
 0x203   :  { %2446 = vmatpush1.bf16.msra.mxu0 %v3646_v47 }
 0x204   :  { %2447 = vmatprep.subr.bf16.mxu0 %v3651_v48 }
 0x207   :  { %2448 = vmatpush1.bf16.msra.mxu0 %v3649_v49 }
 0x208   :  { %2449 = vmatprep.subr.bf16.mxu0 %v3654_v50 }
 0x20b   :  { %2450 = vmatpush1.bf16.msra.mxu0 %v3652_v51 }
 0x20c   :  { %2451 = vmatprep.subr.bf16.mxu0 %v3657_v52 }
 0x20f   :  { %2452 = vmatpush1.bf16.msra.mxu0 %v3655_v53 }
 0x210   :  { %2453 = vmatprep.subr.bf16.mxu0 %v3660_v55 }
 0x213   :  { %2454 = vmatpush1.bf16.msra.mxu0 %v3658_v56 }
 0x214   :  { %2455 = vmatprep.subr.bf16.mxu0 %v3663_v58 }
 0x217   :  { %2456 = vmatpush1.bf16.msra.mxu0 %v3661_v59 }
 0x218   :  { %2457 = vmatprep.subr.bf16.mxu0 %v3666_v62 }
 0x21b   :  { %2458 = vmatpush1.bf16.msra.mxu0 %v3664_v63 }
 0x21e   :  { %2460 = vmatmul.mubr.bf16.vlgmr.msra.gmra.mrb[4].mxu0 %v1988_v1 }
 0x2f1   :  { %v2461_v7 = vpop.f32.mrb[4].mxu0 }
 0x2f2   :  { %v3151_v8 = vadd.f32 %v2461_v7, %v2059_v5  ;;  %v2463_v9 = vpop.f32.mrb[5].mxu0 }
 0x2f3   :  { %v2465_v10 = vpop.f32.mrb[6].mxu0  ;;  %v3152_v24 = vadd.f32 %v2463_v9, %v2063_v22 }
 0x2f4   :  { %v2468_v11 = vmax.f32 %v3151_v8, 0.0  ;;  %v2466_v12 = vpop.f32.mrb[7].mxu0 }
 0x2f5   :  { %v2469_v26 = vmax.f32 %v3152_v24, 0.0 }
 0x2f6   :  { %v2470_v14 = vpack.c.bf16 %v2468_v11, %v2468_v11 }
 0x2f7   :  { %v2471_v42 = vpack.c.bf16 %v2469_v26, %v2469_v26 }
 0x2f8   :  { %3124 = vmatmul.mubr.bf16.vlgmr.msra.gmra.mrb[4].mxu1 %v2470_v14 }
 0x2f9   :  { %3128 = vmatpush3.bf16.msra.mxu1 %v3675_v13  ;;  %3143 = vmatprep.mubr.msk.bf16.mxu1 %vm3741_vm0, %v3740_v61 }
 0x2fa   :  { %3129 = vmatprep.subr.bf16.mxu1 %v3740_v61 }
 0x2fd   :  { %3130 = vmatpush3.bf16.msra.mxu1 %v3676_v16 }
 0x2fe   :  { %3131 = vmatprep.subr.bf16.mxu1 %v3740_v61 }
 0x301   :  { %3132 = vmatpush3.bf16.msra.mxu1 %v3677_v4 }
 0x302   :  { %3133 = vmatprep.subr.bf16.mxu1 %v3740_v61 }
 0x305   :  { %3134 = vmatpush3.bf16.msra.mxu1 %v3678_v17 }
 0x306   :  { %3135 = vmatprep.subr.bf16.mxu1 %v3740_v61 }
 0x309   :  { %3136 = vmatpush3.bf16.msra.mxu1 %v3679_v18 }
 0x30a   :  { %3137 = vmatprep.subr.bf16.mxu1 %v3740_v61 }
 0x30d   :  { %3138 = vmatpush3.bf16.msra.mxu1 %v3680_v19 }
 0x30e   :  { %3139 = vmatprep.subr.bf16.mxu1 %v3740_v61 }
 0x311   :  { %3140 = vmatpush3.bf16.msra.mxu1 %v3681_v23 }
 0x312   :  { %3141 = vmatprep.subr.bf16.mxu1 %v3740_v61  ;;  %v3080_v61 = vld [vmem:[%s4926_s8] ss:$0 sm:$0xff]  ;;  %s2729_s8 = sshll.u32 %s3742_s6, 4  ;;  %s2730_s8 = int_to_ptr.vmem [resolvable:$true] %s2729_s8 }
 0x313   :  { %s3691_s1 = scalar_lea.vmem %s2730_s8, 32  ;;  %p3696_p1 = scmp.lt.s32.totalorder %s2730_s8, %s2730_s8 }
 0x314   :  { %p3692_p0 = scmp.ne.s32.totalorder %s2730_s8, %s3691_s1  ;;  %p3697_p2 = scmp.lt.s32.totalorder %s3691_s1, %s3691_s1 }
 0x315   :  { %3142 = vmatpush3.bf16.msra.mxu1 %v3682_v25 }
 0x316   :  { %p3698_p3 = por %p3697_p2, %p3696_p1 }
 0x318   :  { %3144 = vmatmul.mubr.bf16.vlgmr.msra.gmra.mrb[8].mxu1 %v2471_v42  ;;  %p3699_p4 = pnand %p3698_p3, %p3692_p0 }
 0x3cb   :  { %v2577_v27 = vpop.f32.mrb[4].mxu1 }
 0x3cc   :  { %v2578_v15 = vadd.f32 %v3071_v6, %v2577_v27  ;;  %v3125_v28 = vpop.f32.mrb[5].mxu1 }
 0x3cd   :  { %v2580_v29 = vpop.f32.mrb[6].mxu1 }
 0x3ce   :  { %v3126_v30 = vpop.f32.mrb[7].mxu1  ;;  %v2695_v31 = vsel %vm2694_vm1, %v2578_v15, -inf }
 0x3cf   :  { %2696 = vmax.xlane.f32.xlu0 %v2695_v31 }
 0x3eb   :  { %v2688_v21 = vpop.f32.mrb[8].mxu1 }
 0x3ec   :  { %v2689_v32 = vadd.f32 %v3080_v61, %v2688_v21  ;;  %v3145_v33 = vpop.f32.mrb[9].mxu1 }
 0x3ed   :  { %v2691_v34 = vpop.f32.mrb[10].mxu1 }
 0x3ee   :  { %v3146_v20 = vpop.f32.mrb[11].mxu1  ;;  %v2709_v35 = vsel %vm2694_vm1, %v2689_v32, -inf }
 0x3ef   :  { %2710 = vmax.xlane.f32.xlu0 %v2709_v35 }
 0x45c   :  { %v2697_v36 = vpop.xlane.xlu0 %2696 }
 0x45d   :  { %v2698_v37 = vsub.f32 %v2578_v15, %v2697_v36 }
 0x45f   :  { %v2699_v38 = vmul.f32 1.442695, %v2698_v37 }
 0x461   :  { %3683 = vpow2.f32 %v2699_v38 }
 0x46b   :  { %v3684_v39 = vpop.eup %3683 }
 0x46c   :  { %v2701_v40 = vsel %vm2694_vm1, %v3684_v39, 0.0 }
 0x46d   :  { %2702 = vadd.xlane.f32.xlu1 %v2701_v40 }
 0x47c   :  { %v2711_v41 = vpop.xlane.xlu0 %2710 }
 0x47d   :  { %v2712_v43 = vsub.f32 %v2689_v32, %v2711_v41 }
 0x47f   :  { %v2713_v44 = vmul.f32 1.442695, %v2712_v43 }
 0x481   :  { %3685 = vpow2.f32 %v2713_v44 }
 0x48b   :  { %v3686_v45 = vpop.eup %3685 }
 0x48c   :  { %v2715_v46 = vsel %vm2694_vm1, %v3686_v45, 0.0 }
 0x48d   :  { %2716 = vadd.xlane.f32.xlu1 %v2715_v46 }
 0x4fa   :  { %v2703_v47 = vpop.xlane.xlu1 %2702 }
 0x4fb   :  { %3687 = vlog2.f32 %v2703_v47 }
 0x505   :  { %v3688_v48 = vpop.eup %3687 }
 0x506   :  { %v2705_v49 = vmul.f32 0.6931472, %v3688_v48 }
 0x508   :  { %v2706_v50 = vadd.f32 %v2705_v49, %v2697_v36 }
 0x50a   :  { %v2707_v51 = vsub.f32 %v2578_v15, %v2706_v50 }
 0x50c   :  { %2708 = vst [vmem:[#allocation2] sm:$0x3] %v2707_v51 }
 0x50d   :  { %3702 = shalt.err (!%p3699_p4)
}
 0x50e   :  { %s3703_s14 = scalar_lea.hbm %s4927_s9, 32 }
 0x50f   :  { %p3704_p5 = scmp.ne.s32.totalorder %s4927_s9, %s3703_s14  ;;  %p3707_p6 = scmp.lt.u32.totalorder %s3703_s14, %s4927_s9 }
 0x511   :  { %p3709_p7 = pnand %p3707_p6, %p3704_p5 }
 0x513   :  { %3712 = shalt.err (!%p3709_p7)
}
 0x514   :  { %2732 = dma.vmem_to_hbm [thread:$0]  %s2730_s8, 32, %s4927_s9, [#allocation3]  }
 0x515   :  { %s3743_s19 = smov [#allocation4]  }
 0x516   :  { %s2739_s4 = sshll.u32 %s3743_s19, 4  ;;  %s2740_s4 = int_to_ptr.vmem [resolvable:$true] %s2739_s4 }
 0x517   :  { %s3713_s20 = scalar_lea.vmem %s2740_s4, 32  ;;  %p3718_p9 = scmp.lt.s32.totalorder %s2740_s4, %s2740_s4 }
 0x518   :  { %p3714_p8 = scmp.ne.s32.totalorder %s2740_s4, %s3713_s20  ;;  %p3719_p10 = scmp.lt.s32.totalorder %s3713_s20, %s3713_s20 }
 0x51a   :  { %v2717_v52 = vpop.xlane.xlu1 %2716  ;;  %p3720_p11 = por %p3719_p10, %p3718_p9 }
 0x51b   :  { %3689 = vlog2.f32 %v2717_v52 }
 0x51c   :  { %p3721_p12 = pnand %p3720_p11, %p3714_p8 }
 0x525   :  { %v3690_v53 = vpop.eup %3689 }
 0x526   :  { %v2719_v54 = vmul.f32 0.6931472, %v3690_v53 }
 0x528   :  { %v2720_v55 = vadd.f32 %v2719_v54, %v2711_v41 }
 0x52a   :  { %v2721_v56 = vsub.f32 %v2689_v32, %v2720_v55 }
 0x52c   :  { %2722 = vst [vmem:[#allocation4] sm:$0x3] %v2721_v56 }
 0x52d   :  { %3724 = shalt.err (!%p3721_p12)
}
 0x52e   :  { %s3725_s9 = scalar_lea.hbm %s4928_s10, 32 }
 0x52f   :  { %p3726_p13 = scmp.ne.s32.totalorder %s4928_s10, %s3725_s9  ;;  %p3729_p0 = scmp.lt.u32.totalorder %s3725_s9, %s4928_s10 }
 0x531   :  { %p3731_p1 = pnand %p3729_p0, %p3726_p13 }
 0x533   :  { %3734 = shalt.err (!%p3731_p1)
}
 0x534   :  { %2742 = dma.vmem_to_hbm [thread:$0]  %s2740_s4, 32, %s4928_s10, [#allocation5]  }
 0x535   :  { %3735 = dma.done.wait [#allocation3], 32  }
 0x536   :  { %3736 = vsyncadd [#allocation3], 4294967264 }
 0x537   :  { %3737 = dma.done.wait [#allocation5], 32  }
 0x538   :  { %3738 = vsyncadd [#allocation5], 4294967264 }
 0x539   :  { %2749 = vsyncpa [#allocation3], 1 }
 0x53a   :  { %2750 = vsyncpa [#allocation5], 1 }

// kernel: dann_forward.4
= control target key start
LH: loop header
LB: loop body
LE: loop exit
PB: predicated region body
PF: predicated region fallthrough
CT: control target
= control target key end

     0   :  { %s6556_s12 = smov 0   ;;  %s7156_s0 = inlined_call_operand.vmem [shape: bf16[2,208,128], index: 0, kind: input, shape index: {}]   ;;  %s7157_s1 = inlined_call_operand.vmem [shape: bf16[15,128,128], index: 1, kind: input, shape index: {}]   ;;  %s7158_s2 = inlined_call_operand.vmem [shape: f32[1,64], index: 2, kind: input, shape index: {}]   ;;  %s7159_s3 = inlined_call_operand.vmem [shape: bf16[2,4,4,64], index: 3, kind: output, shape index: {}]  }
   0x1 LB: > { %s4830_s13 = sadd.s32 4294967295, %s6533_s12   ;;  %p4834_p0 = scmp.ge.s32.totalorder %s6533_s12, 1  ;;  %s6533_s12 = sphi %s6556_s12, %s13_s12  }
   0x2   : > { %p137_p1 = scmp.lt.s32.totalorder %s6533_s12, 3 }
   0x4   : > { %p138_p2 = pnand %p4834_p0, %p137_p1 }
   0x5   : > { %v6277_v0 = vld [vmem:[%s7157_s1] sm:$0xff] (!%p138_p2)   ;;  %v6279_v2 = vld [vmem:[%s7157_s1 + $0x8] sm:$0xff] (!%p138_p2)   ;;  %p161_p3 = scmp.lt.s32.totalorder (!%p138_p2), %s4830_s13, 1  ;;  %v6281_v4 = vld [vmem:[%s7157_s1 + $0x10] sm:$0xff] (!%p138_p2)   ;;  %vm490_vm0 = vsmask.f32 (!%p138_p2), 7424 }
   0x6   : > { %141 = sbr.rel (%p138_p2) target bundleno = 613 (0x265), region = 32  ;;  %v6278_v1 = vld [vmem:[%s7157_s1 + $0x1c0] sm:$0xff] (!%p138_p2)   ;;  %5559 = vmatprep.subr.bf16.mxu1 (!%p138_p2), %v6277_v0  ;;  %v6280_v3 = vld [vmem:[%s7157_s1 + $0x1c8] sm:$0xff] (!%p138_p2)   ;;  %v6282_v5 = vld [vmem:[%s7157_s1 + $0x1d0] sm:$0xff] (!%p138_p2)   ;;  %vm837_vm1 = vcmask (!%p138_p2), 1046528   ;;  %vm4734_vm2 = vcmask (!%p138_p2), 517120  }
   0x7   : > { %5783 = vmatprep.subr.bf16.mxu0 (!%p138_p2), %v6278_v1  ;;  %5560 = vmatpush3.bf16.msra.mxu1 (!%p138_p2), %v6277_v0  ;;  %v6283_v6 = vld [vmem:[%s7157_s1 + $0x18] sm:$0xff] (!%p138_p2)   ;;  %v6285_v8 = vld [vmem:[%s7157_s1 + $0x20] sm:$0xff] (!%p138_p2)   ;;  %v6287_v10 = vld [vmem:[%s7157_s1 + $0x28] sm:$0xff] (!%p138_p2)  }
   0x8   : > { %5784 = vmatpush3.bf16.msra.mxu0 (!%p138_p2), %v6278_v1  ;;  %5561 = vmatprep.subr.bf16.mxu1 (!%p138_p2), %v6279_v2  ;;  %v6284_v7 = vld [vmem:[%s7157_s1 + $0x1d8] sm:$0xff] (!%p138_p2)   ;;  %v6286_v9 = vld [vmem:[%s7157_s1 + $0x1e0] sm:$0xff] (!%p138_p2)   ;;  %v6288_v12 = vld [vmem:[%s7157_s1 + $0x1e8] sm:$0xff] (!%p138_p2)  }
   0x9   : > { %5785 = vmatprep.subr.bf16.mxu0 (!%p138_p2), %v6280_v3  ;;  %v6289_v13 = vld [vmem:[%s7157_s1 + $0x30] sm:$0xff] (!%p138_p2)   ;;  %v6291_v22 = vld [vmem:[%s7157_s1 + $0x38] sm:$0xff] (!%p138_p2)   ;;  %v6297_v32 = vld [vmem:[%s7157_s1 + $0x40] sm:$0xff] (!%p138_p2)  }
   0xa   : > { %v6290_v15 = vld [vmem:[%s7157_s1 + $0x1f0] sm:$0xff] (!%p138_p2)   ;;  %v6292_v27 = vld [vmem:[%s7157_s1 + $0x1f8] sm:$0xff] (!%p138_p2)   ;;  %v6299_v35 = vld [vmem:[%s7157_s1 + $0x200] sm:$0xff] (!%p138_p2)  }
   0xb   : > { %5562 = vmatpush3.bf16.msra.mxu1 (!%p138_p2), %v6279_v2  ;;  %v6300_v37 = vld [vmem:[%s7157_s1 + $0x48] sm:$0xff] (!%p138_p2)   ;;  %v6305_v50 = vld [vmem:[%s7157_s1 + $0x50] sm:$0xff] (!%p138_p2)   ;;  %v6308_v55 = vld [vmem:[%s7157_s1 + $0x58] sm:$0xff] (!%p138_p2)  }
   0xc   : > { %5786 = vmatpush3.bf16.msra.mxu0 (!%p138_p2), %v6280_v3  ;;  %5563 = vmatprep.subr.bf16.mxu1 (!%p138_p2), %v6281_v4  ;;  %v6301_v39 = vld [vmem:[%s7157_s1 + $0x208] sm:$0xff] (!%p138_p2)   ;;  %v6307_v53 = vld [vmem:[%s7157_s1 + $0x210] sm:$0xff] (!%p138_p2)   ;;  %v6309_v57 = vld [vmem:[%s7157_s1 + $0x218] sm:$0xff] (!%p138_p2)  }
   0xd   : > { %s7161_s13 = smov (!%p161_p3, %s4830_s13), 1  ;;  %5787 = vmatprep.subr.bf16.mxu0 %v6282_v5 }
   0xe   : > { %s6267_s30 = smul.u32 104, %s7161_s13  ;;  %s5318_s19 = sshll.u32 %s7161_s13, 3 }
   0xf   : > { %5564 = vmatpush3.bf16.msra.mxu1 %v6281_v4  ;;  %v6313_v4 = vld [vmem:[%s7157_s1 + $0x60] sm:$0xff]   ;;  %s170_s22 = scalar_lea.vmem %s7159_s3, %s5318_s19 }
  0x10   : > { %5788 = vmatpush3.bf16.msra.mxu0 %v6282_v5  ;;  %5565 = vmatprep.subr.bf16.mxu1 %v6283_v6  ;;  %s6603_s14 = scalar_lea.vmem %s7156_s0, %s6267_s30 }
  0x11   : > { %5789 = vmatprep.subr.bf16.mxu0 %v6284_v7  ;;  %v6293_v11 = vld [vmem:[%s6603_s14] sm:$0xff]   ;;  %v6294_v14 = vld [vmem:[%s6603_s14 + $0x10] sm:$0xff]   ;;  %v6295_v16 = vld [vmem:[%s6603_s14 + $0x18] sm:$0xff]  }
  0x12   : > { %5575 = vmatprep.mubr.bf16.mxu1 %v6293_v11  ;;  %v2323_v17 = vshrl.u32 %v6294_v14, 16  ;;  %v2325_v18 = vshll.u32 %v6294_v14, 16  ;;  %v2330_v19 = vshll.u32 %v6295_v16, 16  ;;  %v6298_v20 = vld [vmem:[%s6603_s14 + $0x20] sm:$0xff]   ;;  %v2334_v24 = vshrl.u32 %v6295_v16, 16  ;;  %v6303_v29 = vld [vmem:[%s6603_s14 + $0x28] sm:$0xff]  }
  0x13   : > { %5566 = vmatpush3.bf16.msra.mxu1 %v6283_v6  ;;  %v2338_v25 = vshll.u32 %v6298_v20, 16  ;;  %v2342_v30 = vshrl.u32 %v6298_v20, 16  ;;  %v6296_v31 = vld [vmem:[%s6603_s14 + $0x8] sm:$0xff]   ;;  %v2346_v36 = vshll.u32 %v6303_v29, 16  ;;  %v6306_v38 = vld [vmem:[%s6603_s14 + $0x30] sm:$0xff]   ;;  %v2350_v43 = vshrl.u32 %v6303_v29, 16 }
  0x14   : > { %5790 = vmatpush3.bf16.msra.mxu0 %v6284_v7  ;;  %5567 = vmatprep.subr.bf16.mxu1 %v6285_v8  ;;  %v2327_v21 = vrot.slane %v2325_v18, 1  ;;  %v2332_v23 = vrot.slane %v2330_v19, 1  ;;  %v2354_v44 = vshll.u32 %v6306_v38, 16  ;;  %v6302_v45 = vld [vmem:[%s6603_s14 + $0x10] sm:$0xff]   ;;  %v6311_v47 = vld [vmem:[%s6603_s14 + $0x38] sm:$0xff]   ;;  %v2358_v48 = vshrl.u32 %v6306_v38, 16 }
  0x15   : > { %5791 = vmatprep.subr.bf16.mxu0 %v6286_v9  ;;  %v2340_v34 = vrot.slane %v2338_v25, 1  ;;  %v2348_v41 = vrot.slane %v2346_v36, 1  ;;  %v6304_v49 = vld [vmem:[%s6603_s14 + $0x18] sm:$0xff]   ;;  %v2362_v54 = vshll.u32 %v6311_v47, 16  ;;  %v6314_v56 = vld [vmem:[%s6603_s14 + $0x40] sm:$0xff]   ;;  %v2366_v61 = vshrl.u32 %v6311_v47, 16 }
  0x16   : > { %v2328_v26 = vor.u32 %v2327_v21, %v2323_v17  ;;  %v2336_v33 = vor.u32 %v2334_v24, %v2332_v23  ;;  %v2356_v52 = vrot.slane %v2354_v44, 1  ;;  %v2370_v62 = vshll.u32 %v6314_v56, 16  ;;  %v6310_v63 = vld [vmem:[%s6603_s14 + $0x20] sm:$0xff]   ;;  %v6319_v1 = vld [vmem:[%s6603_s14 + $0x48] sm:$0xff]   ;;  %v6318_v17 = vld [vmem:[%s6603_s14 + $0x30] sm:$0xff]  }
  0x17   : > { %5568 = vmatpush3.bf16.msra.mxu1 %v6285_v8  ;;  %v2344_v40 = vor.u32 %v2342_v30, %v2340_v34  ;;  %v2352_v51 = vor.u32 %v2350_v43, %v2348_v41  ;;  %v2364_v59 = vrot.slane %v2362_v54, 1  ;;  %v2374_v2 = vshrl.u32 %v6314_v56, 16  ;;  %v6312_v3 = vld [vmem:[%s6603_s14 + $0x28] sm:$0xff]   ;;  %v6315_v7 = vld [vmem:[%s7157_s1 + $0x220] sm:$0xff]   ;;  %v6321_v18 = vld [vmem:[%s7157_s1 + $0x70] sm:$0xff]  }
  0x18   : > { %5792 = vmatpush3.bf16.msra.mxu0 %v6286_v9  ;;  %5569 = vmatprep.subr.bf16.mxu1 %v6287_v10  ;;  %v2333_v28 = vsel %vm490_vm0, %v2328_v26, %v2332_v23  ;;  %v2341_v42 = vsel %vm490_vm0, %v2336_v33, %v2340_v34  ;;  %v2360_v58 = vor.u32 %v2358_v48, %v2356_v52  ;;  %v2372_v6 = vrot.slane %v2370_v62, 1  ;;  %v6316_v9 = vld [vmem:[%s7157_s1 + $0x68] sm:$0xff]   ;;  %v6326_v19 = vld [vmem:[%s6603_s14] sm:$0xff]   ;;  %v6320_v23 = vld [vmem:[%s6603_s14 + $0x38] sm:$0xff]  }
  0x19   : > { %5793 = vmatprep.subr.bf16.mxu0 %v6288_v12  ;;  %5799 = vmatprep.mubr.bf16.mxu0 %v2333_v28  ;;  %v2349_v46 = vsel %vm490_vm0, %v2344_v40, %v2348_v41  ;;  %v2357_v60 = vsel %vm490_vm0, %v2352_v51, %v2356_v52  ;;  %v2368_v5 = vor.u32 %v2366_v61, %v2364_v59  ;;  %v2378_v8 = vshll.u32 %v6319_v1, 16  ;;  %v6317_v11 = vld [vmem:[%s7157_s1 + $0x228] sm:$0xff]   ;;  %v6328_v29 = vld [vmem:[%s6603_s14 + $0x10] sm:$0xfe]   ;;  %v6324_v30 = vld [vmem:[%s7157_s1 + $0x78] sm:$0xff]  }
  0x1a   : > { %v2365_v0 = vsel %vm490_vm0, %v2360_v58, %v2364_v59  ;;  %v492_v25 = vshrl.u32 %v6326_v19, 16  ;;  %v494_v26 = vshll.u32 %v6326_v19, 16  ;;  %v6330_v36 = vld [vmem:[%s6603_s14 + $0x10] sm:$0xff]   ;;  %v6332_v40 = vld [vmem:[%s6603_s14 + $0x20] sm:$0xff]   ;;  %v6325_v41 = vld [vmem:[%s7157_s1 + $0x238] sm:$0xff]  }
  0x1b   : > { %5570 = vmatpush3.bf16.msra.mxu1 %v6287_v10  ;;  %v6322_v10 = vld [vmem:[%s6603_s14 + $0x50] ss:$0 sps:$4 sm:$0x11]   ;;  %v2373_v14 = vsel %vm490_vm0, %v2368_v5, %v2372_v6  ;;  %v6331_v44 = vld [vmem:[%s7157_s1 + $0x80] sm:$0xff]   ;;  %v2671_v48 = vrot.slane %v6332_v40, 1  ;;  %v511_v51 = vshrl.u32 %v6330_v36, 16 }
  0x1c   : > { %5794 = vmatpush3.bf16.msra.mxu0 %v6288_v12  ;;  %5571 = vmatprep.subr.bf16.mxu1 %v6289_v13  ;;  %v2376_v12 = vor.u32 %v2374_v2, %v2372_v6  ;;  %v2386_v16 = vshll.u32 %v6322_v10, 16  ;;  %v6334_v52 = vld [vmem:[%s7157_s1 + $0x88] sm:$0xff]   ;;  %v6338_v58 = vld [vmem:[%s6603_s14 + $0x20] sm:$0xff]   ;;  %v6340_v62 = vld [vmem:[%s6603_s14 + $0x30] sm:$0xff]  }
  0x1d   : > { %5795 = vmatprep.subr.bf16.mxu0 %v6290_v15  ;;  %v6339_v2 = vld [vmem:[%s7157_s1 + $0x90] sm:$0xff]   ;;  %v2675_v6 = vrot.slane %v6340_v62, 1  ;;  %v6342_v10 = vld [vmem:[%s7157_s1 + $0x98] sm:$0xff]  }
  0x1e   : > { %v2388_v21 = vrot.slane %v2386_v16, 1  ;;  %v6346_v16 = vld [vmem:[%s6603_s14 + $0x30] sm:$0xff]   ;;  %v6362_v62 = vld [vmem:[%s6603_s14 + $0x18] sm:$0xff]  }
  0x1f   : > { %5572 = vmatpush3.bf16.msra.mxu1 %v6289_v13  ;;  %v2380_v13 = vrot.slane %v2378_v8, 1  ;;  %v527_v8 = vshrl.u32 %v6338_v58, 16 }
  0x20   : > { %5796 = vmatpush3.bf16.msra.mxu0 %v6290_v15  ;;  %5573 = vmatprep.subr.bf16.mxu1 %v6291_v22  ;;  %v2382_v15 = vshrl.u32 %v6319_v1, 16 }
  0x21   : > { %5797 = vmatprep.subr.bf16.mxu0 %v6292_v27  ;;  %v2381_v20 = vsel %vm490_vm0, %v2376_v12, %v2380_v13 }
  0x22   : > { %v2384_v24 = vor.u32 %v2382_v15, %v2380_v13  ;;  %v6343_v13 = vld [vmem:[%s7157_s1 + $0x258] sm:$0xff]  }
  0x23   : > { %5574 = vmatpush3.bf16.msra.mxu1 %v6291_v22  ;;  %v6327_v22 = vld [vmem:[%s6603_s14 + $0x8] sm:$0xff]  }
  0x24   : > { %5798 = vmatpush3.bf16.msra.mxu0 %v6292_v27  ;;  %5591 = vmatprep.subr.bf16.mxu1 %v6297_v32  ;;  %v6323_v27 = vld [vmem:[%s7157_s1 + $0x230] sm:$0xff]   ;;  %v499_v28 = vshll.u32 %v6327_v22, 16  ;;  %v503_v34 = vshrl.u32 %v6327_v22, 16  ;;  %v539_v22 = vshll.u32 %v6346_v16, 16 }
  0x25   : > { %5815 = vmatprep.subr.bf16.mxu0 %v6299_v35 }
  0x26   : > { %5576 = vmatmul.mubr.bf16.vlgmr.msra.gmra.mrb[0].mxu1 %v6296_v31  ;;  %v496_v31 = vrot.slane %v494_v26, 1  ;;  %v501_v33 = vrot.slane %v499_v28, 1 }
  0x27   : > { %5800 = vmatmul.mubr.bf16.vlgmr.msra.gmra.mrb[0].mxu0 %v2341_v42  ;;  %5592 = vmatpush3.bf16.msra.mxu1 %v6297_v32  ;;  %v6329_v32 = vld [vmem:[%s6603_s14 + $0x18] sm:$0xff]   ;;  %v507_v42 = vshll.u32 %v6330_v36, 16 }
  0x28   : > { %5816 = vmatpush3.bf16.msra.mxu0 %v6299_v35  ;;  %5593 = vmatprep.subr.bf16.mxu1 %v6300_v37  ;;  %v2668_v35 = vrot.slane %v6328_v29, 1  ;;  %v497_v38 = vor.u32 %v496_v31, %v492_v25  ;;  %v6349_v29 = vld [vmem:[%s7157_s1 + $0x260] sm:$0xff]   ;;  %v6352_v31 = vld [vmem:[%s6603_s14 + $0x38] sm:$0xff]  }
  0x29   : > { %5817 = vmatprep.subr.bf16.mxu0 %v6301_v39  ;;  %5579 = vmatprep.mubr.bf16.mxu1 %v6302_v45  ;;  %v505_v45 = vor.u32 %v503_v34, %v501_v33  ;;  %v509_v47 = vrot.slane %v507_v42, 1  ;;  %v547_v36 = vshll.u32 %v6352_v31, 16  ;;  %v551_v40 = vshrl.u32 %v6352_v31, 16  ;;  %v6387_v31 = vld [vmem:[%s6603_s14 + $0x40] ss:$0 sps:$4 sm:$0x11]  }
  0x2a   : > { %5803 = vmatprep.mubr.bf16.mxu0 %v2349_v46  ;;  %v502_v43 = vsel %vm490_vm0, %v497_v38, %v501_v33  ;;  %v6353_v33 = vld [vmem:[%s6603_s14 + $0x48] sm:$0xff]  }
  0x2b   : > { %5594 = vmatpush3.bf16.msra.mxu1 %v6300_v37  ;;  %v2389_v37 = vsel %vm490_vm0, %v2384_v24, %v2388_v21  ;;  %v510_v54 = vsel %vm490_vm0, %v505_v45, %v509_v47  ;;  %v513_v56 = vor.u32 %v511_v51, %v509_v47  ;;  %v6347_v24 = vld [vmem:[%s7157_s1 + $0xa0] sm:$0xff]   ;;  %v549_v42 = vrot.slane %v547_v36, 1  ;;  %v6356_v45 = vld [vmem:[%s6603_s14 + $0x50] ss:$0 sps:$4 sm:$0x11]  }
  0x2c   : > { %5818 = vmatpush3.bf16.msra.mxu0 %v6301_v39  ;;  %5595 = vmatprep.subr.bf16.mxu1 %v6305_v50  ;;  %v2669_v39 = vrot.slane %v6329_v32, 1  ;;  %v6350_v32 = vld [vmem:[%s7157_s1 + $0xa8] sm:$0xff]   ;;  %v2683_v51 = vrot.slane %v6356_v45, 1  ;;  %v6388_v36 = vld [vmem:[%s7157_s1 + $0xf0] sm:$0xff]  }
  0x2d   : > { %5819 = vmatprep.subr.bf16.mxu0 %v6307_v53 }
  0x2e   : > { %5580 = vmatmul.mubr.bf16.gmra.mrb[4].mxu1 %v6304_v49  ;;  %v2670_v46 = vsel %vm837_vm1, %v2668_v35, %v2669_v39  ;;  %v6333_v49 = vld [vmem:[%s7157_s1 + $0x240] sm:$0xff]  }
  0x2f   : > { %5804 = vmatmul.mubr.bf16.gmra.mrb[4].mxu0 %v2357_v60  ;;  %5596 = vmatpush3.bf16.msra.mxu1 %v6305_v50  ;;  %v6336_v50 = vld [vmem:[%s6603_s14 + $0x18] sm:$0xff]   ;;  %v2672_v60 = vsel %vm837_vm1, %v2669_v39, %v2671_v48  ;;  %v2681_v39 = vrot.slane %v6353_v33, 1 }
  0x30   : > { %5820 = vmatpush3.bf16.msra.mxu0 %v6307_v53  ;;  %5597 = vmatprep.subr.bf16.mxu1 %v6308_v55  ;;  %v6337_v53 = vld [vmem:[%s6603_s14 + $0x28] sm:$0xff]   ;;  %v519_v59 = vshrl.u32 %v6336_v50, 16 }
  0x31   : > { %5821 = vmatprep.subr.bf16.mxu0 %v6309_v57  ;;  %5583 = vmatprep.mubr.bf16.mxu1 %v6310_v63  ;;  %v2673_v61 = vrot.slane %v6337_v53, 1  ;;  %v6360_v53 = vld [vmem:[%s6603_s14] sm:$0xfe]  }
  0x32   : > { %5807 = vmatprep.mubr.bf16.mxu0 %v2365_v0  ;;  %v523_v0 = vshll.u32 %v6338_v58, 16  ;;  %v838_v58 = vrot.slane %v6360_v53, 1  ;;  %v6398_v53 = vld [vmem:[%s6603_s14 + $0x28] sm:$0xff]  }
  0x33   : > { %5598 = vmatpush3.bf16.msra.mxu1 %v6308_v55  ;;  %v6335_v55 = vld [vmem:[%s7157_s1 + $0x248] sm:$0xff]   ;;  %v2674_v1 = vsel %vm837_vm1, %v2671_v48, %v2673_v61  ;;  %v553_v48 = vor.u32 %v551_v40, %v549_v42 }
  0x34   : > { %5822 = vmatpush3.bf16.msra.mxu0 %v6309_v57  ;;  %5599 = vmatprep.subr.bf16.mxu1 %v6313_v4  ;;  %v515_v57 = vshll.u32 %v6336_v50, 16  ;;  %v525_v5 = vrot.slane %v523_v0, 1  ;;  %v6357_v50 = vld [vmem:[%s7157_s1 + $0x270] sm:$0xff]   ;;  %v6364_v0 = vld [vmem:[%s7157_s1 + $0xc0] sm:$0xff]  }
  0x35   : > { %5823 = vmatprep.subr.bf16.mxu0 %v6315_v7 }
  0x36   : > { %5584 = vmatmul.mubr.bf16.gmra.mrb[8].mxu1 %v6312_v3  ;;  %v517_v63 = vrot.slane %v515_v57, 1  ;;  %v2684_v57 = vsel %vm837_vm1, %v2681_v39, %v2683_v51 }
  0x37   : > { %5808 = vmatmul.mubr.bf16.gmra.mrb[8].mxu0 %v2373_v14  ;;  %5600 = vmatpush3.bf16.msra.mxu1 %v6313_v4  ;;  %v529_v14 = vor.u32 %v527_v8, %v525_v5  ;;  %v6368_v8 = vld [vmem:[%s7157_s1 + $0x288] sm:$0xff]  }
  0x38   : > { %5824 = vmatpush3.bf16.msra.mxu0 %v6315_v7  ;;  %5601 = vmatprep.subr.bf16.mxu1 %v6316_v9  ;;  %v518_v3 = vsel %vm490_vm0, %v513_v56, %v517_v63  ;;  %v521_v4 = vor.u32 %v519_v59, %v517_v63  ;;  %v6341_v7 = vld [vmem:[%s7157_s1 + $0x250] sm:$0xff]  }
  0x39   : > { %5825 = vmatprep.subr.bf16.mxu0 %v6317_v11  ;;  %5587 = vmatprep.mubr.bf16.mxu1 %v6318_v17  ;;  %v6363_v59 = vld [vmem:[%s6603_s14 + $0x10] sm:$0xff]  }
  0x3a   : > { %5811 = vmatprep.mubr.bf16.mxu0 %v2381_v20  ;;  %v526_v12 = vsel %vm490_vm0, %v521_v4, %v525_v5  ;;  %v6348_v20 = vld [vmem:[%s6603_s14 + $0x40] sm:$0xff]   ;;  %v841_v63 = vrot.slane %v6363_v59, 1  ;;  %v6367_v5 = vld [vmem:[%s7157_s1 + $0xc8] sm:$0xff]  }
  0x3b   : > { %5602 = vmatpush3.bf16.msra.mxu1 %v6316_v9  ;;  %v6344_v9 = vld [vmem:[%s6603_s14 + $0x28] sm:$0xff]   ;;  %v2679_v28 = vrot.slane %v6348_v20, 1  ;;  %v6376_v20 = vld [vmem:[%s7157_s1 + $0x298] sm:$0xff]  }
  0x3c   : > { %5826 = vmatpush3.bf16.msra.mxu0 %v6317_v11  ;;  %5603 = vmatprep.subr.bf16.mxu1 %v6321_v18  ;;  %v6345_v11 = vld [vmem:[%s6603_s14 + $0x38] sm:$0xff]   ;;  %v531_v15 = vshll.u32 %v6344_v9, 16  ;;  %v535_v17 = vshrl.u32 %v6344_v9, 16  ;;  %v6401_v59 = vld [vmem:[%s7157_s1 + $0x2c8] sm:$0xff]  }
  0x3d   : > { %5827 = vmatprep.subr.bf16.mxu0 %v6323_v27  ;;  %v2677_v19 = vrot.slane %v6345_v11, 1  ;;  %v2682_v47 = vsel %vm837_vm1, %v2679_v28, %v2681_v39  ;;  %v6391_v39 = vld [vmem:[%s7157_s1 + $0xf8] sm:$0xff]  }
  0x3e   : > { %5588 = vmatmul.mubr.bf16.gmra.mrb[12].mxu1 %v6320_v23  ;;  %v533_v21 = vrot.slane %v531_v15, 1  ;;  %v6377_v15 = vld [vmem:[%s6603_s14 + $0x28] sm:$0xff]  }
  0x3f   : > { %5812 = vmatmul.mubr.bf16.gmra.mrb[12].mxu0 %v2389_v37  ;;  %5604 = vmatpush3.bf16.msra.mxu1 %v6321_v18  ;;  %v2676_v18 = vsel %vm837_vm1, %v2673_v61, %v2675_v6  ;;  %v2678_v23 = vsel %vm837_vm1, %v2675_v6, %v2677_v19  ;;  %v6354_v37 = vld [vmem:[%s6603_s14 + $0x40] ss:$0 sps:$4 sm:$0x11]   ;;  %v2680_v38 = vsel %vm837_vm1, %v2677_v19, %v2679_v28  ;;  %v6379_v19 = vld [vmem:[%s6603_s14 + $0x30] sm:$0xff]  }
  0x40   : > { %5828 = vmatpush3.bf16.msra.mxu0 %v6323_v27  ;;  %5605 = vmatprep.subr.bf16.mxu1 %v6324_v30  ;;  %v534_v25 = vsel %vm490_vm0, %v529_v14, %v533_v21  ;;  %v537_v26 = vor.u32 %v535_v17, %v533_v21  ;;  %v541_v27 = vrot.slane %v539_v22, 1  ;;  %v6374_v14 = vld [vmem:[%s7157_s1 + $0x290] sm:$0xff]   ;;  %v6375_v17 = vld [vmem:[%s7157_s1 + $0xd8] sm:$0xff]  }
  0x41   : > { %5829 = vmatprep.subr.bf16.mxu0 %v6325_v41  ;;  %5607 = vmatprep.mubr.bf16.mxu1 %v502_v43  ;;  %v555_v43 = vshll.u32 %v6354_v37, 16  ;;  %v6378_v22 = vld [vmem:[%s6603_s14 + $0x38] sm:$0xff]   ;;  %v6389_v37 = vld [vmem:[%s6603_s14 + $0x50] sm:$0xff]  }
  0x42   : > { %5831 = vmatprep.mubr.bf16.mxu0 %v2670_v46  ;;  %v542_v34 = vsel %vm490_vm0, %v537_v26, %v541_v27  ;;  %v6382_v26 = vld [vmem:[%s7157_s1 + $0x2a0] sm:$0xff]  }
  0x43   : > { %5606 = vmatpush3.bf16.msra.mxu1 %v6324_v30  ;;  %v543_v30 = vshrl.u32 %v6346_v16, 16 }
  0x44   : > { %5830 = vmatpush3.bf16.msra.mxu0 %v6325_v41  ;;  %5623 = vmatprep.subr.bf16.mxu1 %v6331_v44  ;;  %v6351_v41 = vld [vmem:[%s7157_s1 + $0x268] sm:$0xff]  }
  0x45   : > { %5847 = vmatprep.subr.bf16.mxu0 %v6333_v49  ;;  %v545_v35 = vor.u32 %v543_v30, %v541_v27  ;;  %v6385_v27 = vld [vmem:[%s6603_s14 + $0x38] sm:$0xff]  }
  0x46   : > { %5608 = vmatmul.mubr.bf16.vlgmr.msra.gmra.mrb[0].mxu1 %v510_v54  ;;  %v851_v30 = vrot.slane %v6385_v27, 1  ;;  %v6415_v27 = vld [vmem:[%s7157_s1 + $0x2e0] sm:$0xff]  }
  0x47   : > { %5832 = vmatmul.mubr.bf16.vlgmr.msra.gmra.mrb[0].mxu0 %v2672_v60  ;;  %5624 = vmatpush3.bf16.msra.mxu1 %v6331_v44  ;;  %v6355_v44 = vld [vmem:[%s7157_s1 + $0xb0] sm:$0xff]   ;;  %v550_v46 = vsel %vm490_vm0, %v545_v35, %v549_v42  ;;  %v6359_v60 = vld [vmem:[%s7157_s1 + $0x278] sm:$0xff]   ;;  %v853_v35 = vrot.slane %v6387_v31, 1 }
  0x48   : > { %5848 = vmatpush3.bf16.msra.mxu0 %v6333_v49  ;;  %5625 = vmatprep.subr.bf16.mxu1 %v6334_v52  ;;  %v557_v49 = vrot.slane %v555_v43, 1  ;;  %v6394_v42 = vld [vmem:[%s6603_s14 + $0x18] sm:$0xff]   ;;  %v6395_v43 = vld [vmem:[%s6603_s14 + $0x20] sm:$0xff]  }
  0x49   : > { %5849 = vmatprep.subr.bf16.mxu0 %v6335_v55  ;;  %5611 = vmatprep.mubr.bf16.mxu1 %v518_v3  ;;  %v6369_v3 = vld [vmem:[%s6603_s14 + $0x18] sm:$0xff]   ;;  %v854_v40 = vsel %vm837_vm1, %v851_v30, %v853_v35  ;;  %v3238_v45 = vshrl.u32 %v6394_v42, 16 }
  0x4a   : > { %5835 = vmatprep.mubr.bf16.mxu0 %v2674_v1  ;;  %v558_v54 = vsel %vm490_vm0, %v553_v48, %v557_v49  ;;  %v6365_v1 = vld [vmem:[%s6603_s14 + $0x20] sm:$0xff]   ;;  %v843_v6 = vrot.slane %v6369_v3, 1  ;;  %v3249_v48 = vshrl.u32 %v6395_v43, 16  ;;  %v6418_v35 = vld [vmem:[%s6603_s14 + $0x38] sm:$0xff]  }
  0x4b   : > { %5626 = vmatpush3.bf16.msra.mxu1 %v6334_v52  ;;  %v6361_v52 = vld [vmem:[%s6603_s14 + $0x8] sm:$0xff]   ;;  %v6397_v49 = vld [vmem:[%s7157_s1 + $0x100] sm:$0xff]  }
  0x4c   : > { %5850 = vmatpush3.bf16.msra.mxu0 %v6335_v55  ;;  %5627 = vmatprep.subr.bf16.mxu1 %v6339_v2  ;;  %v6358_v55 = vld [vmem:[%s7157_s1 + $0xb8] sm:$0xff]   ;;  %v839_v56 = vrot.slane %v6361_v52, 1  ;;  %v844_v9 = vsel %vm837_vm1, %v841_v63, %v843_v6  ;;  %v6396_v52 = vld [vmem:[%s6603_s14 + $0x10] sm:$0xff]  }
  0x4d   : > { %5851 = vmatprep.subr.bf16.mxu0 %v6341_v7 }
  0x4e   : > { %5612 = vmatmul.mubr.bf16.gmra.mrb[4].mxu1 %v526_v12  ;;  %v840_v61 = vsel %vm837_vm1, %v838_v58, %v839_v56  ;;  %v842_v4 = vsel %vm837_vm1, %v839_v56, %v841_v63  ;;  %v6372_v12 = vld [vmem:[%s7157_s1 + $0xd0] sm:$0xff]   ;;  %v6400_v58 = vld [vmem:[%s7157_s1 + $0x108] sm:$0xff]   ;;  %v6402_v63 = vld [vmem:[%s6603_s14 + $0x18] sm:$0xff]  }
  0x4f   : > { %5836 = vmatmul.mubr.bf16.gmra.mrb[4].mxu0 %v2676_v18  ;;  %5628 = vmatpush3.bf16.msra.mxu1 %v6339_v2  ;;  %v6366_v2 = vld [vmem:[%s7157_s1 + $0x280] sm:$0xff]   ;;  %v847_v18 = vrot.slane %v6377_v15, 1 }
  0x50   : > { %5852 = vmatpush3.bf16.msra.mxu0 %v6341_v7  ;;  %5629 = vmatprep.subr.bf16.mxu1 %v6342_v10  ;;  %v6371_v7 = vld [vmem:[%s6603_s14 + $0x20] sm:$0xff]  }
  0x51   : > { %5853 = vmatprep.subr.bf16.mxu0 %v6343_v13  ;;  %5615 = vmatprep.mubr.bf16.mxu1 %v534_v25  ;;  %v845_v11 = vrot.slane %v6371_v7, 1  ;;  %v6381_v25 = vld [vmem:[%s6603_s14 + $0x40] sm:$0xff]  }
  0x52   : > { %5839 = vmatprep.mubr.bf16.mxu0 %v2678_v23  ;;  %v849_v23 = vrot.slane %v6379_v19, 1 }
  0x53   : > { %5630 = vmatpush3.bf16.msra.mxu1 %v6342_v10  ;;  %v6370_v10 = vld [vmem:[%s6603_s14 + $0x28] sm:$0xff]   ;;  %v846_v16 = vsel %vm837_vm1, %v843_v6, %v845_v11  ;;  %v848_v21 = vsel %vm837_vm1, %v845_v11, %v847_v18  ;;  %v6406_v6 = vld [vmem:[%s6603_s14 + $0x38] sm:$0xff]  }
  0x54   : > { %5854 = vmatpush3.bf16.msra.mxu0 %v6343_v13  ;;  %5631 = vmatprep.subr.bf16.mxu1 %v6347_v24  ;;  %v6373_v13 = vld [vmem:[%s6603_s14 + $0x30] sm:$0xff]   ;;  %v850_v28 = vsel %vm837_vm1, %v847_v18, %v849_v23  ;;  %v852_v33 = vsel %vm837_vm1, %v849_v23, %v851_v30  ;;  %v6408_v11 = vld [vmem:[%s7157_s1 + $0x118] sm:$0xff]   ;;  %v3273_v15 = vshrl.u32 %v6406_v6, 16  ;;  %v6411_v18 = vld [vmem:[%s6603_s14 + $0x40] sm:$0xff]  }
  0x55   : > { %5855 = vmatprep.subr.bf16.mxu0 %v6349_v29  ;;  %v6412_v23 = vld [vmem:[%s6603_s14 + $0x30] sm:$0xff]  }
  0x56   : > { %5616 = vmatmul.mubr.bf16.gmra.mrb[8].mxu1 %v542_v34  ;;  %v6386_v34 = vld [vmem:[%s6603_s14 + $0x48] sm:$0xff]  }
  0x57   : > { %5840 = vmatmul.mubr.bf16.gmra.mrb[8].mxu0 %v2680_v38  ;;  %5632 = vmatpush3.bf16.msra.mxu1 %v6347_v24  ;;  %v6380_v24 = vld [vmem:[%s7157_s1 + $0xe0] sm:$0xff]   ;;  %v6390_v38 = vld [vmem:[%s7157_s1 + $0x2b0] sm:$0xff]  }
  0x58   : > { %5856 = vmatpush3.bf16.msra.mxu0 %v6349_v29  ;;  %5633 = vmatprep.subr.bf16.mxu1 %v6350_v32  ;;  %v6383_v29 = vld [vmem:[%s7157_s1 + $0xe8] sm:$0xff]  }
  0x59   : > { %5857 = vmatprep.subr.bf16.mxu0 %v6351_v41  ;;  %5619 = vmatprep.mubr.bf16.mxu1 %v550_v46  ;;  %v3240_v46 = vshll.u32 %v6394_v42, 16  ;;  %v6422_v42 = vld [vmem:[%s6603_s14 + $0x58] ss:$0 sps:$4 sm:$0x11]  }
  0x5a   : > { %5843 = vmatprep.mubr.bf16.mxu0 %v2682_v47  ;;  %v3245_v47 = vshll.u32 %v6395_v43, 16 }
  0x5b   : > { %5634 = vmatpush3.bf16.msra.mxu1 %v6350_v32  ;;  %v6384_v32 = vld [vmem:[%s7157_s1 + $0x2a8] sm:$0xff]  }
  0x5c   : > { %5858 = vmatpush3.bf16.msra.mxu0 %v6351_v41  ;;  %5635 = vmatprep.subr.bf16.mxu1 %v6355_v44  ;;  %v6392_v41 = vld [vmem:[%s7157_s1 + $0x2b8] sm:$0xff]   ;;  %v3247_v51 = vrot.slane %v3245_v47, 1 }
  0x5d   : > { %5859 = vmatprep.subr.bf16.mxu0 %v6357_v50  ;;  %v6424_v47 = vld [vmem:[%s7157_s1 + $0x138] sm:$0xff]  }
  0x5e   : > { %5620 = vmatmul.mubr.bf16.gmra.mrb[12].mxu1 %v558_v54  ;;  %v6399_v54 = vld [vmem:[%s7157_s1 + $0x2c0] sm:$0xff]   ;;  %v3251_v56 = vor.u32 %v3249_v48, %v3247_v51 }
  0x5f   : > { %5844 = vmatmul.mubr.bf16.gmra.mrb[12].mxu0 %v2684_v57  ;;  %5636 = vmatpush3.bf16.msra.mxu1 %v6355_v44  ;;  %v6393_v44 = vld [vmem:[%s6603_s14 + $0x8] sm:$0xff]   ;;  %v3253_v57 = vshll.u32 %v6398_v53, 16 }
  0x60   : > { %5860 = vmatpush3.bf16.msra.mxu0 %v6357_v50  ;;  %5637 = vmatprep.subr.bf16.mxu1 %v6358_v55  ;;  %v3242_v50 = vrot.slane %v3240_v46, 1  ;;  %v3301_v46 = vshll.u32 %v6422_v42, 16 }
  0x61   : > { %5861 = vmatprep.subr.bf16.mxu0 %v6359_v60  ;;  %5639 = vmatprep.mubr.bf16.mxu1 %v840_v61 }
  0x62   : > { %5863 = vmatprep.mubr.bf16.mxu0 %v6362_v62  ;;  %v3255_v62 = vrot.slane %v3253_v57, 1 }
  0x63   : > { %5638 = vmatpush3.bf16.msra.mxu1 %v6358_v55  ;;  %v3243_v55 = vor.u32 %v3242_v50, %v3238_v45  ;;  %v6423_v45 = vld [vmem:[%s7157_s1 + $0x2f0] sm:$0xff]   ;;  %v6425_v50 = vld [vmem:[%s7157_s1 + $0x2f8] sm:$0xff]  }
  0x64   : > { %5862 = vmatpush3.bf16.msra.mxu0 %v6359_v60  ;;  %5655 = vmatprep.subr.bf16.mxu1 %v6364_v0  ;;  %v3257_v60 = vshrl.u32 %v6398_v53, 16  ;;  %v6427_v53 = vld [vmem:[%s6603_s14 + $0x10] sm:$0xff]  }
  0x65   : > { %5879 = vmatprep.subr.bf16.mxu0 %v6366_v2  ;;  %v3248_v61 = vsel %vm490_vm0, %v3243_v55, %v3247_v51  ;;  %v3303_v51 = vrot.slane %v3301_v46, 1  ;;  %v1415_v57 = vshll.u32 %v6427_v53, 16 }
  0x66   : > { %5640 = vmatmul.mubr.bf16.vlgmr.msra.gmra.mrb[0].mxu1 %v842_v4  ;;  %v6405_v4 = vld [vmem:[%s7157_s1 + $0x110] sm:$0xff]  }
  0x67   : > { %5864 = vmatmul.mubr.bf16.vlgmr.msra.gmra.mrb[0].mxu0 %v6365_v1  ;;  %5656 = vmatpush3.bf16.msra.mxu1 %v6364_v0  ;;  %v6403_v0 = vld [vmem:[%s6603_s14 + $0x30] sm:$0xff]   ;;  %v3256_v1 = vsel %vm490_vm0, %v3251_v56, %v3255_v62 }
  0x68   : > { %5880 = vmatpush3.bf16.msra.mxu0 %v6366_v2  ;;  %5657 = vmatprep.subr.bf16.mxu1 %v6367_v5  ;;  %v3259_v2 = vor.u32 %v3257_v60, %v3255_v62  ;;  %v3261_v3 = vshll.u32 %v6403_v0, 16  ;;  %v3265_v7 = vshrl.u32 %v6403_v0, 16  ;;  %v1417_v62 = vrot.slane %v1415_v57, 1  ;;  %v6430_v0 = vld [vmem:[%s6603_s14 + $0x18] sm:$0xff]  }
  0x69   : > { %5881 = vmatprep.subr.bf16.mxu0 %v6368_v8  ;;  %5643 = vmatprep.mubr.bf16.mxu1 %v844_v9  ;;  %v6407_v9 = vld [vmem:[%s7157_s1 + $0x2d0] sm:$0xff]  }
  0x6a   : > { %5867 = vmatprep.mubr.bf16.mxu0 %v6370_v10  ;;  %v3269_v10 = vshll.u32 %v6406_v6, 16  ;;  %v1423_v6 = vshll.u32 %v6430_v0, 16 }
  0x6b   : > { %5658 = vmatpush3.bf16.msra.mxu1 %v6367_v5  ;;  %v6404_v5 = vld [vmem:[%s6603_s14 + $0x20] sm:$0xff]  }
  0x6c   : > { %5882 = vmatpush3.bf16.msra.mxu0 %v6368_v8  ;;  %5659 = vmatprep.subr.bf16.mxu1 %v6372_v12  ;;  %v3263_v8 = vrot.slane %v3261_v3, 1 }
  0x6d   : > { %5883 = vmatprep.subr.bf16.mxu0 %v6374_v14 }
  0x6e   : > { %5644 = vmatmul.mubr.bf16.gmra.mrb[4].mxu1 %v846_v16  ;;  %v3271_v16 = vrot.slane %v3269_v10, 1 }
  0x6f   : > { %5868 = vmatmul.mubr.bf16.gmra.mrb[4].mxu0 %v6373_v13  ;;  %5660 = vmatpush3.bf16.msra.mxu1 %v6372_v12  ;;  %v3264_v12 = vsel %vm490_vm0, %v3259_v2, %v3263_v8  ;;  %v3267_v13 = vor.u32 %v3265_v7, %v3263_v8  ;;  %v6433_v7 = vld [vmem:[%s7157_s1 + $0x300] sm:$0xff]  }
  0x70   : > { %5884 = vmatpush3.bf16.msra.mxu0 %v6374_v14  ;;  %5661 = vmatprep.subr.bf16.mxu1 %v6375_v17  ;;  %v6409_v14 = vld [vmem:[%s7157_s1 + $0x2d8] sm:$0xff]  }
  0x71   : > { %5885 = vmatprep.subr.bf16.mxu0 %v6376_v20  ;;  %5647 = vmatprep.mubr.bf16.mxu1 %v848_v21  ;;  %v3272_v19 = vsel %vm490_vm0, %v3267_v13, %v3271_v16  ;;  %v3277_v21 = vshll.u32 %v6411_v18, 16  ;;  %v6435_v13 = vld [vmem:[%s7157_s1 + $0x308] sm:$0xff]  }
  0x72   : > { %5871 = vmatprep.mubr.bf16.mxu0 %v6378_v22  ;;  %v6413_v22 = vld [vmem:[%s7157_s1 + $0x120] sm:$0xff]  }
  0x73   : > { %5662 = vmatpush3.bf16.msra.mxu1 %v6375_v17  ;;  %v6410_v17 = vld [vmem:[%s6603_s14 + $0x28] sm:$0xff]  }
  0x74   : > { %5886 = vmatpush3.bf16.msra.mxu0 %v6376_v20  ;;  %5663 = vmatprep.subr.bf16.mxu1 %v6380_v24  ;;  %v3275_v20 = vor.u32 %v3273_v15, %v3271_v16  ;;  %v6436_v16 = vld [vmem:[%s6603_s14 + $0x20] sm:$0xff]  }
  0x75   : > { %5887 = vmatprep.subr.bf16.mxu0 %v6382_v26 }
  0x76   : > { %5648 = vmatmul.mubr.bf16.gmra.mrb[8].mxu1 %v850_v28 }
  0x77   : > { %5872 = vmatmul.mubr.bf16.gmra.mrb[8].mxu0 %v6381_v25  ;;  %5664 = vmatpush3.bf16.msra.mxu1 %v6380_v24  ;;  %v6414_v24 = vld [vmem:[%s6603_s14 + $0x48] sm:$0xff]   ;;  %v3281_v25 = vshrl.u32 %v6411_v18, 16  ;;  %v6437_v18 = vld [vmem:[%s6603_s14 + $0x30] sm:$0xff]  }
  0x78   : > { %5888 = vmatpush3.bf16.msra.mxu0 %v6382_v26  ;;  %5665 = vmatprep.subr.bf16.mxu1 %v6383_v29  ;;  %v3279_v26 = vrot.slane %v3277_v21, 1  ;;  %v3285_v28 = vshll.u32 %v6414_v24, 16  ;;  %v6438_v21 = vld [vmem:[%s6603_s14 + $0x28] sm:$0xff]  }
  0x79   : > { %5889 = vmatprep.subr.bf16.mxu0 %v6384_v32  ;;  %5651 = vmatprep.mubr.bf16.mxu1 %v852_v33  ;;  %v3289_v33 = vshrl.u32 %v6414_v24, 16  ;;  %v3588_v24 = vrot.slane %v6437_v18, 1 }
  0x7a   : > { %5875 = vmatprep.mubr.bf16.mxu0 %v6386_v34  ;;  %v3280_v30 = vsel %vm490_vm0, %v3275_v20, %v3279_v26  ;;  %v3283_v31 = vor.u32 %v3281_v25, %v3279_v26  ;;  %v3287_v34 = vrot.slane %v3285_v28, 1  ;;  %v1431_v20 = vshll.u32 %v6436_v16, 16  ;;  %v6440_v25 = vld [vmem:[%s6603_s14 + $0x38] sm:$0xff]  }
  0x7b   : > { %5666 = vmatpush3.bf16.msra.mxu1 %v6383_v29  ;;  %v6416_v29 = vld [vmem:[%s7157_s1 + $0x128] sm:$0xff]  }
  0x7c   : > { %5890 = vmatpush3.bf16.msra.mxu0 %v6384_v32  ;;  %5667 = vmatprep.subr.bf16.mxu1 %v6388_v36  ;;  %v6417_v32 = vld [vmem:[%s7157_s1 + $0x2e8] sm:$0xff]   ;;  %v1433_v26 = vrot.slane %v1431_v20, 1 }
  0x7d   : > { %5891 = vmatprep.subr.bf16.mxu0 %v6390_v38 }
  0x7e   : > { %5652 = vmatmul.mubr.bf16.gmra.mrb[12].mxu1 %v854_v40  ;;  %v6421_v40 = vld [vmem:[%s7157_s1 + $0x130] sm:$0xff]  }
  0x7f   : > { %5876 = vmatmul.mubr.bf16.gmra.mrb[12].mxu0 %v6389_v37  ;;  %5668 = vmatpush3.bf16.msra.mxu1 %v6388_v36  ;;  %v6419_v36 = vld [vmem:[%s6603_s14 + $0x50] sm:$0xff]   ;;  %v3288_v37 = vsel %vm490_vm0, %v3283_v31, %v3287_v34 }
  0x80   : > { %5892 = vmatpush3.bf16.msra.mxu0 %v6390_v38  ;;  %5669 = vmatprep.subr.bf16.mxu1 %v6391_v39  ;;  %v3291_v38 = vor.u32 %v3289_v33, %v3287_v34  ;;  %v3297_v43 = vshrl.u32 %v6419_v36, 16  ;;  %v6442_v34 = vld [vmem:[%s7157_s1 + $0x158] sm:$0xff]  }
  0x81   : > { %5893 = vmatprep.subr.bf16.mxu0 %v6392_v41  ;;  %5671 = vmatprep.mubr.bf16.mxu1 %v6393_v44 }
  0x82   : > { %5895 = vmatprep.mubr.bf16.mxu0 %v3248_v61  ;;  %v6429_v61 = vld [vmem:[%s6603_s14 + $0x20] sm:$0xff]  }
  0x83   : > { %5670 = vmatpush3.bf16.msra.mxu1 %v6391_v39  ;;  %v3293_v39 = vshll.u32 %v6419_v36, 16  ;;  %v3584_v3 = vrot.slane %v6429_v61, 1  ;;  %v6443_v36 = vld [vmem:[%s7157_s1 + $0x318] sm:$0xff]   ;;  %v6452_v61 = vld [vmem:[%s6603_s14 + $0x40] sm:$0xff]  }
  0x84   : > { %5894 = vmatpush3.bf16.msra.mxu0 %v6392_v41  ;;  %5687 = vmatprep.subr.bf16.mxu1 %v6397_v49  ;;  %v6420_v41 = vld [vmem:[%s6603_s14 + $0x40] sm:$0xff]  }
  0x85   : > { %5911 = vmatprep.subr.bf16.mxu0 %v6399_v54  ;;  %v3295_v44 = vrot.slane %v3293_v39, 1  ;;  %v6444_v39 = vld [vmem:[%s6603_s14 + $0x30] sm:$0xff]  }
  0x86   : > { %5672 = vmatmul.mubr.bf16.vlgmr.msra.gmra.mrb[0].mxu1 %v6396_v52  ;;  %v6426_v52 = vld [vmem:[%s6603_s14 + $0x8] sm:$0xff]   ;;  %v1447_v42 = vshll.u32 %v6444_v39, 16 }
  0x87   : > { %5896 = vmatmul.mubr.bf16.vlgmr.msra.gmra.mrb[0].mxu0 %v3256_v1  ;;  %5688 = vmatpush3.bf16.msra.mxu1 %v6397_v49  ;;  %v3296_v48 = vsel %vm490_vm0, %v3291_v38, %v3295_v44  ;;  %v3299_v49 = vor.u32 %v3297_v43, %v3295_v44  ;;  %v1408_v55 = vshrl.u32 %v6426_v52, 16  ;;  %v1410_v56 = vshll.u32 %v6426_v52, 16  ;;  %v6431_v1 = vld [vmem:[%s7157_s1 + $0x140] sm:$0xff]   ;;  %v6446_v43 = vld [vmem:[%s6603_s14 + $0x38] sm:$0xff]  }
  0x88   : > { %5912 = vmatpush3.bf16.msra.mxu0 %v6399_v54  ;;  %5689 = vmatprep.subr.bf16.mxu1 %v6400_v58  ;;  %v1451_v44 = vshrl.u32 %v6444_v39, 16  ;;  %v6449_v52 = vld [vmem:[%s7157_s1 + $0x320] sm:$0xff]   ;;  %v6473_v39 = vld [vmem:[%s6603_s14 + $0x38] sm:$0xff]  }
  0x89   : > { %5913 = vmatprep.subr.bf16.mxu0 %v6401_v59  ;;  %5675 = vmatprep.mubr.bf16.mxu1 %v6402_v63  ;;  %v3304_v54 = vsel %vm490_vm0, %v3299_v49, %v3303_v51  ;;  %v1412_v60 = vrot.slane %v1410_v56, 1  ;;  %v1455_v49 = vshll.u32 %v6446_v43, 16  ;;  %v6450_v56 = vld [vmem:[%s7157_s1 + $0x168] sm:$0xff]  }
  0x8a   : > { %5899 = vmatprep.mubr.bf16.mxu0 %v3264_v12  ;;  %v1425_v12 = vrot.slane %v1423_v6, 1  ;;  %v6455_v6 = vld [vmem:[%s7157_s1 + $0x170] sm:$0xff]  }
  0x8b   : > { %5690 = vmatpush3.bf16.msra.mxu1 %v6400_v58  ;;  %v1419_v58 = vshrl.u32 %v6427_v53, 16  ;;  %v1413_v2 = vor.u32 %v1412_v60, %v1408_v55  ;;  %v1457_v55 = vrot.slane %v1455_v49, 1 }
  0x8c   : > { %5914 = vmatpush3.bf16.msra.mxu0 %v6401_v59  ;;  %5691 = vmatprep.subr.bf16.mxu1 %v6405_v4  ;;  %v6428_v59 = vld [vmem:[%s6603_s14 + $0x18] sm:$0xfe]  }
  0x8d   : > { %5915 = vmatprep.subr.bf16.mxu0 %v6407_v9  ;;  %v3583_v63 = vrot.slane %v6428_v59, 1  ;;  %v1418_v8 = vsel %vm490_vm0, %v1413_v2, %v1417_v62  ;;  %v1459_v59 = vshrl.u32 %v6446_v43, 16  ;;  %v6476_v43 = vld [vmem:[%s7157_s1 + $0x358] sm:$0xff]  }
  0x8e   : > { %5676 = vmatmul.mubr.bf16.gmra.mrb[4].mxu1 %v6404_v5  ;;  %v1421_v5 = vor.u32 %v1419_v58, %v1417_v62  ;;  %v6451_v58 = vld [vmem:[%s7157_s1 + $0x328] sm:$0xff]   ;;  %v6453_v62 = vld [vmem:[%s6603_s14 + $0x50] sm:$0xff]  }
  0x8f   : > { %5900 = vmatmul.mubr.bf16.gmra.mrb[4].mxu0 %v3272_v19  ;;  %5692 = vmatpush3.bf16.msra.mxu1 %v6405_v4  ;;  %v6432_v4 = vld [vmem:[%s6603_s14 + $0x28] sm:$0xff]   ;;  %v3596_v2 = vrot.slane %v6453_v62, 1 }
  0x90   : > { %5916 = vmatpush3.bf16.msra.mxu0 %v6407_v9  ;;  %5693 = vmatprep.subr.bf16.mxu1 %v6408_v11  ;;  %v3585_v9 = vsel %vm837_vm1, %v3583_v63, %v3584_v3  ;;  %v3586_v10 = vrot.slane %v6432_v4, 1  ;;  %v1426_v15 = vsel %vm490_vm0, %v1421_v5, %v1425_v12  ;;  %v1461_v63 = vor.u32 %v1459_v59, %v1457_v55  ;;  %v6487_v59 = vld [vmem:[%s6603_s14 + $0x48] ss:$0 sps:$4 sm:$0x11]  }
  0x91   : > { %5917 = vmatprep.subr.bf16.mxu0 %v6409_v14  ;;  %5679 = vmatprep.mubr.bf16.mxu1 %v6410_v17  ;;  %v1427_v17 = vshrl.u32 %v6430_v0, 16  ;;  %v1463_v0 = vshll.u32 %v6452_v61, 16  ;;  %v1768_v62 = vrot.slane %v6487_v59, 1  ;;  %v6515_v59 = vld [vmem:[%s6603_s14 + $0x60] ss:$0 sps:$4 sm:$0x11]  }
  0x92   : > { %5903 = vmatprep.mubr.bf16.mxu0 %v3280_v30  ;;  %v3589_v28 = vsel %vm837_vm1, %v3586_v10, %v3588_v24  ;;  %v6441_v30 = vld [vmem:[%s7157_s1 + $0x310] sm:$0xff]  }
  0x93   : > { %5694 = vmatpush3.bf16.msra.mxu1 %v6408_v11  ;;  %v6434_v11 = vld [vmem:[%s7157_s1 + $0x148] sm:$0xff]   ;;  %v1429_v19 = vor.u32 %v1427_v17, %v1425_v12  ;;  %v1465_v4 = vrot.slane %v1463_v0, 1  ;;  %v6490_v0 = vld [vmem:[%s7157_s1 + $0x370] sm:$0xff]  }
  0x94   : > { %5918 = vmatpush3.bf16.msra.mxu0 %v6409_v14  ;;  %5695 = vmatprep.subr.bf16.mxu1 %v6413_v22  ;;  %v3587_v14 = vsel %vm837_vm1, %v3584_v3, %v3586_v10  ;;  %v1467_v3 = vshrl.u32 %v6452_v61, 16  ;;  %v6458_v10 = vld [vmem:[%s7157_s1 + $0x178] sm:$0xff]  }
  0x95   : > { %5919 = vmatprep.subr.bf16.mxu0 %v6415_v27  ;;  %v1434_v31 = vsel %vm490_vm0, %v1429_v19, %v1433_v26  ;;  %v6460_v19 = vld [vmem:[%s6603_s14 + $0x8] sm:$0xfe]  }
  0x96   : > { %5680 = vmatmul.mubr.bf16.gmra.mrb[8].mxu1 %v6412_v23  ;;  %v6439_v23 = vld [vmem:[%s7157_s1 + $0x150] sm:$0xff]   ;;  %v1469_v12 = vor.u32 %v1467_v3, %v1465_v4  ;;  %v6492_v3 = vld [vmem:[%s7157_s1 + $0x378] sm:$0xff]  }
  0x97   : > { %5904 = vmatmul.mubr.bf16.gmra.mrb[8].mxu0 %v3288_v37  ;;  %5696 = vmatpush3.bf16.msra.mxu1 %v6413_v22  ;;  %v1435_v22 = vshrl.u32 %v6436_v16, 16  ;;  %v1443_v37 = vshrl.u32 %v6438_v21, 16  ;;  %v6461_v16 = vld [vmem:[%s6603_s14 + $0x10] sm:$0xff]  }
  0x98   : > { %5920 = vmatpush3.bf16.msra.mxu0 %v6415_v27  ;;  %5697 = vmatprep.subr.bf16.mxu1 %v6416_v29  ;;  %v1439_v27 = vshll.u32 %v6438_v21, 16  ;;  %v1754_v20 = vrot.slane %v6461_v16, 1  ;;  %v6462_v21 = vld [vmem:[%s6603_s14 + $0x20] sm:$0xff]   ;;  %v6499_v16 = vld [vmem:[%s7157_s1 + $0x388] sm:$0xff]  }
  0x99   : > { %5921 = vmatprep.subr.bf16.mxu0 %v6417_v32  ;;  %5683 = vmatprep.mubr.bf16.mxu1 %v6418_v35 }
  0x9a   : > { %5907 = vmatprep.mubr.bf16.mxu0 %v3296_v48  ;;  %v1441_v33 = vrot.slane %v1439_v27, 1  ;;  %v1449_v48 = vrot.slane %v1447_v42, 1  ;;  %v6465_v27 = vld [vmem:[%s6603_s14 + $0x28] sm:$0xff]   ;;  %v6475_v42 = vld [vmem:[%s7157_s1 + $0x198] sm:$0xff]  }
  0x9b   : > { %5698 = vmatpush3.bf16.msra.mxu1 %v6416_v29  ;;  %v3590_v29 = vrot.slane %v6440_v25, 1 }
  0x9c   : > { %5922 = vmatpush3.bf16.msra.mxu0 %v6417_v32  ;;  %5699 = vmatprep.subr.bf16.mxu1 %v6421_v40  ;;  %v1437_v32 = vor.u32 %v1435_v22, %v1433_v26  ;;  %v1753_v22 = vrot.slane %v6460_v19, 1 }
  0x9d   : > { %5923 = vmatprep.subr.bf16.mxu0 %v6423_v45  ;;  %v3591_v35 = vsel %vm837_vm1, %v3588_v24, %v3590_v29  ;;  %v6464_v24 = vld [vmem:[%s7157_s1 + $0x180] sm:$0xff]  }
  0x9e   : > { %5684 = vmatmul.mubr.bf16.gmra.mrb[12].mxu1 %v6420_v41  ;;  %v1442_v38 = vsel %vm490_vm0, %v1437_v32, %v1441_v33  ;;  %v1445_v41 = vor.u32 %v1443_v37, %v1441_v33  ;;  %v1755_v25 = vsel %vm837_vm1, %v1753_v22, %v1754_v20  ;;  %v6469_v32 = vld [vmem:[%s6603_s14 + $0x20] sm:$0xff]   ;;  %v6470_v33 = vld [vmem:[%s6603_s14 + $0x30] sm:$0xff]   ;;  %v6501_v22 = vld [vmem:[%s6603_s14 + $0x38] sm:$0xff]  }
  0x9f   : > { %5908 = vmatmul.mubr.bf16.gmra.mrb[12].mxu0 %v3304_v54  ;;  %5700 = vmatpush3.bf16.msra.mxu1 %v6421_v40  ;;  %v6445_v40 = vld [vmem:[%s6603_s14 + $0x40] sm:$0xff]   ;;  %v1453_v54 = vor.u32 %v1451_v44, %v1449_v48  ;;  %v6477_v44 = vld [vmem:[%s6603_s14 + $0x30] sm:$0xff]  }
  0xa0   : > { %5924 = vmatpush3.bf16.msra.mxu0 %v6423_v45  ;;  %5701 = vmatprep.subr.bf16.mxu1 %v6424_v47  ;;  %v6447_v45 = vld [vmem:[%s7157_s1 + $0x160] sm:$0xff]   ;;  %v3592_v46 = vrot.slane %v6445_v40, 1  ;;  %v1450_v53 = vsel %vm490_vm0, %v1445_v41, %v1449_v48  ;;  %v6474_v40 = vld [vmem:[%s7157_s1 + $0x350] sm:$0xff]  }
  0xa1   : > { %5925 = vmatprep.subr.bf16.mxu0 %v6425_v50  ;;  %5703 = vmatprep.mubr.bf16.mxu1 %v1418_v8  ;;  %v1458_v60 = vsel %vm490_vm0, %v1453_v54, %v1457_v55  ;;  %v6480_v48 = vld [vmem:[%s7157_s1 + $0x1a0] sm:$0xff]   ;;  %v6483_v54 = vld [vmem:[%s7157_s1 + $0x1a8] sm:$0xff]  }
  0xa2   : > { %5927 = vmatprep.mubr.bf16.mxu0 %v3585_v9  ;;  %v6456_v9 = vld [vmem:[%s6603_s14 + $0x58] ss:$0 sps:$4 sm:$0x11]   ;;  %v6484_v55 = vld [vmem:[%s7157_s1 + $0x368] sm:$0xff]  }
  0xa3   : > { %5702 = vmatpush3.bf16.msra.mxu1 %v6424_v47  ;;  %v6448_v47 = vld [vmem:[%s6603_s14 + $0x48] sm:$0xff]  }
  0xa4   : > { %5926 = vmatpush3.bf16.msra.mxu0 %v6425_v50  ;;  %5719 = vmatprep.subr.bf16.mxu1 %v6431_v1  ;;  %v3593_v50 = vsel %vm837_vm1, %v3590_v29, %v3592_v46  ;;  %v3594_v51 = vrot.slane %v6448_v47, 1  ;;  %v6479_v47 = vld [vmem:[%s6603_s14 + $0x38] sm:$0xff]  }
  0xa5   : > { %5943 = vmatprep.subr.bf16.mxu0 %v6433_v7 }
  0xa6   : > { %5704 = vmatmul.mubr.bf16.vlgmr.msra.gmra.mrb[0].mxu1 %v1426_v15  ;;  %v3595_v57 = vsel %vm837_vm1, %v3592_v46, %v3594_v51  ;;  %v3597_v8 = vsel %vm837_vm1, %v3594_v51, %v3596_v2  ;;  %v3598_v15 = vrot.slane %v6456_v9, 1  ;;  %v1762_v46 = vrot.slane %v6477_v44, 1  ;;  %v6481_v51 = vld [vmem:[%s6603_s14 + $0x48] sm:$0xff]   ;;  %v6509_v44 = vld [vmem:[%s6603_s14 + $0x50] sm:$0xff]  }
  0xa7   : > { %5928 = vmatmul.mubr.bf16.vlgmr.msra.gmra.mrb[0].mxu0 %v3587_v14  ;;  %5720 = vmatpush3.bf16.msra.mxu1 %v6431_v1  ;;  %v6454_v1 = vld [vmem:[%s6603_s14 + $0x48] ss:$0 sps:$4 sm:$0x11]   ;;  %v6459_v14 = vld [vmem:[%s7157_s1 + $0x338] sm:$0xff]  }
  0xa8   : > { %5944 = vmatpush3.bf16.msra.mxu0 %v6433_v7  ;;  %5721 = vmatprep.subr.bf16.mxu1 %v6434_v11  ;;  %v1471_v5 = vshll.u32 %v6454_v1, 16  ;;  %v6457_v7 = vld [vmem:[%s7157_s1 + $0x330] sm:$0xff]   ;;  %v3599_v18 = vsel %vm837_vm1, %v3596_v2, %v3598_v15  ;;  %v6491_v2 = vld [vmem:[%s7157_s1 + $0x1b8] sm:$0xff]   ;;  %v6498_v15 = vld [vmem:[%s7157_s1 + $0x380] sm:$0xff]  }
  0xa9   : > { %5945 = vmatprep.subr.bf16.mxu0 %v6435_v13  ;;  %5931 = vmatprep.mubr.bf16.mxu0 %v3589_v28  ;;  %v6466_v28 = vld [vmem:[%s7157_s1 + $0x340] sm:$0xff]  }
  0xaa   : > { %5707 = vmatprep.mubr.bf16.mxu1 %v1434_v31  ;;  %v6468_v31 = vld [vmem:[%s7157_s1 + $0x348] sm:$0xff]  }
  0xab   : > { %5722 = vmatpush3.bf16.msra.mxu1 %v6434_v11  ;;  %v1466_v11 = vsel %vm490_vm0, %v1461_v63, %v1465_v4  ;;  %v6489_v63 = vld [vmem:[%s6603_s14 + $0x58] sm:$0xff]   ;;  %v6493_v4 = vld [vmem:[%s6603_s14 + $0x10] sm:$0xff]  }
  0xac   : > { %5946 = vmatpush3.bf16.msra.mxu0 %v6435_v13  ;;  %5723 = vmatprep.subr.bf16.mxu1 %v6439_v23  ;;  %v1473_v13 = vrot.slane %v1471_v5, 1  ;;  %v6494_v5 = vld [vmem:[%s6603_s14 + $0x20] sm:$0xff]  }
  0xad   : > { %5947 = vmatprep.subr.bf16.mxu0 %v6441_v30  ;;  %v4155_v9 = vshll.u32 %v6494_v5, 16 }
  0xae   : > { %5708 = vmatmul.mubr.bf16.gmra.mrb[4].mxu1 %v1442_v38  ;;  %v1474_v17 = vsel %vm490_vm0, %v1469_v12, %v1473_v13  ;;  %v6497_v12 = vld [vmem:[%s6603_s14 + $0x30] sm:$0xff]  }
  0xaf   : > { %5932 = vmatmul.mubr.bf16.gmra.mrb[4].mxu0 %v3591_v35  ;;  %5724 = vmatpush3.bf16.msra.mxu1 %v6439_v23  ;;  %v6463_v23 = vld [vmem:[%s6603_s14 + $0x18] sm:$0xff]   ;;  %v6471_v35 = vld [vmem:[%s6603_s14 + $0x28] sm:$0xff]   ;;  %v4157_v13 = vrot.slane %v4155_v9, 1 }
  0xb0   : > { %5948 = vmatpush3.bf16.msra.mxu0 %v6441_v30  ;;  %5725 = vmatprep.subr.bf16.mxu1 %v6442_v34  ;;  %v1756_v26 = vrot.slane %v6463_v23, 1  ;;  %v6467_v30 = vld [vmem:[%s7157_s1 + $0x188] sm:$0xff]   ;;  %v1760_v38 = vrot.slane %v6471_v35, 1  ;;  %v4172_v23 = vshrl.u32 %v6497_v12, 16 }
  0xb1   : > { %5949 = vmatprep.subr.bf16.mxu0 %v6443_v36  ;;  %5935 = vmatprep.mubr.bf16.mxu0 %v3593_v50  ;;  %v1764_v50 = vrot.slane %v6479_v47, 1  ;;  %v6508_v47 = vld [vmem:[%s6603_s14 + $0x38] sm:$0xff]   ;;  %v6521_v9 = vld [vmem:[%s6603_s14 + $0x48] sm:$0xff]  }
  0xb2   : > { %5711 = vmatprep.mubr.bf16.mxu1 %v1450_v53  ;;  %v1757_v29 = vsel %vm837_vm1, %v1754_v20, %v1756_v26  ;;  %v1763_v49 = vsel %vm837_vm1, %v1760_v38, %v1762_v46 }
  0xb3   : > { %5726 = vmatpush3.bf16.msra.mxu1 %v6442_v34  ;;  %v1758_v34 = vrot.slane %v6469_v32, 1  ;;  %v1765_v53 = vsel %vm837_vm1, %v1762_v46, %v1764_v50 }
  0xb4   : > { %5950 = vmatpush3.bf16.msra.mxu0 %v6443_v36  ;;  %5727 = vmatprep.subr.bf16.mxu1 %v6447_v45  ;;  %v6472_v36 = vld [vmem:[%s7157_s1 + $0x190] sm:$0xff]  }
  0xb5   : > { %5951 = vmatprep.subr.bf16.mxu0 %v6449_v52  ;;  %v1759_v37 = vsel %vm837_vm1, %v1756_v26, %v1758_v34  ;;  %v1761_v41 = vsel %vm837_vm1, %v1758_v34, %v1760_v38  ;;  %v6506_v34 = vld [vmem:[%s6603_s14 + $0x30] sm:$0xff]   ;;  %v6505_v38 = vld [vmem:[%s7157_s1 + $0x398] sm:$0xff]  }
  0xb6   : > { %5712 = vmatmul.mubr.bf16.gmra.mrb[8].mxu1 %v1458_v60  ;;  %v6488_v60 = vld [vmem:[%s7157_s1 + $0x1b0] sm:$0xff]  }
  0xb7   : > { %5936 = vmatmul.mubr.bf16.gmra.mrb[8].mxu0 %v3595_v57  ;;  %5728 = vmatpush3.bf16.msra.mxu1 %v6447_v45  ;;  %v6478_v45 = vld [vmem:[%s6603_s14 + $0x40] sm:$0xff]   ;;  %v6486_v57 = vld [vmem:[%s6603_s14 + $0x50] sm:$0xff]  }
  0xb8   : > { %5952 = vmatpush3.bf16.msra.mxu0 %v6449_v52  ;;  %5729 = vmatprep.subr.bf16.mxu1 %v6450_v56  ;;  %v6482_v52 = vld [vmem:[%s7157_s1 + $0x360] sm:$0xff]  }
  0xb9   : > { %5953 = vmatprep.subr.bf16.mxu0 %v6451_v58  ;;  %5939 = vmatprep.mubr.bf16.mxu0 %v3597_v8  ;;  %v4153_v8 = vshrl.u32 %v6494_v5, 16 }
  0xba   : > { %5715 = vmatprep.mubr.bf16.mxu1 %v1466_v11 }
  0xbb   : > { %5730 = vmatpush3.bf16.msra.mxu1 %v6450_v56  ;;  %v6485_v56 = vld [vmem:[%s6603_s14 + $0x40] sm:$0xff]   ;;  %v4158_v19 = vor.u32 %v4157_v13, %v4153_v8  ;;  %v4507_v13 = vrot.slane %v6521_v9, 1 }
  0xbc   : > { %5954 = vmatpush3.bf16.msra.mxu0 %v6451_v58  ;;  %5731 = vmatprep.subr.bf16.mxu1 %v6455_v6  ;;  %v1766_v58 = vrot.slane %v6485_v56, 1  ;;  %v6511_v56 = vld [vmem:[%s7157_s1 + $0x3a8] sm:$0xff]   ;;  %v6520_v8 = vld [vmem:[%s6603_s14 + $0x40] sm:$0xff]  }
  0xbd   : > { %5955 = vmatprep.subr.bf16.mxu0 %v6457_v7 }
  0xbe   : > { %5716 = vmatmul.mubr.bf16.gmra.mrb[12].mxu1 %v1474_v17  ;;  %v1767_v61 = vsel %vm837_vm1, %v1764_v50, %v1766_v58  ;;  %v1769_v1 = vsel %vm837_vm1, %v1766_v58, %v1768_v62  ;;  %v4168_v17 = vshll.u32 %v6497_v12, 16  ;;  %v4505_v12 = vrot.slane %v6520_v8, 1 }
  0xbf   : > { %5940 = vmatmul.mubr.bf16.gmra.mrb[12].mxu0 %v3599_v18  ;;  %5732 = vmatpush3.bf16.msra.mxu1 %v6455_v6  ;;  %v6495_v6 = vld [vmem:[%s6603_s14 + $0x28] sm:$0xff]   ;;  %v6500_v18 = vld [vmem:[%s6603_s14 + $0x20] sm:$0xff]  }
  0xc0   : > { %5956 = vmatpush3.bf16.msra.mxu0 %v6457_v7  ;;  %5733 = vmatprep.subr.bf16.mxu1 %v6458_v10  ;;  %v6496_v7 = vld [vmem:[%s6603_s14 + $0x18] sm:$0xff]   ;;  %v4164_v11 = vshrl.u32 %v6495_v6, 16 }
  0xc1   : > { %5957 = vmatprep.subr.bf16.mxu0 %v6459_v14  ;;  %5959 = vmatprep.mubr.bf16.mxu0 %v6462_v21  ;;  %v4170_v21 = vrot.slane %v4168_v17, 1  ;;  %v6522_v17 = vld [vmem:[%s6603_s14 + $0x30] sm:$0xff]  }
  0xc2   : > { %5735 = vmatprep.mubr.bf16.mxu1 %v1755_v25  ;;  %v6502_v25 = vld [vmem:[%s6603_s14 + $0x28] sm:$0xff]  }
  0xc3   : > { %5734 = vmatpush3.bf16.msra.mxu1 %v6458_v10  ;;  %v4160_v10 = vshll.u32 %v6495_v6, 16 }
  0xc4   : > { %5958 = vmatpush3.bf16.msra.mxu0 %v6459_v14  ;;  %5751 = vmatprep.subr.bf16.mxu1 %v6464_v24 }
  0xc5   : > { %5975 = vmatprep.subr.bf16.mxu0 %v6466_v28  ;;  %v4162_v14 = vrot.slane %v4160_v10, 1 }
  0xc6   : > { %5736 = vmatmul.mubr.bf16.vlgmr.msra.gmra.mrb[0].mxu1 %v1757_v29  ;;  %v6503_v29 = vld [vmem:[%s6603_s14 + $0x40] sm:$0xff]  }
  0xc7   : > { %5960 = vmatmul.mubr.bf16.vlgmr.msra.gmra.mrb[0].mxu0 %v6465_v27  ;;  %5752 = vmatpush3.bf16.msra.mxu1 %v6464_v24  ;;  %v4166_v20 = vor.u32 %v4164_v11, %v4162_v14  ;;  %v4163_v24 = vsel %vm490_vm0, %v4158_v19, %v4162_v14  ;;  %v4174_v27 = vor.u32 %v4172_v23, %v4170_v21  ;;  %v6523_v14 = vld [vmem:[%s6603_s14 + $0x50] sm:$0xff]   ;;  %v4501_v23 = vrot.slane %v6522_v17, 1 }
  0xc8   : > { %5976 = vmatpush3.bf16.msra.mxu0 %v6466_v28  ;;  %5753 = vmatprep.subr.bf16.mxu1 %v6467_v30  ;;  %v4176_v28 = vshll.u32 %v6501_v22, 16  ;;  %v4509_v19 = vrot.slane %v6523_v14, 1 }
  0xc9   : > { %5977 = vmatprep.subr.bf16.mxu0 %v6468_v31  ;;  %5963 = vmatprep.mubr.bf16.mxu0 %v6470_v33  ;;  %v4171_v26 = vsel %vm490_vm0, %v4166_v20, %v4170_v21  ;;  %v4184_v33 = vshll.u32 %v6503_v29, 16  ;;  %v6524_v20 = vld [vmem:[%s6603_s14 + $0x38] sm:$0xff]  }
  0xca   : > { %5739 = vmatprep.mubr.bf16.mxu1 %v1759_v37  ;;  %v4178_v32 = vrot.slane %v4176_v28, 1  ;;  %v6525_v21 = vld [vmem:[%s6603_s14 + $0x58] sm:$0xff]  }
  0xcb   : > { %5754 = vmatpush3.bf16.msra.mxu1 %v6467_v30  ;;  %v4180_v30 = vshrl.u32 %v6501_v22, 16  ;;  %v4186_v37 = vrot.slane %v4184_v33, 1  ;;  %v4511_v22 = vrot.slane %v6525_v21, 1 }
  0xcc   : > { %5978 = vmatpush3.bf16.msra.mxu0 %v6468_v31  ;;  %5755 = vmatprep.subr.bf16.mxu1 %v6472_v36  ;;  %v6504_v31 = vld [vmem:[%s7157_s1 + $0x390] sm:$0xff]   ;;  %v4179_v35 = vsel %vm490_vm0, %v4174_v27, %v4178_v32 }
  0xcd   : > { %5979 = vmatprep.subr.bf16.mxu0 %v6474_v40  ;;  %v4512_v27 = vsel %vm837_vm1, %v4509_v19, %v4511_v22 }
  0xce   : > { %5740 = vmatmul.mubr.bf16.gmra.mrb[4].mxu1 %v1761_v41 }
  0xcf   : > { %5964 = vmatmul.mubr.bf16.gmra.mrb[4].mxu0 %v6473_v39  ;;  %5756 = vmatpush3.bf16.msra.mxu1 %v6472_v36  ;;  %v4182_v36 = vor.u32 %v4180_v30, %v4178_v32  ;;  %v6507_v39 = vld [vmem:[%s6603_s14 + $0x48] sm:$0xff]  }
  0xd0   : > { %5980 = vmatpush3.bf16.msra.mxu0 %v6474_v40  ;;  %5757 = vmatprep.subr.bf16.mxu1 %v6475_v42  ;;  %v4188_v40 = vshrl.u32 %v6503_v29, 16 }
  0xd1   : > { %5981 = vmatprep.subr.bf16.mxu0 %v6476_v43  ;;  %5967 = vmatprep.mubr.bf16.mxu0 %v6478_v45  ;;  %v4187_v41 = vsel %vm490_vm0, %v4182_v36, %v4186_v37  ;;  %v4196_v45 = vshrl.u32 %v6507_v39, 16 }
  0xd2   : > { %5743 = vmatprep.mubr.bf16.mxu1 %v1763_v49  ;;  %v6510_v49 = vld [vmem:[%s7157_s1 + $0x3a0] sm:$0xff]  }
  0xd3   : > { %5758 = vmatpush3.bf16.msra.mxu1 %v6475_v42  ;;  %v4190_v42 = vor.u32 %v4188_v40, %v4186_v37 }
  0xd4   : > { %5982 = vmatpush3.bf16.msra.mxu0 %v6476_v43  ;;  %5759 = vmatprep.subr.bf16.mxu1 %v6480_v48  ;;  %v4192_v43 = vshll.u32 %v6507_v39, 16 }
  0xd5   : > { %5983 = vmatprep.subr.bf16.mxu0 %v6482_v52 }
  0xd6   : > { %5744 = vmatmul.mubr.bf16.gmra.mrb[8].mxu1 %v1765_v53  ;;  %v4194_v46 = vrot.slane %v4192_v43, 1  ;;  %v6512_v53 = vld [vmem:[%s6603_s14 + $0x40] sm:$0xff]  }
  0xd7   : > { %5968 = vmatmul.mubr.bf16.gmra.mrb[8].mxu0 %v6481_v51  ;;  %5760 = vmatpush3.bf16.msra.mxu1 %v6480_v48  ;;  %v4200_v48 = vshll.u32 %v6509_v44, 16 }
  0xd8   : > { %5984 = vmatpush3.bf16.msra.mxu0 %v6482_v52  ;;  %5761 = vmatprep.subr.bf16.mxu1 %v6483_v54  ;;  %v4195_v50 = vsel %vm490_vm0, %v4190_v42, %v4194_v46  ;;  %v4198_v51 = vor.u32 %v4196_v45, %v4194_v46 }
  0xd9   : > { %5985 = vmatprep.subr.bf16.mxu0 %v6484_v55  ;;  %5971 = vmatprep.mubr.bf16.mxu0 %v6486_v57  ;;  %v4202_v52 = vrot.slane %v4200_v48, 1 }
  0xda   : > { %5747 = vmatprep.mubr.bf16.mxu1 %v1767_v61 }
  0xdb   : > { %5762 = vmatpush3.bf16.msra.mxu1 %v6483_v54  ;;  %v6513_v54 = vld [vmem:[%s6603_s14 + $0x58] sm:$0xff]  }
  0xdc   : > { %5986 = vmatpush3.bf16.msra.mxu0 %v6484_v55  ;;  %5763 = vmatprep.subr.bf16.mxu1 %v6488_v60  ;;  %v4204_v55 = vshrl.u32 %v6509_v44, 16  ;;  %v4208_v58 = vshll.u32 %v6513_v54, 16  ;;  %v4212_v62 = vshrl.u32 %v6513_v54, 16 }
  0xdd   : > { %5987 = vmatprep.subr.bf16.mxu0 %v6490_v0 }
  0xde   : > { %5748 = vmatmul.mubr.bf16.gmra.mrb[12].mxu1 %v1769_v1  ;;  %v4206_v57 = vor.u32 %v4204_v55, %v4202_v52  ;;  %v4210_v61 = vrot.slane %v4208_v58, 1  ;;  %v6514_v1 = vld [vmem:[%s6603_s14 + $0x48] sm:$0xff]  }
  0xdf   : > { %5972 = vmatmul.mubr.bf16.gmra.mrb[12].mxu0 %v6489_v63  ;;  %5764 = vmatpush3.bf16.msra.mxu1 %v6488_v60  ;;  %v4203_v60 = vsel %vm490_vm0, %v4198_v51, %v4202_v52  ;;  %v4216_v63 = vshll.u32 %v6515_v59, 16 }
  0xe0   : > { %5988 = vmatpush3.bf16.msra.mxu0 %v6490_v0  ;;  %5765 = vmatprep.subr.bf16.mxu1 %v6491_v2  ;;  %v6519_v0 = vld [vmem:[%s6603_s14 + $0x28] sm:$0xff]   ;;  %v4214_v5 = vor.u32 %v4212_v62, %v4210_v61 }
  0xe1   : > { %5989 = vmatprep.subr.bf16.mxu0 %v6492_v3  ;;  %5767 = vmatprep.mubr.bf16.mxu1 %v6493_v4  ;;  %v6518_v4 = vld [vmem:[%s6603_s14 + $0x20] sm:$0xfe]   ;;  %v4218_v6 = vrot.slane %v4216_v63, 1  ;;  %v4499_v11 = vrot.slane %v6519_v0, 1 }
  0xe2   : > { %5991 = vmatprep.mubr.bf16.mxu0 %v4163_v24  ;;  %v4498_v10 = vrot.slane %v6518_v4, 1  ;;  %v4510_v24 = vsel %vm837_vm1, %v4507_v13, %v4509_v19 }
  0xe3   : > { %5766 = vmatpush3.bf16.msra.mxu1 %v6491_v2  ;;  %v4211_v2 = vsel %vm490_vm0, %v4206_v57, %v4210_v61  ;;  %v4502_v28 = vsel %vm837_vm1, %v4499_v11, %v4501_v23 }
  0xe4   : > { %5990 = vmatpush3.bf16.msra.mxu0 %v6492_v3  ;;  %6039 = vmatprep.subr.bf16.mxu1 %v6498_v15  ;;  %v6516_v3 = vld [vmem:[%s7157_s1 + $0x3b0] sm:$0xff]  }
  0xe5   : > { %6007 = vmatprep.subr.bf16.mxu0 %v6498_v15 }
  0xe6   : > { %5768 = vmatmul.mubr.bf16.vlgmr.msra.gmra.mrb[0].mxu1 %v6496_v7  ;;  %v6517_v7 = vld [vmem:[%s7157_s1 + $0x3b8] sm:$0xff]  }
  0xe7   : > { %5771 = vmatprep.mubr.bf16.mxu1 %v6500_v18  ;;  %6047 = vmatpush3.bf16.msra.mxu1 %v6498_v15  ;;  %v4500_v18 = vsel %vm837_vm1, %v4498_v10, %v4499_v11 }
  0xe8   : > { %6040 = vmatprep.subr.bf16.mxu1 %v6499_v16  ;;  %5992 = vmatmul.mubr.bf16.vlgmr.msra.gmra.mrb[0].mxu0 %v4171_v26  ;;  %v6526_v26 = vld [vmem:[%s6603_s14 + $0x60] ss:$0 sps:$4 sm:$0x11]   ;;  %s6535_s14 = smov 64  }
  0xe9   : > { %6008 = vmatpush3.bf16.msra.mxu0 %v6498_v15  ;;  %5995 = vmatprep.mubr.bf16.mxu0 %v4179_v35  ;;  %v4219_v15 = vsel %vm490_vm0, %v4214_v5, %v4218_v6  ;;  %v4513_v30 = vrot.slane %v6526_v26, 1 }
  0xea   : > { %6009 = vmatprep.subr.bf16.mxu0 %v6499_v16 }
  0xeb   : > { %6048 = vmatpush3.bf16.msra.mxu1 %v6499_v16 }
  0xec   : > { %6041 = vmatprep.subr.bf16.mxu1 %v6504_v31 }
  0xed   : > { %6010 = vmatpush3.bf16.msra.mxu0 %v6499_v16  ;;  %v4508_v16 = vsel %vm837_vm1, %v4505_v12, %v4507_v13 }
  0xee   : > { %5772 = vmatmul.mubr.bf16.gmra.mrb[4].mxu1 %v6502_v25  ;;  %6011 = vmatprep.subr.bf16.mxu0 %v6504_v31  ;;  %v4503_v25 = vrot.slane %v6524_v20, 1 }
  0xef   : > { %5775 = vmatprep.mubr.bf16.mxu1 %v6506_v34  ;;  %6049 = vmatpush3.bf16.msra.mxu1 %v6504_v31 }
  0xf0   : > { %6042 = vmatprep.subr.bf16.mxu1 %v6505_v38  ;;  %5996 = vmatmul.mubr.bf16.gmra.mrb[4].mxu0 %v4187_v41  ;;  %v4504_v29 = vsel %vm837_vm1, %v4501_v23, %v4503_v25  ;;  %v4506_v32 = vsel %vm837_vm1, %v4503_v25, %v4505_v12  ;;  %v5312_v25 = vld [vmem:[%s7158_s2] ss:$0 sm:$0xff] }
  0xf1   : > { %6012 = vmatpush3.bf16.msra.mxu0 %v6504_v31  ;;  %5999 = vmatprep.mubr.bf16.mxu0 %v4195_v50  ;;  %v4514_v31 = vsel %vm837_vm1, %v4511_v22, %v4513_v30 }
  0xf2   : > { %6013 = vmatprep.subr.bf16.mxu0 %v6505_v38 }
  0xf3   : > { %6050 = vmatpush3.bf16.msra.mxu1 %v6505_v38 }
  0xf4   : > { %6043 = vmatprep.subr.bf16.mxu1 %v6510_v49 }
  0xf5   : > { %6014 = vmatpush3.bf16.msra.mxu0 %v6505_v38 }
  0xf6   : > { %5776 = vmatmul.mubr.bf16.gmra.mrb[8].mxu1 %v6508_v47  ;;  %6015 = vmatprep.subr.bf16.mxu0 %v6510_v49 }
  0xf7   : > { %5779 = vmatprep.mubr.bf16.mxu1 %v6512_v53  ;;  %6051 = vmatpush3.bf16.msra.mxu1 %v6510_v49 }
  0xf8   : > { %6044 = vmatprep.subr.bf16.mxu1 %v6511_v56  ;;  %6000 = vmatmul.mubr.bf16.gmra.mrb[8].mxu0 %v4203_v60 }
  0xf9   : > { %6016 = vmatpush3.bf16.msra.mxu0 %v6510_v49  ;;  %6003 = vmatprep.mubr.bf16.mxu0 %v4211_v2 }
  0xfa   : > { %6017 = vmatprep.subr.bf16.mxu0 %v6511_v56 }
  0xfb   : > { %6052 = vmatpush3.bf16.msra.mxu1 %v6511_v56 }
  0xfc   : > { %6045 = vmatprep.subr.bf16.mxu1 %v6516_v3 }
  0xfd   : > { %6018 = vmatpush3.bf16.msra.mxu0 %v6511_v56 }
  0xfe   : > { %5780 = vmatmul.mubr.bf16.gmra.mrb[12].mxu1 %v6514_v1  ;;  %6019 = vmatprep.subr.bf16.mxu0 %v6516_v3 }
  0xff   : > { %6053 = vmatpush3.bf16.msra.mxu1 %v6516_v3  ;;  %6031 = vmatprep.mubr.bf16.mxu1 %v4508_v16 }
 0x100   : > { %6046 = vmatprep.subr.bf16.mxu1 %v6517_v7  ;;  %6004 = vmatmul.mubr.bf16.gmra.mrb[12].mxu0 %v4219_v15 }
 0x101   : > { %6020 = vmatpush3.bf16.msra.mxu0 %v6516_v3  ;;  %6023 = vmatprep.mubr.bf16.mxu0 %v4500_v18 }
 0x102   : > { %6021 = vmatprep.subr.bf16.mxu0 %v6517_v7 }
 0x103   : > { %6054 = vmatpush3.bf16.msra.mxu1 %v6517_v7 }
 0x105   : > { %6022 = vmatpush3.bf16.msra.mxu0 %v6517_v7 }
 0x106   : > { %6032 = vmatmul.mubr.bf16.vlgmr.msra.gmra.mrb[16].mxu1 %v4510_v24 }
 0x107   : > { %6035 = vmatprep.mubr.bf16.mxu1 %v4512_v27 }
 0x108   : > { %6024 = vmatmul.mubr.bf16.vlgmr.msra.gmra.mrb[0].mxu0 %v4502_v28 }
 0x109   : > { %6027 = vmatprep.mubr.bf16.mxu0 %v4504_v29 }
 0x10e   : > { %6036 = vmatmul.mubr.bf16.gmra.mrb[20].mxu1 %v4514_v31 }
 0x110   : > { %6028 = vmatmul.mubr.bf16.gmra.mrb[4].mxu0 %v4506_v32 }
 0x1b9   : > { %v5769_v33 = vpop.f32.mrb[0].mxu1 }
 0x1ba   : > { %v2134_v34 = vpop.f32.mrb[1].mxu1 }
 0x1bb   : > { %v5770_v35 = vpop.f32.mrb[2].mxu1 }
 0x1bc   : > { %v2137_v36 = vpop.f32.mrb[3].mxu1 }
 0x1c1   : > { %v5773_v37 = vpop.f32.mrb[4].mxu1 }
 0x1c2   : > { %v2150_v38 = vpop.f32.mrb[5].mxu1 }
 0x1c3   : > { %v5774_v39 = vpop.f32.mrb[6].mxu1 }
 0x1c4   : > { %v2153_v40 = vpop.f32.mrb[7].mxu1 }
 0x1c9   : > { %v5777_v41 = vpop.f32.mrb[8].mxu1 }
 0x1ca   : > { %v2166_v42 = vpop.f32.mrb[9].mxu1 }
 0x1cb   : > { %v5778_v43 = vpop.f32.mrb[10].mxu1  ;;  %v6001_v45 = vpop.f32.mrb[8].mxu0 }
 0x1cc   : > { %v2169_v44 = vpop.f32.mrb[11].mxu1  ;;  %v6059_v46 = vadd.f32 %v6001_v45, %v5777_v41  ;;  %v4342_v47 = vpop.f32.mrb[9].mxu0 }
 0x1cd   : > { %v6061_v48 = vadd.f32 %v4342_v47, %v2166_v42  ;;  %v6002_v49 = vpop.f32.mrb[10].mxu0 }
 0x1ce   : > { %v4345_v50 = vpop.f32.mrb[11].mxu0 }
 0x1d1   : > { %v5781_v51 = vpop.f32.mrb[12].mxu1 }
 0x1d2   : > { %v2182_v52 = vpop.f32.mrb[13].mxu1 }
 0x1d3   : > { %v5782_v53 = vpop.f32.mrb[14].mxu1  ;;  %v6005_v55 = vpop.f32.mrb[12].mxu0 }
 0x1d4   : > { %v2185_v54 = vpop.f32.mrb[15].mxu1  ;;  %v6063_v56 = vadd.f32 %v6005_v55, %v5781_v51  ;;  %v4358_v57 = vpop.f32.mrb[13].mxu0 }
 0x1d5   : > { %v6065_v58 = vadd.f32 %v4358_v57, %v2182_v52  ;;  %v6006_v59 = vpop.f32.mrb[14].mxu0 }
 0x1d6   : > { %v4361_v60 = vpop.f32.mrb[15].mxu0 }
 0x1d9   : > { %v6033_v61 = vpop.f32.mrb[16].mxu1 }
 0x1da   : > { %v6060_v62 = vadd.f32 %v6059_v46, %v6033_v61  ;;  %v4637_v63 = vpop.f32.mrb[17].mxu1 }
 0x1db   : > { %v6062_v0 = vadd.f32 %v6061_v48, %v4637_v63  ;;  %v6034_v1 = vpop.f32.mrb[18].mxu1  ;;  %v6025_v2 = vpop.f32.mrb[0].mxu0 }
 0x1dc   : > { %v4640_v3 = vpop.f32.mrb[19].mxu1  ;;  %v6055_v4 = vadd.f32 %v6025_v2, %v5769_v33  ;;  %v4605_v5 = vpop.f32.mrb[1].mxu0 }
 0x1dd   : > { %v4751_v6 = vmax.f32 %v6062_v0, %v6060_v62  ;;  %v6056_v7 = vadd.f32 %v4605_v5, %v2134_v34  ;;  %v6026_v8 = vpop.f32.mrb[2].mxu0 }
 0x1de   : > { %v4608_v9 = vpop.f32.mrb[3].mxu0 }
 0x1df   : > { %4753 = vrot.lane.b32.xlu1 %v4751_v6, %s6535_s14  ;;  %v4719_v10 = vmax.f32 %v6056_v7, %v6055_v4 }
 0x1e1   : > { %v6037_v11 = vpop.f32.mrb[20].mxu1  ;;  %4721 = vrot.lane.b32.xlu0 %v4719_v10, %s6535_s14 }
 0x1e2   : > { %v6064_v12 = vadd.f32 %v6063_v56, %v6037_v11  ;;  %v4653_v13 = vpop.f32.mrb[21].mxu1 }
 0x1e3   : > { %v6066_v14 = vadd.f32 %v6065_v58, %v4653_v13  ;;  %v6038_v15 = vpop.f32.mrb[22].mxu1  ;;  %v6029_v16 = vpop.f32.mrb[4].mxu0 }
 0x1e4   : > { %v4656_v17 = vpop.f32.mrb[23].mxu1  ;;  %v6057_v18 = vadd.f32 %v6029_v16, %v5773_v37  ;;  %v4621_v19 = vpop.f32.mrb[5].mxu0 }
 0x1e5   : > { %v4764_v20 = vmax.f32 %v6066_v14, %v6064_v12  ;;  %v6058_v21 = vadd.f32 %v4621_v19, %v2150_v38  ;;  %v6030_v22 = vpop.f32.mrb[6].mxu0 }
 0x1e6   : > { %v4624_v23 = vpop.f32.mrb[7].mxu0 }
 0x1e7   : > { %4766 = vrot.lane.b32.xlu1 %v4764_v20, %s6535_s14  ;;  %v4738_v24 = vmax.f32 %v6058_v21, %v6057_v18 }
 0x1e9   : > { %4740 = vrot.lane.b32.xlu0 %v4738_v24, %s6535_s14 }
 0x251   : > { %v4754_v26 = vpop.permute.xlu1 %4753 }
 0x252   : > { %v4756_v27 = vmax.f32 %v4751_v6, %v4754_v26 }
 0x253   : > { %v4722_v28 = vpop.permute.xlu0 %4721 }
 0x254   : > { %v4757_v29 = vadd.f32 %v5312_v25, %v4756_v27  ;;  %v4724_v30 = vmax.f32 %v4719_v10, %v4722_v28 }
 0x256   : > { %v4758_v31 = vmax.f32 %v4757_v29, 0.0  ;;  %v4731_v32 = vadd.f32 %v5312_v25, %v4724_v30 }
 0x258   : > { %v4759_v33 = vpack.c.bf16 %v4758_v31, %v4758_v31  ;;  %v4732_v34 = vmax.f32 %v4731_v32, 0.0 }
 0x259   : > { %v4767_v35 = vpop.permute.xlu1 %4766 }
 0x25a   : > { %5314 = vst.msk [vmem:[%s170_s22 + $0x4] sm:$0x3] %vm4734_vm2, %v4759_v33  ;;  %v4769_v36 = vmax.f32 %v4764_v20, %v4767_v35  ;;  %v4733_v37 = vpack.c.bf16 %v4732_v34, %v4732_v34 }
 0x25b   : > { %v4741_v38 = vpop.permute.xlu0 %4740 }
 0x25c   : > { %v4770_v39 = vadd.f32 %v5312_v25, %v4769_v36  ;;  %4735 = vst.msk [vmem:[%s170_s22] sm:$0x3] %vm4734_vm2, %v4733_v37  ;;  %v4743_v40 = vmax.f32 %v4738_v24, %v4741_v38 }
 0x25e   : > { %v4771_v41 = vmax.f32 %v4770_v39, 0.0  ;;  %v4744_v42 = vadd.f32 %v5312_v25, %v4743_v40 }
 0x260   : > { %v4772_v43 = vpack.c.bf16 %v4771_v41, %v4771_v41  ;;  %v4745_v44 = vmax.f32 %v4744_v42, 0.0 }
 0x262   : > { %5315 = vst.msk [vmem:[%s170_s22 + $0x6] sm:$0x3] %vm4734_vm2, %v4772_v43  ;;  %v4746_v45 = vpack.c.bf16 %v4745_v44, %v4745_v44 }
 0x264   : > { %5313 = vst.msk [vmem:[%s170_s22 + $0x2] sm:$0x3] %vm4734_vm2, %v4746_v45 }
 0x265 PF: > { %s13_s12 = sadd.s32 1, %s6533_s12  }
 0x266   : > { %p10_p4 = scmp.ge.s32.totalorder %s13_s12, 4  }
 0x268   :  { %12 = sbr.rel (!%p10_p4) target bundleno = 1 (0x1), region = 79 }

// kernel: dann_forward.3
= control target key start
LH: loop header
LB: loop body
LE: loop exit
PB: predicated region body
PF: predicated region fallthrough
CT: control target
= control target key end

     0   :  { %s14040_s12 = smov 0   ;;  %s15376_s0 = inlined_call_operand.vmem [shape: bf16[2,464,6], index: 0, kind: input, shape index: {}]   ;;  %s15377_s1 = inlined_call_operand.vmem [shape: bf16[15,6,128], index: 1, kind: input, shape index: {}]   ;;  %s15378_s2 = inlined_call_operand.vmem [shape: f32[1,64], index: 2, kind: input, shape index: {}]   ;;  %s15379_s3 = inlined_call_operand.vmem [shape: bf16[2,12,12,64], index: 3, kind: output, shape index: {}]  }
   0x1 LB: > { %s10989_s13 = sadd.s32 4294967295, %s14017_s12   ;;  %p10993_p0 = scmp.ge.s32.totalorder %s14017_s12, 1  ;;  %s14017_s12 = sphi %s14040_s12, %s13_s12  }
   0x2   : > { %p137_p1 = scmp.lt.s32.totalorder %s14017_s12, 3 }
   0x4   : > { %p138_p2 = pnand %p10993_p0, %p137_p1 }
   0x5   : > { %v220_v0 = vld [vmem:[%s15377_s1] sm:$0x7] (!%p138_p2)  ;;  %vm414_vm0 = vcmask (!%p138_p2), 1042432   ;;  %p161_p3 = scmp.lt.s32.totalorder (!%p138_p2), %s10989_s13, 1  ;;  %v11342_v2 = vld [vmem:[%s15377_s1 + $0x1c] sm:$0x7] (!%p138_p2) }
   0x6   : > { %141 = sbr.rel (%p138_p2) target bundleno = 1081 (0x439), region = 32  ;;  %13612 = vmatprep.subr.msk.bf16.mxu1 (!%p138_p2), %vm414_vm0, %v220_v0  ;;  %v416_v1 = vsel (!%p138_p2), %vm414_vm0, %v220_v0, 0  ;;  %v11044_v3 = vld [vmem:[%s15377_s1 + $0x4] sm:$0x7] (!%p138_p2)  ;;  %13619 = vmatprep.subr.msk.bf16.mxu0 (!%p138_p2), %vm414_vm0, %v11342_v2  ;;  %v14063_v4 = vsel (!%p138_p2), %vm414_vm0, %v11342_v2, 0  ;;  %vm341_vm1 = vcmask (!%p138_p2), 48128  }
   0x7   : > { %12189 = vmatpush3.bf16.msra.mxu1 (!%p138_p2), %v416_v1  ;;  %v11392_v5 = vld [vmem:[%s15377_s1 + $0x20] sm:$0x7] (!%p138_p2)  ;;  %12539 = vmatpush3.bf16.msra.mxu0 (!%p138_p2), %v14063_v4  ;;  %v14081_v7 = vld [vmem:[%s15377_s1 + $0x8] sm:$0x7] (!%p138_p2)  ;;  %v1135_v9 = vsel (!%p138_p2), %vm414_vm0, %v11044_v3, 0  ;;  %vm1680_vm3 = vcmask (!%p138_p2), 1046528  }
   0x8   : > { %13613 = vmatprep.subr.msk.bf16.mxu1 (!%p138_p2), %vm414_vm0, %v11044_v3  ;;  %13621 = vmatprep.subr.msk.bf16.mxu0 (!%p138_p2), %vm414_vm0, %v11392_v5  ;;  %vm865_vm2 = vsmask.f32 (!%p138_p2), 7424  ;;  %v5993_v18 = vsel (!%p138_p2), %vm414_vm0, %v11392_v5, 0  ;;  %v14102_v31 = vld [vmem:[%s15377_s1 + $0x24] sm:$0x7] (!%p138_p2)  ;;  %vm10589_vm4 = vcmask (!%p138_p2), 519168  }
   0x9   : > { %vm10591_vm5 = vcmask (!%p138_p2), 517120  }
   0xd   : > { %s15381_s13 = smov (!%p161_p3, %s10989_s13), 1 }
   0xe   : > { %s13628_s22 = smul.u32 232, %s15381_s13 }
   0xf   : > { %s13629_s28 = smul.u32 96, %s15381_s13 }
  0x10   : > { %s14075_s25 = scalar_lea.vmem %s15376_s0, %s13628_s22 }
  0x11   : > { %v13639_v6 = vld [vmem:[%s14075_s25] sm:$0xff]   ;;  %v13640_v8 = vld [vmem:[%s14075_s25 + $0x8] sm:$0xff]   ;;  %v13641_v10 = vld [vmem:[%s14075_s25 + $0x10] sm:$0xff]   ;;  %s15278_s4 = scalar_lea.vmem %s15379_s3, %s13629_s28 }
  0x12   : > { %12190 = vmatprep.mubr.msk.bf16.mxu1 %vm341_vm1, %v13639_v6  ;;  %v13642_v11 = vld [vmem:[%s14075_s25 + $0x18] sm:$0xff]   ;;  %v13643_v12 = vld [vmem:[%s14075_s25 + $0x10] sm:$0xff]   ;;  %v5058_v13 = vshrl.u32 %v13641_v10, 16  ;;  %v5060_v14 = vshll.u32 %v13641_v10, 16  ;;  %v13644_v17 = vld [vmem:[%s14075_s25 + $0x20] sm:$0xff]  }
  0x13   : > { %12191 = vmatmul.mubr.msk.bf16.vlgmr.msra.gmra.mrb[0].mxu1 %vm341_vm1, %v13640_v8  ;;  %v5065_v15 = vshll.u32 %v13642_v11, 16  ;;  %v5069_v16 = vshrl.u32 %v13642_v11, 16  ;;  %v13645_v21 = vld [vmem:[%s14075_s25 + $0x18] sm:$0xff]   ;;  %v13646_v22 = vld [vmem:[%s14075_s25 + $0x28] sm:$0xff]   ;;  %v5073_v23 = vshll.u32 %v13644_v17, 16  ;;  %v5077_v24 = vshrl.u32 %v13644_v17, 16 }
  0x14   : > { %12239 = vmatpush3.bf16.msra.mxu1 %v1135_v9  ;;  %12194 = vmatprep.mubr.msk.bf16.mxu1 %vm341_vm1, %v13643_v12  ;;  %v5062_v19 = vrot.slane %v5060_v14, 1  ;;  %v5081_v27 = vshll.u32 %v13646_v22, 16  ;;  %v13647_v28 = vld [vmem:[%s14075_s25 + $0x20] sm:$0xff]   ;;  %v13648_v30 = vld [vmem:[%s14075_s25 + $0x30] sm:$0xff]   ;;  %v5085_v34 = vshrl.u32 %v13646_v22, 16  ;;  %v13650_v38 = vld [vmem:[%s14075_s25 + $0x38] sm:$0xff]  }
  0x15   : > { %13614 = vmatprep.subr.msk.bf16.mxu1 %vm414_vm0, %v14081_v7  ;;  %v5067_v20 = vrot.slane %v5065_v15, 1  ;;  %v5075_v29 = vrot.slane %v5073_v23, 1  ;;  %v5089_v37 = vshll.u32 %v13648_v30, 16  ;;  %v5093_v39 = vshrl.u32 %v13648_v30, 16  ;;  %v13649_v43 = vld [vmem:[%s14075_s25 + $0x28] sm:$0xff]   ;;  %v13651_v45 = vld [vmem:[%s14075_s25 + $0x30] sm:$0xff]  }
  0x16   : > { %v5063_v25 = vor.u32 %v5062_v19, %v5058_v13  ;;  %v5083_v33 = vrot.slane %v5081_v27, 1  ;;  %v5097_v44 = vshll.u32 %v13650_v38, 16  ;;  %v13652_v46 = vld [vmem:[%s14075_s25 + $0x40] sm:$0xff]   ;;  %v13654_v50 = vld [vmem:[%s14075_s25 + $0x48] sm:$0xff]   ;;  %v5101_v52 = vshrl.u32 %v13650_v38, 16  ;;  %v13656_v56 = vld [vmem:[%s14075_s25 + $0x50] sm:$0xff]  }
  0x17   : > { %v5071_v26 = vor.u32 %v5069_v16, %v5067_v20  ;;  %v5079_v36 = vor.u32 %v5077_v24, %v5075_v29  ;;  %v5091_v42 = vrot.slane %v5089_v37, 1  ;;  %v5105_v49 = vshll.u32 %v13652_v46, 16  ;;  %v13658_v59 = vld [vmem:[%s14075_s25 + $0x58] sm:$0xff]   ;;  %v13655_v63 = vld [vmem:[%s14075_s25 + $0x40] sm:$0xff]   ;;  %v13657_v11 = vld [vmem:[%s14075_s25 + $0x48] sm:$0xff]  }
  0x18   : > { %v5068_v32 = vsel %vm865_vm2, %v5063_v25, %v5067_v20  ;;  %v5087_v41 = vor.u32 %v5085_v34, %v5083_v33  ;;  %v5099_v48 = vrot.slane %v5097_v44, 1  ;;  %v5109_v54 = vshrl.u32 %v13652_v46, 16  ;;  %v13653_v60 = vld [vmem:[%s14075_s25 + $0x38] sm:$0xff]   ;;  %v13660_v9 = vld [vmem:[%s14075_s25 + $0x60] sm:$0xff]   ;;  %v13662_v14 = vld [vmem:[%s14075_s25 + $0x68] sm:$0xff]  }
  0x19   : > { %12540 = vmatprep.mubr.msk.bf16.mxu0 %vm341_vm1, %v5068_v32  ;;  %v5076_v35 = vsel %vm865_vm2, %v5071_v26, %v5075_v29  ;;  %v5084_v40 = vsel %vm865_vm2, %v5079_v36, %v5083_v33  ;;  %v5095_v47 = vor.u32 %v5093_v39, %v5091_v42  ;;  %v5113_v55 = vshll.u32 %v13654_v50, 16  ;;  %v13659_v15 = vld [vmem:[%s14075_s25 + $0x50] sm:$0xff]   ;;  %v13661_v25 = vld [vmem:[%s14075_s25 + $0x58] sm:$0xff]   ;;  %v13665_v38 = vld [vmem:[%s14075_s25 + $0x68] sm:$0xff]  }
  0x1a   : > { %12541 = vmatmul.mubr.msk.bf16.vlgmr.msra.gmra.mrb[0].mxu0 %vm341_vm1, %v5076_v35  ;;  %v5092_v51 = vsel %vm865_vm2, %v5087_v41, %v5091_v42  ;;  %v5107_v57 = vrot.slane %v5105_v49, 1  ;;  %v5103_v58 = vor.u32 %v5101_v52, %v5099_v48  ;;  %v5121_v0 = vshll.u32 %v13656_v56, 16  ;;  %v13664_v23 = vld [vmem:[%s14075_s25 + $0x70] sm:$0xff]   ;;  %v13667_v35 = vld [vmem:[%s14075_s25 + $0x18] sm:$0xff]   ;;  %v13672_v49 = vld [vmem:[%s14075_s25 + $0x80] sm:$0xff]  }
  0x1b   : > { %12195 = vmatmul.mubr.msk.bf16.gmra.mrb[4].mxu1 %vm341_vm1, %v13645_v21  ;;  %12589 = vmatpush3.bf16.msra.mxu0 %v5993_v18  ;;  %v5100_v53 = vsel %vm865_vm2, %v5095_v47, %v5099_v48  ;;  %v5115_v62 = vrot.slane %v5113_v55, 1  ;;  %v5117_v2 = vshrl.u32 %v13654_v50, 16  ;;  %v5125_v3 = vshrl.u32 %v13656_v56, 16  ;;  %v13666_v33 = vld [vmem:[%s14075_s25 + $0x10] sm:$0xfe]   ;;  %v13670_v47 = vld [vmem:[%s14075_s25 + $0x78] sm:$0xff]  }
  0x1c   : > { %12198 = vmatprep.mubr.msk.bf16.mxu1 %vm341_vm1, %v13647_v28  ;;  %12544 = vmatprep.mubr.msk.bf16.mxu0 %vm341_vm1, %v5084_v40  ;;  %v5111_v61 = vor.u32 %v5109_v54, %v5107_v57  ;;  %v5108_v1 = vsel %vm865_vm2, %v5103_v58, %v5107_v57  ;;  %v5129_v5 = vshll.u32 %v13658_v59, 16  ;;  %v5123_v8 = vrot.slane %v5121_v0, 1  ;;  %v13663_v28 = vld [vmem:[%s14075_s25 + $0x60] sm:$0xff]   ;;  %v13668_v41 = vld [vmem:[%s14075_s25 + $0x70] sm:$0xff]   ;;  %v13675_v54 = vld [vmem:[%s14075_s25 + $0x38] sm:$0xff]  }
  0x1d   : > { %13622 = vmatprep.subr.msk.bf16.mxu0 %vm414_vm0, %v14102_v31  ;;  %v5119_v10 = vor.u32 %v5117_v2, %v5115_v62  ;;  %v5137_v16 = vshll.u32 %v13660_v9, 16  ;;  %v5133_v18 = vshrl.u32 %v13658_v59, 16  ;;  %v5141_v20 = vshrl.u32 %v13660_v9, 16  ;;  %v13674_v56 = vld [vmem:[%s14075_s25 + $0x88] sm:$0xff]   ;;  %v13677_v59 = vld [vmem:[%s14075_s25 + $0x40] sm:$0xff]  }
  0x1e   : > { %v5116_v6 = vsel %vm865_vm2, %v5111_v61, %v5115_v62  ;;  %v5127_v12 = vor.u32 %v5125_v3, %v5123_v8  ;;  %v5131_v13 = vrot.slane %v5129_v5, 1  ;;  %v5145_v21 = vshll.u32 %v13662_v14, 16  ;;  %v13679_v61 = vld [vmem:[%s14075_s25 + $0x48] sm:$0xff]   ;;  %v13688_v2 = vld [vmem:[%s14075_s25] sm:$0xff]   ;;  %v13681_v5 = vld [vmem:[%s14075_s25 + $0x50] sm:$0xff]  }
  0x1f   : > { %v5124_v17 = vsel %vm865_vm2, %v5119_v10, %v5123_v8  ;;  %v5139_v22 = vrot.slane %v5137_v16, 1  ;;  %v5149_v29 = vshrl.u32 %v13662_v14, 16  ;;  %v5153_v30 = vshll.u32 %v13664_v23, 16  ;;  %v13683_v8 = vld [vmem:[%s14075_s25 + $0x58] sm:$0xff]   ;;  %v13689_v9 = vld [vmem:[%s14075_s25 + $0x8] sm:$0xff]   ;;  %v13684_v14 = vld [vmem:[%s14075_s25 + $0xb0] sm:$0xff]  }
  0x20   : > { %v5132_v19 = vsel %vm865_vm2, %v5127_v12, %v5131_v13  ;;  %v5135_v24 = vor.u32 %v5133_v18, %v5131_v13  ;;  %v5147_v27 = vrot.slane %v5145_v21, 1  ;;  %v5871_v39 = vrot.slane %v13666_v33, 1  ;;  %v13682_v12 = vld [vmem:[%s14075_s25 + $0xa8] sm:$0xff]   ;;  %v13690_v33 = vld [vmem:[%s14075_s25 + $0x70] sm:$0xff]  }
  0x21   : > { %v5143_v26 = vor.u32 %v5141_v20, %v5139_v22  ;;  %v14156_v37 = vrot.slane %v5153_v30, 1  ;;  %v5872_v40 = vrot.slane %v13667_v35, 1  ;;  %v6607_v52 = vsel %vm414_vm0, %v14102_v31, 0  ;;  %v13676_v31 = vld [vmem:[%s14075_s25 + $0x90] sm:$0xff]   ;;  %v13687_v20 = vld [vmem:[%s14075_s25 + $0x68] sm:$0xff]  }
  0x22   : > { %12545 = vmatmul.mubr.msk.bf16.gmra.mrb[4].mxu0 %vm341_vm1, %v5092_v51  ;;  %v5140_v32 = vsel %vm865_vm2, %v5135_v24, %v5139_v22  ;;  %v5151_v36 = vor.u32 %v5149_v29, %v5147_v27  ;;  %v13673_v51 = vld [vmem:[%s14075_s25 + $0x30] sm:$0xff]   ;;  %v5880_v57 = vrot.slane %v13675_v54, 1  ;;  %v5882_v62 = vrot.slane %v13677_v59, 1 }
  0x23   : > { %12199 = vmatmul.mubr.msk.bf16.gmra.mrb[8].mxu1 %vm341_vm1, %v13649_v43  ;;  %12548 = vmatprep.mubr.msk.bf16.mxu0 %vm341_vm1, %v5100_v53  ;;  %v5148_v34 = vsel %vm865_vm2, %v5143_v26, %v5147_v27  ;;  %v13669_v43 = vld [vmem:[%s14075_s25 + $0x20] sm:$0xff]   ;;  %v5873_v44 = vsel %vm1680_vm3, %v5871_v39, %v5872_v40  ;;  %v5878_v55 = vrot.slane %v13673_v51, 1  ;;  %v5884_v0 = vrot.slane %v13679_v61, 1  ;;  %v13691_v22 = vld [vmem:[%s14075_s25 + $0x10] sm:$0xff]   ;;  %v13686_v27 = vld [vmem:[%s14075_s25 + $0xb8] sm:$0xff]  }
  0x24   : > { %12202 = vmatprep.mubr.msk.bf16.mxu1 %vm341_vm1, %v13651_v45  ;;  %v5156_v42 = vsel %vm865_vm2, %v5151_v36, %v14156_v37  ;;  %v13671_v45 = vld [vmem:[%s14075_s25 + $0x28] sm:$0xff]   ;;  %v5874_v46 = vrot.slane %v13669_v43, 1  ;;  %v5883_v3 = vsel %vm1680_vm3, %v5880_v57, %v5882_v62  ;;  %v869_v10 = vshll.u32 %v13688_v2, 16 }
  0x25   : > { %v5876_v48 = vrot.slane %v13671_v45, 1  ;;  %v5888_v13 = vrot.slane %v13683_v8, 1  ;;  %v867_v16 = vshrl.u32 %v13688_v2, 16  ;;  %v874_v18 = vshll.u32 %v13689_v9, 16  ;;  %v13698_v8 = vld [vmem:[%s14075_s25 + $0x90] sm:$0xff]  }
  0x26   : > { %v5875_v50 = vsel %vm1680_vm3, %v5872_v40, %v5874_v46  ;;  %v5892_v29 = vrot.slane %v13687_v20, 1  ;;  %v882_v30 = vshll.u32 %v13691_v22, 16  ;;  %v886_v36 = vshrl.u32 %v13691_v22, 16  ;;  %v13695_v40 = vld [vmem:[%s14075_s25 + $0x20] sm:$0xff]  }
  0x27   : > { %v5877_v53 = vsel %vm1680_vm3, %v5874_v46, %v5876_v48  ;;  %v5879_v58 = vsel %vm1680_vm3, %v5876_v48, %v5878_v55  ;;  %v876_v24 = vrot.slane %v874_v18, 1  ;;  %v13697_v46 = vld [vmem:[%s14075_s25 + $0x28] sm:$0xff]   ;;  %v1803_v51 = vsel %vm414_vm0, %v14081_v7, 0 }
  0x28   : > { %v902_v54 = vshrl.u32 %v13695_v40, 16  ;;  %v910_v2 = vshrl.u32 %v13697_v46, 16  ;;  %v5902_v20 = vrot.slane %v13698_v8, 1 }
  0x2a   : > { %12549 = vmatmul.mubr.msk.bf16.gmra.mrb[8].mxu0 %vm341_vm1, %v5108_v1  ;;  %v13680_v1 = vld [vmem:[%s14075_s25 + $0xa0] sm:$0xff]  }
  0x2b   : > { %12203 = vmatmul.mubr.msk.bf16.gmra.mrb[12].mxu1 %vm341_vm1, %v13653_v60  ;;  %12552 = vmatprep.mubr.msk.bf16.mxu0 %vm341_vm1, %v5116_v6  ;;  %v5881_v60 = vsel %vm1680_vm3, %v5878_v55, %v5880_v57  ;;  %v5885_v6 = vsel %vm1680_vm3, %v5882_v62, %v5884_v0  ;;  %v906_v55 = vshll.u32 %v13697_v46, 16  ;;  %v13694_v57 = vld [vmem:[%s14075_s25 + $0x80] sm:$0xff]   ;;  %v13706_v46 = vld [vmem:[%s14075_s25 + $0xb0] sm:$0xff]  }
  0x2c   : > { %12206 = vmatprep.mubr.msk.bf16.mxu1 %vm341_vm1, %v13655_v63  ;;  %v13678_v63 = vld [vmem:[%s14075_s25 + $0x98] sm:$0xff]  }
  0x2d   : > { %v908_v62 = vrot.slane %v906_v55, 1  ;;  %v13711_v55 = vld [vmem:[%s14075_s25 + $0x60] sm:$0xff]  }
  0x32   : > { %12553 = vmatmul.mubr.msk.bf16.gmra.mrb[12].mxu0 %vm341_vm1, %v5124_v17  ;;  %v871_v17 = vrot.slane %v869_v10, 1 }
  0x33   : > { %12207 = vmatmul.mubr.msk.bf16.gmra.mrb[16].mxu1 %vm341_vm1, %v13657_v11  ;;  %12556 = vmatprep.mubr.msk.bf16.mxu0 %vm341_vm1, %v5132_v19  ;;  %v5886_v11 = vrot.slane %v13681_v5, 1 }
  0x34   : > { %12210 = vmatprep.mubr.msk.bf16.mxu1 %vm341_vm1, %v13659_v15  ;;  %v13685_v15 = vld [vmem:[%s14075_s25 + $0x60] sm:$0xff]   ;;  %v872_v23 = vor.u32 %v871_v17, %v867_v16  ;;  %v912_v16 = vor.u32 %v910_v2, %v908_v62 }
  0x35   : > { %v5887_v19 = vsel %vm1680_vm3, %v5884_v0, %v5886_v11  ;;  %v5889_v21 = vsel %vm1680_vm3, %v5886_v11, %v5888_v13  ;;  %v5890_v26 = vrot.slane %v13685_v15, 1  ;;  %v5898_v0 = vrot.slane %v13694_v57, 1  ;;  %v13703_v15 = vld [vmem:[%s14075_s25 + $0x40] sm:$0xff]  }
  0x36   : > { %v877_v35 = vsel %vm865_vm2, %v872_v23, %v876_v24  ;;  %v930_v22 = vshll.u32 %v13703_v15, 16 }
  0x37   : > { %v5891_v39 = vsel %vm1680_vm3, %v5888_v13, %v5890_v26 }
  0x3a   : > { %12557 = vmatmul.mubr.msk.bf16.gmra.mrb[16].mxu0 %vm341_vm1, %v5140_v32  ;;  %v878_v32 = vshrl.u32 %v13689_v9, 16 }
  0x3b   : > { %12211 = vmatmul.mubr.msk.bf16.gmra.mrb[20].mxu1 %vm341_vm1, %v13661_v25  ;;  %12560 = vmatprep.mubr.msk.bf16.mxu0 %vm341_vm1, %v5148_v34  ;;  %v13693_v25 = vld [vmem:[%s14075_s25 + $0x18] sm:$0xff]  }
  0x3c   : > { %12214 = vmatprep.mubr.msk.bf16.mxu1 %vm341_vm1, %v13663_v28  ;;  %v14219_v28 = vld [vmem:[%s15377_s1 + $0x28] sm:$0x7]  ;;  %v13692_v34 = vld [vmem:[%s14075_s25 + $0x78] sm:$0xff]   ;;  %v880_v43 = vor.u32 %v878_v32, %v876_v24  ;;  %v13702_v24 = vld [vmem:[%s14075_s25 + $0xa0] sm:$0xff]  }
  0x3d   : > { %v5896_v48 = vrot.slane %v13692_v34, 1 }
  0x3f   : > { %v5899_v11 = vsel %vm1680_vm3, %v5896_v48, %v5898_v0 }
  0x42   : > { %12561 = vmatmul.mubr.msk.bf16.gmra.mrb[20].mxu0 %vm341_vm1, %v5156_v42  ;;  %v884_v42 = vrot.slane %v882_v30, 1  ;;  %v14266_v30 = vld [vmem:[%s15377_s1 + $0xc] sm:$0x7] }
  0x43   : > { %12215 = vmatmul.mubr.msk.bf16.gmra.mrb[24].mxu1 %vm341_vm1, %v13665_v38  ;;  %12590 = vmatprep.mubr.msk.bf16.mxu0 %vm341_vm1, %v5873_v44  ;;  %v890_v38 = vshll.u32 %v13693_v25, 16 }
  0x44   : > { %12218 = vmatprep.mubr.msk.bf16.mxu1 %vm341_vm1, %v13668_v41  ;;  %v5893_v41 = vsel %vm1680_vm3, %v5890_v26, %v5892_v29  ;;  %v888_v44 = vor.u32 %v886_v36, %v884_v42  ;;  %v13707_v36 = vld [vmem:[%s14075_s25 + $0x50] sm:$0xff]  }
  0x45   : > { %v892_v45 = vrot.slane %v890_v38, 1 }
  0x4a   : > { %12591 = vmatmul.mubr.msk.bf16.vlgmr.msra.gmra.mrb[0].mxu0 %vm341_vm1, %v5875_v50  ;;  %v885_v50 = vsel %vm865_vm2, %v880_v43, %v884_v42  ;;  %v5906_v42 = vrot.slane %v13702_v24, 1 }
  0x4b   : > { %12219 = vmatmul.mubr.msk.bf16.gmra.mrb[28].mxu1 %vm341_vm1, %v13670_v47  ;;  %12639 = vmatpush3.bf16.msra.mxu0 %v6607_v52  ;;  %v5894_v47 = vrot.slane %v13690_v33, 1  ;;  %v894_v52 = vshrl.u32 %v13693_v25, 16  ;;  %v13704_v33 = vld [vmem:[%s14075_s25 + $0xa8] sm:$0xff]  }
  0x4c   : > { %12222 = vmatprep.mubr.msk.bf16.mxu1 %vm341_vm1, %v13672_v49  ;;  %12594 = vmatprep.mubr.msk.bf16.mxu0 %vm341_vm1, %v5877_v53  ;;  %v898_v49 = vshll.u32 %v13695_v40, 16  ;;  %v893_v53 = vsel %vm865_vm2, %v888_v44, %v892_v45  ;;  %v5908_v43 = vrot.slane %v13704_v33, 1  ;;  %v946_v44 = vshll.u32 %v13707_v36, 16  ;;  %v13721_v33 = vld [vmem:[%s14075_s25 + $0x88] sm:$0xff]  }
  0x4d   : > { %13623 = vmatprep.subr.msk.bf16.mxu0 %vm414_vm0, %v14219_v28  ;;  %v896_v7 = vor.u32 %v894_v52, %v892_v45  ;;  %v13708_v52 = vld [vmem:[%s14075_s25 + $0xb8] sm:$0xff]  }
  0x4e   : > { %v900_v59 = vrot.slane %v898_v49, 1  ;;  %v950_v49 = vshrl.u32 %v13707_v36, 16 }
  0x50   : > { %v904_v61 = vor.u32 %v902_v54, %v900_v59  ;;  %v901_v5 = vsel %vm865_vm2, %v896_v7, %v900_v59  ;;  %v948_v54 = vrot.slane %v946_v44, 1  ;;  %v5910_v59 = vrot.slane %v13706_v46, 1 }
  0x51   : > { %v962_v7 = vshll.u32 %v13711_v55, 16 }
  0x52   : > { %12595 = vmatmul.mubr.msk.bf16.gmra.mrb[4].mxu0 %vm341_vm1, %v5879_v58  ;;  %v5897_v58 = vsel %vm1680_vm3, %v5894_v47, %v5896_v48  ;;  %v952_v57 = vor.u32 %v950_v49, %v948_v54  ;;  %v13725_v49 = vld [vmem:[%s14075_s25 + $0x98] sm:$0xff]  }
  0x53   : > { %12223 = vmatmul.mubr.msk.bf16.gmra.mrb[32].mxu1 %vm341_vm1, %v13674_v56  ;;  %12598 = vmatprep.mubr.msk.bf16.mxu0 %vm341_vm1, %v5881_v60  ;;  %v5895_v56 = vsel %vm1680_vm3, %v5892_v29, %v5894_v47  ;;  %v13699_v60 = vld [vmem:[%s14075_s25 + $0x30] sm:$0xff]   ;;  %v964_v8 = vrot.slane %v962_v7, 1  ;;  %v14336_v7 = vld [vmem:[%s15377_s1 + $0x2c] sm:$0x7] }
  0x54   : > { %12226 = vmatprep.mubr.msk.bf16.mxu1 %vm341_vm1, %v13676_v31  ;;  %v13696_v31 = vld [vmem:[%s14075_s25 + $0x88] sm:$0xff]   ;;  %v918_v9 = vshrl.u32 %v13699_v60, 16 }
  0x5a   : > { %12599 = vmatmul.mubr.msk.bf16.gmra.mrb[8].mxu0 %vm341_vm1, %v5883_v3  ;;  %v914_v3 = vshll.u32 %v13699_v60, 16  ;;  %v5912_v60 = vrot.slane %v13708_v52, 1 }
  0x5b   : > { %12227 = vmatmul.mubr.msk.bf16.gmra.mrb[36].mxu1 %vm341_vm1, %v13678_v63  ;;  %12602 = vmatprep.mubr.msk.bf16.mxu0 %vm341_vm1, %v5885_v6  ;;  %v13701_v63 = vld [vmem:[%s14075_s25 + $0x38] sm:$0xff]   ;;  %v909_v6 = vsel %vm865_vm2, %v904_v61, %v908_v62  ;;  %v13710_v62 = vld [vmem:[%s14075_s25 + $0xc0] sm:$0xff]  }
  0x5c   : > { %12230 = vmatprep.mubr.msk.bf16.mxu1 %vm341_vm1, %v13680_v1  ;;  %v5900_v1 = vrot.slane %v13696_v31, 1  ;;  %v922_v10 = vshll.u32 %v13701_v63, 16  ;;  %v916_v13 = vrot.slane %v914_v3, 1  ;;  %v926_v25 = vshrl.u32 %v13701_v63, 16 }
  0x5d   : > { %v5911_v3 = vsel %vm1680_vm3, %v5908_v43, %v5910_v59 }
  0x5e   : > { %v920_v17 = vor.u32 %v918_v9, %v916_v13  ;;  %v924_v18 = vrot.slane %v922_v10, 1  ;;  %v917_v23 = vsel %vm865_vm2, %v912_v16, %v916_v13  ;;  %v5903_v32 = vsel %vm1680_vm3, %v5900_v1, %v5902_v20  ;;  %v13715_v9 = vld [vmem:[%s14075_s25 + $0x70] sm:$0xff]   ;;  %v13717_v13 = vld [vmem:[%s14075_s25 + $0x78] sm:$0xff]  }
  0x5f   : > { %v978_v16 = vshll.u32 %v13715_v9, 16 }
  0x60   : > { %v925_v26 = vsel %vm865_vm2, %v920_v17, %v924_v18  ;;  %v928_v38 = vor.u32 %v926_v25, %v924_v18  ;;  %v13714_v18 = vld [vmem:[%s14075_s25 + $0xd0] ss:$0 sps:$4 sm:$0x11]  }
  0x61   : > { %v980_v25 = vrot.slane %v978_v16, 1  ;;  %v13726_v16 = vld [vmem:[%s14075_s25 + $0x40] sm:$0xff]  }
  0x62   : > { %12603 = vmatmul.mubr.msk.bf16.gmra.mrb[12].mxu0 %vm341_vm1, %v5887_v19  ;;  %v13705_v19 = vld [vmem:[%s14075_s25 + $0x48] sm:$0xff]  }
  0x63   : > { %12231 = vmatmul.mubr.msk.bf16.gmra.mrb[40].mxu1 %vm341_vm1, %v13682_v12  ;;  %12606 = vmatprep.mubr.msk.bf16.mxu0 %vm341_vm1, %v5889_v21  ;;  %v5901_v12 = vsel %vm1680_vm3, %v5898_v0, %v5900_v1  ;;  %v938_v29 = vshll.u32 %v13705_v19, 16  ;;  %v942_v47 = vshrl.u32 %v13705_v19, 16  ;;  %v966_v1 = vshrl.u32 %v13711_v55, 16 }
  0x64   : > { %12234 = vmatprep.mubr.msk.bf16.mxu1 %vm341_vm1, %v13684_v14  ;;  %v13700_v14 = vld [vmem:[%s14075_s25 + $0x98] sm:$0xff]  }
  0x65   : > { %v5904_v21 = vrot.slane %v13700_v14, 1  ;;  %v940_v40 = vrot.slane %v938_v29, 1  ;;  %v5914_v14 = vrot.slane %v13710_v62, 1  ;;  %v13729_v62 = vld [vmem:[%s14075_s25 + $0xa8] sm:$0xff]  }
  0x67   : > { %v5905_v34 = vsel %vm1680_vm3, %v5902_v20, %v5904_v21 }
  0x6a   : > { %12607 = vmatmul.mubr.msk.bf16.gmra.mrb[16].mxu0 %vm341_vm1, %v5891_v39 }
  0x6b   : > { %12235 = vmatmul.mubr.msk.bf16.gmra.mrb[44].mxu1 %vm341_vm1, %v13686_v27  ;;  %12610 = vmatprep.mubr.msk.bf16.mxu0 %vm341_vm1, %v5893_v41  ;;  %v934_v27 = vshrl.u32 %v13703_v15, 16  ;;  %v13709_v41 = vld [vmem:[%s14075_s25 + $0x58] sm:$0xff]  }
  0x6c   : > { %12240 = vmatprep.mubr.msk.bf16.mxu1 %vm341_vm1, %v877_v35  ;;  %v932_v35 = vrot.slane %v930_v22, 1  ;;  %v958_v63 = vshrl.u32 %v13709_v41, 16  ;;  %v986_v22 = vshll.u32 %v13717_v13, 16 }
  0x6e   : > { %v936_v39 = vor.u32 %v934_v27, %v932_v35  ;;  %v933_v45 = vsel %vm865_vm2, %v928_v38, %v932_v35  ;;  %v990_v38 = vshrl.u32 %v13717_v13, 16 }
  0x70   : > { %v941_v48 = vsel %vm865_vm2, %v936_v39, %v940_v40 }
  0x72   : > { %12611 = vmatmul.mubr.msk.bf16.gmra.mrb[20].mxu0 %vm341_vm1, %v5895_v56  ;;  %v944_v56 = vor.u32 %v942_v47, %v940_v40 }
  0x73   : > { %12241 = vmatmul.mubr.msk.bf16.vlgmr.msra.gmra.mrb[0].mxu1 %vm341_vm1, %v885_v50  ;;  %12614 = vmatprep.mubr.msk.bf16.mxu0 %vm341_vm1, %v5897_v58  ;;  %v954_v50 = vshll.u32 %v13709_v41, 16  ;;  %v13713_v58 = vld [vmem:[%s14075_s25 + $0x68] sm:$0xff]   ;;  %v1002_v41 = vshll.u32 %v13721_v33, 16 }
  0x74   : > { %12244 = vmatprep.mubr.msk.bf16.mxu1 %vm341_vm1, %v893_v53  ;;  %12289 = vmatpush3.bf16.msra.mxu1 %v1803_v51  ;;  %v5907_v51 = vsel %vm1680_vm3, %v5904_v21, %v5906_v42  ;;  %v5909_v53 = vsel %vm1680_vm3, %v5906_v42, %v5908_v43  ;;  %v949_v61 = vsel %vm865_vm2, %v944_v56, %v948_v54  ;;  %v970_v2 = vshll.u32 %v13713_v58, 16  ;;  %v13716_v43 = vld [vmem:[%s14075_s25 + $0x18] sm:$0xff]  }
  0x75   : > { %13615 = vmatprep.subr.msk.bf16.mxu1 %vm414_vm0, %v14266_v30  ;;  %v956_v31 = vrot.slane %v954_v50, 1  ;;  %v974_v19 = vshrl.u32 %v13713_v58, 16  ;;  %v982_v21 = vshrl.u32 %v13715_v9, 16  ;;  %v1018_v56 = vshll.u32 %v13725_v49, 16 }
  0x77   : > { %v957_v0 = vsel %vm865_vm2, %v952_v57, %v956_v31  ;;  %v960_v10 = vor.u32 %v958_v63, %v956_v31  ;;  %v984_v29 = vor.u32 %v982_v21, %v980_v25  ;;  %v7421_v57 = vsel %vm414_vm0, %v14219_v28, 0  ;;  %v13720_v31 = vld [vmem:[%s14075_s25 + $0x28] sm:$0xff]  }
  0x78   : > { %v1020_v28 = vrot.slane %v1018_v56, 1  ;;  %v2417_v56 = vsel %vm414_vm0, %v14266_v30, 0  ;;  %v13748_v30 = vld [vmem:[%s14075_s25 + $0x30] sm:$0xff]  }
  0x79   : > { %v965_v17 = vsel %vm865_vm2, %v960_v10, %v964_v8  ;;  %v13731_v10 = vld [vmem:[%s14075_s25 + $0xb0] sm:$0xff]  }
  0x7a   : > { %12615 = vmatmul.mubr.msk.bf16.gmra.mrb[24].mxu0 %vm341_vm1, %v5899_v11  ;;  %v968_v11 = vor.u32 %v966_v1, %v964_v8  ;;  %v1022_v1 = vshrl.u32 %v13725_v49, 16  ;;  %v13724_v8 = vld [vmem:[%s14075_s25 + $0x38] sm:$0xff]   ;;  %v13736_v49 = vld [vmem:[%s14075_s25 + $0x68] sm:$0xff]  }
  0x7b   : > { %12245 = vmatmul.mubr.msk.bf16.gmra.mrb[4].mxu1 %vm341_vm1, %v901_v5  ;;  %12618 = vmatprep.mubr.msk.bf16.mxu0 %vm341_vm1, %v5901_v12  ;;  %v13712_v5 = vld [vmem:[%s14075_s25 + $0xc8] sm:$0xff]   ;;  %v972_v12 = vrot.slane %v970_v2, 1  ;;  %v13722_v2 = vld [vmem:[%s14075_s25 + $0x30] sm:$0xff]  }
  0x7c   : > { %12248 = vmatprep.mubr.msk.bf16.mxu1 %vm341_vm1, %v909_v6  ;;  %v5913_v6 = vsel %vm1680_vm3, %v5910_v59, %v5912_v60  ;;  %v5916_v15 = vrot.slane %v13712_v5, 1  ;;  %v13727_v59 = vld [vmem:[%s14075_s25 + $0xa0] sm:$0xff]  }
  0x7d   : > { %v973_v20 = vsel %vm865_vm2, %v968_v11, %v972_v12  ;;  %v976_v27 = vor.u32 %v974_v19, %v972_v12  ;;  %v1026_v63 = vshll.u32 %v13727_v59, 16  ;;  %v1030_v5 = vshrl.u32 %v13727_v59, 16 }
  0x7e   : > { %v5917_v24 = vsel %vm1680_vm3, %v5914_v14, %v5916_v15  ;;  %v1024_v11 = vor.u32 %v1022_v1, %v1020_v28  ;;  %v1692_v1 = vrot.slane %v13748_v30, 1 }
  0x7f   : > { %v981_v36 = vsel %vm865_vm2, %v976_v27, %v980_v25  ;;  %v1028_v9 = vrot.slane %v1026_v63, 1 }
  0x81   : > { %v1032_v12 = vor.u32 %v1030_v5, %v1028_v9  ;;  %v13747_v5 = vld [vmem:[%s14075_s25 + $0x90] sm:$0xff]  }
  0x82   : > { %12619 = vmatmul.mubr.msk.bf16.gmra.mrb[28].mxu0 %vm341_vm1, %v5903_v32  ;;  %v988_v32 = vrot.slane %v986_v22, 1  ;;  %v13735_v22 = vld [vmem:[%s14075_s25 + $0xc0] ss:$0 sps:$4 sm:$0x11]  }
  0x83   : > { %12249 = vmatmul.mubr.msk.bf16.gmra.mrb[8].mxu1 %vm341_vm1, %v917_v23  ;;  %12622 = vmatprep.mubr.msk.bf16.mxu0 %vm341_vm1, %v5905_v34  ;;  %v5915_v23 = vsel %vm1680_vm3, %v5912_v60, %v5914_v14  ;;  %v5918_v34 = vrot.slane %v13714_v18, 1  ;;  %v13733_v14 = vld [vmem:[%s14075_s25 + $0xb8] sm:$0xff]   ;;  %v1038_v18 = vshrl.u32 %v13729_v62, 16 }
  0x84   : > { %12252 = vmatprep.mubr.msk.bf16.mxu1 %vm341_vm1, %v925_v26  ;;  %v13719_v26 = vld [vmem:[%s14075_s25 + $0x80] sm:$0xff]   ;;  %v989_v39 = vsel %vm865_vm2, %v984_v29, %v988_v32  ;;  %v992_v46 = vor.u32 %v990_v38, %v988_v32  ;;  %v1050_v21 = vshll.u32 %v13733_v14, 16  ;;  %v13730_v29 = vld [vmem:[%s14075_s25 + $0x50] sm:$0xff]   ;;  %v1054_v32 = vshrl.u32 %v13733_v14, 16 }
  0x85   : > { %v994_v35 = vshll.u32 %v13719_v26, 16  ;;  %v998_v40 = vshrl.u32 %v13719_v26, 16  ;;  %v5919_v42 = vsel %vm1680_vm3, %v5916_v15, %v5918_v34  ;;  %v1042_v15 = vshll.u32 %v13731_v10, 16  ;;  %v13737_v34 = vld [vmem:[%s14075_s25] sm:$0xfe]   ;;  %v13756_v14 = vld [vmem:[%s14075_s25 + $0x50] sm:$0xff]  }
  0x86   : > { %v1052_v27 = vrot.slane %v1050_v21, 1  ;;  %v13760_v21 = vld [vmem:[%s14075_s25 + $0x60] sm:$0xff]  }
  0x87   : > { %v996_v44 = vrot.slane %v994_v35, 1 }
  0x89   : > { %v1000_v47 = vor.u32 %v998_v40, %v996_v44  ;;  %v997_v52 = vsel %vm865_vm2, %v992_v46, %v996_v44  ;;  %v1056_v40 = vor.u32 %v1054_v32, %v1052_v27  ;;  %v13740_v44 = vld [vmem:[%s14075_s25 + $0x10] sm:$0xff]   ;;  %v1704_v32 = vrot.slane %v13760_v21, 1 }
  0x8a   : > { %12623 = vmatmul.mubr.msk.bf16.gmra.mrb[32].mxu0 %vm341_vm1, %v5907_v51  ;;  %v13718_v51 = vld [vmem:[%s14075_s25 + $0x20] sm:$0xff]  }
  0x8b   : > { %12253 = vmatmul.mubr.msk.bf16.gmra.mrb[12].mxu1 %vm341_vm1, %v933_v45  ;;  %12626 = vmatprep.mubr.msk.bf16.mxu0 %vm341_vm1, %v5909_v53  ;;  %v13723_v45 = vld [vmem:[%s14075_s25 + $0x90] sm:$0xff]   ;;  %v1006_v53 = vshrl.u32 %v13721_v33, 16  ;;  %v1058_v33 = vshll.u32 %v13735_v22, 16 }
  0x8c   : > { %12256 = vmatprep.mubr.msk.bf16.mxu1 %vm341_vm1, %v941_v48  ;;  %v1004_v48 = vrot.slane %v1002_v41, 1  ;;  %v1010_v50 = vshll.u32 %v13723_v45, 16  ;;  %v1014_v55 = vshrl.u32 %v13723_v45, 16  ;;  %v13734_v45 = vld [vmem:[%s14075_s25 + $0x60] sm:$0xff]   ;;  %v13755_v22 = vld [vmem:[%s14075_s25 + $0xb0] sm:$0xff]  }
  0x8d   : > { %v1060_v41 = vrot.slane %v1058_v33, 1 }
  0x8e   : > { %v1005_v54 = vsel %vm865_vm2, %v1000_v47, %v1004_v48  ;;  %v1012_v58 = vrot.slane %v1010_v50, 1  ;;  %v1008_v60 = vor.u32 %v1006_v53, %v1004_v48  ;;  %v13742_v47 = vld [vmem:[%s14075_s25 + $0x18] sm:$0xff]   ;;  %v1684_v50 = vrot.slane %v13740_v44, 1  ;;  %v13739_v53 = vld [vmem:[%s14075_s25 + $0x70] sm:$0xff]   ;;  %v13768_v44 = vld [vmem:[%s14075_s25 + $0x28] sm:$0xff]  }
  0x8f   : > { %v1061_v46 = vsel %vm865_vm2, %v1056_v40, %v1060_v41  ;;  %v13767_v40 = vld [vmem:[%s14075_s25 + $0x78] sm:$0xff]  }
  0x92   : > { %12627 = vmatmul.mubr.msk.bf16.gmra.mrb[36].mxu0 %vm341_vm1, %v5911_v3 }
  0x93   : > { %12257 = vmatmul.mubr.msk.bf16.gmra.mrb[16].mxu1 %vm341_vm1, %v949_v61  ;;  %12630 = vmatprep.mubr.msk.bf16.mxu0 %vm341_vm1, %v5913_v6  ;;  %v1016_v61 = vor.u32 %v1014_v55, %v1012_v58  ;;  %v1034_v6 = vshll.u32 %v13729_v62, 16  ;;  %v13741_v55 = vld [vmem:[%s14075_s25 + $0x78] sm:$0xff]  }
  0x94   : > { %12260 = vmatprep.mubr.msk.bf16.mxu1 %vm341_vm1, %v957_v0  ;;  %v1013_v0 = vsel %vm865_vm2, %v1008_v60, %v1012_v58  ;;  %v14393_v58 = vld [vmem:[%s15377_s1 + $0x10] sm:$0x7]  ;;  %v13750_v62 = vld [vmem:[%s14075_s25 + $0x38] sm:$0xff]  }
  0x95   : > { %v1021_v3 = vsel %vm865_vm2, %v1016_v61, %v1020_v28  ;;  %v1036_v13 = vrot.slane %v1034_v6, 1  ;;  %v13743_v61 = vld [vmem:[%s14075_s25 + $0x80] sm:$0xff]  }
  0x97   : > { %v1037_v19 = vsel %vm865_vm2, %v1032_v12, %v1036_v13  ;;  %v1040_v25 = vor.u32 %v1038_v18, %v1036_v13  ;;  %v13751_v13 = vld [vmem:[%s14075_s25 + $0xa0] sm:$0xff]  }
  0x9a   : > { %12631 = vmatmul.mubr.msk.bf16.gmra.mrb[40].mxu0 %vm341_vm1, %v5915_v23  ;;  %v13728_v23 = vld [vmem:[%s14075_s25 + $0x48] sm:$0xff]  }
  0x9b   : > { %12261 = vmatmul.mubr.msk.bf16.gmra.mrb[20].mxu1 %vm341_vm1, %v965_v17  ;;  %12634 = vmatprep.mubr.msk.bf16.mxu0 %vm341_vm1, %v5917_v24  ;;  %v1029_v17 = vsel %vm865_vm2, %v1024_v11, %v1028_v9  ;;  %v1044_v24 = vrot.slane %v1042_v15, 1 }
  0x9c   : > { %12264 = vmatprep.mubr.msk.bf16.mxu1 %vm341_vm1, %v973_v20  ;;  %v1046_v20 = vshrl.u32 %v13731_v10, 16  ;;  %v13749_v10 = vld [vmem:[%s14075_s25 + $0x98] sm:$0xff]  }
  0x9d   : > { %v1045_v35 = vsel %vm865_vm2, %v1040_v25, %v1044_v24  ;;  %v13757_v25 = vld [vmem:[%s14075_s25 + $0xb8] sm:$0xff]  }
  0x9e   : > { %v1048_v26 = vor.u32 %v1046_v20, %v1044_v24 }
  0xa0   : > { %v1053_v38 = vsel %vm865_vm2, %v1048_v26, %v1052_v27  ;;  %v13765_v26 = vld [vmem:[%s14075_s25 + $0x18] sm:$0xff]  }
  0xa1   : > { %v7155_v33 = vshll.u32 %v13765_v26, 16 }
  0xa2   : > { %12635 = vmatmul.mubr.msk.bf16.gmra.mrb[44].mxu0 %vm341_vm1, %v5919_v42  ;;  %v1681_v42 = vrot.slane %v13737_v34, 1 }
  0xa3   : > { %12265 = vmatmul.mubr.msk.bf16.gmra.mrb[24].mxu1 %vm341_vm1, %v981_v36  ;;  %12640 = vmatprep.mubr.msk.bf16.mxu0 %vm341_vm1, %v13716_v43  ;;  %v13732_v36 = vld [vmem:[%s14075_s25 + $0x58] sm:$0xff]  }
  0xa4   : > { %12268 = vmatprep.mubr.msk.bf16.mxu1 %vm341_vm1, %v989_v39  ;;  %v13738_v39 = vld [vmem:[%s14075_s25 + $0x8] sm:$0xff]  }
  0xa5   : > { %v1682_v43 = vrot.slane %v13738_v39, 1 }
  0xa7   : > { %v1683_v48 = vsel %vm1680_vm3, %v1681_v42, %v1682_v43  ;;  %v13761_v42 = vld [vmem:[%s14075_s25 + $0xc8] sm:$0xff]  }
  0xaa   : > { %12641 = vmatmul.mubr.msk.bf16.vlgmr.msra.gmra.mrb[0].mxu0 %vm341_vm1, %v13718_v51  ;;  %v1686_v51 = vrot.slane %v13742_v47, 1  ;;  %v13770_v47 = vld [vmem:[%s14075_s25 + $0x30] sm:$0xff]  }
  0xab   : > { %12269 = vmatmul.mubr.msk.bf16.gmra.mrb[28].mxu1 %vm341_vm1, %v997_v52  ;;  %12689 = vmatpush3.bf16.msra.mxu0 %v7421_v57  ;;  %v13744_v52 = vld [vmem:[%s14075_s25 + $0x20] sm:$0xff]   ;;  %v13746_v57 = vld [vmem:[%s14075_s25 + $0x28] sm:$0xff]  }
  0xac   : > { %12272 = vmatprep.mubr.msk.bf16.mxu1 %vm341_vm1, %v1005_v54  ;;  %12644 = vmatprep.mubr.msk.bf16.mxu0 %vm341_vm1, %v13720_v31  ;;  %v1685_v54 = vsel %vm1680_vm3, %v1682_v43, %v1684_v50  ;;  %v1687_v31 = vsel %vm1680_vm3, %v1684_v50, %v1686_v51  ;;  %v1688_v59 = vrot.slane %v13744_v52, 1  ;;  %v1690_v60 = vrot.slane %v13746_v57, 1  ;;  %v13763_v52 = vld [vmem:[%s14075_s25 + $0xd0] sm:$0xff]  }
  0xad   : > { %13624 = vmatprep.subr.msk.bf16.mxu0 %vm414_vm0, %v14336_v7  ;;  %v7157_v43 = vrot.slane %v7155_v33, 1  ;;  %v7176_v57 = vshll.u32 %v13770_v47, 16  ;;  %v13779_v33 = vld [vmem:[%s14075_s25 + $0xa8] sm:$0xff]  }
  0xae   : > { %v1689_v28 = vsel %vm1680_vm3, %v1686_v51, %v1688_v59  ;;  %v1691_v63 = vsel %vm1680_vm3, %v1688_v59, %v1690_v60  ;;  %v1693_v6 = vsel %vm1680_vm3, %v1690_v60, %v1692_v1  ;;  %v7168_v51 = vshll.u32 %v13768_v44, 16  ;;  %v13772_v60 = vld [vmem:[%s14075_s25 + $0x38] sm:$0xff]  }
  0xb2   : > { %12645 = vmatmul.mubr.msk.bf16.gmra.mrb[4].mxu0 %vm341_vm1, %v13722_v2  ;;  %v1694_v2 = vrot.slane %v13750_v62, 1  ;;  %v7170_v62 = vrot.slane %v7168_v51, 1 }
  0xb3   : > { %12273 = vmatmul.mubr.msk.bf16.gmra.mrb[32].mxu1 %vm341_vm1, %v1013_v0  ;;  %12648 = vmatprep.mubr.msk.bf16.mxu0 %vm341_vm1, %v13724_v8  ;;  %v13745_v0 = vld [vmem:[%s14075_s25 + $0x88] sm:$0xff]  }
  0xb4   : > { %12276 = vmatprep.mubr.msk.bf16.mxu1 %vm341_vm1, %v1021_v3  ;;  %v13752_v3 = vld [vmem:[%s14075_s25 + $0x40] sm:$0xff]   ;;  %v13754_v8 = vld [vmem:[%s14075_s25 + $0x48] sm:$0xff]   ;;  %v1695_v9 = vsel %vm1680_vm3, %v1692_v1, %v1694_v2  ;;  %v8088_v1 = vsel %vm414_vm0, %v14336_v7, 0 }
  0xb5   : > { %v1696_v11 = vrot.slane %v13752_v3, 1  ;;  %v1698_v12 = vrot.slane %v13754_v8, 1  ;;  %v7180_v3 = vshrl.u32 %v13770_v47, 16  ;;  %v7184_v8 = vshll.u32 %v13772_v60, 16 }
  0xb7   : > { %v1697_v15 = vsel %vm1680_vm3, %v1694_v2, %v1696_v11  ;;  %v1699_v18 = vsel %vm1680_vm3, %v1696_v11, %v1698_v12  ;;  %v7178_v2 = vrot.slane %v7176_v57, 1 }
  0xb9   : > { %v7182_v21 = vor.u32 %v7180_v3, %v7178_v2 }
  0xba   : > { %12649 = vmatmul.mubr.msk.bf16.gmra.mrb[8].mxu0 %vm341_vm1, %v13726_v16  ;;  %v13753_v16 = vld [vmem:[%s14075_s25 + $0xa8] sm:$0xff]  }
  0xbb   : > { %12277 = vmatmul.mubr.msk.bf16.gmra.mrb[36].mxu1 %vm341_vm1, %v1029_v17  ;;  %12652 = vmatprep.mubr.msk.bf16.mxu0 %vm341_vm1, %v13728_v23  ;;  %v13758_v17 = vld [vmem:[%s14075_s25 + $0x58] sm:$0xff]   ;;  %v13762_v23 = vld [vmem:[%s14075_s25 + $0x68] sm:$0xff]  }
  0xbc   : > { %12280 = vmatprep.mubr.msk.bf16.mxu1 %vm341_vm1, %v1037_v19  ;;  %v1700_v19 = vrot.slane %v13756_v14, 1  ;;  %v1702_v20 = vrot.slane %v13758_v17, 1  ;;  %v1706_v34 = vrot.slane %v13762_v23, 1  ;;  %v14481_v17 = vld [vmem:[%s15377_s1 + $0x30] sm:$0x7] }
  0xbe   : > { %v1701_v24 = vsel %vm1680_vm3, %v1698_v12, %v1700_v19  ;;  %v1703_v27 = vsel %vm1680_vm3, %v1700_v19, %v1702_v20  ;;  %v1705_v41 = vsel %vm1680_vm3, %v1702_v20, %v1704_v32  ;;  %v13775_v12 = vld [vmem:[%s14075_s25 + $0x98] sm:$0xff]   ;;  %v13777_v20 = vld [vmem:[%s14075_s25 + $0xa0] sm:$0xff]  }
  0xbf   : > { %v1718_v19 = vrot.slane %v13775_v12, 1 }
  0xc2   : > { %12653 = vmatmul.mubr.msk.bf16.gmra.mrb[12].mxu0 %vm341_vm1, %v13730_v29  ;;  %v13766_v29 = vld [vmem:[%s14075_s25 + $0x20] sm:$0xff]  }
  0xc3   : > { %12281 = vmatmul.mubr.msk.bf16.gmra.mrb[40].mxu1 %vm341_vm1, %v1045_v35  ;;  %12656 = vmatprep.mubr.msk.bf16.mxu0 %vm341_vm1, %v13732_v36  ;;  %v13764_v35 = vld [vmem:[%s14075_s25 + $0x70] sm:$0xff]   ;;  %v13759_v36 = vld [vmem:[%s14075_s25 + $0xc0] sm:$0xff]   ;;  %v7160_v39 = vshll.u32 %v13766_v29, 16  ;;  %v7164_v50 = vshrl.u32 %v13766_v29, 16 }
  0xc4   : > { %12284 = vmatprep.mubr.msk.bf16.mxu1 %vm341_vm1, %v1053_v38  ;;  %v7153_v38 = vshrl.u32 %v13765_v26, 16 }
  0xca   : > { %12657 = vmatmul.mubr.msk.bf16.gmra.mrb[16].mxu0 %vm341_vm1, %v13734_v45  ;;  %v1707_v45 = vsel %vm1680_vm3, %v1704_v32, %v1706_v34  ;;  %v1720_v32 = vrot.slane %v13777_v20, 1 }
  0xcb   : > { %12285 = vmatmul.mubr.msk.bf16.gmra.mrb[44].mxu1 %vm341_vm1, %v1061_v46  ;;  %12660 = vmatprep.mubr.msk.bf16.mxu0 %vm341_vm1, %v13736_v49  ;;  %v1708_v46 = vrot.slane %v13764_v35, 1  ;;  %v7162_v49 = vrot.slane %v7160_v39, 1 }
  0xcc   : > { %12290 = vmatprep.mubr.msk.bf16.mxu1 %vm341_vm1, %v1683_v48  ;;  %v1710_v48 = vrot.slane %v13767_v40, 1  ;;  %v1722_v40 = vrot.slane %v13779_v33, 1  ;;  %v1721_v47 = vsel %vm1680_vm3, %v1718_v19, %v1720_v32  ;;  %v13794_v33 = vld [vmem:[%s14075_s25 + $0x90] sm:$0xff]  }
  0xce   : > { %v1711_v59 = vsel %vm1680_vm3, %v1708_v46, %v1710_v48 }
  0xd2   : > { %12661 = vmatmul.mubr.msk.bf16.gmra.mrb[20].mxu0 %vm341_vm1, %v13739_v53  ;;  %v7158_v53 = vor.u32 %v7157_v43, %v7153_v38 }
  0xd3   : > { %12291 = vmatmul.mubr.msk.bf16.vlgmr.msra.gmra.mrb[0].mxu1 %vm341_vm1, %v1685_v54  ;;  %12664 = vmatprep.mubr.msk.bf16.mxu0 %vm341_vm1, %v13741_v55  ;;  %v13769_v54 = vld [vmem:[%s14075_s25 + $0x80] sm:$0xff]   ;;  %v7172_v55 = vshrl.u32 %v13768_v44, 16 }
  0xd4   : > { %12294 = vmatprep.mubr.msk.bf16.mxu1 %vm341_vm1, %v1687_v31  ;;  %12339 = vmatpush3.bf16.msra.mxu1 %v2417_v56  ;;  %v1709_v56 = vsel %vm1680_vm3, %v1706_v34, %v1708_v46  ;;  %v13771_v31 = vld [vmem:[%s14075_s25 + $0x88] sm:$0xff]   ;;  %v7163_v30 = vsel %vm865_vm2, %v7158_v53, %v7162_v49  ;;  %v13782_v46 = vld [vmem:[%s14075_s25 + $0x60] sm:$0xff]  }
  0xd5   : > { %13616 = vmatprep.subr.msk.bf16.mxu1 %vm414_vm0, %v14393_v58 }
  0xda   : > { %12665 = vmatmul.mubr.msk.bf16.gmra.mrb[24].mxu0 %vm341_vm1, %v13743_v61  ;;  %v1712_v61 = vrot.slane %v13769_v54, 1 }
  0xdb   : > { %12295 = vmatmul.mubr.msk.bf16.gmra.mrb[4].mxu1 %vm341_vm1, %v1689_v28  ;;  %12668 = vmatprep.mubr.msk.bf16.mxu0 %vm341_vm1, %v13745_v0  ;;  %v13774_v28 = vld [vmem:[%s14075_s25 + $0x40] sm:$0xff]   ;;  %v7166_v0 = vor.u32 %v7164_v50, %v7162_v49 }
  0xdc   : > { %12298 = vmatprep.mubr.msk.bf16.mxu1 %vm341_vm1, %v1691_v63  ;;  %v1714_v63 = vrot.slane %v13771_v31, 1  ;;  %v7192_v11 = vshll.u32 %v13774_v28, 16  ;;  %v7196_v26 = vshrl.u32 %v13774_v28, 16 }
  0xdd   : > { %v7171_v14 = vsel %vm865_vm2, %v7166_v0, %v7170_v62 }
  0xde   : > { %v7194_v23 = vrot.slane %v7192_v11, 1  ;;  %v13788_v11 = vld [vmem:[%s14075_s25 + $0x78] sm:$0xff]  }
  0xe2   : > { %12669 = vmatmul.mubr.msk.bf16.gmra.mrb[28].mxu0 %vm341_vm1, %v13747_v5  ;;  %v13773_v5 = vld [vmem:[%s14075_s25 + $0x90] sm:$0xff]  }
  0xe3   : > { %12299 = vmatmul.mubr.msk.bf16.gmra.mrb[8].mxu1 %vm341_vm1, %v1693_v6  ;;  %12672 = vmatprep.mubr.msk.bf16.mxu0 %vm341_vm1, %v13749_v10  ;;  %v7174_v6 = vor.u32 %v7172_v55, %v7170_v62  ;;  %v1713_v10 = vsel %vm1680_vm3, %v1710_v48, %v1712_v61  ;;  %v1723_v48 = vsel %vm1680_vm3, %v1720_v32, %v1722_v40  ;;  %v13785_v62 = vld [vmem:[%s14075_s25 + $0xc0] ss:$0 sps:$4 sm:$0x11]  }
  0xe4   : > { %12302 = vmatprep.mubr.msk.bf16.mxu1 %vm341_vm1, %v1695_v9  ;;  %v7188_v9 = vshrl.u32 %v13772_v60, 16 }
  0xe5   : > { %v7179_v7 = vsel %vm865_vm2, %v7174_v6, %v7178_v2 }
  0xea   : > { %12673 = vmatmul.mubr.msk.bf16.gmra.mrb[32].mxu0 %vm341_vm1, %v13751_v13  ;;  %v1715_v13 = vsel %vm1680_vm3, %v1712_v61, %v1714_v63 }
  0xeb   : > { %12303 = vmatmul.mubr.msk.bf16.gmra.mrb[12].mxu1 %vm341_vm1, %v1697_v15  ;;  %12676 = vmatprep.mubr.msk.bf16.mxu0 %vm341_vm1, %v13753_v16  ;;  %v1716_v15 = vrot.slane %v13773_v5, 1  ;;  %v13776_v16 = vld [vmem:[%s14075_s25 + $0x48] sm:$0xff]  }
  0xec   : > { %12306 = vmatprep.mubr.msk.bf16.mxu1 %vm341_vm1, %v1699_v18  ;;  %v7186_v18 = vrot.slane %v7184_v8, 1  ;;  %v1728_v8 = vrot.slane %v13785_v62, 1  ;;  %v13799_v62 = vld [vmem:[%s14075_s25 + $0x38] sm:$0xff]  }
  0xed   : > { %v1719_v29 = vsel %vm1680_vm3, %v1716_v15, %v1718_v19  ;;  %v7248_v19 = vshll.u32 %v13788_v11, 16 }
  0xee   : > { %v7187_v34 = vsel %vm865_vm2, %v7182_v21, %v7186_v18 }
  0xf2   : > { %12677 = vmatmul.mubr.msk.bf16.gmra.mrb[36].mxu0 %vm341_vm1, %v13755_v22  ;;  %v7190_v22 = vor.u32 %v7188_v9, %v7186_v18 }
  0xf3   : > { %12307 = vmatmul.mubr.msk.bf16.gmra.mrb[16].mxu1 %vm341_vm1, %v1701_v24  ;;  %12680 = vmatprep.mubr.msk.bf16.mxu0 %vm341_vm1, %v13757_v25  ;;  %v13778_v24 = vld [vmem:[%s14075_s25 + $0x50] sm:$0xff]   ;;  %v1717_v25 = vsel %vm1680_vm3, %v1714_v63, %v1716_v15 }
  0xf4   : > { %12310 = vmatprep.mubr.msk.bf16.mxu1 %vm341_vm1, %v1703_v27  ;;  %v7200_v27 = vshll.u32 %v13776_v16, 16  ;;  %v7195_v35 = vsel %vm865_vm2, %v7190_v22, %v7194_v23  ;;  %v7208_v38 = vshll.u32 %v13778_v24, 16  ;;  %v7212_v49 = vshrl.u32 %v13778_v24, 16 }
  0xf5   : > { %v7252_v22 = vshrl.u32 %v13788_v11, 16  ;;  %v7250_v24 = vrot.slane %v7248_v19, 1  ;;  %v13803_v11 = vld [vmem:[%s14075_s25 + $0x48] sm:$0xff]  }
  0xf6   : > { %v7202_v39 = vrot.slane %v7200_v27, 1  ;;  %v7210_v44 = vrot.slane %v7208_v38, 1  ;;  %v13789_v27 = vld [vmem:[%s14075_s25 + $0x10] sm:$0xff]  }
  0xf8   : > { %v7214_v60 = vor.u32 %v7212_v49, %v7210_v44  ;;  %v13798_v49 = vld [vmem:[%s14075_s25 + $0xa0] sm:$0xff]  }
  0xfa   : > { %12681 = vmatmul.mubr.msk.bf16.gmra.mrb[40].mxu0 %vm341_vm1, %v13759_v36  ;;  %v7204_v36 = vshrl.u32 %v13776_v16, 16  ;;  %v13787_v16 = vld [vmem:[%s14075_s25 + $0x8] sm:$0xff]  }
  0xfb   : > { %12311 = vmatmul.mubr.msk.bf16.gmra.mrb[20].mxu1 %vm341_vm1, %v1705_v41  ;;  %12684 = vmatprep.mubr.msk.bf16.mxu0 %vm341_vm1, %v13761_v42  ;;  %v13780_v41 = vld [vmem:[%s14075_s25 + $0x58] sm:$0xff]   ;;  %v7198_v42 = vor.u32 %v7196_v26, %v7194_v23 }
  0xfc   : > { %12314 = vmatprep.mubr.msk.bf16.mxu1 %vm341_vm1, %v1707_v45  ;;  %v7206_v43 = vor.u32 %v7204_v36, %v7202_v39  ;;  %v13781_v45 = vld [vmem:[%s14075_s25 + $0xb0] sm:$0xff]   ;;  %v7216_v50 = vshll.u32 %v13780_v41, 16  ;;  %v7220_v51 = vshrl.u32 %v13780_v41, 16 }
  0xfd   : > { %v7203_v53 = vsel %vm865_vm2, %v7198_v42, %v7202_v39  ;;  %v1724_v55 = vrot.slane %v13781_v45, 1  ;;  %v14540_v39 = vld [vmem:[%s15377_s1 + $0x14] sm:$0x7] }
  0xfe   : > { %v7211_v54 = vsel %vm865_vm2, %v7206_v43, %v7210_v44  ;;  %v7218_v57 = vrot.slane %v7216_v50, 1  ;;  %v7272_v43 = vshll.u32 %v13794_v33, 16  ;;  %v13796_v44 = vld [vmem:[%s14075_s25 + $0x98] sm:$0xff]   ;;  %v13795_v50 = vld [vmem:[%s14075_s25 + $0x28] sm:$0xff]  }
  0xff   : > { %v1725_v63 = vsel %vm1680_vm3, %v1722_v40, %v1724_v55 }
 0x100   : > { %v7222_v61 = vor.u32 %v7220_v51, %v7218_v57  ;;  %v7219_v5 = vsel %vm865_vm2, %v7214_v60, %v7218_v57  ;;  %v7276_v51 = vshrl.u32 %v13794_v33, 16  ;;  %v13797_v60 = vld [vmem:[%s14075_s25 + $0x30] sm:$0xff]  }
 0x102   : > { %12685 = vmatmul.mubr.msk.bf16.gmra.mrb[44].mxu0 %vm341_vm1, %v13763_v52  ;;  %v13783_v52 = vld [vmem:[%s14075_s25 + $0xb8] sm:$0xff]  }
 0x103   : > { %12315 = vmatmul.mubr.msk.bf16.gmra.mrb[24].mxu1 %vm341_vm1, %v1709_v56  ;;  %12690 = vmatprep.mubr.msk.bf16.mxu0 %vm341_vm1, %v7163_v30  ;;  %v7224_v56 = vshll.u32 %v13782_v46, 16  ;;  %v1726_v31 = vrot.slane %v13783_v52, 1  ;;  %v13786_v30 = vld [vmem:[%s14075_s25 + $0x70] sm:$0xff]   ;;  %v7280_v52 = vshll.u32 %v13796_v44, 16 }
 0x104   : > { %12318 = vmatprep.mubr.msk.bf16.mxu1 %vm341_vm1, %v1711_v59  ;;  %v13784_v59 = vld [vmem:[%s14075_s25 + $0x68] sm:$0xff]   ;;  %v7240_v9 = vshll.u32 %v13786_v30, 16  ;;  %v7244_v18 = vshrl.u32 %v13786_v30, 16 }
 0x105   : > { %v7226_v28 = vrot.slane %v7224_v56, 1  ;;  %v1727_v0 = vsel %vm1680_vm3, %v1724_v55, %v1726_v31  ;;  %v7232_v2 = vshll.u32 %v13784_v59, 16  ;;  %v7236_v3 = vshrl.u32 %v13784_v59, 16 }
 0x106   : > { %v1729_v15 = vsel %vm1680_vm3, %v1726_v31, %v1728_v8  ;;  %v7284_v55 = vshrl.u32 %v13796_v44, 16  ;;  %v7288_v56 = vshll.u32 %v13798_v49, 16  ;;  %v7282_v57 = vrot.slane %v7280_v52, 1  ;;  %v13800_v31 = vld [vmem:[%s14075_s25 + $0xa8] sm:$0xff]   ;;  %v13804_v8 = vld [vmem:[%s14075_s25 + $0xb8] sm:$0xff]   ;;  %v13813_v52 = vld [vmem:[%s14075_s25 + $0x70] sm:$0xff]  }
 0x107   : > { %v7227_v6 = vsel %vm865_vm2, %v7222_v61, %v7226_v28  ;;  %v7316_v19 = vshrl.u32 %v13804_v8, 16 }
 0x108   : > { %v7286_v30 = vor.u32 %v7284_v55, %v7282_v57  ;;  %v7290_v61 = vrot.slane %v7288_v56, 1  ;;  %v13816_v55 = vld [vmem:[%s14075_s25 + $0x78] sm:$0xff]  }
 0x10a   : > { %12691 = vmatmul.mubr.msk.bf16.vlgmr.msra.gmra.mrb[0].mxu0 %vm341_vm1, %v7171_v14  ;;  %v7242_v14 = vrot.slane %v7240_v9, 1 }
 0x10b   : > { %12319 = vmatmul.mubr.msk.bf16.gmra.mrb[28].mxu1 %vm341_vm1, %v1713_v10  ;;  %12739 = vmatpush3.bf16.msra.mxu0 %v8088_v1  ;;  %v7228_v1 = vshrl.u32 %v13782_v46, 16  ;;  %v7234_v10 = vrot.slane %v7232_v2, 1  ;;  %v13793_v46 = vld [vmem:[%s14075_s25 + $0x20] sm:$0xff]   ;;  %v7291_v2 = vsel %vm865_vm2, %v7286_v30, %v7290_v61  ;;  %v13819_v30 = vld [vmem:[%s14075_s25 + $0x30] sm:$0xff]  }
 0x10c   : > { %12322 = vmatprep.mubr.msk.bf16.mxu1 %vm341_vm1, %v1715_v13  ;;  %12694 = vmatprep.mubr.msk.bf16.mxu0 %vm341_vm1, %v7179_v7  ;;  %v13790_v7 = vld [vmem:[%s14075_s25 + $0x80] sm:$0xff]   ;;  %v7246_v26 = vor.u32 %v7244_v18, %v7242_v14 }
 0x10d   : > { %13625 = vmatprep.subr.msk.bf16.mxu0 %vm414_vm0, %v14481_v17  ;;  %v7230_v12 = vor.u32 %v7228_v1, %v7226_v28  ;;  %v7238_v13 = vor.u32 %v7236_v3, %v7234_v10  ;;  %v7256_v23 = vshll.u32 %v13790_v7, 16  ;;  %v7260_v36 = vshrl.u32 %v13790_v7, 16  ;;  %v13802_v28 = vld [vmem:[%s14075_s25 + $0xb0] sm:$0xff]  }
 0x10e   : > { %v7251_v40 = vsel %vm865_vm2, %v7246_v26, %v7250_v24  ;;  %v7300_v3 = vshrl.u32 %v13800_v31, 16  ;;  %v7308_v7 = vshrl.u32 %v13802_v28, 16 }
 0x10f   : > { %v7235_v20 = vsel %vm865_vm2, %v7230_v12, %v7234_v10  ;;  %v7243_v21 = vsel %vm865_vm2, %v7238_v13, %v7242_v14  ;;  %v7258_v32 = vrot.slane %v7256_v23, 1  ;;  %v13801_v10 = vld [vmem:[%s14075_s25 + $0x40] sm:$0xff]  }
 0x110   : > { %v13806_v14 = vld [vmem:[%s14075_s25 + $0xc0] sm:$0xff]  }
 0x111   : > { %v7262_v45 = vor.u32 %v7260_v36, %v7258_v32 }
 0x112   : > { %12695 = vmatmul.mubr.msk.bf16.gmra.mrb[4].mxu0 %vm341_vm1, %v7187_v34  ;;  %v13791_v34 = vld [vmem:[%s14075_s25 + $0x18] sm:$0xff]  }
 0x113   : > { %12323 = vmatmul.mubr.msk.bf16.gmra.mrb[32].mxu1 %vm341_vm1, %v1717_v25  ;;  %12698 = vmatprep.mubr.msk.bf16.mxu0 %vm341_vm1, %v7195_v35  ;;  %v13792_v25 = vld [vmem:[%s14075_s25 + $0x88] sm:$0xff]   ;;  %v3231_v35 = vsel %vm414_vm0, %v14393_v58, 0 }
 0x114   : > { %12326 = vmatprep.mubr.msk.bf16.mxu1 %vm341_vm1, %v1719_v29  ;;  %v7254_v29 = vor.u32 %v7252_v22, %v7250_v24  ;;  %v7264_v38 = vshll.u32 %v13792_v25, 16  ;;  %v7268_v42 = vshrl.u32 %v13792_v25, 16  ;;  %v13808_v22 = vld [vmem:[%s14075_s25 + $0xc8] sm:$0xff]   ;;  %v13805_v24 = vld [vmem:[%s14075_s25 + $0x50] sm:$0xff]   ;;  %v13807_v25 = vld [vmem:[%s14075_s25 + $0x58] sm:$0xff]  }
 0x115   : > { %v7328_v33 = vshll.u32 %v13808_v22, 16  ;;  %v7332_v36 = vshrl.u32 %v13808_v22, 16 }
 0x116   : > { %v7259_v41 = vsel %vm865_vm2, %v7254_v29, %v7258_v32  ;;  %v7266_v58 = vrot.slane %v7264_v38, 1  ;;  %v13810_v29 = vld [vmem:[%s14075_s25 + $0xd0] sm:$0xff]   ;;  %v7324_v32 = vshrl.u32 %v13806_v14, 16 }
 0x117   : > { %v7336_v38 = vshll.u32 %v13810_v29, 16 }
 0x119   : > { %v7338_v44 = vrot.slane %v7336_v38, 1 }
 0x11a   : > { %12699 = vmatmul.mubr.msk.bf16.gmra.mrb[8].mxu0 %vm341_vm1, %v7203_v53  ;;  %v7267_v53 = vsel %vm865_vm2, %v7262_v45, %v7266_v58  ;;  %v13811_v45 = vld [vmem:[%s14075_s25 + $0x68] sm:$0xff]  }
 0x11b   : > { %12327 = vmatmul.mubr.msk.bf16.gmra.mrb[36].mxu1 %vm341_vm1, %v1721_v47  ;;  %12702 = vmatprep.mubr.msk.bf16.mxu0 %vm341_vm1, %v7211_v54  ;;  %v7270_v47 = vor.u32 %v7268_v42, %v7266_v58 }
 0x11c   : > { %12330 = vmatprep.mubr.msk.bf16.mxu1 %vm341_vm1, %v1723_v48  ;;  %v7274_v48 = vrot.slane %v7272_v43, 1  ;;  %v13809_v43 = vld [vmem:[%s14075_s25 + $0x60] sm:$0xff]  }
 0x11e   : > { %v7275_v54 = vsel %vm865_vm2, %v7270_v47, %v7274_v48  ;;  %v7278_v59 = vor.u32 %v7276_v51, %v7274_v48  ;;  %v13814_v48 = vld [vmem:[%s14075_s25 + $0x18] sm:$0xfe]   ;;  %v13815_v51 = vld [vmem:[%s14075_s25 + $0x20] sm:$0xff]  }
 0x11f   : > { %v7966_v56 = vrot.slane %v13814_v48, 1 }
 0x120   : > { %v7283_v1 = vsel %vm865_vm2, %v7278_v59, %v7282_v57  ;;  %v7967_v57 = vrot.slane %v13815_v51, 1 }
 0x122   : > { %12703 = vmatmul.mubr.msk.bf16.gmra.mrb[12].mxu0 %vm341_vm1, %v7219_v5  ;;  %v7304_v5 = vshll.u32 %v13802_v28, 16  ;;  %v13818_v28 = vld [vmem:[%s14075_s25 + $0x80] sm:$0xff]  }
 0x123   : > { %12331 = vmatmul.mubr.msk.bf16.gmra.mrb[40].mxu1 %vm341_vm1, %v1725_v63  ;;  %12706 = vmatprep.mubr.msk.bf16.mxu0 %vm341_vm1, %v7227_v6  ;;  %v7292_v63 = vshrl.u32 %v13798_v49, 16 }
 0x124   : > { %12334 = vmatprep.mubr.msk.bf16.mxu1 %vm341_vm1, %v1727_v0  ;;  %v7296_v0 = vshll.u32 %v13800_v31, 16  ;;  %v7306_v13 = vrot.slane %v7304_v5, 1  ;;  %v13817_v31 = vld [vmem:[%s14075_s25 + $0x28] sm:$0xff]  }
 0x125   : > { %v7294_v9 = vor.u32 %v7292_v63, %v7290_v61  ;;  %v7969_v61 = vrot.slane %v13817_v31, 1  ;;  %v13820_v63 = vld [vmem:[%s14075_s25 + $0x88] sm:$0xff]  }
 0x126   : > { %v7298_v6 = vrot.slane %v7296_v0, 1  ;;  %v7310_v23 = vor.u32 %v7308_v7, %v7306_v13  ;;  %v8702_v0 = vsel %vm414_vm0, %v14481_v17, 0  ;;  %v13843_v31 = vld [vmem:[%s14075_s25 + $0x28] sm:$0xff]  }
 0x128   : > { %v7302_v12 = vor.u32 %v7300_v3, %v7298_v6  ;;  %v7970_v3 = vsel %vm1680_vm3, %v7967_v57, %v7969_v61 }
 0x12a   : > { %12707 = vmatmul.mubr.msk.bf16.gmra.mrb[16].mxu0 %vm341_vm1, %v7235_v20  ;;  %v7307_v18 = vsel %vm865_vm2, %v7302_v12, %v7306_v13  ;;  %v7320_v20 = vshll.u32 %v13806_v14, 16  ;;  %v13827_v12 = vld [vmem:[%s14075_s25 + $0x50] sm:$0xff]  }
 0x12b   : > { %12335 = vmatmul.mubr.msk.bf16.gmra.mrb[44].mxu1 %vm341_vm1, %v1729_v15  ;;  %12710 = vmatprep.mubr.msk.bf16.mxu0 %vm341_vm1, %v7243_v21  ;;  %v7312_v15 = vshll.u32 %v13804_v8, 16  ;;  %v13822_v8 = vld [vmem:[%s14075_s25 + $0x90] sm:$0xff]  }
 0x12c   : > { %12340 = vmatprep.mubr.msk.bf16.mxu1 %vm341_vm1, %v13787_v16  ;;  %v7299_v16 = vsel %vm865_vm2, %v7294_v9, %v7298_v6  ;;  %v14623_v6 = vld [vmem:[%s15377_s1 + $0x34] sm:$0x7] }
 0x12d   : > { %v7314_v21 = vrot.slane %v7312_v15, 1  ;;  %v13826_v15 = vld [vmem:[%s14075_s25 + $0xa0] sm:$0xff]  }
 0x12f   : > { %v7318_v26 = vor.u32 %v7316_v19, %v7314_v21  ;;  %v13829_v19 = vld [vmem:[%s14075_s25 + $0x58] sm:$0xff]  }
 0x132   : > { %12711 = vmatmul.mubr.msk.bf16.gmra.mrb[20].mxu0 %vm341_vm1, %v7251_v40  ;;  %v7330_v40 = vrot.slane %v7328_v33, 1  ;;  %v13833_v33 = vld [vmem:[%s14075_s25 + $0x68] sm:$0xff]  }
 0x133   : > { %12341 = vmatmul.mubr.msk.bf16.vlgmr.msra.gmra.mrb[0].mxu1 %vm341_vm1, %v13789_v27  ;;  %12714 = vmatprep.mubr.msk.bf16.mxu0 %vm341_vm1, %v7259_v41  ;;  %v7322_v27 = vrot.slane %v7320_v20, 1  ;;  %v13812_v41 = vld [vmem:[%s14075_s25 + $0xd8] ss:$0 sps:$4 sm:$0x11]   ;;  %v13831_v20 = vld [vmem:[%s14075_s25 + $0x60] sm:$0xff]  }
 0x134   : > { %12344 = vmatprep.mubr.msk.bf16.mxu1 %vm341_vm1, %v13791_v34  ;;  %12389 = vmatpush3.bf16.msra.mxu1 %v3231_v35  ;;  %v7315_v34 = vsel %vm865_vm2, %v7310_v23, %v7314_v21  ;;  %v7334_v58 = vor.u32 %v7332_v36, %v7330_v40  ;;  %v7344_v47 = vshll.u32 %v13812_v41, 16  ;;  %v13836_v21 = vld [vmem:[%s14075_s25 + $0x8] sm:$0xff]  }
 0x135   : > { %13617 = vmatprep.subr.msk.bf16.mxu1 %vm414_vm0, %v14540_v39  ;;  %v7323_v35 = vsel %vm865_vm2, %v7318_v26, %v7322_v27  ;;  %v7326_v42 = vor.u32 %v7324_v32, %v7322_v27  ;;  %v7981_v26 = vrot.slane %v13829_v19, 1  ;;  %v13830_v27 = vld [vmem:[%s14075_s25 + $0xb0] sm:$0xff]   ;;  %v13832_v32 = vld [vmem:[%s14075_s25 + $0xb8] sm:$0xff]  }
 0x137   : > { %v7331_v49 = vsel %vm865_vm2, %v7326_v42, %v7330_v40  ;;  %v13839_v40 = vld [vmem:[%s14075_s25 + $0x18] sm:$0xff]  }
 0x138   : > { %v2978_v48 = vshll.u32 %v13839_v40, 16 }
 0x13a   : > { %12715 = vmatmul.mubr.msk.bf16.gmra.mrb[24].mxu0 %vm341_vm1, %v7267_v53 }
 0x13b   : > { %12345 = vmatmul.mubr.msk.bf16.gmra.mrb[4].mxu1 %vm341_vm1, %v13793_v46  ;;  %12718 = vmatprep.mubr.msk.bf16.mxu0 %vm341_vm1, %v7275_v54  ;;  %v7340_v46 = vshrl.u32 %v13810_v29, 16  ;;  %v7346_v54 = vrot.slane %v7344_v47, 1  ;;  %v7983_v29 = vrot.slane %v13831_v20, 1 }
 0x13c   : > { %12348 = vmatprep.mubr.msk.bf16.mxu1 %vm341_vm1, %v13795_v50  ;;  %v7339_v50 = vsel %vm865_vm2, %v7334_v58, %v7338_v44 }
 0x13d   : > { %v7342_v53 = vor.u32 %v7340_v46, %v7338_v44  ;;  %v7984_v42 = vsel %vm1680_vm3, %v7981_v26, %v7983_v29  ;;  %v13841_v44 = vld [vmem:[%s14075_s25 + $0x20] sm:$0xff]  }
 0x13e   : > { %v13834_v46 = vld [vmem:[%s14075_s25 + $0xc0] sm:$0xff]  }
 0x13f   : > { %v7347_v59 = vsel %vm865_vm2, %v7342_v53, %v7346_v54  ;;  %v2986_v53 = vshll.u32 %v13841_v44, 16 }
 0x142   : > { %12719 = vmatmul.mubr.msk.bf16.gmra.mrb[28].mxu0 %vm341_vm1, %v7283_v1  ;;  %v13821_v1 = vld [vmem:[%s14075_s25 + $0x38] sm:$0xff]  }
 0x143   : > { %12349 = vmatmul.mubr.msk.bf16.gmra.mrb[8].mxu1 %vm341_vm1, %v13797_v60  ;;  %12722 = vmatprep.mubr.msk.bf16.mxu0 %vm341_vm1, %v7291_v2  ;;  %v7968_v60 = vsel %vm1680_vm3, %v7966_v56, %v7967_v57  ;;  %v13823_v2 = vld [vmem:[%s14075_s25 + $0x40] sm:$0xff]   ;;  %v7973_v17 = vrot.slane %v13821_v1, 1  ;;  %v2980_v56 = vrot.slane %v2978_v48, 1  ;;  %v2990_v1 = vshrl.u32 %v13841_v44, 16 }
 0x144   : > { %12352 = vmatprep.mubr.msk.bf16.mxu1 %vm341_vm1, %v13799_v62  ;;  %v7971_v62 = vrot.slane %v13819_v30, 1  ;;  %v7975_v9 = vrot.slane %v13823_v2, 1  ;;  %v13840_v57 = vld [vmem:[%s14075_s25 + $0x80] sm:$0xff]   ;;  %v2988_v30 = vrot.slane %v2986_v53, 1  ;;  %v13855_v53 = vld [vmem:[%s14075_s25 + $0x58] sm:$0xff]  }
 0x146   : > { %v7972_v5 = vsel %vm1680_vm3, %v7969_v61, %v7971_v62  ;;  %v7974_v13 = vsel %vm1680_vm3, %v7971_v62, %v7973_v17  ;;  %v7976_v14 = vsel %vm1680_vm3, %v7973_v17, %v7975_v9  ;;  %v13845_v61 = vld [vmem:[%s14075_s25 + $0x30] sm:$0xff]   ;;  %v7991_v62 = vrot.slane %v13840_v57, 1  ;;  %v13857_v57 = vld [vmem:[%s14075_s25 + $0x60] sm:$0xff]  }
 0x147   : > { %v3002_v17 = vshll.u32 %v13845_v61, 16 }
 0x14a   : > { %12723 = vmatmul.mubr.msk.bf16.gmra.mrb[32].mxu0 %vm341_vm1, %v7299_v16  ;;  %v7979_v16 = vrot.slane %v13827_v12, 1 }
 0x14b   : > { %12353 = vmatmul.mubr.msk.bf16.gmra.mrb[12].mxu1 %vm341_vm1, %v13801_v10  ;;  %12726 = vmatprep.mubr.msk.bf16.mxu0 %vm341_vm1, %v7307_v18  ;;  %v13824_v10 = vld [vmem:[%s14075_s25 + $0x98] sm:$0xff]   ;;  %v13828_v18 = vld [vmem:[%s14075_s25 + $0xa8] sm:$0xff]  }
 0x14c   : > { %12356 = vmatprep.mubr.msk.bf16.mxu1 %vm341_vm1, %v13803_v11  ;;  %v13825_v11 = vld [vmem:[%s14075_s25 + $0x48] sm:$0xff]   ;;  %v7982_v41 = vsel %vm1680_vm3, %v7979_v16, %v7981_v26 }
 0x14d   : > { %v7977_v7 = vrot.slane %v13825_v11, 1 }
 0x14f   : > { %v7978_v22 = vsel %vm1680_vm3, %v7975_v9, %v7977_v7  ;;  %v7980_v23 = vsel %vm1680_vm3, %v7977_v7, %v7979_v16  ;;  %v13842_v9 = vld [vmem:[%s14075_s25 + $0x88] sm:$0xff]   ;;  %v13849_v16 = vld [vmem:[%s14075_s25 + $0x40] sm:$0xff]  }
 0x150   : > { %v3022_v44 = vshrl.u32 %v13849_v16, 16 }
 0x152   : > { %12727 = vmatmul.mubr.msk.bf16.gmra.mrb[36].mxu0 %vm341_vm1, %v7315_v34  ;;  %v13835_v34 = vld [vmem:[%s14075_s25 + $0x70] sm:$0xff]  }
 0x153   : > { %12357 = vmatmul.mubr.msk.bf16.gmra.mrb[16].mxu1 %vm341_vm1, %v13805_v24  ;;  %12730 = vmatprep.mubr.msk.bf16.mxu0 %vm341_vm1, %v7323_v35  ;;  %v13837_v24 = vld [vmem:[%s14075_s25 + $0x10] sm:$0xff]   ;;  %v2963_v35 = vshrl.u32 %v13836_v21, 16  ;;  %v7987_v47 = vrot.slane %v13835_v34, 1  ;;  %v13851_v34 = vld [vmem:[%s14075_s25 + $0x48] sm:$0xff]  }
 0x154   : > { %12360 = vmatprep.mubr.msk.bf16.mxu1 %vm341_vm1, %v13807_v25  ;;  %v2965_v25 = vshll.u32 %v13836_v21, 16  ;;  %v2970_v36 = vshll.u32 %v13837_v24, 16 }
 0x156   : > { %v2967_v38 = vrot.slane %v2965_v25, 1  ;;  %v2972_v58 = vrot.slane %v2970_v36, 1  ;;  %v3018_v25 = vshll.u32 %v13849_v16, 16 }
 0x15a   : > { %12731 = vmatmul.mubr.msk.bf16.gmra.mrb[40].mxu0 %vm341_vm1, %v7331_v49  ;;  %v2974_v49 = vshrl.u32 %v13837_v24, 16 }
 0x15b   : > { %12361 = vmatmul.mubr.msk.bf16.gmra.mrb[20].mxu1 %vm341_vm1, %v13809_v43  ;;  %12734 = vmatprep.mubr.msk.bf16.mxu0 %vm341_vm1, %v7339_v50  ;;  %v2968_v43 = vor.u32 %v2967_v38, %v2963_v35  ;;  %v13838_v50 = vld [vmem:[%s14075_s25 + $0x78] sm:$0xff]   ;;  %v3020_v38 = vrot.slane %v3018_v25, 1 }
 0x15c   : > { %12364 = vmatprep.mubr.msk.bf16.mxu1 %vm341_vm1, %v13811_v45  ;;  %v7985_v45 = vrot.slane %v13833_v33, 1  ;;  %v13848_v33 = vld [vmem:[%s14075_s25 + $0xa0] sm:$0xff]   ;;  %v13863_v25 = vld [vmem:[%s14075_s25 + $0x78] sm:$0xff]  }
 0x15d   : > { %v2973_v51 = vsel %vm865_vm2, %v2968_v43, %v2972_v58  ;;  %v3026_v43 = vshll.u32 %v13851_v34, 16 }
 0x15e   : > { %v7986_v54 = vsel %vm1680_vm3, %v7983_v29, %v7985_v45 }
 0x162   : > { %12735 = vmatmul.mubr.msk.bf16.gmra.mrb[44].mxu0 %vm341_vm1, %v7347_v59  ;;  %v2976_v59 = vor.u32 %v2974_v49, %v2972_v58  ;;  %v13850_v49 = vld [vmem:[%s14075_s25 + $0xa8] sm:$0xff]  }
 0x163   : > { %12365 = vmatmul.mubr.msk.bf16.gmra.mrb[24].mxu1 %vm341_vm1, %v13813_v52  ;;  %12740 = vmatprep.mubr.msk.bf16.mxu0 %vm341_vm1, %v7968_v60  ;;  %v2982_v52 = vshrl.u32 %v13839_v40, 16  ;;  %v13853_v40 = vld [vmem:[%s14075_s25 + $0x50] sm:$0xff]  }
 0x164   : > { %12368 = vmatprep.mubr.msk.bf16.mxu1 %vm341_vm1, %v13816_v55  ;;  %v7988_v55 = vsel %vm1680_vm3, %v7985_v45, %v7987_v47 }
 0x165   : > { %v2984_v60 = vor.u32 %v2982_v52, %v2980_v56  ;;  %v13852_v52 = vld [vmem:[%s14075_s25 + $0xb0] sm:$0xff]  }
 0x167   : > { %v2989_v2 = vsel %vm865_vm2, %v2984_v60, %v2988_v30  ;;  %v3042_v60 = vshll.u32 %v13855_v53, 16 }
 0x16a   : > { %12741 = vmatmul.mubr.msk.bf16.vlgmr.msra.gmra.mrb[0].mxu0 %vm341_vm1, %v7970_v3  ;;  %v3898_v3 = vsel %vm414_vm0, %v14540_v39, 0  ;;  %v2992_v39 = vor.u32 %v2990_v1, %v2988_v30  ;;  %v13854_v1 = vld [vmem:[%s14075_s25 + $0xb8] sm:$0xff]  }
 0x16b   : > { %12369 = vmatmul.mubr.msk.bf16.gmra.mrb[28].mxu1 %vm341_vm1, %v13818_v28  ;;  %12789 = vmatpush3.bf16.msra.mxu0 %v8702_v0  ;;  %v7989_v28 = vrot.slane %v13838_v50, 1  ;;  %v2981_v0 = vsel %vm865_vm2, %v2976_v59, %v2980_v56  ;;  %v8003_v59 = vrot.slane %v13852_v52, 1 }
 0x16c   : > { %12372 = vmatprep.mubr.msk.bf16.mxu1 %vm341_vm1, %v13820_v63  ;;  %12744 = vmatprep.mubr.msk.bf16.mxu0 %vm341_vm1, %v7972_v5  ;;  %v2994_v63 = vshll.u32 %v13843_v31, 16  ;;  %v2998_v5 = vshrl.u32 %v13843_v31, 16  ;;  %v8001_v31 = vrot.slane %v13850_v49, 1 }
 0x16d   : > { %13626 = vmatprep.subr.msk.bf16.mxu0 %vm414_vm0, %v14623_v6  ;;  %v7992_v11 = vsel %vm1680_vm3, %v7989_v28, %v7991_v62 }
 0x16e   : > { %v2996_v12 = vrot.slane %v2994_v63, 1  ;;  %v3050_v63 = vshll.u32 %v13857_v57, 16 }
 0x170   : > { %v3000_v7 = vor.u32 %v2998_v5, %v2996_v12  ;;  %v2997_v21 = vsel %vm865_vm2, %v2992_v39, %v2996_v12  ;;  %v13856_v5 = vld [vmem:[%s14075_s25 + $0xc0] sm:$0xff]   ;;  %v13861_v12 = vld [vmem:[%s14075_s25 + $0x70] sm:$0xff]  }
 0x172   : > { %12745 = vmatmul.mubr.msk.bf16.gmra.mrb[4].mxu0 %vm341_vm1, %v7974_v13  ;;  %v13844_v13 = vld [vmem:[%s14075_s25 + $0x90] sm:$0xff]  }
 0x173   : > { %12373 = vmatmul.mubr.msk.bf16.gmra.mrb[32].mxu1 %vm341_vm1, %v13822_v8  ;;  %12748 = vmatprep.mubr.msk.bf16.mxu0 %vm341_vm1, %v7976_v14  ;;  %v7990_v8 = vsel %vm1680_vm3, %v7987_v47, %v7989_v28  ;;  %v13847_v14 = vld [vmem:[%s14075_s25 + $0x38] sm:$0xff]   ;;  %v7995_v19 = vrot.slane %v13844_v13, 1  ;;  %v3034_v47 = vshll.u32 %v13853_v40, 16  ;;  %v8005_v13 = vrot.slane %v13854_v1, 1 }
 0x174   : > { %12376 = vmatprep.mubr.msk.bf16.mxu1 %vm341_vm1, %v13824_v10  ;;  %v14685_v10 = vld [vmem:[%s15377_s1 + $0x18] sm:$0x7]  ;;  %v3010_v20 = vshll.u32 %v13847_v14, 16  ;;  %v3014_v24 = vshrl.u32 %v13847_v14, 16  ;;  %v8007_v14 = vrot.slane %v13856_v5, 1 }
 0x175   : > { %v3036_v56 = vrot.slane %v3034_v47, 1 }
 0x17a   : > { %12749 = vmatmul.mubr.msk.bf16.gmra.mrb[8].mxu0 %vm341_vm1, %v7978_v22  ;;  %v3006_v22 = vshrl.u32 %v13845_v61, 16  ;;  %v3038_v61 = vshrl.u32 %v13853_v40, 16 }
 0x17b   : > { %12377 = vmatmul.mubr.msk.bf16.gmra.mrb[36].mxu1 %vm341_vm1, %v13826_v15  ;;  %12752 = vmatprep.mubr.msk.bf16.mxu0 %vm341_vm1, %v7980_v23  ;;  %v3004_v15 = vrot.slane %v3002_v17, 1  ;;  %v13859_v17 = vld [vmem:[%s14075_s25 + $0x68] sm:$0xff]  }
 0x17c   : > { %12380 = vmatprep.mubr.msk.bf16.mxu1 %vm341_vm1, %v13828_v18  ;;  %v7993_v18 = vrot.slane %v13842_v9, 1  ;;  %v3058_v39 = vshll.u32 %v13859_v17, 16 }
 0x17d   : > { %v3005_v23 = vsel %vm865_vm2, %v3000_v7, %v3004_v15  ;;  %v3008_v35 = vor.u32 %v3006_v22, %v3004_v15  ;;  %v3054_v15 = vshrl.u32 %v13857_v57, 16  ;;  %v8008_v22 = vsel %vm1680_vm3, %v8005_v13, %v8007_v14 }
 0x17e   : > { %v7994_v26 = vsel %vm1680_vm3, %v7991_v62, %v7993_v18  ;;  %v7996_v29 = vsel %vm1680_vm3, %v7993_v18, %v7995_v19  ;;  %v3046_v62 = vshrl.u32 %v13855_v53, 16  ;;  %v3062_v18 = vshrl.u32 %v13859_v17, 16 }
 0x182   : > { %12753 = vmatmul.mubr.msk.bf16.gmra.mrb[12].mxu0 %vm341_vm1, %v7982_v41 }
 0x183   : > { %12381 = vmatmul.mubr.msk.bf16.gmra.mrb[40].mxu1 %vm341_vm1, %v13830_v27  ;;  %12756 = vmatprep.mubr.msk.bf16.mxu0 %vm341_vm1, %v7984_v42  ;;  %v13846_v27 = vld [vmem:[%s14075_s25 + $0x98] sm:$0xff]   ;;  %v7999_v42 = vrot.slane %v13848_v33, 1 }
 0x184   : > { %12384 = vmatprep.mubr.msk.bf16.mxu1 %vm341_vm1, %v13832_v32  ;;  %v3012_v32 = vrot.slane %v3010_v20, 1  ;;  %v7997_v41 = vrot.slane %v13846_v27, 1  ;;  %v8006_v20 = vsel %vm1680_vm3, %v8003_v59, %v8005_v13  ;;  %v13875_v13 = vld [vmem:[%s14075_s25 + $0xa8] sm:$0xff]  }
 0x186   : > { %v3016_v36 = vor.u32 %v3014_v24, %v3012_v32  ;;  %v3013_v58 = vsel %vm865_vm2, %v3008_v35, %v3012_v32  ;;  %v7998_v48 = vsel %vm1680_vm3, %v7995_v19, %v7997_v41  ;;  %v8000_v50 = vsel %vm1680_vm3, %v7997_v41, %v7999_v42  ;;  %v13860_v24 = vld [vmem:[%s14075_s25 + $0xd0] sm:$0xff]   ;;  %v13865_v32 = vld [vmem:[%s14075_s25 + $0x80] sm:$0xff]  }
 0x187   : > { %v3066_v19 = vshll.u32 %v13861_v12, 16  ;;  %v3074_v35 = vshll.u32 %v13863_v25, 16  ;;  %v3078_v41 = vshrl.u32 %v13863_v25, 16 }
 0x188   : > { %v3021_v45 = vsel %vm865_vm2, %v3016_v36, %v3020_v38 }
 0x18a   : > { %12757 = vmatmul.mubr.msk.bf16.gmra.mrb[16].mxu0 %vm341_vm1, %v7986_v54  ;;  %v3024_v54 = vor.u32 %v3022_v44, %v3020_v38  ;;  %v3070_v38 = vshrl.u32 %v13861_v12, 16 }
 0x18b   : > { %12385 = vmatmul.mubr.msk.bf16.gmra.mrb[44].mxu1 %vm341_vm1, %v13834_v46  ;;  %12760 = vmatprep.mubr.msk.bf16.mxu0 %vm341_vm1, %v7988_v55  ;;  %v3030_v46 = vshrl.u32 %v13851_v34, 16  ;;  %v8011_v34 = vrot.slane %v13860_v24, 1  ;;  %v13872_v24 = vld [vmem:[%s14075_s25 + $0x40] sm:$0xff]  }
 0x18c   : > { %12390 = vmatprep.mubr.msk.bf16.mxu1 %vm341_vm1, %v2973_v51  ;;  %v3028_v51 = vrot.slane %v3026_v43, 1 }
 0x18e   : > { %v3032_v55 = vor.u32 %v3030_v46, %v3028_v51  ;;  %v3029_v30 = vsel %vm865_vm2, %v3024_v54, %v3028_v51  ;;  %v13867_v46 = vld [vmem:[%s14075_s25 + $0x88] sm:$0xff]   ;;  %v3086_v54 = vshrl.u32 %v13865_v32, 16 }
 0x18f   : > { %v3090_v52 = vshll.u32 %v13867_v46, 16 }
 0x190   : > { %v3037_v28 = vsel %vm865_vm2, %v3032_v55, %v3036_v56 }
 0x192   : > { %12761 = vmatmul.mubr.msk.bf16.gmra.mrb[20].mxu0 %vm341_vm1, %v7990_v8  ;;  %v3040_v8 = vor.u32 %v3038_v61, %v3036_v56  ;;  %v3094_v56 = vshrl.u32 %v13867_v46, 16 }
 0x193   : > { %12391 = vmatmul.mubr.msk.bf16.vlgmr.msra.gmra.mrb[0].mxu1 %vm341_vm1, %v2981_v0  ;;  %12764 = vmatprep.mubr.msk.bf16.mxu0 %vm341_vm1, %v7992_v11  ;;  %v8002_v0 = vsel %vm1680_vm3, %v7999_v42, %v8001_v31  ;;  %v3052_v11 = vrot.slane %v3050_v63, 1  ;;  %v3082_v42 = vshll.u32 %v13865_v32, 16  ;;  %v13873_v63 = vld [vmem:[%s14075_s25 + $0xa0] sm:$0xff]  }
 0x194   : > { %12394 = vmatprep.mubr.msk.bf16.mxu1 %vm341_vm1, %v2989_v2  ;;  %12439 = vmatpush3.bf16.msra.mxu1 %v3898_v3  ;;  %v8004_v2 = vsel %vm1680_vm3, %v8001_v31, %v8003_v59  ;;  %v3044_v3 = vrot.slane %v3042_v60, 1  ;;  %v13864_v59 = vld [vmem:[%s14075_s25 + $0x20] sm:$0xff]   ;;  %v3092_v60 = vrot.slane %v3090_v52, 1 }
 0x195   : > { %13618 = vmatprep.subr.msk.bf16.mxu1 %vm414_vm0, %v14685_v10  ;;  %v3084_v49 = vrot.slane %v3082_v42, 1 }
 0x196   : > { %v3048_v9 = vor.u32 %v3046_v62, %v3044_v3  ;;  %v3045_v7 = vsel %vm865_vm2, %v3040_v8, %v3044_v3  ;;  %v13866_v3 = vld [vmem:[%s14075_s25 + $0x28] sm:$0xff]   ;;  %v3114_v8 = vshll.u32 %v13873_v63, 16 }
 0x197   : > { %v3088_v61 = vor.u32 %v3086_v54, %v3084_v49  ;;  %v13886_v54 = vld [vmem:[%s14075_s25 + $0x10] sm:$0xff]  }
 0x198   : > { %v3053_v16 = vsel %vm865_vm2, %v3048_v9, %v3052_v11  ;;  %v13868_v9 = vld [vmem:[%s14075_s25 + $0x30] sm:$0xff]  }
 0x199   : > { %v3093_v1 = vsel %vm865_vm2, %v3088_v61, %v3092_v60  ;;  %v13882_v61 = vld [vmem:[%s14075_s25 + $0x68] sm:$0xff]  }
 0x19a   : > { %12765 = vmatmul.mubr.msk.bf16.gmra.mrb[24].mxu0 %vm341_vm1, %v7994_v26  ;;  %v3056_v26 = vor.u32 %v3054_v15, %v3052_v11  ;;  %v9516_v11 = vsel %vm414_vm0, %v14623_v6, 0  ;;  %v3116_v15 = vrot.slane %v3114_v8, 1  ;;  %v13877_v6 = vld [vmem:[%s14075_s25 + $0xb0] sm:$0xff]   ;;  %v4512_v8 = vsel %vm414_vm0, %v14685_v10, 0 }
 0x19b   : > { %12395 = vmatmul.mubr.msk.bf16.gmra.mrb[4].mxu1 %vm341_vm1, %v2997_v21  ;;  %12768 = vmatprep.mubr.msk.bf16.mxu0 %vm341_vm1, %v7996_v29  ;;  %v13858_v21 = vld [vmem:[%s14075_s25 + $0xc8] sm:$0xff]   ;;  %v3068_v29 = vrot.slane %v3066_v19, 1  ;;  %v3118_v19 = vshrl.u32 %v13873_v63, 16  ;;  %v13884_v63 = vld [vmem:[%s14075_s25 + $0x70] sm:$0xff]  }
 0x19c   : > { %12398 = vmatprep.mubr.msk.bf16.mxu1 %vm341_vm1, %v3005_v23  ;;  %v3060_v23 = vrot.slane %v3058_v39, 1  ;;  %v8009_v33 = vrot.slane %v13858_v21, 1  ;;  %v14778_v39 = vld [vmem:[%s15377_s1 + $0x38] sm:$0x7] }
 0x19d   : > { %v3072_v47 = vor.u32 %v3070_v38, %v3068_v29  ;;  %v13874_v38 = vld [vmem:[%s14075_s25 + $0x48] sm:$0xff]  }
 0x19e   : > { %v3064_v27 = vor.u32 %v3062_v18, %v3060_v23  ;;  %v3061_v36 = vsel %vm865_vm2, %v3056_v26, %v3060_v23  ;;  %v8010_v43 = vsel %vm1680_vm3, %v8007_v14, %v8009_v33  ;;  %v8012_v44 = vsel %vm1680_vm3, %v8009_v33, %v8011_v34  ;;  %v13879_v26 = vld [vmem:[%s14075_s25 + $0xb8] sm:$0xff]   ;;  %v13881_v33 = vld [vmem:[%s14075_s25 + $0xc0] sm:$0xff]  }
 0x19f   : > { %v3130_v23 = vshll.u32 %v13877_v6, 16  ;;  %v3146_v42 = vshll.u32 %v13881_v33, 16 }
 0x1a0   : > { %v3069_v40 = vsel %vm865_vm2, %v3064_v27, %v3068_v29  ;;  %v3120_v27 = vor.u32 %v3118_v19, %v3116_v15 }
 0x1a1   : > { %v3132_v32 = vrot.slane %v3130_v23, 1  ;;  %v13895_v23 = vld [vmem:[%s14075_s25 + $0x98] sm:$0xff]  }
 0x1a2   : > { %12769 = vmatmul.mubr.msk.bf16.gmra.mrb[28].mxu0 %vm341_vm1, %v7998_v48 }
 0x1a3   : > { %12399 = vmatmul.mubr.msk.bf16.gmra.mrb[8].mxu1 %vm341_vm1, %v3013_v58  ;;  %12772 = vmatprep.mubr.msk.bf16.mxu0 %vm341_vm1, %v8000_v50  ;;  %v13862_v58 = vld [vmem:[%s14075_s25 + $0xd8] ss:$0 sps:$4 sm:$0x11]   ;;  %v13869_v50 = vld [vmem:[%s14075_s25 + $0x90] sm:$0xff]  }
 0x1a4   : > { %12402 = vmatprep.mubr.msk.bf16.mxu1 %vm341_vm1, %v3021_v45  ;;  %v3076_v45 = vrot.slane %v3074_v35, 1  ;;  %v8013_v51 = vrot.slane %v13862_v58, 1  ;;  %v3098_v57 = vshll.u32 %v13869_v50, 16 }
 0x1a6   : > { %v3080_v48 = vor.u32 %v3078_v41, %v3076_v45  ;;  %v3077_v53 = vsel %vm865_vm2, %v3072_v47, %v3076_v45  ;;  %v8014_v31 = vsel %vm1680_vm3, %v8011_v34, %v8013_v51  ;;  %v3100_v62 = vrot.slane %v3098_v57, 1  ;;  %v13883_v45 = vld [vmem:[%s14075_s25 + $0xc8] ss:$0 sps:$4 sm:$0x11]   ;;  %v13878_v51 = vld [vmem:[%s14075_s25 + $0x58] sm:$0xff]  }
 0x1a7   : > { %v3138_v34 = vshll.u32 %v13879_v26, 16  ;;  %v3142_v41 = vshrl.u32 %v13879_v26, 16  ;;  %v3148_v47 = vrot.slane %v3146_v42, 1  ;;  %v13897_v26 = vld [vmem:[%s14075_s25 + $0xa0] sm:$0xff]  }
 0x1a8   : > { %v3085_v55 = vsel %vm865_vm2, %v3080_v48, %v3084_v49  ;;  %v3150_v49 = vshrl.u32 %v13881_v33, 16  ;;  %v13904_v33 = vld [vmem:[%s14075_s25 + $0x58] sm:$0xff]  }
 0x1a9   : > { %v3140_v58 = vrot.slane %v3138_v34, 1  ;;  %v13899_v34 = vld [vmem:[%s14075_s25 + $0xa8] sm:$0xff]  }
 0x1aa   : > { %12773 = vmatmul.mubr.msk.bf16.gmra.mrb[32].mxu0 %vm341_vm1, %v8002_v0 }
 0x1ab   : > { %12403 = vmatmul.mubr.msk.bf16.gmra.mrb[12].mxu1 %vm341_vm1, %v3029_v30  ;;  %12776 = vmatprep.mubr.msk.bf16.mxu0 %vm341_vm1, %v8004_v2  ;;  %v13871_v30 = vld [vmem:[%s14075_s25 + $0x98] sm:$0xff]   ;;  %v3102_v2 = vshrl.u32 %v13869_v50, 16  ;;  %v3144_v46 = vor.u32 %v3142_v41, %v3140_v58  ;;  %v3154_v50 = vshll.u32 %v13883_v45, 16  ;;  %v13910_v45 = vld [vmem:[%s14075_s25 + $0x70] sm:$0xff]  }
 0x1ac   : > { %12406 = vmatprep.mubr.msk.bf16.mxu1 %vm341_vm1, %v3037_v28  ;;  %v3096_v28 = vor.u32 %v3094_v56, %v3092_v60  ;;  %v3106_v0 = vshll.u32 %v13871_v30, 16  ;;  %v3110_v17 = vshrl.u32 %v13871_v30, 16  ;;  %v3152_v56 = vor.u32 %v3150_v49, %v3148_v47  ;;  %v13888_v30 = vld [vmem:[%s14075_s25 + $0x18] sm:$0xff]  }
 0x1ad   : > { %v3104_v14 = vor.u32 %v3102_v2, %v3100_v62  ;;  %v3149_v52 = vsel %vm865_vm2, %v3144_v46, %v3148_v47  ;;  %v3156_v57 = vrot.slane %v3154_v50, 1  ;;  %v13905_v46 = vld [vmem:[%s14075_s25 + $0xc0] sm:$0xff]   ;;  %v3801_v49 = vrot.slane %v13910_v45, 1  ;;  %v13914_v50 = vld [vmem:[%s14075_s25 + $0x28] sm:$0xff]  }
 0x1ae   : > { %v3101_v5 = vsel %vm865_vm2, %v3096_v28, %v3100_v62  ;;  %v3108_v12 = vrot.slane %v3106_v0, 1  ;;  %v13890_v62 = vld [vmem:[%s14075_s25 + $0x20] sm:$0xff]   ;;  %v3779_v0 = vrot.slane %v13888_v30, 1 }
 0x1af   : > { %v3157_v60 = vsel %vm865_vm2, %v3152_v56, %v3156_v57  ;;  %v13913_v47 = vld [vmem:[%s14075_s25 + $0x20] sm:$0xff]   ;;  %v13909_v57 = vld [vmem:[%s14075_s25 + $0xd0] sm:$0xff]  }
 0x1b0   : > { %v3109_v18 = vsel %vm865_vm2, %v3104_v14, %v3108_v12  ;;  %v14009_v14 = vld [vmem:[%s15377_s1 + $0x1c] sm:$0x7]  ;;  %v13915_v56 = vld [vmem:[%s14075_s25 + $0x80] sm:$0xff]  }
 0x1b2   : > { %12777 = vmatmul.mubr.msk.bf16.gmra.mrb[36].mxu0 %vm341_vm1, %v8006_v20  ;;  %v13870_v20 = vld [vmem:[%s14075_s25 + $0x38] sm:$0xff]  }
 0x1b3   : > { %12407 = vmatmul.mubr.msk.bf16.gmra.mrb[16].mxu1 %vm341_vm1, %v3045_v7  ;;  %12780 = vmatprep.mubr.msk.bf16.mxu0 %vm341_vm1, %v8008_v22  ;;  %v3112_v7 = vor.u32 %v3110_v17, %v3108_v12  ;;  %v3126_v22 = vshrl.u32 %v13875_v13, 16 }
 0x1b4   : > { %12410 = vmatprep.mubr.msk.bf16.mxu1 %vm341_vm1, %v3053_v16  ;;  %v3122_v16 = vshll.u32 %v13875_v13, 16 }
 0x1b5   : > { %v3117_v21 = vsel %vm865_vm2, %v3112_v7, %v3116_v15  ;;  %v13896_v7 = vld [vmem:[%s14075_s25 + $0x38] sm:$0xff]   ;;  %v13891_v15 = vld [vmem:[%s14075_s25 + $0x88] sm:$0xff]  }
 0x1b6   : > { %v3124_v25 = vrot.slane %v3122_v16, 1  ;;  %v13898_v16 = vld [vmem:[%s14075_s25 + $0x40] sm:$0xff]   ;;  %v3787_v19 = vrot.slane %v13896_v7, 1 }
 0x1b8   : > { %v3128_v29 = vor.u32 %v3126_v22, %v3124_v25  ;;  %v3125_v35 = vsel %vm865_vm2, %v3120_v27, %v3124_v25  ;;  %v13900_v22 = vld [vmem:[%s14075_s25 + $0x48] sm:$0xff]   ;;  %v13902_v25 = vld [vmem:[%s14075_s25 + $0x50] sm:$0xff]  }
 0x1b9   : > { %v3791_v27 = vrot.slane %v13900_v22, 1 }
 0x1ba   : > { %12781 = vmatmul.mubr.msk.bf16.gmra.mrb[40].mxu0 %vm341_vm1, %v8010_v43  ;;  %v13876_v43 = vld [vmem:[%s14075_s25 + $0x50] sm:$0xff]  }
 0x1bb   : > { %12411 = vmatmul.mubr.msk.bf16.gmra.mrb[20].mxu1 %vm341_vm1, %v3061_v36  ;;  %12784 = vmatprep.mubr.msk.bf16.mxu0 %vm341_vm1, %v8012_v44  ;;  %v3134_v36 = vshrl.u32 %v13877_v6, 16 }
 0x1bc   : > { %12414 = vmatprep.mubr.msk.bf16.mxu1 %vm341_vm1, %v3069_v40  ;;  %v3133_v40 = vsel %vm865_vm2, %v3128_v29, %v3132_v32  ;;  %v3793_v29 = vrot.slane %v13902_v25, 1 }
 0x1bd   : > { %v3136_v44 = vor.u32 %v3134_v36, %v3132_v32  ;;  %v13906_v36 = vld [vmem:[%s14075_s25 + $0x60] sm:$0xff]  }
 0x1be   : > { %v3797_v41 = vrot.slane %v13906_v36, 1 }
 0x1bf   : > { %v3141_v48 = vsel %vm865_vm2, %v3136_v44, %v3140_v58  ;;  %v13903_v58 = vld [vmem:[%s14075_s25 + $0xb8] sm:$0xff]  }
 0x1c2   : > { %12785 = vmatmul.mubr.msk.bf16.gmra.mrb[44].mxu0 %vm341_vm1, %v8014_v31 }
 0x1c3   : > { %12415 = vmatmul.mubr.msk.bf16.gmra.mrb[24].mxu1 %vm341_vm1, %v3077_v53  ;;  %12790 = vmatprep.mubr.msk.bf16.mxu0 %vm341_vm1, %v13864_v59  ;;  %v13885_v53 = vld [vmem:[%s14075_s25 + $0x8] sm:$0xfe]   ;;  %v3777_v59 = vrot.slane %v13886_v54, 1 }
 0x1c4   : > { %12418 = vmatprep.mubr.msk.bf16.mxu1 %vm341_vm1, %v3085_v55  ;;  %v13880_v55 = vld [vmem:[%s14075_s25 + $0x60] sm:$0xff]   ;;  %v3776_v31 = vrot.slane %v13885_v53, 1  ;;  %v13912_v53 = vld [vmem:[%s14075_s25 + $0x78] sm:$0xff]   ;;  %v13907_v54 = vld [vmem:[%s14075_s25 + $0xc8] sm:$0xff]  }
 0x1c5   : > { %v3780_v2 = vsel %vm1680_vm3, %v3777_v59, %v3779_v0  ;;  %v3803_v30 = vrot.slane %v13912_v53, 1 }
 0x1c6   : > { %v3778_v28 = vsel %vm1680_vm3, %v3776_v31, %v3777_v59  ;;  %v9248_v31 = vshrl.u32 %v13913_v47, 16 }
 0x1ca   : > { %12791 = vmatmul.mubr.msk.bf16.vlgmr.msra.gmra.mrb[0].mxu0 %vm341_vm1, %v13866_v3  ;;  %v13892_v3 = vld [vmem:[%s14075_s25 + $0x28] sm:$0xff]  }
 0x1cb   : > { %12419 = vmatmul.mubr.msk.bf16.gmra.mrb[28].mxu1 %vm341_vm1, %v3093_v1  ;;  %12839 = vmatpush3.bf16.msra.mxu0 %v9516_v11  ;;  %v3781_v1 = vrot.slane %v13890_v62, 1  ;;  %v13889_v11 = vld [vmem:[%s14075_s25 + $0x80] sm:$0xff]   ;;  %v3783_v12 = vrot.slane %v13892_v3, 1  ;;  %v13911_v3 = vld [vmem:[%s14075_s25 + $0xd8] sm:$0xff]  }
 0x1cc   : > { %12422 = vmatprep.mubr.msk.bf16.mxu1 %vm341_vm1, %v3101_v5  ;;  %12794 = vmatprep.mubr.msk.bf16.mxu0 %vm341_vm1, %v13868_v9  ;;  %v13887_v5 = vld [vmem:[%s14075_s25 + $0x78] sm:$0xff]   ;;  %v13894_v9 = vld [vmem:[%s14075_s25 + $0x30] sm:$0xff]  }
 0x1cd   : > { %13627 = vmatprep.subr.msk.bf16.mxu0 %vm414_vm0, %v14778_v39  ;;  %v3782_v17 = vsel %vm1680_vm3, %v3779_v0, %v3781_v1  ;;  %v3785_v13 = vrot.slane %v13894_v9, 1  ;;  %v3784_v10 = vsel %vm1680_vm3, %v3781_v1, %v3783_v12  ;;  %v13918_v0 = vld [vmem:[%s14075_s25 + $0x38] sm:$0xff]   ;;  %v3804_v1 = vsel %vm1680_vm3, %v3801_v49, %v3803_v30 }
 0x1ce   : > { %v9259_v9 = vshrl.u32 %v13914_v50, 16 }
 0x1cf   : > { %v3786_v6 = vsel %vm1680_vm3, %v3783_v12, %v3785_v13 }
 0x1d2   : > { %12795 = vmatmul.mubr.msk.bf16.gmra.mrb[4].mxu0 %vm341_vm1, %v13870_v20  ;;  %v3789_v20 = vrot.slane %v13898_v16, 1 }
 0x1d3   : > { %12423 = vmatmul.mubr.msk.bf16.gmra.mrb[32].mxu1 %vm341_vm1, %v3109_v18  ;;  %12798 = vmatprep.mubr.msk.bf16.mxu0 %vm341_vm1, %v13872_v24  ;;  %v13893_v18 = vld [vmem:[%s14075_s25 + $0x90] sm:$0xff]  }
 0x1d4   : > { %12426 = vmatprep.mubr.msk.bf16.mxu1 %vm341_vm1, %v3117_v21  ;;  %v3788_v21 = vsel %vm1680_vm3, %v3785_v13, %v3787_v19  ;;  %v3790_v24 = vsel %vm1680_vm3, %v3787_v19, %v3789_v20  ;;  %v3792_v32 = vsel %vm1680_vm3, %v3789_v20, %v3791_v27  ;;  %v9271_v13 = vshll.u32 %v13918_v0, 16  ;;  %v13922_v19 = vld [vmem:[%s14075_s25 + $0x48] sm:$0xff]  }
 0x1da   : > { %12799 = vmatmul.mubr.msk.bf16.gmra.mrb[8].mxu0 %vm341_vm1, %v13874_v38  ;;  %v13901_v38 = vld [vmem:[%s14075_s25 + $0xb0] sm:$0xff]  }
 0x1db   : > { %12427 = vmatmul.mubr.msk.bf16.gmra.mrb[36].mxu1 %vm341_vm1, %v3125_v35  ;;  %12802 = vmatprep.mubr.msk.bf16.mxu0 %vm341_vm1, %v13876_v43  ;;  %v3794_v35 = vsel %vm1680_vm3, %v3791_v27, %v3793_v29  ;;  %v13908_v43 = vld [vmem:[%s14075_s25 + $0x68] sm:$0xff]   ;;  %v10183_v27 = vsel %vm414_vm0, %v14778_v39, 0 }
 0x1dc   : > { %12430 = vmatprep.mubr.msk.bf16.mxu1 %vm341_vm1, %v3133_v40  ;;  %v3795_v40 = vrot.slane %v13904_v33, 1  ;;  %v9287_v33 = vshll.u32 %v13922_v19, 16 }
 0x1de   : > { %v3796_v42 = vsel %vm1680_vm3, %v3793_v29, %v3795_v40  ;;  %v3798_v44 = vsel %vm1680_vm3, %v3795_v40, %v3797_v41 }
 0x1e2   : > { %12803 = vmatmul.mubr.msk.bf16.gmra.mrb[12].mxu0 %vm341_vm1, %v13878_v51  ;;  %v9250_v51 = vshll.u32 %v13913_v47, 16 }
 0x1e3   : > { %12431 = vmatmul.mubr.msk.bf16.gmra.mrb[40].mxu1 %vm341_vm1, %v3141_v48  ;;  %12806 = vmatprep.mubr.msk.bf16.mxu0 %vm341_vm1, %v13880_v55  ;;  %v3799_v48 = vrot.slane %v13908_v43, 1 }
 0x1e4   : > { %12434 = vmatprep.mubr.msk.bf16.mxu1 %vm341_vm1, %v3149_v52  ;;  %v9252_v59 = vrot.slane %v9250_v51, 1 }
 0x1e5   : > { %v3800_v52 = vsel %vm1680_vm3, %v3797_v41, %v3799_v48  ;;  %v3802_v55 = vsel %vm1680_vm3, %v3799_v48, %v3801_v49  ;;  %v9289_v41 = vrot.slane %v9287_v33, 1  ;;  %v9291_v48 = vshrl.u32 %v13922_v19, 16  ;;  %v13935_v33 = vld [vmem:[%s14075_s25 + $0x10] sm:$0xff]  }
 0x1e6   : > { %v9253_v62 = vor.u32 %v9252_v59, %v9248_v31  ;;  %v13930_v59 = vld [vmem:[%s14075_s25 + $0x68] sm:$0xff]  }
 0x1ea   : > { %12807 = vmatmul.mubr.msk.bf16.gmra.mrb[16].mxu0 %vm341_vm1, %v13882_v61  ;;  %v3805_v61 = vrot.slane %v13915_v56, 1  ;;  %v9293_v56 = vor.u32 %v9291_v48, %v9289_v41 }
 0x1eb   : > { %12435 = vmatmul.mubr.msk.bf16.gmra.mrb[44].mxu1 %vm341_vm1, %v3157_v60  ;;  %12810 = vmatprep.mubr.msk.bf16.mxu0 %vm341_vm1, %v13884_v63  ;;  %v9255_v60 = vshll.u32 %v13914_v50, 16 }
 0x1ec   : > { %12440 = vmatprep.mubr.msk.bf16.mxu1 %vm341_vm1, %v3778_v28  ;;  %v13916_v28 = vld [vmem:[%s14075_s25 + $0x30] sm:$0xff]  }
 0x1ed   : > { %v9257_v63 = vrot.slane %v9255_v60, 1  ;;  %v9267_v12 = vshrl.u32 %v13916_v28, 16 }
 0x1f2   : > { %12811 = vmatmul.mubr.msk.bf16.gmra.mrb[20].mxu0 %vm341_vm1, %v13887_v5  ;;  %v3806_v5 = vsel %vm1680_vm3, %v3803_v30, %v3805_v61  ;;  %v13929_v30 = vld [vmem:[%s14075_s25 + $0xb8] sm:$0xff]  }
 0x1f3   : > { %12441 = vmatmul.mubr.msk.bf16.vlgmr.msra.gmra.mrb[0].mxu1 %vm341_vm1, %v3780_v2  ;;  %12814 = vmatprep.mubr.msk.bf16.mxu0 %vm341_vm1, %v13889_v11  ;;  %v13917_v2 = vld [vmem:[%s14075_s25 + $0x88] sm:$0xff]   ;;  %v9258_v11 = vsel %vm865_vm2, %v9253_v62, %v9257_v63  ;;  %v13931_v62 = vld [vmem:[%s14075_s25 + $0xc0] sm:$0xff]  }
 0x1f4   : > { %12444 = vmatprep.mubr.msk.bf16.mxu1 %vm341_vm1, %v3782_v17  ;;  %12489 = vmatpush3.bf16.msra.mxu1 %v4512_v8  ;;  %v9263_v17 = vshll.u32 %v13916_v28, 16  ;;  %v13919_v8 = vld [vmem:[%s14075_s25 + $0x90] sm:$0xff]  }
 0x1f5   : > { %13620 = vmatprep.subr.msk.bf16.mxu1 %vm414_vm0, %v14009_v14  ;;  %v3807_v14 = vrot.slane %v13917_v2, 1  ;;  %v3809_v7 = vrot.slane %v13919_v8, 1  ;;  %v3821_v8 = vrot.slane %v13931_v62, 1 }
 0x1f7   : > { %v3808_v20 = vsel %vm1680_vm3, %v3805_v61, %v3807_v14  ;;  %v3810_v22 = vsel %vm1680_vm3, %v3807_v14, %v3809_v7  ;;  %v13934_v14 = vld [vmem:[%s14075_s25 + $0x78] sm:$0xff]  }
 0x1fa   : > { %12815 = vmatmul.mubr.msk.bf16.gmra.mrb[24].mxu0 %vm341_vm1, %v13891_v15  ;;  %v13920_v15 = vld [vmem:[%s14075_s25 + $0x40] sm:$0xff]  }
 0x1fb   : > { %12445 = vmatmul.mubr.msk.bf16.gmra.mrb[4].mxu1 %vm341_vm1, %v3784_v10  ;;  %12818 = vmatprep.mubr.msk.bf16.mxu0 %vm341_vm1, %v13893_v18  ;;  %v9265_v10 = vrot.slane %v9263_v17, 1  ;;  %v9273_v18 = vrot.slane %v9271_v13, 1 }
 0x1fc   : > { %12448 = vmatprep.mubr.msk.bf16.mxu1 %vm341_vm1, %v3786_v6  ;;  %v9261_v6 = vor.u32 %v9259_v9, %v9257_v63  ;;  %v13932_v9 = vld [vmem:[%s14075_s25 + $0x70] sm:$0xff]  }
 0x1fd   : > { %v9269_v16 = vor.u32 %v9267_v12, %v9265_v10 }
 0x1fe   : > { %v9266_v25 = vsel %vm865_vm2, %v9261_v6, %v9265_v10  ;;  %v9327_v6 = vshll.u32 %v13932_v9, 16 }
 0x1ff   : > { %v9274_v29 = vsel %vm865_vm2, %v9269_v16, %v9273_v18 }
 0x202   : > { %12819 = vmatmul.mubr.msk.bf16.gmra.mrb[28].mxu0 %vm341_vm1, %v13895_v23  ;;  %v9279_v23 = vshll.u32 %v13920_v15, 16 }
 0x203   : > { %12449 = vmatmul.mubr.msk.bf16.gmra.mrb[8].mxu1 %vm341_vm1, %v3788_v21  ;;  %12822 = vmatprep.mubr.msk.bf16.mxu0 %vm341_vm1, %v13897_v26  ;;  %v13921_v21 = vld [vmem:[%s14075_s25 + $0x98] sm:$0xff]   ;;  %v9275_v26 = vshrl.u32 %v13918_v0, 16 }
 0x204   : > { %12452 = vmatprep.mubr.msk.bf16.mxu1 %vm341_vm1, %v3790_v24  ;;  %v13923_v24 = vld [vmem:[%s14075_s25 + $0xa0] sm:$0xff]  }
 0x205   : > { %v3813_v36 = vrot.slane %v13923_v24, 1  ;;  %v9277_v39 = vor.u32 %v9275_v26, %v9273_v18  ;;  %v9323_v18 = vshrl.u32 %v13930_v59, 16  ;;  %v13936_v24 = vld [vmem:[%s14075_s25 + $0x80] sm:$0xff]  }
 0x20a   : > { %12823 = vmatmul.mubr.msk.bf16.gmra.mrb[32].mxu0 %vm341_vm1, %v13899_v34  ;;  %v3811_v34 = vrot.slane %v13921_v21, 1  ;;  %v9335_v21 = vshll.u32 %v13934_v14, 16 }
 0x20b   : > { %12453 = vmatmul.mubr.msk.bf16.gmra.mrb[12].mxu1 %vm341_vm1, %v3792_v32  ;;  %12826 = vmatprep.mubr.msk.bf16.mxu0 %vm341_vm1, %v13901_v38  ;;  %v9283_v32 = vshrl.u32 %v13920_v15, 16  ;;  %v13924_v38 = vld [vmem:[%s14075_s25 + $0x50] sm:$0xff]  }
 0x20c   : > { %12456 = vmatprep.mubr.msk.bf16.mxu1 %vm341_vm1, %v3794_v35  ;;  %v9281_v35 = vrot.slane %v9279_v23, 1  ;;  %v3812_v43 = vsel %vm1680_vm3, %v3809_v7, %v3811_v34  ;;  %v9295_v45 = vshll.u32 %v13924_v38, 16  ;;  %v9299_v50 = vshrl.u32 %v13924_v38, 16  ;;  %v13933_v7 = vld [vmem:[%s14075_s25 + $0xc8] ss:$0 sps:$4 sm:$0x11]  }
 0x20d   : > { %v9329_v23 = vrot.slane %v9327_v6, 1 }
 0x20e   : > { %v9285_v40 = vor.u32 %v9283_v32, %v9281_v35  ;;  %v9282_v47 = vsel %vm865_vm2, %v9277_v39, %v9281_v35  ;;  %v9297_v53 = vrot.slane %v9295_v45, 1  ;;  %v9347_v39 = vshrl.u32 %v13936_v24, 16 }
 0x210   : > { %v9290_v49 = vsel %vm865_vm2, %v9285_v40, %v9289_v41  ;;  %v9298_v63 = vsel %vm865_vm2, %v9293_v56, %v9297_v53 }
 0x212   : > { %12827 = vmatmul.mubr.msk.bf16.gmra.mrb[36].mxu0 %vm341_vm1, %v13903_v58  ;;  %v13925_v58 = vld [vmem:[%s14075_s25 + $0xa8] sm:$0xff]  }
 0x213   : > { %12457 = vmatmul.mubr.msk.bf16.gmra.mrb[16].mxu1 %vm341_vm1, %v3796_v42  ;;  %12830 = vmatprep.mubr.msk.bf16.mxu0 %vm341_vm1, %v13905_v46  ;;  %v13926_v42 = vld [vmem:[%s14075_s25 + $0x58] sm:$0xff]   ;;  %v13927_v46 = vld [vmem:[%s14075_s25 + $0xb0] sm:$0xff]  }
 0x214   : > { %12460 = vmatprep.mubr.msk.bf16.mxu1 %vm341_vm1, %v3798_v44  ;;  %v3814_v44 = vsel %vm1680_vm3, %v3811_v34, %v3813_v36  ;;  %v9303_v51 = vshll.u32 %v13926_v42, 16  ;;  %v9307_v0 = vshrl.u32 %v13926_v42, 16  ;;  %v9343_v34 = vshll.u32 %v13936_v24, 16  ;;  %v13940_v42 = vld [vmem:[%s14075_s25 + $0x90] sm:$0xff]  }
 0x215   : > { %v9359_v48 = vshll.u32 %v13940_v42, 16 }
 0x216   : > { %v9305_v31 = vrot.slane %v9303_v51, 1  ;;  %v9345_v41 = vrot.slane %v9343_v34, 1  ;;  %v13956_v34 = vld [vmem:[%s14075_s25 + $0xd0] sm:$0xff]  }
 0x21a   : > { %12831 = vmatmul.mubr.msk.bf16.gmra.mrb[40].mxu0 %vm341_vm1, %v13907_v54  ;;  %v3817_v54 = vrot.slane %v13927_v46, 1  ;;  %v13942_v46 = vld [vmem:[%s14075_s25 + $0x98] sm:$0xff]  }
 0x21b   : > { %12461 = vmatmul.mubr.msk.bf16.gmra.mrb[20].mxu1 %vm341_vm1, %v3800_v52  ;;  %12834 = vmatprep.mubr.msk.bf16.mxu0 %vm341_vm1, %v13909_v57  ;;  %v3815_v52 = vrot.slane %v13925_v58, 1  ;;  %v9301_v57 = vor.u32 %v9299_v50, %v9297_v53  ;;  %v13937_v58 = vld [vmem:[%s14075_s25 + $0x18] sm:$0xff]   ;;  %v9367_v53 = vshll.u32 %v13942_v46, 16 }
 0x21c   : > { %12464 = vmatprep.mubr.msk.bf16.mxu1 %vm341_vm1, %v3802_v55  ;;  %v13928_v55 = vld [vmem:[%s14075_s25 + $0x60] sm:$0xff]  }
 0x21d   : > { %v3816_v60 = vsel %vm1680_vm3, %v3813_v36, %v3815_v52  ;;  %v3818_v61 = vsel %vm1680_vm3, %v3815_v52, %v3817_v54  ;;  %v9311_v28 = vshll.u32 %v13928_v55, 16  ;;  %v9315_v2 = vshrl.u32 %v13928_v55, 16  ;;  %v13944_v55 = vld [vmem:[%s14075_s25 + $0xa0] sm:$0xff]  }
 0x21e   : > { %v9339_v36 = vshrl.u32 %v13934_v14, 16  ;;  %v9363_v52 = vshrl.u32 %v13940_v42, 16  ;;  %v9423_v42 = vshll.u32 %v13956_v34, 16 }
 0x21f   : > { %v9313_v17 = vrot.slane %v9311_v28, 1 }
 0x221   : > { %v9317_v12 = vor.u32 %v9315_v2, %v9313_v17  ;;  %v13948_v2 = vld [vmem:[%s14075_s25 + $0xb0] sm:$0xff]  }
 0x222   : > { %12835 = vmatmul.mubr.msk.bf16.gmra.mrb[44].mxu0 %vm341_vm1, %v13911_v3  ;;  %v9319_v3 = vshll.u32 %v13930_v59, 16  ;;  %v9369_v59 = vrot.slane %v9367_v53, 1  ;;  %v13959_v53 = vld [vmem:[%s14075_s25 + $0x70] sm:$0xff]  }
 0x223   : > { %12465 = vmatmul.mubr.msk.bf16.gmra.mrb[24].mxu1 %vm341_vm1, %v3804_v1  ;;  %12840 = vmatprep.mubr.msk.bf16.mxu0 %vm341_vm1, %v9258_v11  ;;  %v9306_v1 = vsel %vm865_vm2, %v9301_v57, %v9305_v31  ;;  %v9309_v11 = vor.u32 %v9307_v0, %v9305_v31  ;;  %v13941_v57 = vld [vmem:[%s14075_s25 + $0x28] sm:$0xff]  }
 0x224   : > { %12468 = vmatprep.mubr.msk.bf16.mxu1 %vm341_vm1, %v3806_v5  ;;  %v3819_v5 = vrot.slane %v13929_v30, 1  ;;  %v9321_v13 = vrot.slane %v9319_v3, 1  ;;  %v13943_v30 = vld [vmem:[%s14075_s25 + $0x30] sm:$0xff]  }
 0x225   : > { %v9314_v16 = vsel %vm865_vm2, %v9309_v11, %v9313_v17  ;;  %v13947_v11 = vld [vmem:[%s14075_s25 + $0x40] sm:$0xff]  }
 0x226   : > { %v3820_v10 = vsel %vm1680_vm3, %v3817_v54, %v3819_v5  ;;  %v3822_v15 = vsel %vm1680_vm3, %v3819_v5, %v3821_v8  ;;  %v9322_v19 = vsel %vm865_vm2, %v9317_v12, %v9321_v13  ;;  %v9361_v54 = vrot.slane %v9359_v48, 1  ;;  %v13945_v5 = vld [vmem:[%s14075_s25 + $0x38] sm:$0xff]  }
 0x227   : > { %v9391_v12 = vshll.u32 %v13948_v2, 16 }
 0x228   : > { %v9365_v31 = vor.u32 %v9363_v52, %v9361_v54 }
 0x229   : > { %v9393_v6 = vrot.slane %v9391_v12, 1 }
 0x22a   : > { %12841 = vmatmul.mubr.msk.bf16.vlgmr.msra.gmra.mrb[0].mxu0 %vm341_vm1, %v9266_v25  ;;  %v9325_v25 = vor.u32 %v9323_v18, %v9321_v13  ;;  %v9370_v62 = vsel %vm865_vm2, %v9365_v31, %v9369_v59  ;;  %v13962_v31 = vld [vmem:[%s14075_s25 + $0x20] sm:$0xfe]  }
 0x22b   : > { %12469 = vmatmul.mubr.msk.bf16.gmra.mrb[28].mxu1 %vm341_vm1, %v3808_v20  ;;  %12889 = vmatpush3.bf16.msra.mxu0 %v10183_v27  ;;  %v9331_v20 = vshrl.u32 %v13932_v9, 16  ;;  %v9337_v27 = vrot.slane %v9335_v21, 1  ;;  %v13950_v9 = vld [vmem:[%s14075_s25 + $0xb8] sm:$0xff]  }
 0x22c   : > { %12472 = vmatprep.mubr.msk.bf16.mxu1 %vm341_vm1, %v3810_v22  ;;  %12844 = vmatprep.mubr.msk.bf16.mxu0 %vm341_vm1, %v9274_v29  ;;  %v3823_v22 = vrot.slane %v13933_v7, 1  ;;  %v13938_v29 = vld [vmem:[%s14075_s25 + $0x88] sm:$0xff]   ;;  %v9330_v35 = vsel %vm865_vm2, %v9325_v25, %v9329_v23  ;;  %v9395_v7 = vshrl.u32 %v13948_v2, 16  ;;  %v13967_v2 = vld [vmem:[%s14075_s25 + $0x38] sm:$0xff]  }
 0x22d   : > { %v9333_v26 = vor.u32 %v9331_v20, %v9329_v23  ;;  %v9351_v40 = vshll.u32 %v13938_v29, 16  ;;  %v9355_v50 = vshrl.u32 %v13938_v29, 16  ;;  %v13951_v23 = vld [vmem:[%s14075_s25 + $0x50] sm:$0xff]  }
 0x22e   : > { %v3824_v32 = vsel %vm1680_vm3, %v3821_v8, %v3823_v22  ;;  %v9397_v20 = vor.u32 %v9395_v7, %v9393_v6  ;;  %v13954_v22 = vld [vmem:[%s14075_s25 + $0xc8] sm:$0xff]  }
 0x22f   : > { %v9338_v38 = vsel %vm865_vm2, %v9333_v26, %v9337_v27  ;;  %v9353_v45 = vrot.slane %v9351_v40, 1  ;;  %v9403_v26 = vshrl.u32 %v13950_v9, 16  ;;  %v13958_v40 = vld [vmem:[%s14075_s25 + $0xd8] sm:$0xff]  }
 0x231   : > { %v9357_v56 = vor.u32 %v9355_v50, %v9353_v45  ;;  %v13957_v50 = vld [vmem:[%s14075_s25 + $0x68] sm:$0xff]  }
 0x232   : > { %12845 = vmatmul.mubr.msk.bf16.gmra.mrb[4].mxu0 %vm341_vm1, %v9282_v47  ;;  %v13939_v47 = vld [vmem:[%s14075_s25 + $0x20] sm:$0xff]  }
 0x233   : > { %12473 = vmatmul.mubr.msk.bf16.gmra.mrb[32].mxu1 %vm341_vm1, %v3812_v43  ;;  %12848 = vmatprep.mubr.msk.bf16.mxu0 %vm341_vm1, %v9290_v49  ;;  %v9341_v43 = vor.u32 %v9339_v36, %v9337_v27  ;;  %v9362_v28 = vsel %vm865_vm2, %v9357_v56, %v9361_v54  ;;  %v13953_v36 = vld [vmem:[%s14075_s25 + $0x58] sm:$0xff]  }
 0x234   : > { %12476 = vmatprep.mubr.msk.bf16.mxu1 %vm341_vm1, %v3814_v44  ;;  %v9349_v44 = vor.u32 %v9347_v39, %v9345_v41 }
 0x235   : > { %v9346_v49 = vsel %vm865_vm2, %v9341_v43, %v9345_v41  ;;  %v13955_v41 = vld [vmem:[%s14075_s25 + $0x60] sm:$0xff]  }
 0x236   : > { %v9354_v51 = vsel %vm865_vm2, %v9349_v44, %v9353_v45  ;;  %v9427_v45 = vshrl.u32 %v13956_v34, 16 }
 0x23a   : > { %12849 = vmatmul.mubr.msk.bf16.gmra.mrb[8].mxu0 %vm341_vm1, %v9298_v63  ;;  %v9379_v63 = vshrl.u32 %v13944_v55, 16 }
 0x23b   : > { %12477 = vmatmul.mubr.msk.bf16.gmra.mrb[36].mxu1 %vm341_vm1, %v3816_v60  ;;  %12852 = vmatprep.mubr.msk.bf16.mxu0 %vm341_vm1, %v9306_v1  ;;  %v13946_v60 = vld [vmem:[%s14075_s25 + $0xa8] sm:$0xff]  }
 0x23c   : > { %12480 = vmatprep.mubr.msk.bf16.mxu1 %vm341_vm1, %v3818_v61  ;;  %v9375_v61 = vshll.u32 %v13944_v55, 16  ;;  %v9383_v0 = vshll.u32 %v13946_v60, 16  ;;  %v9387_v14 = vshrl.u32 %v13946_v60, 16  ;;  %v9435_v55 = vshrl.u32 %v13958_v40, 16 }
 0x23e   : > { %v9377_v1 = vrot.slane %v9375_v61, 1  ;;  %v9385_v8 = vrot.slane %v9383_v0, 1  ;;  %v13961_v61 = vld [vmem:[%s14075_s25 + $0x78] sm:$0xff]   ;;  %v13965_v0 = vld [vmem:[%s14075_s25 + $0x30] sm:$0xff]  }
 0x240   : > { %v9381_v17 = vor.u32 %v9379_v63, %v9377_v1  ;;  %v9389_v18 = vor.u32 %v9387_v14, %v9385_v8 }
 0x242   : > { %12853 = vmatmul.mubr.msk.bf16.gmra.mrb[12].mxu0 %vm341_vm1, %v9314_v16  ;;  %v13952_v16 = vld [vmem:[%s14075_s25 + $0xc0] sm:$0xff]   ;;  %v9394_v25 = vsel %vm865_vm2, %v9389_v18, %v9393_v6 }
 0x243   : > { %12481 = vmatmul.mubr.msk.bf16.gmra.mrb[40].mxu1 %vm341_vm1, %v3820_v10  ;;  %12856 = vmatprep.mubr.msk.bf16.mxu0 %vm341_vm1, %v9322_v19  ;;  %v9386_v10 = vsel %vm865_vm2, %v9381_v17, %v9385_v8  ;;  %v13949_v19 = vld [vmem:[%s14075_s25 + $0x48] sm:$0xff]   ;;  %v9407_v24 = vshll.u32 %v13952_v16, 16  ;;  %v9411_v29 = vshrl.u32 %v13952_v16, 16  ;;  %v10066_v17 = vrot.slane %v13967_v2, 1  ;;  %v13968_v8 = vld [vmem:[%s14075_s25 + $0x90] sm:$0xff]  }
 0x244   : > { %12484 = vmatprep.mubr.msk.bf16.mxu1 %vm341_vm1, %v3822_v15  ;;  %v9399_v15 = vshll.u32 %v13950_v9, 16  ;;  %v13973_v16 = vld [vmem:[%s14075_s25 + $0x50] sm:$0xff]  }
 0x246   : > { %v9401_v21 = vrot.slane %v9399_v15, 1  ;;  %v13972_v15 = vld [vmem:[%s14075_s25 + $0xa0] sm:$0xff]  }
 0x248   : > { %v9402_v27 = vsel %vm865_vm2, %v9397_v20, %v9401_v21  ;;  %v10072_v20 = vrot.slane %v13973_v16, 1 }
 0x24a   : > { %12857 = vmatmul.mubr.msk.bf16.gmra.mrb[16].mxu0 %vm341_vm1, %v9330_v35  ;;  %v9405_v35 = vor.u32 %v9403_v26, %v9401_v21  ;;  %v13974_v21 = vld [vmem:[%s14075_s25 + $0xa8] sm:$0xff]  }
 0x24b   : > { %12485 = vmatmul.mubr.msk.bf16.gmra.mrb[44].mxu1 %vm341_vm1, %v3824_v32  ;;  %12860 = vmatprep.mubr.msk.bf16.mxu0 %vm341_vm1, %v9338_v38  ;;  %v9415_v32 = vshll.u32 %v13954_v22, 16 }
 0x24c   : > { %12490 = vmatprep.mubr.msk.bf16.mxu1 %vm341_vm1, %v13935_v33  ;;  %v9409_v33 = vrot.slane %v9407_v24, 1 }
 0x24d   : > { %v9417_v39 = vrot.slane %v9415_v32, 1 }
 0x24e   : > { %v9413_v38 = vor.u32 %v9411_v29, %v9409_v33  ;;  %v9410_v43 = vsel %vm865_vm2, %v9405_v35, %v9409_v33  ;;  %v13984_v29 = vld [vmem:[%s14075_s25 + $0x78] sm:$0xff]   ;;  %v13980_v35 = vld [vmem:[%s14075_s25 + $0xc0] sm:$0xff]  }
 0x24f   : > { %v13978_v33 = vld [vmem:[%s14075_s25 + $0xb8] sm:$0xff]  }
 0x250   : > { %v9418_v44 = vsel %vm865_vm2, %v9413_v38, %v9417_v39 }
 0x252   : > { %12861 = vmatmul.mubr.msk.bf16.gmra.mrb[20].mxu0 %vm341_vm1, %v9346_v49  ;;  %v13960_v49 = vld [vmem:[%s14075_s25 + $0xe0] ss:$0 sps:$4 sm:$0x11]  }
 0x253   : > { %12491 = vmatmul.mubr.msk.bf16.vlgmr.msra.gmra.mrb[0].mxu1 %vm341_vm1, %v13937_v58  ;;  %12864 = vmatprep.mubr.msk.bf16.mxu0 %vm341_vm1, %v9354_v51  ;;  %v9419_v58 = vshrl.u32 %v13954_v22, 16  ;;  %v9439_v56 = vshll.u32 %v13960_v49, 16 }
 0x254   : > { %12494 = vmatprep.mubr.msk.bf16.mxu1 %vm341_vm1, %v13939_v47  ;;  %12939 = vmatpush3.bf16.msra.mxu1 %v14063_v4  ;;  %v9371_v4 = vshrl.u32 %v13942_v46, 16  ;;  %v9431_v46 = vshll.u32 %v13958_v40, 16  ;;  %v9425_v47 = vrot.slane %v9423_v42, 1 }
 0x255   : > { %v9421_v48 = vor.u32 %v9419_v58, %v9417_v39  ;;  %v5161_v39 = vshll.u32 %v13984_v29, 16  ;;  %v13986_v58 = vld [vmem:[%s14075_s25 + $0x80] sm:$0xff]  }
 0x256   : > { %v9373_v3 = vor.u32 %v9371_v4, %v9369_v59  ;;  %v9429_v51 = vor.u32 %v9427_v45, %v9425_v47  ;;  %v9433_v52 = vrot.slane %v9431_v46, 1  ;;  %v13963_v59 = vld [vmem:[%s14075_s25 + $0x28] sm:$0xff]  }
 0x257   : > { %v9426_v54 = vsel %vm865_vm2, %v9421_v48, %v9425_v47  ;;  %v10062_v4 = vrot.slane %v13963_v59, 1  ;;  %v5163_v45 = vrot.slane %v5161_v39, 1  ;;  %v13988_v46 = vld [vmem:[%s14075_s25 + $0x88] sm:$0xff]   ;;  %v13990_v59 = vld [vmem:[%s14075_s25 + $0x90] sm:$0xff]  }
 0x258   : > { %v9378_v13 = vsel %vm865_vm2, %v9373_v3, %v9377_v1  ;;  %v9437_v60 = vor.u32 %v9435_v55, %v9433_v52  ;;  %v10064_v3 = vrot.slane %v13965_v0, 1  ;;  %v13982_v48 = vld [vmem:[%s14075_s25 + $0xc8] sm:$0xff]  }
 0x25a   : > { %12865 = vmatmul.mubr.msk.bf16.gmra.mrb[24].mxu0 %vm341_vm1, %v9362_v28  ;;  %v10061_v28 = vrot.slane %v13962_v31, 1  ;;  %v10065_v9 = vsel %vm1680_vm3, %v10062_v4, %v10064_v3  ;;  %v10067_v12 = vsel %vm1680_vm3, %v10064_v3, %v10066_v17  ;;  %v13987_v31 = vld [vmem:[%s14075_s25 + $0x88] sm:$0xff]   ;;  %v5189_v3 = vshrl.u32 %v13990_v59, 16 }
 0x25b   : > { %12495 = vmatmul.mubr.msk.bf16.gmra.mrb[4].mxu1 %vm341_vm1, %v13941_v57  ;;  %12868 = vmatprep.mubr.msk.bf16.mxu0 %vm341_vm1, %v9370_v62  ;;  %v9434_v57 = vsel %vm865_vm2, %v9429_v51, %v9433_v52  ;;  %v13964_v62 = vld [vmem:[%s14075_s25 + $0x80] sm:$0xff]   ;;  %v5165_v51 = vshrl.u32 %v13984_v29, 16  ;;  %v13995_v29 = vld [vmem:[%s14075_s25 + $0xa8] sm:$0xff]  }
 0x25c   : > { %12498 = vmatprep.mubr.msk.bf16.mxu1 %vm341_vm1, %v13943_v30  ;;  %v9441_v30 = vrot.slane %v9439_v56, 1  ;;  %v10063_v1 = vsel %vm1680_vm3, %v10061_v28, %v10062_v4  ;;  %v13985_v56 = vld [vmem:[%s14075_s25 + $0x80] sm:$0xff]   ;;  %v13992_v28 = vld [vmem:[%s14075_s25 + $0x98] sm:$0xff]   ;;  %v10094_v39 = vrot.slane %v13995_v29, 1 }
 0x25d   : > { %v10084_v4 = vrot.slane %v13985_v56, 1 }
 0x25e   : > { %v9442_v63 = vsel %vm865_vm2, %v9437_v60, %v9441_v30  ;;  %v5167_v60 = vor.u32 %v5165_v51, %v5163_v45 }
 0x262   : > { %12869 = vmatmul.mubr.msk.bf16.gmra.mrb[28].mxu0 %vm341_vm1, %v9378_v13  ;;  %v13971_v13 = vld [vmem:[%s14075_s25 + $0x48] sm:$0xff]  }
 0x263   : > { %12499 = vmatmul.mubr.msk.bf16.gmra.mrb[8].mxu1 %vm341_vm1, %v13945_v5  ;;  %12872 = vmatprep.mubr.msk.bf16.mxu0 %vm341_vm1, %v9386_v10  ;;  %v13966_v5 = vld [vmem:[%s14075_s25 + $0x88] sm:$0xff]   ;;  %v13970_v10 = vld [vmem:[%s14075_s25 + $0x98] sm:$0xff]   ;;  %v10070_v7 = vrot.slane %v13971_v13, 1  ;;  %v13994_v13 = vld [vmem:[%s14075_s25 + $0xa0] sm:$0xff]  }
 0x264   : > { %12502 = vmatprep.mubr.msk.bf16.mxu1 %vm341_vm1, %v13947_v11  ;;  %v13969_v11 = vld [vmem:[%s14075_s25 + $0x40] sm:$0xff]  }
 0x265   : > { %v10068_v14 = vrot.slane %v13969_v11, 1  ;;  %v10073_v24 = vsel %vm1680_vm3, %v10070_v7, %v10072_v20 }
 0x267   : > { %v10069_v6 = vsel %vm1680_vm3, %v10066_v17, %v10068_v14  ;;  %v10071_v18 = vsel %vm1680_vm3, %v10068_v14, %v10070_v7 }
 0x26a   : > { %12873 = vmatmul.mubr.msk.bf16.gmra.mrb[32].mxu0 %vm341_vm1, %v9394_v25  ;;  %v13977_v25 = vld [vmem:[%s14075_s25 + $0x60] sm:$0xff]  }
 0x26b   : > { %12503 = vmatmul.mubr.msk.bf16.gmra.mrb[12].mxu1 %vm341_vm1, %v13949_v19  ;;  %12876 = vmatprep.mubr.msk.bf16.mxu0 %vm341_vm1, %v9402_v27  ;;  %v13975_v19 = vld [vmem:[%s14075_s25 + $0x58] sm:$0xff]   ;;  %v13979_v27 = vld [vmem:[%s14075_s25 + $0x68] sm:$0xff]   ;;  %v10076_v32 = vrot.slane %v13977_v25, 1  ;;  %v13993_v25 = vld [vmem:[%s14075_s25 + $0xa0] sm:$0xff]  }
 0x26c   : > { %12506 = vmatprep.mubr.msk.bf16.mxu1 %vm341_vm1, %v13951_v23  ;;  %v10074_v22 = vrot.slane %v13975_v19, 1  ;;  %v13976_v23 = vld [vmem:[%s14075_s25 + $0xb0] sm:$0xff]   ;;  %v10078_v34 = vrot.slane %v13979_v27, 1 }
 0x26e   : > { %v10075_v26 = vsel %vm1680_vm3, %v10072_v20, %v10074_v22  ;;  %v10077_v40 = vsel %vm1680_vm3, %v10074_v22, %v10076_v32  ;;  %v10079_v42 = vsel %vm1680_vm3, %v10076_v32, %v10078_v34  ;;  %v5197_v20 = vshrl.u32 %v13992_v28, 16  ;;  %v13998_v32 = vld [vmem:[%s14075_s25 + $0xb0] sm:$0xff]  }
 0x26f   : > { %v5205_v22 = vshrl.u32 %v13994_v13, 16 }
 0x272   : > { %12877 = vmatmul.mubr.msk.bf16.gmra.mrb[36].mxu0 %vm341_vm1, %v9410_v43  ;;  %v13983_v43 = vld [vmem:[%s14075_s25 + $0x78] sm:$0xff]  }
 0x273   : > { %12507 = vmatmul.mubr.msk.bf16.gmra.mrb[16].mxu1 %vm341_vm1, %v13953_v36  ;;  %12880 = vmatprep.mubr.msk.bf16.mxu0 %vm341_vm1, %v9418_v44  ;;  %v14010_v36 = vld [vmem:[%s14075_s25 + $0x70] sm:$0xff]   ;;  %v10082_v49 = vrot.slane %v13983_v43, 1 }
 0x274   : > { %12510 = vmatprep.mubr.msk.bf16.mxu1 %vm341_vm1, %v13955_v41  ;;  %v5157_v38 = vshrl.u32 %v14010_v36, 16  ;;  %v13981_v41 = vld [vmem:[%s14075_s25 + $0x70] sm:$0xff]   ;;  %v14000_v36 = vld [vmem:[%s14075_s25 + $0xb8] sm:$0xff]  }
 0x275   : > { %v10080_v47 = vrot.slane %v13981_v41, 1  ;;  %v10085_v17 = vsel %vm1680_vm3, %v10082_v49, %v10084_v4 }
 0x276   : > { %v5159_v44 = vor.u32 %v5157_v38, %v14156_v37  ;;  %v10092_v38 = vrot.slane %v13993_v25, 1 }
 0x277   : > { %v10081_v55 = vsel %vm1680_vm3, %v10078_v34, %v10080_v47  ;;  %v10083_v37 = vsel %vm1680_vm3, %v10080_v47, %v10082_v49  ;;  %v13999_v49 = vld [vmem:[%s14075_s25 + $0xb8] sm:$0xff]  }
 0x278   : > { %v5164_v52 = vsel %vm865_vm2, %v5159_v44, %v5163_v45  ;;  %v5225_v44 = vshll.u32 %v14000_v36, 16  ;;  %v10095_v47 = vsel %vm1680_vm3, %v10092_v38, %v10094_v39  ;;  %v10098_v56 = vrot.slane %v13999_v49, 1 }
 0x27a   : > { %12881 = vmatmul.mubr.msk.bf16.gmra.mrb[40].mxu0 %vm341_vm1, %v9426_v54  ;;  %v5177_v54 = vshll.u32 %v13988_v46, 16 }
 0x27b   : > { %12511 = vmatmul.mubr.msk.bf16.gmra.mrb[20].mxu1 %vm341_vm1, %v13957_v50  ;;  %12884 = vmatprep.mubr.msk.bf16.mxu0 %vm341_vm1, %v9434_v57  ;;  %v5169_v50 = vshll.u32 %v13986_v58, 16 }
 0x27c   : > { %12514 = vmatprep.mubr.msk.bf16.mxu1 %vm341_vm1, %v13959_v53  ;;  %v5173_v53 = vshrl.u32 %v13986_v58, 16  ;;  %v5221_v58 = vshrl.u32 %v13998_v32, 16 }
 0x27d   : > { %v5171_v57 = vrot.slane %v5169_v50, 1  ;;  %v14002_v50 = vld [vmem:[%s14075_s25 + $0xc0] sm:$0xff]  }
 0x27f   : > { %v5175_v30 = vor.u32 %v5173_v53, %v5171_v57  ;;  %v5172_v0 = vsel %vm865_vm2, %v5167_v60, %v5171_v57  ;;  %v5227_v53 = vrot.slane %v5225_v44, 1  ;;  %v5237_v60 = vshrl.u32 %v14002_v50, 16 }
 0x282   : > { %12885 = vmatmul.mubr.msk.bf16.gmra.mrb[44].mxu0 %vm341_vm1, %v9442_v63  ;;  %v5185_v63 = vshll.u32 %v13990_v59, 16 }
 0x283   : > { %12515 = vmatmul.mubr.msk.bf16.gmra.mrb[24].mxu1 %vm341_vm1, %v13961_v61  ;;  %12890 = vmatprep.mubr.msk.bf16.mxu0 %vm341_vm1, %v10063_v1  ;;  %v5179_v61 = vrot.slane %v5177_v54, 1  ;;  %v5181_v1 = vshrl.u32 %v13988_v46, 16  ;;  %v13997_v46 = vld [vmem:[%s14075_s25 + $0xb0] sm:$0xff]   ;;  %v14004_v54 = vld [vmem:[%s14075_s25 + $0xc8] sm:$0xff]  }
 0x284   : > { %12518 = vmatprep.mubr.msk.bf16.mxu1 %vm341_vm1, %v13964_v62  ;;  %v10086_v62 = vrot.slane %v13987_v31, 1  ;;  %v5187_v11 = vrot.slane %v5185_v63, 1  ;;  %v5229_v31 = vshrl.u32 %v14000_v36, 16  ;;  %v14003_v63 = vld [vmem:[%s14075_s25 + $0xc8] sm:$0xff]  }
 0x285   : > { %v5180_v2 = vsel %vm865_vm2, %v5175_v30, %v5179_v61  ;;  %v5183_v14 = vor.u32 %v5181_v1, %v5179_v61  ;;  %v5241_v30 = vshll.u32 %v14004_v54, 16  ;;  %v14006_v1 = vld [vmem:[%s14075_s25 + $0xd0] ss:$0 sps:$4 sm:$0x11]  }
 0x287   : > { %v5188_v19 = vsel %vm865_vm2, %v5183_v14, %v5187_v11  ;;  %v14005_v14 = vld [vmem:[%s14075_s25 + $0xd0] sm:$0xff]  }
 0x28a   : > { %12891 = vmatmul.mubr.msk.bf16.vlgmr.msra.gmra.mrb[0].mxu0 %vm341_vm1, %v10065_v9  ;;  %v10087_v9 = vsel %vm1680_vm3, %v10084_v4, %v10086_v62 }
 0x28b   : > { %12519 = vmatmul.mubr.msk.bf16.gmra.mrb[28].mxu1 %vm341_vm1, %v13966_v5  ;;  %12894 = vmatprep.mubr.msk.bf16.mxu0 %vm341_vm1, %v10067_v12  ;;  %v5193_v5 = vshll.u32 %v13992_v28, 16  ;;  %v13991_v12 = vld [vmem:[%s14075_s25 + $0x98] sm:$0xff]   ;;  %v14001_v28 = vld [vmem:[%s14075_s25 + $0xc0] sm:$0xff]  }
 0x28c   : > { %12522 = vmatprep.mubr.msk.bf16.mxu1 %vm341_vm1, %v13968_v8  ;;  %v13989_v8 = vld [vmem:[%s14075_s25 + $0x90] sm:$0xff]   ;;  %v10090_v16 = vrot.slane %v13991_v12, 1 }
 0x28d   : > { %v5195_v7 = vrot.slane %v5193_v5, 1  ;;  %v10100_v5 = vrot.slane %v14001_v28, 1 }
 0x28e   : > { %v10093_v45 = vsel %vm1680_vm3, %v10090_v16, %v10092_v38 }
 0x292   : > { %12895 = vmatmul.mubr.msk.bf16.gmra.mrb[4].mxu0 %vm341_vm1, %v10069_v6  ;;  %v10088_v6 = vrot.slane %v13989_v8, 1 }
 0x293   : > { %12523 = vmatmul.mubr.msk.bf16.gmra.mrb[32].mxu1 %vm341_vm1, %v13970_v10  ;;  %12898 = vmatprep.mubr.msk.bf16.mxu0 %vm341_vm1, %v10071_v18  ;;  %v5191_v10 = vor.u32 %v5189_v3, %v5187_v11  ;;  %v5201_v18 = vshll.u32 %v13994_v13, 16  ;;  %v5243_v3 = vrot.slane %v5241_v30, 1  ;;  %v5249_v11 = vshll.u32 %v14006_v1, 16 }
 0x294   : > { %12526 = vmatprep.mubr.msk.bf16.mxu1 %vm341_vm1, %v13972_v15  ;;  %v13996_v15 = vld [vmem:[%s14075_s25 + $0xa8] sm:$0xff]   ;;  %v10101_v13 = vsel %vm1680_vm3, %v10098_v56, %v10100_v5 }
 0x295   : > { %v5203_v27 = vrot.slane %v5201_v18, 1 }
 0x297   : > { %v5207_v34 = vor.u32 %v5205_v22, %v5203_v27 }
 0x29a   : > { %12899 = vmatmul.mubr.msk.bf16.gmra.mrb[8].mxu0 %vm341_vm1, %v10073_v24  ;;  %v10089_v24 = vsel %vm1680_vm3, %v10086_v62, %v10088_v6 }
 0x29b   : > { %12527 = vmatmul.mubr.msk.bf16.gmra.mrb[36].mxu1 %vm341_vm1, %v13974_v21  ;;  %12902 = vmatprep.mubr.msk.bf16.mxu0 %vm341_vm1, %v10075_v26  ;;  %v5196_v21 = vsel %vm865_vm2, %v5191_v10, %v5195_v7  ;;  %v10091_v26 = vsel %vm1680_vm3, %v10088_v6, %v10090_v16  ;;  %v5251_v6 = vrot.slane %v5249_v11, 1  ;;  %v10104_v16 = vrot.slane %v14005_v14, 1 }
 0x29c   : > { %12530 = vmatprep.mubr.msk.bf16.mxu1 %vm341_vm1, %v13976_v23  ;;  %v5209_v23 = vshll.u32 %v13996_v15, 16 }
 0x2a2   : > { %12903 = vmatmul.mubr.msk.bf16.gmra.mrb[12].mxu0 %vm341_vm1, %v10077_v40  ;;  %v5217_v40 = vshll.u32 %v13998_v32, 16 }
 0x2a3   : > { %12531 = vmatmul.mubr.msk.bf16.gmra.mrb[40].mxu1 %vm341_vm1, %v13978_v33  ;;  %12906 = vmatprep.mubr.msk.bf16.mxu0 %vm341_vm1, %v10079_v42  ;;  %v5199_v33 = vor.u32 %v5197_v20, %v5195_v7  ;;  %v5213_v42 = vshrl.u32 %v13996_v15, 16  ;;  %v14007_v7 = vld [vmem:[%s14075_s25 + $0xd8] sm:$0xff]  }
 0x2a4   : > { %12534 = vmatprep.mubr.msk.bf16.mxu1 %vm341_vm1, %v13980_v35  ;;  %v5211_v35 = vrot.slane %v5209_v23, 1  ;;  %v10106_v18 = vrot.slane %v14007_v7, 1 }
 0x2a5   : > { %v5204_v41 = vsel %vm865_vm2, %v5199_v33, %v5203_v27 }
 0x2a6   : > { %v5212_v43 = vsel %vm865_vm2, %v5207_v34, %v5211_v35  ;;  %v5215_v51 = vor.u32 %v5213_v42, %v5211_v35  ;;  %v10107_v22 = vsel %vm1680_vm3, %v10104_v16, %v10106_v18 }
 0x2aa   : > { %12907 = vmatmul.mubr.msk.bf16.gmra.mrb[16].mxu0 %vm341_vm1, %v10081_v55  ;;  %v10096_v55 = vrot.slane %v13997_v46, 1 }
 0x2ab   : > { %12535 = vmatmul.mubr.msk.bf16.gmra.mrb[44].mxu1 %vm341_vm1, %v13982_v48  ;;  %12910 = vmatprep.mubr.msk.bf16.mxu0 %vm341_vm1, %v10083_v37  ;;  %v5219_v48 = vrot.slane %v5217_v40, 1  ;;  %v5233_v37 = vshll.u32 %v14002_v50, 16 }
 0x2ac   : > { %12564 = vmatprep.mubr.msk.bf16.mxu1 %vm341_vm1, %v5164_v52  ;;  %v10097_v61 = vsel %vm1680_vm3, %v10094_v39, %v10096_v55  ;;  %v10099_v4 = vsel %vm1680_vm3, %v10096_v55, %v10098_v56 }
 0x2ad   : > { %v5223_v52 = vor.u32 %v5221_v58, %v5219_v48  ;;  %v5220_v57 = vsel %vm865_vm2, %v5215_v51, %v5219_v48  ;;  %v5235_v62 = vrot.slane %v5233_v37, 1 }
 0x2af   : > { %v5228_v59 = vsel %vm865_vm2, %v5223_v52, %v5227_v53 }
 0x2b2   : > { %12911 = vmatmul.mubr.msk.bf16.gmra.mrb[20].mxu0 %vm341_vm1, %v10085_v17  ;;  %v10102_v17 = vrot.slane %v14003_v63, 1 }
 0x2b3   : > { %12565 = vmatmul.mubr.msk.bf16.vlgmr.msra.gmra.mrb[24].mxu1 %vm341_vm1, %v5172_v0  ;;  %12914 = vmatprep.mubr.msk.bf16.mxu0 %vm341_vm1, %v10087_v9  ;;  %v5231_v0 = vor.u32 %v5229_v31, %v5227_v53  ;;  %v5245_v9 = vshrl.u32 %v14004_v54, 16 }
 0x2b4   : > { %12568 = vmatprep.mubr.msk.bf16.mxu1 %vm341_vm1, %v5180_v2  ;;  %v5239_v2 = vor.u32 %v5237_v60, %v5235_v62  ;;  %v10103_v10 = vsel %vm1680_vm3, %v10100_v5, %v10102_v17  ;;  %v10105_v20 = vsel %vm1680_vm3, %v10102_v17, %v10104_v16 }
 0x2b5   : > { %v5236_v8 = vsel %vm865_vm2, %v5231_v0, %v5235_v62  ;;  %v5247_v15 = vor.u32 %v5245_v9, %v5243_v3 }
 0x2b6   : > { %v5244_v12 = vsel %vm865_vm2, %v5239_v2, %v5243_v3 }
 0x2ba   : > { %12915 = vmatmul.mubr.msk.bf16.gmra.mrb[24].mxu0 %vm341_vm1, %v10089_v24 }
 0x2bb   : > { %12569 = vmatmul.mubr.msk.bf16.gmra.mrb[28].mxu1 %vm341_vm1, %v5188_v19  ;;  %12918 = vmatprep.mubr.msk.bf16.mxu0 %vm341_vm1, %v10091_v26  ;;  %v5252_v19 = vsel %vm865_vm2, %v5247_v15, %v5251_v6 }
 0x2bc   : > { %12572 = vmatprep.mubr.msk.bf16.mxu1 %vm341_vm1, %v5196_v21  ;;  %v14008_v21 = vld [vmem:[%s14075_s25 + $0xe0] ss:$0 sps:$4 sm:$0x11]   ;;  %s14019_s25 = smov 64  }
 0x2bd   : > { %v10108_v23 = vrot.slane %v14008_v21, 1 }
 0x2bf   : > { %v10109_v24 = vsel %vm1680_vm3, %v10106_v18, %v10108_v23 }
 0x2c2   : > { %12919 = vmatmul.mubr.msk.bf16.gmra.mrb[28].mxu0 %vm341_vm1, %v10093_v45 }
 0x2c3   : > { %12573 = vmatmul.mubr.msk.bf16.gmra.mrb[32].mxu1 %vm341_vm1, %v5204_v41  ;;  %12922 = vmatprep.mubr.msk.bf16.mxu0 %vm341_vm1, %v10095_v47 }
 0x2c4   : > { %12576 = vmatprep.mubr.msk.bf16.mxu1 %vm341_vm1, %v5212_v43 }
 0x2ca   : > { %12923 = vmatmul.mubr.msk.bf16.gmra.mrb[32].mxu0 %vm341_vm1, %v10097_v61 }
 0x2cb   : > { %12577 = vmatmul.mubr.msk.bf16.gmra.mrb[36].mxu1 %vm341_vm1, %v5220_v57  ;;  %12926 = vmatprep.mubr.msk.bf16.mxu0 %vm341_vm1, %v10099_v4 }
 0x2cc   : > { %12580 = vmatprep.mubr.msk.bf16.mxu1 %vm341_vm1, %v5228_v59 }
 0x2d2   : > { %12927 = vmatmul.mubr.msk.bf16.gmra.mrb[36].mxu0 %vm341_vm1, %v10101_v13 }
 0x2d3   : > { %12581 = vmatmul.mubr.msk.bf16.gmra.mrb[40].mxu1 %vm341_vm1, %v5236_v8  ;;  %12930 = vmatprep.mubr.msk.bf16.mxu0 %vm341_vm1, %v10103_v10 }
 0x2d4   : > { %12584 = vmatprep.mubr.msk.bf16.mxu1 %vm341_vm1, %v5244_v12 }
 0x2da   : > { %12931 = vmatmul.mubr.msk.bf16.gmra.mrb[40].mxu0 %vm341_vm1, %v10105_v20 }
 0x2db   : > { %12585 = vmatmul.mubr.msk.bf16.gmra.mrb[44].mxu1 %vm341_vm1, %v5252_v19  ;;  %12934 = vmatprep.mubr.msk.bf16.mxu0 %vm341_vm1, %v10107_v22 }
 0x2e2   : > { %12935 = vmatmul.mubr.msk.bf16.gmra.mrb[44].mxu0 %vm341_vm1, %v10109_v24 }
 0x326   : > { %v12492_v25 = vpop.f32.mrb[0].mxu1 }
 0x327   : > { %v4548_v26 = vpop.f32.mrb[1].mxu1 }
 0x328   : > { %v12493_v27 = vpop.f32.mrb[2].mxu1 }
 0x329   : > { %v4551_v29 = vpop.f32.mrb[3].mxu1 }
 0x32e   : > { %v12496_v32 = vpop.f32.mrb[4].mxu1 }
 0x32f   : > { %v4564_v33 = vpop.f32.mrb[5].mxu1 }
 0x330   : > { %v12497_v34 = vpop.f32.mrb[6].mxu1 }
 0x331   : > { %v4567_v35 = vpop.f32.mrb[7].mxu1 }
 0x336   : > { %v12500_v36 = vpop.f32.mrb[8].mxu1 }
 0x337   : > { %v4580_v38 = vpop.f32.mrb[9].mxu1 }
 0x338   : > { %v12501_v39 = vpop.f32.mrb[10].mxu1 }
 0x339   : > { %v4583_v40 = vpop.f32.mrb[11].mxu1 }
 0x33e   : > { %v12504_v41 = vpop.f32.mrb[12].mxu1 }
 0x33f   : > { %v4596_v42 = vpop.f32.mrb[13].mxu1 }
 0x340   : > { %v12505_v43 = vpop.f32.mrb[14].mxu1 }
 0x341   : > { %v4599_v58 = vpop.f32.mrb[15].mxu1 }
 0x346   : > { %v12508_v44 = vpop.f32.mrb[16].mxu1 }
 0x347   : > { %v4612_v45 = vpop.f32.mrb[17].mxu1 }
 0x348   : > { %v12509_v46 = vpop.f32.mrb[18].mxu1 }
 0x349   : > { %v4615_v47 = vpop.f32.mrb[19].mxu1 }
 0x34e   : > { %v15158_v48 = vpop.f32.mrb[20].mxu1 }
 0x34f   : > { %v15160_v49 = vpop.f32.mrb[21].mxu1 }
 0x350   : > { %v15162_v50 = vpop.f32.mrb[22].mxu1 }
 0x351   : > { %v15164_v51 = vpop.f32.mrb[23].mxu1 }
 0x35d   : > { %v12892_v52 = vpop.f32.mrb[0].mxu0 }
 0x35e   : > { %v12940_v53 = vadd.f32 %v12892_v52, %v12492_v25  ;;  %v10219_v54 = vpop.f32.mrb[1].mxu0 }
 0x35f   : > { %v12941_v55 = vadd.f32 %v10219_v54, %v4548_v26  ;;  %v12893_v56 = vpop.f32.mrb[2].mxu0 }
 0x360   : > { %v12942_v37 = vadd.f32 %v12893_v56, %v12493_v27  ;;  %v10222_v57 = vpop.f32.mrb[3].mxu0 }
 0x361   : > { %v12943_v31 = vadd.f32 %v10222_v57, %v4551_v29  ;;  %v15166_v59 = vmax.f32 %v12941_v55, %v12940_v53 }
 0x363   : > { %v15168_v60 = vmax.f32 %v12943_v31, %v12942_v37  ;;  %10563 = vrot.lane.b32.xlu0 %v15166_v59, %s14019_s25 }
 0x365   : > { %v12896_v30 = vpop.f32.mrb[4].mxu0 }
 0x366   : > { %v12944_v61 = vadd.f32 %v12896_v30, %v12496_v32  ;;  %v10235_v28 = vpop.f32.mrb[5].mxu0 }
 0x367   : > { %v12945_v4 = vadd.f32 %v10235_v28, %v4564_v33  ;;  %v12897_v62 = vpop.f32.mrb[6].mxu0  ;;  %10565 = vrot.lane.b32.xlu0 %v15168_v60, %s14019_s25 }
 0x368   : > { %v12946_v63 = vadd.f32 %v12897_v62, %v12497_v34  ;;  %v10238_v0 = vpop.f32.mrb[7].mxu0 }
 0x369   : > { %v12947_v1 = vadd.f32 %v10238_v0, %v4567_v35  ;;  %v15174_v2 = vmax.f32 %v12945_v4, %v12944_v61 }
 0x36b   : > { %v15176_v3 = vmax.f32 %v12947_v1, %v12946_v63  ;;  %10601 = vrot.lane.b32.xlu1 %v15174_v2, %s14019_s25 }
 0x36d   : > { %v12900_v5 = vpop.f32.mrb[8].mxu0 }
 0x36e   : > { %v12948_v17 = vadd.f32 %v12900_v5, %v12500_v36  ;;  %v10251_v8 = vpop.f32.mrb[9].mxu0 }
 0x36f   : > { %v12949_v9 = vadd.f32 %v10251_v8, %v4580_v38  ;;  %v12901_v11 = vpop.f32.mrb[10].mxu0  ;;  %10603 = vrot.lane.b32.xlu1 %v15176_v3, %s14019_s25 }
 0x370   : > { %v12950_v12 = vadd.f32 %v12901_v11, %v12501_v39  ;;  %v10254_v13 = vpop.f32.mrb[11].mxu0 }
 0x371   : > { %v15182_v14 = vmax.f32 %v12949_v9, %v12948_v17  ;;  %v12951_v10 = vadd.f32 %v10254_v13, %v4583_v40 }
 0x373   : > { %v15184_v7 = vmax.f32 %v12951_v10, %v12950_v12  ;;  %10632 = vrot.lane.b32.xlu0 %v15182_v14, %s14019_s25 }
 0x375   : > { %v12904_v15 = vpop.f32.mrb[12].mxu0  ;;  %10634 = vrot.lane.b32.xlu1 %v15184_v7, %s14019_s25 }
 0x376   : > { %v12952_v6 = vadd.f32 %v12904_v15, %v12504_v41  ;;  %v10267_v16 = vpop.f32.mrb[13].mxu0 }
 0x377   : > { %v12953_v18 = vadd.f32 %v10267_v16, %v4596_v42  ;;  %v12905_v19 = vpop.f32.mrb[14].mxu0 }
 0x378   : > { %v12954_v20 = vadd.f32 %v12905_v19, %v12505_v43  ;;  %v10270_v21 = vpop.f32.mrb[15].mxu0 }
 0x379   : > { %v15190_v22 = vmax.f32 %v12953_v18, %v12952_v6  ;;  %v12955_v23 = vadd.f32 %v10270_v21, %v4599_v58 }
 0x37b   : > { %v15192_v24 = vmax.f32 %v12955_v23, %v12954_v20  ;;  %10663 = vrot.lane.b32.xlu0 %v15190_v22, %s14019_s25 }
 0x37d   : > { %v12908_v25 = vpop.f32.mrb[16].mxu0  ;;  %10665 = vrot.lane.b32.xlu1 %v15192_v24, %s14019_s25 }
 0x37e   : > { %v12956_v26 = vadd.f32 %v12908_v25, %v12508_v44  ;;  %v10283_v27 = vpop.f32.mrb[17].mxu0 }
 0x37f   : > { %v12957_v29 = vadd.f32 %v10283_v27, %v4612_v45  ;;  %v12909_v32 = vpop.f32.mrb[18].mxu0 }
 0x380   : > { %v12958_v33 = vadd.f32 %v12909_v32, %v12509_v46  ;;  %v10286_v34 = vpop.f32.mrb[19].mxu0 }
 0x381   : > { %v15198_v35 = vmax.f32 %v12957_v29, %v12956_v26  ;;  %v12959_v36 = vadd.f32 %v10286_v34, %v4615_v47 }
 0x383   : > { %v15200_v38 = vmax.f32 %v12959_v36, %v12958_v33  ;;  %10694 = vrot.lane.b32.xlu0 %v15198_v35, %s14019_s25 }
 0x385   : > { %v12912_v41 = vpop.f32.mrb[20].mxu0  ;;  %10696 = vrot.lane.b32.xlu1 %v15200_v38, %s14019_s25 }
 0x386   : > { %v12566_v39 = vpop.f32.mrb[24].mxu1  ;;  %v12960_v43 = vadd.f32 %v12912_v41, %v15158_v48  ;;  %v10299_v58 = vpop.f32.mrb[21].mxu0 }
 0x387   : > { %v5458_v40 = vpop.f32.mrb[25].mxu1  ;;  %v12961_v45 = vadd.f32 %v10299_v58, %v15160_v49  ;;  %v12913_v46 = vpop.f32.mrb[22].mxu0 }
 0x388   : > { %v12567_v42 = vpop.f32.mrb[26].mxu1  ;;  %v12962_v47 = vadd.f32 %v12913_v46, %v15162_v50  ;;  %v10302_v52 = vpop.f32.mrb[23].mxu0 }
 0x389   : > { %v5461_v44 = vpop.f32.mrb[27].mxu1  ;;  %v15209_v53 = vmax.f32 %v12961_v45, %v12960_v43  ;;  %v12963_v54 = vadd.f32 %v10302_v52, %v15164_v51 }
 0x38b   : > { %v15212_v55 = vmax.f32 %v12963_v54, %v12962_v47  ;;  %10725 = vrot.lane.b32.xlu0 %v15209_v53, %s14019_s25 }
 0x38d   : > { %v12916_v48 = vpop.f32.mrb[24].mxu0  ;;  %10727 = vrot.lane.b32.xlu1 %v15212_v55, %s14019_s25 }
 0x38e   : > { %v12570_v56 = vpop.f32.mrb[28].mxu1  ;;  %v12964_v57 = vadd.f32 %v12916_v48, %v12566_v39  ;;  %v10315_v31 = vpop.f32.mrb[25].mxu0 }
 0x38f   : > { %v5474_v37 = vpop.f32.mrb[29].mxu1  ;;  %v12965_v30 = vadd.f32 %v10315_v31, %v5458_v40  ;;  %v12917_v61 = vpop.f32.mrb[26].mxu0 }
 0x390   : > { %v12571_v49 = vpop.f32.mrb[30].mxu1  ;;  %v12966_v28 = vadd.f32 %v12917_v61, %v12567_v42  ;;  %v10318_v4 = vpop.f32.mrb[27].mxu0 }
 0x391   : > { %v5477_v50 = vpop.f32.mrb[31].mxu1  ;;  %v15218_v51 = vmax.f32 %v12965_v30, %v12964_v57  ;;  %v12967_v62 = vadd.f32 %v10318_v4, %v5461_v44 }
 0x393   : > { %v15220_v63 = vmax.f32 %v12967_v62, %v12966_v28  ;;  %10756 = vrot.lane.b32.xlu0 %v15218_v51, %s14019_s25 }
 0x395   : > { %v12920_v5 = vpop.f32.mrb[28].mxu0  ;;  %10758 = vrot.lane.b32.xlu1 %v15220_v63, %s14019_s25 }
 0x396   : > { %v12574_v0 = vpop.f32.mrb[32].mxu1  ;;  %v12968_v8 = vadd.f32 %v12920_v5, %v12570_v56  ;;  %v10331_v9 = vpop.f32.mrb[29].mxu0 }
 0x397   : > { %v5490_v1 = vpop.f32.mrb[33].mxu1  ;;  %v12969_v12 = vadd.f32 %v10331_v9, %v5474_v37  ;;  %v12921_v13 = vpop.f32.mrb[30].mxu0 }
 0x398   : > { %v12575_v17 = vpop.f32.mrb[34].mxu1  ;;  %v12970_v10 = vadd.f32 %v12921_v13, %v12571_v49  ;;  %v10334_v15 = vpop.f32.mrb[31].mxu0 }
 0x399   : > { %v5493_v11 = vpop.f32.mrb[35].mxu1  ;;  %v15226_v6 = vmax.f32 %v12969_v12, %v12968_v8  ;;  %v12971_v16 = vadd.f32 %v10334_v15, %v5477_v50 }
 0x39b   : > { %v15228_v18 = vmax.f32 %v12971_v16, %v12970_v10  ;;  %10787 = vrot.lane.b32.xlu0 %v15226_v6, %s14019_s25 }
 0x39d   : > { %v12924_v21 = vpop.f32.mrb[32].mxu0  ;;  %10789 = vrot.lane.b32.xlu1 %v15228_v18, %s14019_s25 }
 0x39e   : > { %v12578_v19 = vpop.f32.mrb[36].mxu1  ;;  %v12972_v25 = vadd.f32 %v12924_v21, %v12574_v0  ;;  %v10347_v26 = vpop.f32.mrb[33].mxu0 }
 0x39f   : > { %v5506_v20 = vpop.f32.mrb[37].mxu1  ;;  %v12973_v29 = vadd.f32 %v10347_v26, %v5490_v1  ;;  %v12925_v32 = vpop.f32.mrb[34].mxu0 }
 0x3a0   : > { %v12579_v23 = vpop.f32.mrb[38].mxu1  ;;  %v12974_v33 = vadd.f32 %v12925_v32, %v12575_v17  ;;  %v10350_v34 = vpop.f32.mrb[35].mxu0 }
 0x3a1   : > { %v5509_v27 = vpop.f32.mrb[39].mxu1  ;;  %v15234_v36 = vmax.f32 %v12973_v29, %v12972_v25  ;;  %v12975_v39 = vadd.f32 %v10350_v34, %v5493_v11  ;;  %v15269_v25 = vld [vmem:[%s15378_s2] ss:$0 sm:$0xff] }
 0x3a3   : > { %v15236_v40 = vmax.f32 %v12975_v39, %v12974_v33  ;;  %10818 = vrot.lane.b32.xlu0 %v15234_v36, %s14019_s25 }
 0x3a5   : > { %v12928_v43 = vpop.f32.mrb[36].mxu0  ;;  %10820 = vrot.lane.b32.xlu1 %v15236_v40, %s14019_s25 }
 0x3a6   : > { %v12582_v41 = vpop.f32.mrb[40].mxu1  ;;  %v12976_v44 = vadd.f32 %v12928_v43, %v12578_v19  ;;  %v10363_v45 = vpop.f32.mrb[37].mxu0 }
 0x3a7   : > { %v5522_v42 = vpop.f32.mrb[41].mxu1  ;;  %v12977_v47 = vadd.f32 %v10363_v45, %v5506_v20  ;;  %v12929_v52 = vpop.f32.mrb[38].mxu0 }
 0x3a8   : > { %v12583_v58 = vpop.f32.mrb[42].mxu1  ;;  %v12978_v54 = vadd.f32 %v12929_v52, %v12579_v23  ;;  %v10366_v56 = vpop.f32.mrb[39].mxu0 }
 0x3a9   : > { %v5525_v46 = vpop.f32.mrb[43].mxu1  ;;  %v15242_v37 = vmax.f32 %v12977_v47, %v12976_v44  ;;  %v12979_v48 = vadd.f32 %v10366_v56, %v5509_v27 }
 0x3ab   : > { %v15244_v49 = vmax.f32 %v12979_v48, %v12978_v54  ;;  %10849 = vrot.lane.b32.xlu0 %v15242_v37, %s14019_s25 }
 0x3ad   : > { %v12932_v50 = vpop.f32.mrb[40].mxu0  ;;  %10851 = vrot.lane.b32.xlu1 %v15244_v49, %s14019_s25 }
 0x3ae   : > { %v12586_v57 = vpop.f32.mrb[44].mxu1  ;;  %v12980_v61 = vadd.f32 %v12932_v50, %v12582_v41  ;;  %v10379_v28 = vpop.f32.mrb[41].mxu0 }
 0x3af   : > { %v5538_v31 = vpop.f32.mrb[45].mxu1  ;;  %v12981_v62 = vadd.f32 %v10379_v28, %v5522_v42  ;;  %v12933_v0 = vpop.f32.mrb[42].mxu0 }
 0x3b0   : > { %v12587_v30 = vpop.f32.mrb[46].mxu1  ;;  %v12982_v1 = vadd.f32 %v12933_v0, %v12583_v58  ;;  %v10382_v5 = vpop.f32.mrb[43].mxu0 }
 0x3b1   : > { %v5541_v4 = vpop.f32.mrb[47].mxu1  ;;  %v15250_v17 = vmax.f32 %v12981_v62, %v12980_v61  ;;  %v12983_v8 = vadd.f32 %v10382_v5, %v5525_v46 }
 0x3b3   : > { %v15252_v9 = vmax.f32 %v12983_v8, %v12982_v1  ;;  %10880 = vrot.lane.b32.xlu0 %v15250_v17, %s14019_s25 }
 0x3b5   : > { %v12936_v11 = vpop.f32.mrb[44].mxu0  ;;  %10882 = vrot.lane.b32.xlu1 %v15252_v9, %s14019_s25 }
 0x3b6   : > { %v12984_v12 = vadd.f32 %v12936_v11, %v12586_v57  ;;  %v10395_v13 = vpop.f32.mrb[45].mxu0 }
 0x3b7   : > { %v12985_v10 = vadd.f32 %v10395_v13, %v5538_v31  ;;  %v12937_v15 = vpop.f32.mrb[46].mxu0 }
 0x3b8   : > { %v12986_v16 = vadd.f32 %v12937_v15, %v12587_v30  ;;  %v10398_v19 = vpop.f32.mrb[47].mxu0 }
 0x3b9   : > { %v15258_v20 = vmax.f32 %v12985_v10, %v12984_v12  ;;  %v12987_v21 = vadd.f32 %v10398_v19, %v5541_v4 }
 0x3bb   : > { %v15260_v23 = vmax.f32 %v12987_v21, %v12986_v16  ;;  %10911 = vrot.lane.b32.xlu0 %v15258_v20, %s14019_s25 }
 0x3bd   : > { %10913 = vrot.lane.b32.xlu1 %v15260_v23, %s14019_s25 }
 0x3d5   : > { %v10564_v26 = vpop.permute.xlu0 %10563 }
 0x3d6   : > { %v10569_v27 = vmax.f32 %v15166_v59, %v10564_v26 }
 0x3d8   : > { %v10577_v29 = vadd.f32 %v15269_v25, %v10569_v27 }
 0x3d9   : > { %v10566_v32 = vpop.permute.xlu0 %10565 }
 0x3da   : > { %v10579_v33 = vmax.f32 %v10577_v29, 0.0  ;;  %v10570_v34 = vmax.f32 %v15168_v60, %v10566_v32 }
 0x3dc   : > { %v11789_v39 = vpack.c.bf16 %v10579_v33, %v10579_v33  ;;  %v10578_v41 = vadd.f32 %v15269_v25, %v10570_v34 }
 0x3dd   : > { %v10602_v59 = vpop.permute.xlu1 %10601 }
 0x3de   : > { %10590 = vst.msk [vmem:[%s15278_s4] sm:$0xf] %vm10589_vm4, %v11789_v39  ;;  %v10580_v42 = vmax.f32 %v10578_v41, 0.0  ;;  %v10607_v43 = vmax.f32 %v15174_v2, %v10602_v59 }
 0x3e0   : > { %v11790_v60 = vpack.c.bf16 %v10580_v42, %v10580_v42  ;;  %v10609_v58 = vadd.f32 %v15269_v25, %v10607_v43 }
 0x3e1   : > { %v10604_v44 = vpop.permute.xlu1 %10603 }
 0x3e2   : > { %10592 = vst.msk [vmem:[%s15278_s4 + $0x4] sm:$0x3] %vm10591_vm5, %v11790_v60  ;;  %v10611_v45 = vmax.f32 %v10609_v58, 0.0  ;;  %v10608_v46 = vmax.f32 %v15176_v3, %v10604_v44 }
 0x3e4   : > { %v11791_v47 = vpack.c.bf16 %v10611_v45, %v10611_v45  ;;  %v10610_v52 = vadd.f32 %v15269_v25, %v10608_v46 }
 0x3e5   : > { %v10633_v54 = vpop.permute.xlu0 %10632 }
 0x3e6   : > { %11745 = vst.msk [vmem:[%s15278_s4 + $0x8] sm:$0xf] %vm10589_vm4, %v11791_v47  ;;  %v10612_v56 = vmax.f32 %v10610_v52, 0.0  ;;  %v10638_v2 = vmax.f32 %v15182_v14, %v10633_v54 }
 0x3e7   : > { %v10635_v48 = vpop.permute.xlu1 %10634 }
 0x3e8   : > { %v11792_v57 = vpack.c.bf16 %v10612_v56, %v10612_v56  ;;  %v10640_v31 = vadd.f32 %v15269_v25, %v10638_v2  ;;  %v10639_v50 = vmax.f32 %v15184_v7, %v10635_v48 }
 0x3ea   : > { %11746 = vst.msk [vmem:[%s15278_s4 + $0xc] sm:$0x3] %vm10591_vm5, %v11792_v57  ;;  %v10642_v3 = vmax.f32 %v10640_v31, 0.0  ;;  %v10641_v30 = vadd.f32 %v15269_v25, %v10639_v50 }
 0x3ec   : > { %v11793_v61 = vpack.c.bf16 %v10642_v3, %v10642_v3  ;;  %v10643_v28 = vmax.f32 %v10641_v30, 0.0 }
 0x3ed   : > { %v10664_v4 = vpop.permute.xlu0 %10663 }
 0x3ee   : > { %11749 = vst.msk [vmem:[%s15278_s4 + $0x10] sm:$0xf] %vm10589_vm4, %v11793_v61  ;;  %v11794_v62 = vpack.c.bf16 %v10643_v28, %v10643_v28  ;;  %v10669_v14 = vmax.f32 %v15190_v22, %v10664_v4 }
 0x3ef   : > { %v10666_v0 = vpop.permute.xlu1 %10665 }
 0x3f0   : > { %11750 = vst.msk [vmem:[%s15278_s4 + $0x14] sm:$0x3] %vm10591_vm5, %v11794_v62  ;;  %v10671_v7 = vadd.f32 %v15269_v25, %v10669_v14  ;;  %v10670_v1 = vmax.f32 %v15192_v24, %v10666_v0 }
 0x3f2   : > { %v10673_v5 = vmax.f32 %v10671_v7, 0.0  ;;  %v10672_v8 = vadd.f32 %v15269_v25, %v10670_v1 }
 0x3f4   : > { %v11795_v11 = vpack.c.bf16 %v10673_v5, %v10673_v5  ;;  %v10674_v12 = vmax.f32 %v10672_v8, 0.0 }
 0x3f5   : > { %v10695_v13 = vpop.permute.xlu0 %10694 }
 0x3f6   : > { %11753 = vst.msk [vmem:[%s15278_s4 + $0x18] sm:$0xf] %vm10589_vm4, %v11795_v11  ;;  %v11796_v10 = vpack.c.bf16 %v10674_v12, %v10674_v12  ;;  %v10700_v22 = vmax.f32 %v15198_v35, %v10695_v13 }
 0x3f7   : > { %v10697_v15 = vpop.permute.xlu1 %10696 }
 0x3f8   : > { %11754 = vst.msk [vmem:[%s15278_s4 + $0x1c] sm:$0x3] %vm10591_vm5, %v11796_v10  ;;  %v10702_v16 = vadd.f32 %v15269_v25, %v10700_v22  ;;  %v10701_v24 = vmax.f32 %v15200_v38, %v10697_v15 }
 0x3fa   : > { %v10704_v19 = vmax.f32 %v10702_v16, 0.0  ;;  %v10703_v21 = vadd.f32 %v15269_v25, %v10701_v24 }
 0x3fc   : > { %v11797_v26 = vpack.c.bf16 %v10704_v19, %v10704_v19  ;;  %v10705_v27 = vmax.f32 %v10703_v21, 0.0 }
 0x3fd   : > { %v10726_v29 = vpop.permute.xlu0 %10725 }
 0x3fe   : > { %11757 = vst.msk [vmem:[%s15278_s4 + $0x20] sm:$0xf] %vm10589_vm4, %v11797_v26  ;;  %v11798_v32 = vpack.c.bf16 %v10705_v27, %v10705_v27  ;;  %v10731_v35 = vmax.f32 %v15209_v53, %v10726_v29 }
 0x3ff   : > { %v10728_v33 = vpop.permute.xlu1 %10727 }
 0x400   : > { %11758 = vst.msk [vmem:[%s15278_s4 + $0x24] sm:$0x3] %vm10591_vm5, %v11798_v32  ;;  %v10733_v34 = vadd.f32 %v15269_v25, %v10731_v35  ;;  %v10732_v38 = vmax.f32 %v15212_v55, %v10728_v33 }
 0x402   : > { %v10735_v39 = vmax.f32 %v10733_v34, 0.0  ;;  %v10734_v41 = vadd.f32 %v15269_v25, %v10732_v38 }
 0x404   : > { %v11799_v59 = vpack.c.bf16 %v10735_v39, %v10735_v39  ;;  %v10736_v42 = vmax.f32 %v10734_v41, 0.0 }
 0x405   : > { %v10757_v43 = vpop.permute.xlu0 %10756 }
 0x406   : > { %11761 = vst.msk [vmem:[%s15278_s4 + $0x28] sm:$0xf] %vm10589_vm4, %v11799_v59  ;;  %v11800_v60 = vpack.c.bf16 %v10736_v42, %v10736_v42  ;;  %v10762_v53 = vmax.f32 %v15218_v51, %v10757_v43 }
 0x407   : > { %v10759_v58 = vpop.permute.xlu1 %10758 }
 0x408   : > { %11762 = vst.msk [vmem:[%s15278_s4 + $0x2c] sm:$0x3] %vm10591_vm5, %v11800_v60  ;;  %v10764_v44 = vadd.f32 %v15269_v25, %v10762_v53  ;;  %v10763_v55 = vmax.f32 %v15220_v63, %v10759_v58 }
 0x40a   : > { %v10766_v45 = vmax.f32 %v10764_v44, 0.0  ;;  %v10765_v46 = vadd.f32 %v15269_v25, %v10763_v55 }
 0x40c   : > { %v11801_v47 = vpack.c.bf16 %v10766_v45, %v10766_v45  ;;  %v10767_v52 = vmax.f32 %v10765_v46, 0.0 }
 0x40d   : > { %v10788_v54 = vpop.permute.xlu0 %10787 }
 0x40e   : > { %11765 = vst.msk [vmem:[%s15278_s4 + $0x30] sm:$0xf] %vm10589_vm4, %v11801_v47  ;;  %v11802_v56 = vpack.c.bf16 %v10767_v52, %v10767_v52  ;;  %v10793_v51 = vmax.f32 %v15226_v6, %v10788_v54 }
 0x40f   : > { %v10790_v2 = vpop.permute.xlu1 %10789 }
 0x410   : > { %11766 = vst.msk [vmem:[%s15278_s4 + $0x34] sm:$0x3] %vm10591_vm5, %v11802_v56  ;;  %v10795_v48 = vadd.f32 %v15269_v25, %v10793_v51  ;;  %v10794_v63 = vmax.f32 %v15228_v18, %v10790_v2 }
 0x412   : > { %v10797_v57 = vmax.f32 %v10795_v48, 0.0  ;;  %v10796_v31 = vadd.f32 %v15269_v25, %v10794_v63 }
 0x414   : > { %v11803_v50 = vpack.c.bf16 %v10797_v57, %v10797_v57  ;;  %v10798_v3 = vmax.f32 %v10796_v31, 0.0 }
 0x415   : > { %v10819_v30 = vpop.permute.xlu0 %10818 }
 0x416   : > { %11769 = vst.msk [vmem:[%s15278_s4 + $0x38] sm:$0xf] %vm10589_vm4, %v11803_v50  ;;  %v11804_v61 = vpack.c.bf16 %v10798_v3, %v10798_v3  ;;  %v10824_v6 = vmax.f32 %v15234_v36, %v10819_v30 }
 0x417   : > { %v10821_v28 = vpop.permute.xlu1 %10820 }
 0x418   : > { %11770 = vst.msk [vmem:[%s15278_s4 + $0x3c] sm:$0x3] %vm10591_vm5, %v11804_v61  ;;  %v10826_v4 = vadd.f32 %v15269_v25, %v10824_v6  ;;  %v10825_v18 = vmax.f32 %v15236_v40, %v10821_v28 }
 0x41a   : > { %v10828_v62 = vmax.f32 %v10826_v4, 0.0  ;;  %v10827_v14 = vadd.f32 %v15269_v25, %v10825_v18 }
 0x41c   : > { %v11805_v0 = vpack.c.bf16 %v10828_v62, %v10828_v62  ;;  %v10829_v7 = vmax.f32 %v10827_v14, 0.0 }
 0x41d   : > { %v10850_v1 = vpop.permute.xlu0 %10849 }
 0x41e   : > { %11773 = vst.msk [vmem:[%s15278_s4 + $0x40] sm:$0xf] %vm10589_vm4, %v11805_v0  ;;  %v11806_v5 = vpack.c.bf16 %v10829_v7, %v10829_v7  ;;  %v10855_v36 = vmax.f32 %v15242_v37, %v10850_v1 }
 0x41f   : > { %v10852_v8 = vpop.permute.xlu1 %10851 }
 0x420   : > { %11774 = vst.msk [vmem:[%s15278_s4 + $0x44] sm:$0x3] %vm10591_vm5, %v11806_v5  ;;  %v10857_v11 = vadd.f32 %v15269_v25, %v10855_v36  ;;  %v10856_v40 = vmax.f32 %v15244_v49, %v10852_v8 }
 0x422   : > { %v10859_v12 = vmax.f32 %v10857_v11, 0.0  ;;  %v10858_v13 = vadd.f32 %v15269_v25, %v10856_v40 }
 0x424   : > { %v11807_v10 = vpack.c.bf16 %v10859_v12, %v10859_v12  ;;  %v10860_v22 = vmax.f32 %v10858_v13, 0.0 }
 0x425   : > { %v10881_v15 = vpop.permute.xlu0 %10880 }
 0x426   : > { %11777 = vst.msk [vmem:[%s15278_s4 + $0x48] sm:$0xf] %vm10589_vm4, %v11807_v10  ;;  %v11808_v16 = vpack.c.bf16 %v10860_v22, %v10860_v22  ;;  %v10886_v37 = vmax.f32 %v15250_v17, %v10881_v15 }
 0x427   : > { %v10883_v24 = vpop.permute.xlu1 %10882 }
 0x428   : > { %11778 = vst.msk [vmem:[%s15278_s4 + $0x4c] sm:$0x3] %vm10591_vm5, %v11808_v16  ;;  %v10888_v19 = vadd.f32 %v15269_v25, %v10886_v37  ;;  %v10887_v49 = vmax.f32 %v15252_v9, %v10883_v24 }
 0x42a   : > { %v10890_v21 = vmax.f32 %v10888_v19, 0.0  ;;  %v10889_v26 = vadd.f32 %v15269_v25, %v10887_v49 }
 0x42c   : > { %v11809_v27 = vpack.c.bf16 %v10890_v21, %v10890_v21  ;;  %v10891_v29 = vmax.f32 %v10889_v26, 0.0 }
 0x42d   : > { %v10912_v32 = vpop.permute.xlu0 %10911 }
 0x42e   : > { %11781 = vst.msk [vmem:[%s15278_s4 + $0x50] sm:$0xf] %vm10589_vm4, %v11809_v27  ;;  %v11810_v35 = vpack.c.bf16 %v10891_v29, %v10891_v29  ;;  %v10917_v17 = vmax.f32 %v15258_v20, %v10912_v32 }
 0x42f   : > { %v10914_v33 = vpop.permute.xlu1 %10913 }
 0x430   : > { %11782 = vst.msk [vmem:[%s15278_s4 + $0x54] sm:$0x3] %vm10591_vm5, %v11810_v35  ;;  %v10919_v34 = vadd.f32 %v15269_v25, %v10917_v17  ;;  %v10918_v9 = vmax.f32 %v15260_v23, %v10914_v33 }
 0x432   : > { %v10921_v38 = vmax.f32 %v10919_v34, 0.0  ;;  %v10920_v39 = vadd.f32 %v15269_v25, %v10918_v9 }
 0x434   : > { %v11811_v41 = vpack.c.bf16 %v10921_v38, %v10921_v38  ;;  %v10922_v59 = vmax.f32 %v10920_v39, 0.0 }
 0x436   : > { %11785 = vst.msk [vmem:[%s15278_s4 + $0x58] sm:$0xf] %vm10589_vm4, %v11811_v41  ;;  %v11812_v42 = vpack.c.bf16 %v10922_v59, %v10922_v59 }
 0x438   : > { %11786 = vst.msk [vmem:[%s15278_s4 + $0x5c] sm:$0x3] %vm10591_vm5, %v11812_v42 }
 0x439 PF: > { %s13_s12 = sadd.s32 1, %s14017_s12  }
 0x43a   : > { %p10_p4 = scmp.ge.s32.totalorder %s13_s12, 4  }
 0x43c   :  { %12 = sbr.rel (!%p10_p4) target bundleno = 1 (0x1), region = 87 }

</bundles_post_ra>
